<compile_context>
chip_gen: v7x
topology: tpu7x:2x2x1
jax: 0.10.0
libtpu: 0.0.40
codegen_flags: <defaults>
</compile_context>

<pallas_src>
import jax
import jax.numpy as jnp
import numpy as np
from jax.experimental import pallas as pl
from jax.experimental.pallas import tpu as pltpu

EPS = 1e-8

# -------------------- model dimensions (small, synthetic) --------------------
N_LATENTS = 8      # n_latents
M1_SHAPE = 32      # m1_data_shape (cort_subcort features)
M2_SHAPE = 16      # m2_data_shape (hcm features)
COND_SHAPE = 4     # cond_shape (age condition)
BATCH = 8

WEIGHT_DTYPE = jnp.bfloat16   # set to jnp.float32 for bit-exact weights

# Rows processed per grid step.  128 works on all gens; use 256 on v6e/v7x to
# fill the 256-row MXU when real batches are that large.
TILE_M = 128

# Packed encoder-input layout (width 128):
#   [x1 (0:32) | c (32:36) | 0 (36:64) | x2 (64:80) | c (80:84) | 0 (84:128)]
X1_OFF, C_OFF, X2_OFF = 0, M1_SHAPE, 64
ENC_IN = 128
DEC_IN = 16                     # [z (0:8) | c (8:12) | 0 (12:16)]

# Bias-slab column offsets (all multiples of 128, all widths multiples of 128).
B_E1, B_E2, B_E3, B_E4, B_EH = 0, 128, 384, 896, 1920
B_D1, B_D2, B_D3, B_D4, B_D5 = 2048, 3072, 3584, 3840, 3968
BIAS_W = 4096

# Output slab layout (lane-dense, 128 wide):
#   [recon1 (0:32) | recon2 (32:48) | mu (48:56) | logvar (56:64) | pad (64:128)]
OUT_W = 128


# ------------------------------- Pallas kernel -------------------------------
def mvae_kernel(xc_ref, we128_ref, we256_ref, we512_ref, we1024_ref, b_ref,
                wd1_hbm, wd2_hbm, wd3_hbm, wd4_hbm, wd5_hbm,
                out_ref,
                wd1_v, wd2_v, wd3_v, wd4_v, wd5_v, dec_sem):
    step = pl.program_id(0)
    dec_hbm = (wd1_hbm, wd2_hbm, wd3_hbm, wd4_hbm, wd5_hbm)
    dec_vmem = (wd1_v, wd2_v, wd3_v, wd4_v, wd5_v)

    # Kick off decoder-weight DMA (HBM -> VMEM scratch) before the encoder
    # chain so it overlaps with encoder compute.  Scratch persists across grid
    # steps, so only step 0 copies (grid axis is "arbitrary" => sequential).
    @pl.when(step == 0)
    def _start_decoder_fetch():
        for i in range(5):
            pltpu.make_async_copy(dec_hbm[i], dec_vmem[i], dec_sem.at[i]).start()

    xc = xc_ref[...]                                   # (TILE_M, 128) f32
    c = xc[:, C_OFF:C_OFF + COND_SHAPE]                # (TILE_M, 4)

    def dot(h, w):                                     # bf16 MXU, f32 accumulate
        return jnp.dot(h.astype(w.dtype), w, preferred_element_type=jnp.float32)

    def bias(off, width):
        return b_ref[:, off:off + width]               # (1, width) f32, bcast

    # ---- both encoders fused into one block-diagonal chain ----
    h = jax.nn.relu(dot(xc, we128_ref[:, 0:128]) + bias(B_E1, 128))      # fc1
    h = jax.nn.relu(dot(h, we128_ref[:, 128:384]) + bias(B_E2, 256))     # fc2
    h = jax.nn.relu(dot(h, we256_ref[...]) + bias(B_E3, 512))            # fc3
    h = jax.nn.relu(dot(h, we512_ref[...]) + bias(B_E4, 1024))           # fc4
    head = dot(h, we1024_ref[...]) + bias(B_EH, 128)   # mu1|lv1|mu2|lv2|pad
    mu1, lv1 = head[:, 0:8], head[:, 8:16]
    mu2, lv2 = head[:, 16:24], head[:, 24:32]

    # ---- Product of Experts over {prior(0,0), expert1, expert2} ----
    # var = exp(logvar) + eps ; T = 1/(var + eps).  Arrays are (TILE_M, 8), so
    # exact reciprocals/divides are essentially free and avoid compounding
    # approx-reciprocal error through the log.
    t0 = jnp.float32(1.0 / (1.0 + 2.0 * EPS))
    t1 = 1.0 / (jnp.exp(lv1) + 2.0 * EPS)
    t2 = 1.0 / (jnp.exp(lv2) + 2.0 * EPS)
    ts = t0 + t1 + t2
    pd_mu = (mu1 * t1 + mu2 * t2) / ts                 # prior mu contributes 0
    pd_logvar = jnp.log(1.0 / ts + EPS)

    # ---- reparametrize(): eval path (z = mu) ----
    z = pd_mu

    # Decoder weights must be resident now (copies were issued at entry).
    @pl.when(step == 0)
    def _wait_decoder_fetch():
        for i in range(5):
            pltpu.make_async_copy(dec_hbm[i], dec_vmem[i], dec_sem.at[i]).wait()

    # ---- both decoders: shared-LHS fc1 + block-diagonal fc2..fc5 ----
    zc = jnp.concatenate(
        [z, c, jnp.zeros((z.shape[0], DEC_IN - N_LATENTS - COND_SHAPE),
                         jnp.float32)], axis=-1)                          # (TILE_M, 16)
    h = jax.nn.relu(dot(zc, wd1_v[...]) + bias(B_D1, 1024))               # fc1
    h = jax.nn.relu(dot(h, wd2_v[...]) + bias(B_D2, 512))                 # fc2
    h = jax.nn.relu(dot(h, wd3_v[...]) + bias(B_D3, 256))                 # fc3
    h = jax.nn.relu(dot(h, wd4_v[...]) + bias(B_D4, 128))                 # fc4
    recon = jax.nn.sigmoid(dot(h, wd5_v[...]) + bias(B_D5, 128))          # fc5

    # Lane-dense output: one full 128-wide store (recon1|recon2 in lanes 0:48),
    # then overwrite lanes 48:64 with mu|logvar.  Padding lanes are don't-care.
    out_ref[...] = recon
    out_ref[:, 48:64] = jnp.concatenate([pd_mu, pd_logvar], axis=-1)


# ------------------------------ parameter setup ------------------------------
def _linear(key, fan_in, fan_out):
    kw, kb = jax.random.split(key)
    bound = 1.0 / (fan_in ** 0.5)
    w = jax.random.uniform(kw, (fan_in, fan_out), jnp.float32, -bound, bound)
    b = jax.random.uniform(kb, (fan_out,), jnp.float32, -bound, bound)
    return w, b


def init_params(key):
    """Natural (per-layer) parameters, weights stored (in, out)."""
    ks = iter(jax.random.split(key, 32))

    def enc(x_dim):
        p = {}
        p['w1'], p['b1'] = _linear(next(ks), x_dim + COND_SHAPE, 64)
        p['w2'], p['b2'] = _linear(next(ks), 64, 128)
        p['w3'], p['b3'] = _linear(next(ks), 128, 256)
        p['w4'], p['b4'] = _linear(next(ks), 256, 512)
        p['w51'], p['b51'] = _linear(next(ks), 512, N_LATENTS)
        p['w52'], p['b52'] = _linear(next(ks), 512, N_LATENTS)
        return p

    def dec(out_dim):
        p = {}
        p['w1'], p['b1'] = _linear(next(ks), N_LATENTS + COND_SHAPE, 512)
        p['w2'], p['b2'] = _linear(next(ks), 512, 256)
        p['w3'], p['b3'] = _linear(next(ks), 256, 128)
        p['w4'], p['b4'] = _linear(next(ks), 128, 64)
        p['w5'], p['b5'] = _linear(next(ks), 64, out_dim)
        return p

    return enc(M1_SHAPE), enc(M2_SHAPE), dec(M1_SHAPE), dec(M2_SHAPE)


def pack_params(params, weight_dtype=WEIGHT_DTYPE):
    """Host-side packing into tile-aligned, phase-grouped slabs (done once)."""
    e1, e2, d1, d2 = params
    f = lambda a: np.asarray(a, np.float32)

    def place(shape, blocks):
        m = np.zeros(shape, np.float32)
        for (r, c), a in blocks:
            a = f(a)
            m[r:r + a.shape[0], c:c + a.shape[1]] = a
        return m

    # fused (block-structured) weights; all widths are multiples of 128
    we1 = place((128, 128), [((0, 0), e1['w1']), ((64, 64), e2['w1'])])
    we2 = place((128, 256), [((0, 0), e1['w2']), ((64, 128), e2['w2'])])
    we3 = place((256, 512), [((0, 0), e1['w3']), ((128, 256), e2['w3'])])
    we4 = place((512, 1024), [((0, 0), e1['w4']), ((256, 512), e2['w4'])])
    we5 = place((1024, 128), [((0, 0), e1['w51']), ((0, 8), e1['w52']),
                              ((512, 16), e2['w51']), ((512, 24), e2['w52'])])
    wd1 = place((16, 1024), [((0, 0), d1['w1']), ((0, 512), d2['w1'])])
    wd2 = place((1024, 512), [((0, 0), d1['w2']), ((512, 256), d2['w2'])])
    wd3 = place((512, 256), [((0, 0), d1['w3']), ((256, 128), d2['w3'])])
    wd4 = place((256, 128), [((0, 0), d1['w4']), ((128, 64), d2['w4'])])
    wd5 = place((128, 128), [((0, 0), d1['w5']), ((64, 32), d2['w5'])])

    enc_w128 = np.concatenate([we1, we2], axis=1)      # (128, 384)

    bias = np.zeros((1, BIAS_W), np.float32)

    def put(off, a):
        a = f(a).reshape(-1)
        bias[0, off:off + a.shape[0]] = a

    put(B_E1, e1['b1']); put(B_E1 + 64, e2['b1'])
    put(B_E2, e1['b2']); put(B_E2 + 128, e2['b2'])
    put(B_E3, e1['b3']); put(B_E3 + 256, e2['b3'])
    put(B_E4, e1['b4']); put(B_E4 + 512, e2['b4'])
    put(B_EH, e1['b51']); put(B_EH + 8, e1['b52'])
    put(B_EH + 16, e2['b51']); put(B_EH + 24, e2['b52'])
    put(B_D1, d1['b1']); put(B_D1 + 512, d2['b1'])
    put(B_D2, d1['b2']); put(B_D2 + 256, d2['b2'])
    put(B_D3, d1['b3']); put(B_D3 + 128, d2['b3'])
    put(B_D4, d1['b4']); put(B_D4 + 64, d2['b4'])
    put(B_D5, d1['b5']); put(B_D5 + 32, d2['b5'])

    return {
        # encoder phase (auto-DMA'd via VMEM BlockSpecs, needed immediately)
        'enc_w128': jnp.asarray(enc_w128, weight_dtype),   # (128, 384)
        'enc_w256': jnp.asarray(we3, weight_dtype),        # (256, 512)
        'enc_w512': jnp.asarray(we4, weight_dtype),        # (512, 1024)
        'enc_w1024': jnp.asarray(we5, weight_dtype),       # (1024, 128)
        # decoder phase (left in HBM; manually DMA'd behind the encoder chain)
        'dec_w1': jnp.asarray(wd1, weight_dtype),          # (16, 1024)
        'dec_w2': jnp.asarray(wd2, weight_dtype),          # (1024, 512)
        'dec_w3': jnp.asarray(wd3, weight_dtype),          # (512, 256)
        'dec_w4': jnp.asarray(wd4, weight_dtype),          # (256, 128)
        'dec_w5': jnp.asarray(wd5, weight_dtype),          # (128, 128)
        'bias': jnp.asarray(bias, jnp.float32),            # (1, 4096)
    }


# --------------------------------- wrapper -----------------------------------
def mvae_2m_forward(cort_subcort, hcm, age_cond, packed, tile_m=TILE_M):
    batch = cort_subcort.shape[0]
    pad = lambda n: jnp.zeros((batch, n), jnp.float32)
    # one packed, lane-aligned activation slab: [x1|c|0 ... x2|c|0]
    xc = jnp.concatenate(
        [cort_subcort, age_cond, pad(X2_OFF - M1_SHAPE - COND_SHAPE),
         hcm, age_cond, pad(ENC_IN - X2_OFF - M2_SHAPE - COND_SHAPE)], axis=-1)

    # pad batch to a multiple of tile_m and run a grid over batch tiles;
    # weight BlockSpecs use constant index_maps, so weights are DMA'd once.
    padded = ((batch + tile_m - 1) // tile_m) * tile_m
    if padded != batch:
        xc = jnp.concatenate(
            [xc, jnp.zeros((padded - batch, ENC_IN), jnp.float32)], axis=0)
    n_tiles = padded // tile_m

    any_spec = pl.BlockSpec(memory_space=pl.ANY)
    full = lambda shape: pl.BlockSpec(shape, lambda i: (0, 0))

    grid_spec = pltpu.PrefetchScalarGridSpec(
        num_scalar_prefetch=0,
        grid=(n_tiles,),
        in_specs=[
            pl.BlockSpec((tile_m, ENC_IN), lambda i: (i, 0)),   # activations
            full((128, 384)),                                   # enc fc1+fc2
            full((256, 512)),                                   # enc fc3
            full((512, 1024)),                                  # enc fc4
            full((1024, 128)),                                  # enc heads
            full((1, BIAS_W)),                                  # all biases
            any_spec, any_spec, any_spec, any_spec, any_spec,   # dec w1..w5 (HBM)
        ],
        out_specs=pl.BlockSpec((tile_m, OUT_W), lambda i: (i, 0)),
        scratch_shapes=[
            pltpu.VMEM((16, 1024), WEIGHT_DTYPE),
            pltpu.VMEM((1024, 512), WEIGHT_DTYPE),
            pltpu.VMEM((512, 256), WEIGHT_DTYPE),
            pltpu.VMEM((256, 128), WEIGHT_DTYPE),
            pltpu.VMEM((128, 128), WEIGHT_DTYPE),
            pltpu.SemaphoreType.DMA((5,)),
        ],
    )

    # NOTE: "arbitrary" keeps the batch grid sequential so the step-0 decoder
    # prefetch into persistent scratch is valid.  For v7x 2-TC parallelism,
    # switch to ("parallel",) and issue/wait the decoder copies every step.
    out = pl.pallas_call(
        mvae_kernel,
        out_shape=jax.ShapeDtypeStruct((padded, OUT_W), jnp.float32),
        grid_spec=grid_spec,
        compiler_params=pltpu.CompilerParams(
            dimension_semantics=("arbitrary",)),
    )(xc, packed['enc_w128'], packed['enc_w256'], packed['enc_w512'],
      packed['enc_w1024'], packed['bias'],
      packed['dec_w1'], packed['dec_w2'], packed['dec_w3'], packed['dec_w4'],
      packed['dec_w5'])

    recon1 = out[:batch, 0:M1_SHAPE]
    recon2 = out[:batch, M1_SHAPE:M1_SHAPE + M2_SHAPE]
    mu = out[:batch, 48:48 + N_LATENTS]
    logvar = out[:batch, 56:56 + N_LATENTS]
    return recon1, recon2, mu, logvar


# ------------------------- pure-JAX f32 reference ----------------------------
def mvae_ref(x1, x2, c, params):
    e1, e2, d1, d2 = params

    def enc(x, p):
        h = jnp.concatenate([x, c], -1)
        h = jax.nn.relu(h @ p['w1'] + p['b1'])
        h = jax.nn.relu(h @ p['w2'] + p['b2'])
        h = jax.nn.relu(h @ p['w3'] + p['b3'])
        h = jax.nn.relu(h @ p['w4'] + p['b4'])
        return h @ p['w51'] + p['b51'], h @ p['w52'] + p['b52']

    def dec(z, p):
        h = jnp.concatenate([z, c], -1)
        h = jax.nn.relu(h @ p['w1'] + p['b1'])
        h = jax.nn.relu(h @ p['w2'] + p['b2'])
        h = jax.nn.relu(h @ p['w3'] + p['b3'])
        h = jax.nn.relu(h @ p['w4'] + p['b4'])
        return jax.nn.sigmoid(h @ p['w5'] + p['b5'])

    mu1, lv1 = enc(x1, e1)
    mu2, lv2 = enc(x2, e2)
    t0 = 1.0 / (1.0 + 2.0 * EPS)
    t1 = 1.0 / (jnp.exp(lv1) + 2.0 * EPS)
    t2 = 1.0 / (jnp.exp(lv2) + 2.0 * EPS)
    ts = t0 + t1 + t2
    mu = (mu1 * t1 + mu2 * t2) / ts
    lv = jnp.log(1.0 / ts + EPS)
    z = mu
    return dec(z, d1), dec(z, d2), mu, lv


# ----------------------------------- main -------------------------------------
if __name__ == "__main__":
    key = jax.random.PRNGKey(0)
    k_par, k1, k2, k3 = jax.random.split(key, 4)

    params = init_params(k_par)
    packed = pack_params(params)

    cort_subcort = jax.random.uniform(k1, (BATCH, M1_SHAPE), jnp.float32)
    hcm = jax.random.uniform(k2, (BATCH, M2_SHAPE), jnp.float32)
    age_cond = jax.random.uniform(k3, (BATCH, COND_SHAPE), jnp.float32)

    recon1, recon2, mu, logvar = jax.jit(mvae_2m_forward)(
        cort_subcort, hcm, age_cond, packed)
    jax.block_until_ready((recon1, recon2, mu, logvar))

    assert recon1.shape == (BATCH, M1_SHAPE)
    assert recon2.shape == (BATCH, M2_SHAPE)
    assert mu.shape == (BATCH, N_LATENTS)
    assert logvar.shape == (BATCH, N_LATENTS)
    assert bool(jnp.all(jnp.isfinite(recon1))) and bool(jnp.all(jnp.isfinite(logvar)))

    # loose check vs f32 reference (bf16 weights tolerance)
    r1, r2, m, lv = mvae_ref(cort_subcort, hcm, age_cond, params)
    max_diff = max(float(jnp.max(jnp.abs(a - b))) for a, b in
                   [(recon1, r1), (recon2, r2), (mu, m), (logvar, lv)])
    assert max_diff < 0.15, f"kernel deviates from reference: {max_diff}"

    print("KERNEL_OK")
</pallas_src>

<mosaic_0001>
module attributes {stable_mosaic.version = 11 : i64} {
  func.func @mvae_kernel(%arg0: i32, %arg1: memref<128x128xf32, #tpu.memory_space<vmem>>, %arg2: memref<128x384xbf16, #tpu.memory_space<vmem>>, %arg3: memref<256x512xbf16, #tpu.memory_space<vmem>>, %arg4: memref<512x1024xbf16, #tpu.memory_space<vmem>>, %arg5: memref<1024x128xbf16, #tpu.memory_space<vmem>>, %arg6: memref<1x4096xf32, #tpu.memory_space<vmem>>, %arg7: memref<16x1024xbf16, #tpu.memory_space<any>>, %arg8: memref<1024x512xbf16, #tpu.memory_space<any>>, %arg9: memref<512x256xbf16, #tpu.memory_space<any>>, %arg10: memref<256x128xbf16, #tpu.memory_space<any>>, %arg11: memref<128x128xbf16, #tpu.memory_space<any>>, %arg12: memref<128x128xf32, #tpu.memory_space<vmem>>, %arg13: memref<16x1024xbf16, #tpu.memory_space<vmem>>, %arg14: memref<1024x512xbf16, #tpu.memory_space<vmem>>, %arg15: memref<512x256xbf16, #tpu.memory_space<vmem>>, %arg16: memref<256x128xbf16, #tpu.memory_space<vmem>>, %arg17: memref<128x128xbf16, #tpu.memory_space<vmem>>, %arg18: memref<5x!tpu.dma_semaphore, #tpu.memory_space<semaphore_mem>>) attributes {dimension_semantics = [#tpu.dimension_semantics<arbitrary>], iteration_bounds = array<i64: 1>, scalar_prefetch = 0 : i64, scratch_operands = 6 : i64, tpu.core_type = #tpu.core_type<tc>, window_params = [{transform_indices = @transform_0, window_bounds = array<i64: 128, 128>}, {pipeline_mode = #tpu.pipeline_mode<synchronous>, transform_indices = @transform_1, window_bounds = array<i64: 128, 384>}, {pipeline_mode = #tpu.pipeline_mode<synchronous>, transform_indices = @transform_2, window_bounds = array<i64: 256, 512>}, {pipeline_mode = #tpu.pipeline_mode<synchronous>, transform_indices = @transform_3, window_bounds = array<i64: 512, 1024>}, {pipeline_mode = #tpu.pipeline_mode<synchronous>, transform_indices = @transform_4, window_bounds = array<i64: 1024, 128>}, {pipeline_mode = #tpu.pipeline_mode<synchronous>, transform_indices = @transform_5, window_bounds = array<i64: 1, 4096>}, {}, {}, {}, {}, {}, {transform_indices = @transform_11, window_bounds = array<i64: 128, 128>}]} {
    %c0_i32 = arith.constant 0 : i32
    %0 = arith.cmpi eq, %arg0, %c0_i32 : i32
    %1 = arith.extui %0 : i1 to i32
    %c0_i32_0 = arith.constant 0 : i32
    %2 = arith.cmpi ne, %1, %c0_i32_0 : i32
    scf.if %2 {
      %c0_i32_64 = arith.constant 0 : i32
      %120 = tpu.memref_slice %arg18[%c0_i32_64] : memref<5x!tpu.dma_semaphore, #tpu.memory_space<semaphore_mem>> -> memref<1x!tpu.dma_semaphore, #tpu.memory_space<semaphore_mem>>
      %121 = tpu.memref_squeeze %120 : memref<1x!tpu.dma_semaphore, #tpu.memory_space<semaphore_mem>> -> memref<!tpu.dma_semaphore, #tpu.memory_space<semaphore_mem>>
      tpu.enqueue_dma source(%arg7 : memref<16x1024xbf16, #tpu.memory_space<any>>) target(%arg13 : memref<16x1024xbf16, #tpu.memory_space<vmem>>) target_semaphore(%121 : memref<!tpu.dma_semaphore, #tpu.memory_space<semaphore_mem>>)
      %c1_i32 = arith.constant 1 : i32
      %122 = tpu.memref_slice %arg18[%c1_i32] : memref<5x!tpu.dma_semaphore, #tpu.memory_space<semaphore_mem>> -> memref<1x!tpu.dma_semaphore, #tpu.memory_space<semaphore_mem>>
      %123 = tpu.memref_squeeze %122 : memref<1x!tpu.dma_semaphore, #tpu.memory_space<semaphore_mem>> -> memref<!tpu.dma_semaphore, #tpu.memory_space<semaphore_mem>>
      tpu.enqueue_dma source(%arg8 : memref<1024x512xbf16, #tpu.memory_space<any>>) target(%arg14 : memref<1024x512xbf16, #tpu.memory_space<vmem>>) target_semaphore(%123 : memref<!tpu.dma_semaphore, #tpu.memory_space<semaphore_mem>>)
      %c2_i32 = arith.constant 2 : i32
      %124 = tpu.memref_slice %arg18[%c2_i32] : memref<5x!tpu.dma_semaphore, #tpu.memory_space<semaphore_mem>> -> memref<1x!tpu.dma_semaphore, #tpu.memory_space<semaphore_mem>>
      %125 = tpu.memref_squeeze %124 : memref<1x!tpu.dma_semaphore, #tpu.memory_space<semaphore_mem>> -> memref<!tpu.dma_semaphore, #tpu.memory_space<semaphore_mem>>
      tpu.enqueue_dma source(%arg9 : memref<512x256xbf16, #tpu.memory_space<any>>) target(%arg15 : memref<512x256xbf16, #tpu.memory_space<vmem>>) target_semaphore(%125 : memref<!tpu.dma_semaphore, #tpu.memory_space<semaphore_mem>>)
      %c3_i32 = arith.constant 3 : i32
      %126 = tpu.memref_slice %arg18[%c3_i32] : memref<5x!tpu.dma_semaphore, #tpu.memory_space<semaphore_mem>> -> memref<1x!tpu.dma_semaphore, #tpu.memory_space<semaphore_mem>>
      %127 = tpu.memref_squeeze %126 : memref<1x!tpu.dma_semaphore, #tpu.memory_space<semaphore_mem>> -> memref<!tpu.dma_semaphore, #tpu.memory_space<semaphore_mem>>
      tpu.enqueue_dma source(%arg10 : memref<256x128xbf16, #tpu.memory_space<any>>) target(%arg16 : memref<256x128xbf16, #tpu.memory_space<vmem>>) target_semaphore(%127 : memref<!tpu.dma_semaphore, #tpu.memory_space<semaphore_mem>>)
      %c4_i32 = arith.constant 4 : i32
      %128 = tpu.memref_slice %arg18[%c4_i32] : memref<5x!tpu.dma_semaphore, #tpu.memory_space<semaphore_mem>> -> memref<1x!tpu.dma_semaphore, #tpu.memory_space<semaphore_mem>>
      %129 = tpu.memref_squeeze %128 : memref<1x!tpu.dma_semaphore, #tpu.memory_space<semaphore_mem>> -> memref<!tpu.dma_semaphore, #tpu.memory_space<semaphore_mem>>
      tpu.enqueue_dma source(%arg11 : memref<128x128xbf16, #tpu.memory_space<any>>) target(%arg17 : memref<128x128xbf16, #tpu.memory_space<vmem>>) target_semaphore(%129 : memref<!tpu.dma_semaphore, #tpu.memory_space<semaphore_mem>>)
    } else {
    }
    %c0 = arith.constant 0 : index
    %c0_1 = arith.constant 0 : index
    %3 = vector.load %arg1[%c0, %c0_1] : memref<128x128xf32, #tpu.memory_space<vmem>>, vector<128x128xf32>
    %4 = vector.extract_strided_slice %3 {offsets = [0, 32], sizes = [128, 4], strides = [1, 1]} : vector<128x128xf32> to vector<128x4xf32>
    %c0_2 = arith.constant 0 : index
    %c0_3 = arith.constant 0 : index
    %5 = vector.load %arg2[%c0_2, %c0_3] : memref<128x384xbf16, #tpu.memory_space<vmem>>, vector<128x128xbf16>
    %6 = arith.truncf %3 : vector<128x128xf32> to vector<128x128xbf16>
    %cst = arith.constant dense<0.000000e+00> : vector<128x128xf32>
    %7 = tpu.matmul %6, %5, %cst {dimension_numbers = #tpu.dot_dimension_numbers<[1], [0], [0], [1], [0, 0, 1, 1], [], []>} : vector<128x128xbf16>, vector<128x128xbf16>, vector<128x128xf32> -> vector<128x128xf32>
    %c0_4 = arith.constant 0 : index
    %c0_5 = arith.constant 0 : index
    %8 = vector.load %arg6[%c0_4, %c0_5] : memref<1x4096xf32, #tpu.memory_space<vmem>>, vector<1x128xf32>
    %9 = vector.broadcast %8 : vector<1x128xf32> to vector<128x128xf32>
    %10 = arith.addf %7, %9 : vector<128x128xf32>
    %cst_6 = arith.constant 0.000000e+00 : f32
    %11 = vector.broadcast %cst_6 : f32 to vector<128x128xf32>
    %12 = arith.maximumf %10, %11 : vector<128x128xf32>
    %c0_7 = arith.constant 0 : index
    %c128 = arith.constant 128 : index
    %13 = vector.load %arg2[%c0_7, %c128] : memref<128x384xbf16, #tpu.memory_space<vmem>>, vector<128x256xbf16>
    %14 = arith.truncf %12 : vector<128x128xf32> to vector<128x128xbf16>
    %cst_8 = arith.constant dense<0.000000e+00> : vector<128x256xf32>
    %15 = tpu.matmul %14, %13, %cst_8 {dimension_numbers = #tpu.dot_dimension_numbers<[1], [0], [0], [1], [0, 0, 1, 1], [], []>} : vector<128x128xbf16>, vector<128x256xbf16>, vector<128x256xf32> -> vector<128x256xf32>
    %c0_9 = arith.constant 0 : index
    %c128_10 = arith.constant 128 : index
    %16 = vector.load %arg6[%c0_9, %c128_10] : memref<1x4096xf32, #tpu.memory_space<vmem>>, vector<1x256xf32>
    %17 = vector.broadcast %16 : vector<1x256xf32> to vector<128x256xf32>
    %18 = arith.addf %15, %17 : vector<128x256xf32>
    %cst_11 = arith.constant 0.000000e+00 : f32
    %19 = vector.broadcast %cst_11 : f32 to vector<128x256xf32>
    %20 = arith.maximumf %18, %19 : vector<128x256xf32>
    %c0_12 = arith.constant 0 : index
    %c0_13 = arith.constant 0 : index
    %21 = vector.load %arg3[%c0_12, %c0_13] : memref<256x512xbf16, #tpu.memory_space<vmem>>, vector<256x512xbf16>
    %22 = arith.truncf %20 : vector<128x256xf32> to vector<128x256xbf16>
    %cst_14 = arith.constant dense<0.000000e+00> : vector<128x512xf32>
    %23 = tpu.matmul %22, %21, %cst_14 {dimension_numbers = #tpu.dot_dimension_numbers<[1], [0], [0], [1], [0, 0, 1, 1], [], []>} : vector<128x256xbf16>, vector<256x512xbf16>, vector<128x512xf32> -> vector<128x512xf32>
    %c0_15 = arith.constant 0 : index
    %c384 = arith.constant 384 : index
    %24 = vector.load %arg6[%c0_15, %c384] : memref<1x4096xf32, #tpu.memory_space<vmem>>, vector<1x512xf32>
    %25 = vector.broadcast %24 : vector<1x512xf32> to vector<128x512xf32>
    %26 = arith.addf %23, %25 : vector<128x512xf32>
    %cst_16 = arith.constant 0.000000e+00 : f32
    %27 = vector.broadcast %cst_16 : f32 to vector<128x512xf32>
    %28 = arith.maximumf %26, %27 : vector<128x512xf32>
    %c0_17 = arith.constant 0 : index
    %c0_18 = arith.constant 0 : index
    %29 = vector.load %arg4[%c0_17, %c0_18] : memref<512x1024xbf16, #tpu.memory_space<vmem>>, vector<512x1024xbf16>
    %30 = arith.truncf %28 : vector<128x512xf32> to vector<128x512xbf16>
    %cst_19 = arith.constant dense<0.000000e+00> : vector<128x1024xf32>
    %31 = tpu.matmul %30, %29, %cst_19 {dimension_numbers = #tpu.dot_dimension_numbers<[1], [0], [0], [1], [0, 0, 1, 1], [], []>} : vector<128x512xbf16>, vector<512x1024xbf16>, vector<128x1024xf32> -> vector<128x1024xf32>
    %c0_20 = arith.constant 0 : index
    %c896 = arith.constant 896 : index
    %32 = vector.load %arg6[%c0_20, %c896] : memref<1x4096xf32, #tpu.memory_space<vmem>>, vector<1x1024xf32>
    %33 = vector.broadcast %32 : vector<1x1024xf32> to vector<128x1024xf32>
    %34 = arith.addf %31, %33 : vector<128x1024xf32>
    %cst_21 = arith.constant 0.000000e+00 : f32
    %35 = vector.broadcast %cst_21 : f32 to vector<128x1024xf32>
    %36 = arith.maximumf %34, %35 : vector<128x1024xf32>
    %c0_22 = arith.constant 0 : index
    %c0_23 = arith.constant 0 : index
    %37 = vector.load %arg5[%c0_22, %c0_23] : memref<1024x128xbf16, #tpu.memory_space<vmem>>, vector<1024x128xbf16>
    %38 = arith.truncf %36 : vector<128x1024xf32> to vector<128x1024xbf16>
    %cst_24 = arith.constant dense<0.000000e+00> : vector<128x128xf32>
    %39 = tpu.matmul %38, %37, %cst_24 {dimension_numbers = #tpu.dot_dimension_numbers<[1], [0], [0], [1], [0, 0, 1, 1], [], []>} : vector<128x1024xbf16>, vector<1024x128xbf16>, vector<128x128xf32> -> vector<128x128xf32>
    %c0_25 = arith.constant 0 : index
    %c1920 = arith.constant 1920 : index
    %40 = vector.load %arg6[%c0_25, %c1920] : memref<1x4096xf32, #tpu.memory_space<vmem>>, vector<1x128xf32>
    %41 = vector.broadcast %40 : vector<1x128xf32> to vector<128x128xf32>
    %42 = arith.addf %39, %41 : vector<128x128xf32>
    %43 = vector.extract_strided_slice %42 {offsets = [0, 0], sizes = [128, 8], strides = [1, 1]} : vector<128x128xf32> to vector<128x8xf32>
    %44 = vector.extract_strided_slice %42 {offsets = [0, 8], sizes = [128, 8], strides = [1, 1]} : vector<128x128xf32> to vector<128x8xf32>
    %45 = vector.extract_strided_slice %42 {offsets = [0, 16], sizes = [128, 8], strides = [1, 1]} : vector<128x128xf32> to vector<128x8xf32>
    %46 = vector.extract_strided_slice %42 {offsets = [0, 24], sizes = [128, 8], strides = [1, 1]} : vector<128x128xf32> to vector<128x8xf32>
    %47 = math.exp %44 : vector<128x8xf32>
    %cst_26 = arith.constant 2.000000e-08 : f32
    %48 = vector.broadcast %cst_26 : f32 to vector<128x8xf32>
    %49 = arith.addf %47, %48 : vector<128x8xf32>
    %cst_27 = arith.constant 1.000000e+00 : f32
    %50 = vector.broadcast %cst_27 : f32 to vector<128x8xf32>
    %51 = arith.divf %50, %49 : vector<128x8xf32>
    %52 = math.exp %46 : vector<128x8xf32>
    %cst_28 = arith.constant 2.000000e-08 : f32
    %53 = vector.broadcast %cst_28 : f32 to vector<128x8xf32>
    %54 = arith.addf %52, %53 : vector<128x8xf32>
    %cst_29 = arith.constant 1.000000e+00 : f32
    %55 = vector.broadcast %cst_29 : f32 to vector<128x8xf32>
    %56 = arith.divf %55, %54 : vector<128x8xf32>
    %cst_30 = arith.constant 1.000000e+00 : f32
    %57 = vector.broadcast %cst_30 : f32 to vector<128x8xf32>
    %58 = arith.addf %57, %51 : vector<128x8xf32>
    %59 = arith.addf %58, %56 : vector<128x8xf32>
    %60 = arith.mulf %43, %51 : vector<128x8xf32>
    %61 = arith.mulf %45, %56 : vector<128x8xf32>
    %62 = arith.addf %60, %61 : vector<128x8xf32>
    %63 = arith.divf %62, %59 : vector<128x8xf32>
    %cst_31 = arith.constant 1.000000e+00 : f32
    %64 = vector.broadcast %cst_31 : f32 to vector<128x8xf32>
    %65 = arith.divf %64, %59 : vector<128x8xf32>
    %cst_32 = arith.constant 9.99999993E-9 : f32
    %66 = vector.broadcast %cst_32 : f32 to vector<128x8xf32>
    %67 = arith.addf %65, %66 : vector<128x8xf32>
    %68 = math.log %67 : vector<128x8xf32>
    %c0_i32_33 = arith.constant 0 : i32
    %69 = arith.cmpi eq, %arg0, %c0_i32_33 : i32
    %70 = arith.extui %69 : i1 to i32
    %c0_i32_34 = arith.constant 0 : i32
    %71 = arith.cmpi ne, %70, %c0_i32_34 : i32
    scf.if %71 {
      %c0_i32_64 = arith.constant 0 : i32
      %120 = tpu.memref_slice %arg18[%c0_i32_64] : memref<5x!tpu.dma_semaphore, #tpu.memory_space<semaphore_mem>> -> memref<1x!tpu.dma_semaphore, #tpu.memory_space<semaphore_mem>>
      %121 = tpu.memref_squeeze %120 : memref<1x!tpu.dma_semaphore, #tpu.memory_space<semaphore_mem>> -> memref<!tpu.dma_semaphore, #tpu.memory_space<semaphore_mem>>
      tpu.wait_dma2 semaphore(%121 : memref<!tpu.dma_semaphore, #tpu.memory_space<semaphore_mem>>) src(%arg7 : memref<16x1024xbf16, #tpu.memory_space<any>>) dst(%arg13 : memref<16x1024xbf16, #tpu.memory_space<vmem>>)
      %c1_i32 = arith.constant 1 : i32
      %122 = tpu.memref_slice %arg18[%c1_i32] : memref<5x!tpu.dma_semaphore, #tpu.memory_space<semaphore_mem>> -> memref<1x!tpu.dma_semaphore, #tpu.memory_space<semaphore_mem>>
      %123 = tpu.memref_squeeze %122 : memref<1x!tpu.dma_semaphore, #tpu.memory_space<semaphore_mem>> -> memref<!tpu.dma_semaphore, #tpu.memory_space<semaphore_mem>>
      tpu.wait_dma2 semaphore(%123 : memref<!tpu.dma_semaphore, #tpu.memory_space<semaphore_mem>>) src(%arg8 : memref<1024x512xbf16, #tpu.memory_space<any>>) dst(%arg14 : memref<1024x512xbf16, #tpu.memory_space<vmem>>)
      %c2_i32 = arith.constant 2 : i32
      %124 = tpu.memref_slice %arg18[%c2_i32] : memref<5x!tpu.dma_semaphore, #tpu.memory_space<semaphore_mem>> -> memref<1x!tpu.dma_semaphore, #tpu.memory_space<semaphore_mem>>
      %125 = tpu.memref_squeeze %124 : memref<1x!tpu.dma_semaphore, #tpu.memory_space<semaphore_mem>> -> memref<!tpu.dma_semaphore, #tpu.memory_space<semaphore_mem>>
      tpu.wait_dma2 semaphore(%125 : memref<!tpu.dma_semaphore, #tpu.memory_space<semaphore_mem>>) src(%arg9 : memref<512x256xbf16, #tpu.memory_space<any>>) dst(%arg15 : memref<512x256xbf16, #tpu.memory_space<vmem>>)
      %c3_i32 = arith.constant 3 : i32
      %126 = tpu.memref_slice %arg18[%c3_i32] : memref<5x!tpu.dma_semaphore, #tpu.memory_space<semaphore_mem>> -> memref<1x!tpu.dma_semaphore, #tpu.memory_space<semaphore_mem>>
      %127 = tpu.memref_squeeze %126 : memref<1x!tpu.dma_semaphore, #tpu.memory_space<semaphore_mem>> -> memref<!tpu.dma_semaphore, #tpu.memory_space<semaphore_mem>>
      tpu.wait_dma2 semaphore(%127 : memref<!tpu.dma_semaphore, #tpu.memory_space<semaphore_mem>>) src(%arg10 : memref<256x128xbf16, #tpu.memory_space<any>>) dst(%arg16 : memref<256x128xbf16, #tpu.memory_space<vmem>>)
      %c4_i32 = arith.constant 4 : i32
      %128 = tpu.memref_slice %arg18[%c4_i32] : memref<5x!tpu.dma_semaphore, #tpu.memory_space<semaphore_mem>> -> memref<1x!tpu.dma_semaphore, #tpu.memory_space<semaphore_mem>>
      %129 = tpu.memref_squeeze %128 : memref<1x!tpu.dma_semaphore, #tpu.memory_space<semaphore_mem>> -> memref<!tpu.dma_semaphore, #tpu.memory_space<semaphore_mem>>
      tpu.wait_dma2 semaphore(%129 : memref<!tpu.dma_semaphore, #tpu.memory_space<semaphore_mem>>) src(%arg11 : memref<128x128xbf16, #tpu.memory_space<any>>) dst(%arg17 : memref<128x128xbf16, #tpu.memory_space<vmem>>)
    } else {
    }
    %cst_35 = arith.constant 0.000000e+00 : f32
    %72 = vector.broadcast %cst_35 : f32 to vector<128x4xf32>
    %73 = tpu.concatenate %63, %4, %72 in 1 : vector<128x8xf32>, vector<128x4xf32>, vector<128x4xf32> -> vector<128x16xf32>
    %c0_36 = arith.constant 0 : index
    %c0_37 = arith.constant 0 : index
    %74 = vector.load %arg13[%c0_36, %c0_37] : memref<16x1024xbf16, #tpu.memory_space<vmem>>, vector<16x1024xbf16>
    %75 = arith.truncf %73 : vector<128x16xf32> to vector<128x16xbf16>
    %cst_38 = arith.constant dense<0.000000e+00> : vector<128x1024xf32>
    %76 = tpu.matmul %75, %74, %cst_38 {dimension_numbers = #tpu.dot_dimension_numbers<[1], [0], [0], [1], [0, 0, 1, 1], [], []>} : vector<128x16xbf16>, vector<16x1024xbf16>, vector<128x1024xf32> -> vector<128x1024xf32>
    %c0_39 = arith.constant 0 : index
    %c2048 = arith.constant 2048 : index
    %77 = vector.load %arg6[%c0_39, %c2048] : memref<1x4096xf32, #tpu.memory_space<vmem>>, vector<1x1024xf32>
    %78 = vector.broadcast %77 : vector<1x1024xf32> to vector<128x1024xf32>
    %79 = arith.addf %76, %78 : vector<128x1024xf32>
    %cst_40 = arith.constant 0.000000e+00 : f32
    %80 = vector.broadcast %cst_40 : f32 to vector<128x1024xf32>
    %81 = arith.maximumf %79, %80 : vector<128x1024xf32>
    %c0_41 = arith.constant 0 : index
    %c0_42 = arith.constant 0 : index
    %82 = vector.load %arg14[%c0_41, %c0_42] : memref<1024x512xbf16, #tpu.memory_space<vmem>>, vector<1024x512xbf16>
    %83 = arith.truncf %81 : vector<128x1024xf32> to vector<128x1024xbf16>
    %cst_43 = arith.constant dense<0.000000e+00> : vector<128x512xf32>
    %84 = tpu.matmul %83, %82, %cst_43 {dimension_numbers = #tpu.dot_dimension_numbers<[1], [0], [0], [1], [0, 0, 1, 1], [], []>} : vector<128x1024xbf16>, vector<1024x512xbf16>, vector<128x512xf32> -> vector<128x512xf32>
    %c0_44 = arith.constant 0 : index
    %c3072 = arith.constant 3072 : index
    %85 = vector.load %arg6[%c0_44, %c3072] : memref<1x4096xf32, #tpu.memory_space<vmem>>, vector<1x512xf32>
    %86 = vector.broadcast %85 : vector<1x512xf32> to vector<128x512xf32>
    %87 = arith.addf %84, %86 : vector<128x512xf32>
    %cst_45 = arith.constant 0.000000e+00 : f32
    %88 = vector.broadcast %cst_45 : f32 to vector<128x512xf32>
    %89 = arith.maximumf %87, %88 : vector<128x512xf32>
    %c0_46 = arith.constant 0 : index
    %c0_47 = arith.constant 0 : index
    %90 = vector.load %arg15[%c0_46, %c0_47] : memref<512x256xbf16, #tpu.memory_space<vmem>>, vector<512x256xbf16>
    %91 = arith.truncf %89 : vector<128x512xf32> to vector<128x512xbf16>
    %cst_48 = arith.constant dense<0.000000e+00> : vector<128x256xf32>
    %92 = tpu.matmul %91, %90, %cst_48 {dimension_numbers = #tpu.dot_dimension_numbers<[1], [0], [0], [1], [0, 0, 1, 1], [], []>} : vector<128x512xbf16>, vector<512x256xbf16>, vector<128x256xf32> -> vector<128x256xf32>
    %c0_49 = arith.constant 0 : index
    %c3584 = arith.constant 3584 : index
    %93 = vector.load %arg6[%c0_49, %c3584] : memref<1x4096xf32, #tpu.memory_space<vmem>>, vector<1x256xf32>
    %94 = vector.broadcast %93 : vector<1x256xf32> to vector<128x256xf32>
    %95 = arith.addf %92, %94 : vector<128x256xf32>
    %cst_50 = arith.constant 0.000000e+00 : f32
    %96 = vector.broadcast %cst_50 : f32 to vector<128x256xf32>
    %97 = arith.maximumf %95, %96 : vector<128x256xf32>
    %c0_51 = arith.constant 0 : index
    %c0_52 = arith.constant 0 : index
    %98 = vector.load %arg16[%c0_51, %c0_52] : memref<256x128xbf16, #tpu.memory_space<vmem>>, vector<256x128xbf16>
    %99 = arith.truncf %97 : vector<128x256xf32> to vector<128x256xbf16>
    %cst_53 = arith.constant dense<0.000000e+00> : vector<128x128xf32>
    %100 = tpu.matmul %99, %98, %cst_53 {dimension_numbers = #tpu.dot_dimension_numbers<[1], [0], [0], [1], [0, 0, 1, 1], [], []>} : vector<128x256xbf16>, vector<256x128xbf16>, vector<128x128xf32> -> vector<128x128xf32>
    %c0_54 = arith.constant 0 : index
    %c3840 = arith.constant 3840 : index
    %101 = vector.load %arg6[%c0_54, %c3840] : memref<1x4096xf32, #tpu.memory_space<vmem>>, vector<1x128xf32>
    %102 = vector.broadcast %101 : vector<1x128xf32> to vector<128x128xf32>
    %103 = arith.addf %100, %102 : vector<128x128xf32>
    %cst_55 = arith.constant 0.000000e+00 : f32
    %104 = vector.broadcast %cst_55 : f32 to vector<128x128xf32>
    %105 = arith.maximumf %103, %104 : vector<128x128xf32>
    %c0_56 = arith.constant 0 : index
    %c0_57 = arith.constant 0 : index
    %106 = vector.load %arg17[%c0_56, %c0_57] : memref<128x128xbf16, #tpu.memory_space<vmem>>, vector<128x128xbf16>
    %107 = arith.truncf %105 : vector<128x128xf32> to vector<128x128xbf16>
    %cst_58 = arith.constant dense<0.000000e+00> : vector<128x128xf32>
    %108 = tpu.matmul %107, %106, %cst_58 {dimension_numbers = #tpu.dot_dimension_numbers<[1], [0], [0], [1], [0, 0, 1, 1], [], []>} : vector<128x128xbf16>, vector<128x128xbf16>, vector<128x128xf32> -> vector<128x128xf32>
    %c0_59 = arith.constant 0 : index
    %c3968 = arith.constant 3968 : index
    %109 = vector.load %arg6[%c0_59, %c3968] : memref<1x4096xf32, #tpu.memory_space<vmem>>, vector<1x128xf32>
    %110 = vector.broadcast %109 : vector<1x128xf32> to vector<128x128xf32>
    %111 = arith.addf %108, %110 : vector<128x128xf32>
    %112 = arith.negf %111 : vector<128x128xf32>
    %113 = math.exp %112 : vector<128x128xf32>
    %cst_60 = arith.constant 1.000000e+00 : f32
    %114 = vector.broadcast %cst_60 : f32 to vector<128x128xf32>
    %115 = arith.addf %114, %113 : vector<128x128xf32>
    %116 = arith.divf %114, %115 : vector<128x128xf32>
    %c0_61 = arith.constant 0 : index
    %c0_62 = arith.constant 0 : index
    %117 = vector.load %arg12[%c0_61, %c0_62] : memref<128x128xf32, #tpu.memory_space<vmem>>, vector<128x128xf32>
    tpu.vector_store %arg12[%c0_61, %c0_62], %116 {strides = array<i32>} : memref<128x128xf32, #tpu.memory_space<vmem>>, vector<128x128xf32>,
    %118 = tpu.concatenate %63, %68 in 1 : vector<128x8xf32>, vector<128x8xf32> -> vector<128x16xf32>
    %c0_63 = arith.constant 0 : index
    %c48 = arith.constant 48 : index
    %119 = vector.load %arg12[%c0_63, %c48] : memref<128x128xf32, #tpu.memory_space<vmem>>, vector<128x16xf32>
    tpu.vector_store %arg12[%c0_63, %c48], %118 {strides = array<i32>} : memref<128x128xf32, #tpu.memory_space<vmem>>, vector<128x16xf32>,
    return
  }
  func.func @transform_0(%arg0: i32) -> (i32, i32) {
    %c0_i32 = arith.constant 0 : i32
    %c0_i32_0 = arith.constant 0 : i32
    return %arg0, %c0_i32 : i32, i32
  }
  func.func @transform_1(%arg0: i32) -> (i32, i32) {
    %c0_i32 = arith.constant 0 : i32
    %c0_i32_0 = arith.constant 0 : i32
    %c0_i32_1 = arith.constant 0 : i32
    return %c0_i32, %c0_i32_0 : i32, i32
  }
  func.func @transform_2(%arg0: i32) -> (i32, i32) {
    %c0_i32 = arith.constant 0 : i32
    %c0_i32_0 = arith.constant 0 : i32
    %c0_i32_1 = arith.constant 0 : i32
    return %c0_i32, %c0_i32_0 : i32, i32
  }
  func.func @transform_3(%arg0: i32) -> (i32, i32) {
    %c0_i32 = arith.constant 0 : i32
    %c0_i32_0 = arith.constant 0 : i32
    %c0_i32_1 = arith.constant 0 : i32
    return %c0_i32, %c0_i32_0 : i32, i32
  }
  func.func @transform_4(%arg0: i32) -> (i32, i32) {
    %c0_i32 = arith.constant 0 : i32
    %c0_i32_0 = arith.constant 0 : i32
    %c0_i32_1 = arith.constant 0 : i32
    return %c0_i32, %c0_i32_0 : i32, i32
  }
  func.func @transform_5(%arg0: i32) -> (i32, i32) {
    %c0_i32 = arith.constant 0 : i32
    %c0_i32_0 = arith.constant 0 : i32
    %c0_i32_1 = arith.constant 0 : i32
    return %c0_i32, %c0_i32_0 : i32, i32
  }
  func.func @transform_11(%arg0: i32) -> (i32, i32) {
    %c0_i32 = arith.constant 0 : i32
    %c0_i32_0 = arith.constant 0 : i32
    return %arg0, %c0_i32 : i32, i32
  }
}

</mosaic_0001>

<bundles_post_ra>
// kernel: mvae_2m_forward.1
= control target key start
LH: loop header
LB: loop body
LE: loop exit
PB: predicated region body
PF: predicated region fallthrough
CT: control target
= control target key end

     0   :  { %16 = vsyncpa [#allocation9], 0  ;;  %s13183_s0 = inlined_call_operand.vmem [shape: f32[128,128], index: 0, kind: input, shape index: {}]   ;;  %s13184_s1 = inlined_call_operand.vmem [shape: bf16[128,384], index: 1, kind: input, shape index: {}]   ;;  %s13185_s2 = inlined_call_operand.hbm [shape: bf16[256,512], index: 2, kind: input, shape index: {}]   ;;  %s13186_s3 = inlined_call_operand.hbm [shape: bf16[512,1024], index: 3, kind: input, shape index: {}]   ;;  %s13187_s4 = inlined_call_operand.hbm [shape: bf16[1024,128], index: 4, kind: input, shape index: {}]   ;;  %s13188_s5 = inlined_call_operand.hbm [shape: f32[1,4096], index: 5, kind: input, shape index: {}]   ;;  %s13189_s6 = inlined_call_operand.vmem [shape: bf16[16,1024], index: 6, kind: input, shape index: {}]   ;;  %s13190_s7 = inlined_call_operand.hbm [shape: bf16[1024,512], index: 7, kind: input, shape index: {}]   ;;  %s13191_s8 = inlined_call_operand.hbm [shape: bf16[512,256], index: 8, kind: input, shape index: {}]   ;;  %s13192_s9 = inlined_call_operand.hbm [shape: bf16[256,128], index: 9, kind: input, shape index: {}]   ;;  %s13193_s10 = inlined_call_operand.hbm [shape: bf16[128,128], index: 10, kind: input, shape index: {}]   ;;  %s13194_s11 = inlined_call_operand.vmem [shape: f32[128,128], index: 11, kind: output, shape index: {}]  }
   0x1   :  { %17 = vsyncpa [#allocation11], 0 }
   0x2   :  { %18 = vsyncpa [#allocation14], 0  ;;  %s10679_s17 = smov [#allocation10]   ;;  %s10531_s21 = scalar_lea.hbm %s13186_s3, 32768 }
   0x3   :  { %s40_s18 = sshll.u32 %s10679_s17, 4  ;;  %p10532_p0 = scmp.ne.s32.totalorder %s13186_s3, %s10531_s21  ;;  %s41_s18 = int_to_ptr.vmem [resolvable:$true] %s40_s18 }
   0x4   :  { %p10535_p1 = scmp.lt.u32.totalorder %s10531_s21, %s13186_s3 }
   0x6   :  { %p10537_p2 = pnand %p10535_p1, %p10532_p0 }
   0x8   :  { %10540 = shalt.err (!%p10537_p2)
}
   0x9   :  { %s10541_s26 = scalar_lea.vmem %s41_s18, 32768  ;;  %p10546_p4 = scmp.lt.s32.totalorder %s41_s18, %s41_s18 }
   0xa   :  { %p10542_p3 = scmp.ne.s32.totalorder %s41_s18, %s10541_s26  ;;  %p10547_p5 = scmp.lt.s32.totalorder %s10541_s26, %s10541_s26 }
   0xc   :  { %p10548_p6 = por %p10547_p5, %p10546_p4 }
   0xe   :  { %p10549_p7 = pnand %p10548_p6, %p10542_p3 }
  0x10   :  { %10552 = shalt.err (!%p10549_p7)
}
  0x11   :  { %s10680_s27 = smov 512   ;;  %s10681_s28 = smov 32  }
  0x12   :  { %46 = dma.hbm_to_vmem [thread:$0]  %s13186_s3, 32768, %s41_s18, [#allocation11], %s10680_s27, %s10680_s27, %s10681_s28  }
  0x13   :  { %s10682_s12 = smov [#allocation8]   ;;  %s10553_s16 = scalar_lea.hbm %s13185_s2, 8192 }
  0x14   :  { %s28_s13 = sshll.u32 %s10682_s12, 4  ;;  %p10554_p8 = scmp.ne.s32.totalorder %s13185_s2, %s10553_s16  ;;  %s29_s13 = int_to_ptr.vmem [resolvable:$true] %s28_s13 }
  0x15   :  { %p10557_p9 = scmp.lt.u32.totalorder %s10553_s16, %s13185_s2 }
  0x17   :  { %p10559_p10 = pnand %p10557_p9, %p10554_p8 }
  0x19   :  { %10562 = shalt.err (!%p10559_p10)
}
  0x1a   :  { %s10563_s22 = scalar_lea.vmem %s29_s13, 8192  ;;  %p10568_p12 = scmp.lt.s32.totalorder %s29_s13, %s29_s13 }
  0x1b   :  { %p10564_p11 = scmp.ne.s32.totalorder %s29_s13, %s10563_s22  ;;  %p10569_p13 = scmp.lt.s32.totalorder %s10563_s22, %s10563_s22 }
  0x1d   :  { %p10570_p0 = por %p10569_p13, %p10568_p12 }
  0x1f   :  { %p10571_p1 = pnand %p10570_p0, %p10564_p11 }
  0x21   :  { %10574 = shalt.err (!%p10571_p1)
}
  0x22   :  { %s10683_s3 = smov 256   ;;  %s10684_s18 = smov 16  }
  0x23   :  { %34 = dma.hbm_to_vmem [thread:$0]  %s13185_s2, 8192, %s29_s13, [#allocation9], %s10683_s3, %s10683_s3, %s10684_s18  }
  0x24   :  { %s10685_s25 = smov [#allocation12]   ;;  %s10575_s29 = scalar_lea.hbm %s13187_s4, 8192 }
  0x25   :  { %s52_s26 = sshll.u32 %s10685_s25, 4  ;;  %p10576_p2 = scmp.ne.s32.totalorder %s13187_s4, %s10575_s29  ;;  %s53_s26 = int_to_ptr.vmem [resolvable:$true] %s52_s26 }
  0x26   :  { %p10579_p3 = scmp.lt.u32.totalorder %s10575_s29, %s13187_s4 }
  0x28   :  { %p10581_p4 = pnand %p10579_p3, %p10576_p2 }
  0x2a   :  { %10584 = shalt.err (!%p10581_p4)
}
  0x2b   :  { %s10585_s16 = scalar_lea.vmem %s53_s26, 8192  ;;  %p10590_p6 = scmp.lt.s32.totalorder %s53_s26, %s53_s26 }
  0x2c   :  { %p10586_p5 = scmp.ne.s32.totalorder %s53_s26, %s10585_s16  ;;  %p10591_p7 = scmp.lt.s32.totalorder %s10585_s16, %s10585_s16 }
  0x2e   :  { %p10592_p8 = por %p10591_p7, %p10590_p6 }
  0x30   :  { %p10593_p9 = pnand %p10592_p8, %p10586_p5 }
  0x32   :  { %10596 = shalt.err (!%p10593_p9)
}
  0x33   :  { %s10686_s2 = smov 64   ;;  %s10687_s13 = smov 4  }
  0x34   :  { %58 = dma.hbm_to_vmem [thread:$0]  %s13187_s4, 8192, %s53_s26, [#allocation11], %s10686_s2, %s10686_s2, %s10687_s13  }
  0x35   :  { %s10688_s20 = smov [#allocation13]   ;;  %s10597_s18 = scalar_lea.hbm %s13188_s5, 512 }
  0x36   :  { %s65_s21 = sshll.u32 %s10688_s20, 4  ;;  %p10598_p10 = scmp.ne.s32.totalorder %s13188_s5, %s10597_s18  ;;  %s66_s21 = int_to_ptr.vmem [resolvable:$true] %s65_s21 }
  0x37   :  { %p10601_p11 = scmp.lt.u32.totalorder %s10597_s18, %s13188_s5 }
  0x39   :  { %p10603_p12 = pnand %p10601_p11, %p10598_p10 }
  0x3b   :  { %10606 = shalt.err (!%p10603_p12)
}
  0x3c   :  { %s10607_s28 = scalar_lea.vmem %s66_s21, 512  ;;  %p10612_p0 = scmp.lt.s32.totalorder %s66_s21, %s66_s21 }
  0x3d   :  { %p10608_p13 = scmp.ne.s32.totalorder %s66_s21, %s10607_s28  ;;  %p10613_p1 = scmp.lt.s32.totalorder %s10607_s28, %s10607_s28 }
  0x3f   :  { %p10614_p2 = por %p10613_p1, %p10612_p0 }
  0x41   :  { %p10615_p3 = pnand %p10614_p2, %p10608_p13 }
  0x43   :  { %10618 = shalt.err (!%p10615_p3)
}
  0x44   :  { %68 = dma.hbm_to_vmem [thread:$0]  %s13188_s5, 512, %s66_s21, [#allocation14]  }
  0x45   :  { %10663 = dma.done.wait [#allocation9], 8192  }
  0x46   :  { %10664 = vsyncadd [#allocation9], 4294959104 }
  0x47   :  { %10665 = dma.done.wait [#allocation11], 40960  }
  0x48   :  { %10666 = vsyncadd [#allocation11], 4294926336 }
  0x49   :  { %10667 = dma.done.wait [#allocation14], 512  }
  0x4a   :  { %10668 = vsyncadd [#allocation14], 4294966784 }
  0x4b   :  { %v103_v0 = vld [vmem:[%s13189_s6] sm:$0xf]  ;;  %v107_v2 = vld [vmem:[%s13189_s6 + $0x4] sm:$0xf]  ;;  %v111_v4 = vld [vmem:[%s13189_s6 + $0x8] sm:$0xf] }
  0x4c   :  { %v105_v1 = vld [vmem:[%s13189_s6 + $0x20] sm:$0xf]  ;;  %104 = vst [vmem:[#allocation2] sm:$0xf] %v103_v0  ;;  %108 = vst [vmem:[#allocation2 + $0x8] sm:$0xf] %v107_v2 }
  0x4d   :  { %106 = vst [vmem:[#allocation2 + $0x4] sm:$0xf] %v105_v1  ;;  %v109_v3 = vld [vmem:[%s13189_s6 + $0x24] sm:$0xf]  ;;  %v113_v5 = vld [vmem:[%s13189_s6 + $0x28] sm:$0xf] }
  0x4e   :  { %110 = vst [vmem:[#allocation2 + $0xc] sm:$0xf] %v109_v3  ;;  %112 = vst [vmem:[#allocation2 + $0x10] sm:$0xf] %v111_v4  ;;  %v115_v6 = vld [vmem:[%s13189_s6 + $0xc] sm:$0xf] }
  0x4f   :  { %114 = vst [vmem:[#allocation2 + $0x14] sm:$0xf] %v113_v5  ;;  %v117_v7 = vld [vmem:[%s13189_s6 + $0x2c] sm:$0xf]  ;;  %v119_v8 = vld [vmem:[%s13189_s6 + $0x10] sm:$0xf] }
  0x50   :  { %116 = vst [vmem:[#allocation2 + $0x18] sm:$0xf] %v115_v6  ;;  %118 = vst [vmem:[#allocation2 + $0x1c] sm:$0xf] %v117_v7  ;;  %v121_v9 = vld [vmem:[%s13189_s6 + $0x30] sm:$0xf] }
  0x51   :  { %120 = vst [vmem:[#allocation2 + $0x20] sm:$0xf] %v119_v8  ;;  %v123_v10 = vld [vmem:[%s13189_s6 + $0x14] sm:$0xf]  ;;  %122 = vst [vmem:[#allocation2 + $0x24] sm:$0xf] %v121_v9 }
  0x52   :  { %v125_v11 = vld [vmem:[%s13189_s6 + $0x34] sm:$0xf]  ;;  %124 = vst [vmem:[#allocation2 + $0x28] sm:$0xf] %v123_v10  ;;  %v127_v12 = vld [vmem:[%s13189_s6 + $0x18] sm:$0xf] }
  0x53   :  { %126 = vst [vmem:[#allocation2 + $0x2c] sm:$0xf] %v125_v11  ;;  %v129_v13 = vld [vmem:[%s13189_s6 + $0x38] sm:$0xf]  ;;  %v131_v14 = vld [vmem:[%s13189_s6 + $0x1c] sm:$0xf] }
  0x54   :  { %128 = vst [vmem:[#allocation2 + $0x30] sm:$0xf] %v127_v12  ;;  %130 = vst [vmem:[#allocation2 + $0x34] sm:$0xf] %v129_v13  ;;  %v133_v15 = vld [vmem:[%s13189_s6 + $0x3c] sm:$0xf] }
  0x55   :  { %132 = vst [vmem:[#allocation2 + $0x38] sm:$0xf] %v131_v14  ;;  %134 = vst [vmem:[#allocation2 + $0x3c] sm:$0xf] %v133_v15 }
  0x56   :  { %197 = vsyncadd [#allocation7], 1024  ;;  %s203_s17 = sld [smem:[#allocation0]]   ;;  %s10689_s19 = smov [#allocation3]  }
  0x57   :  { %s211_s20 = sshll.u32 %s10689_s19, 4  ;;  %s10690_s21 = smov 512   ;;  %s212_s20 = int_to_ptr.vmem [resolvable:$true] %s211_s20 }
  0x58   :  { %215 = sst [smem:[#allocation17]] %s10690_s21  ;;  %s10691_s22 = smov 4  }
  0x59   :  { %217 = sst [smem:[#allocation17 + $0x1]] %s10690_s21  ;;  %s10692_s3 = smov 64  }
  0x5a   :  { %219 = sst [smem:[#allocation17 + $0x2]] %s10691_s22  ;;  %s10693_s23 = smov 128  }
  0x5b   :  { %221 = sst [smem:[#allocation17 + $0x3]] %s10692_s3  ;;  %s10694_s6 = smov 2  }
  0x5c   :  { %s8583_s18 = sshll.u32 %s203_s17, 26  ;;  %223 = sst [smem:[#allocation17 + $0x4]] %s10693_s23 }
  0x5d   :  { %s10865_s24 = sadd.s32 134217728, %s8583_s18  ;;  %225 = sst [smem:[#allocation17 + $0x5]] %s10694_s6 }
  0x5e   :  { %s10695_s25 = smov 256   ;;  %229 = sst [smem:[#allocation17 + $0x7]] %s10692_s3 }
  0x5f   :  { %227 = sst [smem:[#allocation17 + $0x6]] %s10695_s25  ;;  %s10696_s27 = smov [#allocation7 + $0x1]  }
  0x60   :  { %231 = sst [smem:[#allocation17 + $0x8]] %s10691_s22  ;;  %s10697_s28 = smov [#allocation16]  }
  0x61   :  { %233 = dma.general %s13190_s7, 32768, %s212_s20, %s10696_s27, %s10697_s28, [#allocation17], %s10865_s24, 0  }
  0x62   :  { %250 = sst [smem:[#allocation19]] %s10695_s25  ;;  %s10698_s29 = smov [#allocation4]  }
  0x63   :  { %s246_s30 = sshll.u32 %s10698_s29, 4  ;;  %252 = sst [smem:[#allocation19 + $0x1]] %s10695_s25  ;;  %s247_s30 = int_to_ptr.vmem [resolvable:$true] %s246_s30 }
  0x64   :  { %254 = sst [smem:[#allocation19 + $0x2]] %s10694_s6  ;;  %s10699_s12 = smov [#allocation5]  }
  0x65   :  { %256 = sst [smem:[#allocation19 + $0x3]] %s10692_s3  ;;  %s277_s14 = sshll.u32 %s10699_s12, 4  ;;  %s278_s14 = int_to_ptr.vmem [resolvable:$true] %s277_s14 }
  0x66   :  { %258 = sst [smem:[#allocation19 + $0x4]] %s10693_s23  ;;  %s10700_s15 = smov [#allocation6]  }
  0x67   :  { %260 = sst [smem:[#allocation19 + $0x5]] %s10694_s6  ;;  %s289_s16 = sshll.u32 %s10700_s15, 4  ;;  %s290_s16 = int_to_ptr.vmem [resolvable:$true] %s289_s16 }
  0x68   :  { %262 = sst [smem:[#allocation19 + $0x6]] %s10693_s23  ;;  %s10701_s7 = smov [#allocation7 + $0x2]  }
  0x69   :  { %264 = sst [smem:[#allocation19 + $0x7]] %s10692_s3  ;;  %s10702_s5 = smov [#allocation18]  }
  0x6a   :  { %266 = sst [smem:[#allocation19 + $0x8]] %s10691_s22  ;;  %s10619_s20 = scalar_lea.hbm %s13192_s9, 2048 }
  0x6b   :  { %268 = dma.general %s13191_s8, 8192, %s247_s30, %s10701_s7, %s10702_s5, [#allocation19], %s10865_s24, 0  }
  0x6c   :  { %p10620_p4 = scmp.ne.s32.totalorder %s13192_s9, %s10619_s20  ;;  %p10623_p5 = scmp.lt.u32.totalorder %s10619_s20, %s13192_s9 }
  0x6e   :  { %p10625_p6 = pnand %p10623_p5, %p10620_p4 }
  0x70   :  { %10628 = shalt.err (!%p10625_p6)  }
  0x71   :  { %s10629_s22 = scalar_lea.vmem %s278_s14, 2048  ;;  %p10634_p8 = scmp.lt.s32.totalorder %s278_s14, %s278_s14 }
  0x72   :  { %p10630_p7 = scmp.ne.s32.totalorder %s278_s14, %s10629_s22  ;;  %p10635_p9 = scmp.lt.s32.totalorder %s10629_s22, %s10629_s22 }
  0x74   :  { %p10636_p10 = por %p10635_p9, %p10634_p8 }
  0x76   :  { %p10637_p11 = pnand %p10636_p10, %p10630_p7 }
  0x78   :  { %10640 = shalt.err (!%p10637_p11)  }
  0x79   :  { %280 = dma.hbm_to_vmem [thread:$0]  %s13192_s9, 2048, %s278_s14, [#allocation7 + $0x3] }
  0x7a   :  { %s10641_s27 = scalar_lea.hbm %s13193_s10, 1024 }
  0x7b   :  { %p10642_p12 = scmp.ne.s32.totalorder %s13193_s10, %s10641_s27  ;;  %p10645_p13 = scmp.lt.u32.totalorder %s10641_s27, %s13193_s10 }
  0x7d   :  { %p10647_p0 = pnand %p10645_p13, %p10642_p12 }
  0x7f   :  { %10650 = shalt.err (!%p10647_p0)  }
  0x80   :  { %s10651_s30 = scalar_lea.vmem %s290_s16, 1024  ;;  %p10656_p2 = scmp.lt.s32.totalorder %s290_s16, %s290_s16 }
  0x81   :  { %p10652_p1 = scmp.ne.s32.totalorder %s290_s16, %s10651_s30  ;;  %p10657_p3 = scmp.lt.s32.totalorder %s10651_s30, %s10651_s30 }
  0x83   :  { %p10658_p4 = por %p10657_p3, %p10656_p2 }
  0x85   :  { %p10659_p5 = pnand %p10658_p4, %p10652_p1 }
  0x87   :  { %10662 = shalt.err (!%p10659_p5)  }
  0x88   :  { %292 = dma.hbm_to_vmem [thread:$0]  %s13193_s10, 1024, %s290_s16, [#allocation7 + $0x4]  ;;  %v10075_v16 = vld [vmem:[%s13184_s1] ss:$12 sps:$4 sm:$0xff]   ;;  %v10076_v17 = vld [vmem:[%s13184_s1 + $0x18] ss:$12 sps:$4 sm:$0xff]  }
  0x89   :  { %9404 = vmatprep.subr.bf16.mxu0 %v10075_v16  ;;  %v10077_v18 = vld [vmem:[%s13184_s1 + $0x30] ss:$12 sps:$4 sm:$0xff]   ;;  %v10078_v19 = vld [vmem:[%s13184_s1 + $0x48] ss:$12 sps:$4 sm:$0xff]   ;;  %v10916_v20 = vld [vmem:[%s13183_s0] sm:$0xff]  ;;  %v13195_v0 = vmov 0  }
  0x8a   :  { %9405 = vmatpush3.bf16.msra.mxu0 %v10075_v16  ;;  %13235 = vst [vmem:[#allocation34_spill] sm:$0xff] %v10916_v20  ;;  %v10921_v21 = vld [vmem:[%s13183_s0 + $0x8] sm:$0xff]  ;;  %v10085_v25 = vld [vmem:[%s13184_s1 + $0x4] ss:$12 sps:$4 sm:$0xff]   ;;  %v10091_v31 = vld [vmem:[%s13184_s1 + $0x34] ss:$12 sps:$4 sm:$0xff]   ;;  %649 = vmatprep.mubr.bf16.mxu1 %v13195_v0 }
  0x8b   :  { %9406 = vmatprep.subr.bf16.mxu0 %v10076_v17  ;;  %13236 = vst [vmem:[#allocation35_spill] sm:$0xff] %v10921_v21  ;;  %v325_v22 = vpack.c.bf16 %v10921_v21, %v10916_v20  ;;  %v10079_v23 = vld [vmem:[%s13184_s1 + $0x60] ss:$12 sps:$4 sm:$0xff]   ;;  %v10083_v24 = vld [vmem:[%s13184_s1 + $0x8] ss:$12 sps:$4 sm:$0xff]   ;;  %v10972_v37 = vld [vmem:[%s13183_s0 + $0x18] sm:$0xff] }
  0x8c   :  { %v10086_v26 = vld [vmem:[%s13184_s1 + $0x20] ss:$12 sps:$4 sm:$0xff]   ;;  %v10080_v27 = vld [vmem:[%s13184_s1 + $0x78] ss:$12 sps:$4 sm:$0xff]   ;;  %617 = vmatprep.subr.bf16.mxu1 %v10083_v24  ;;  %v10088_v28 = vld [vmem:[%s13184_s1 + $0x1c] ss:$12 sps:$4 sm:$0xff]  }
  0x8d   :  { %9420 = vmatprep.mubr.bf16.mxu0 %v325_v22  ;;  %618 = vmatpush1.bf16.msra.mxu1 %v10085_v25  ;;  %v10089_v29 = vld [vmem:[%s13184_s1 + $0x38] ss:$12 sps:$4 sm:$0xff]   ;;  %v10081_v30 = vld [vmem:[%s13184_s1 + $0x90] ss:$12 sps:$4 sm:$0xff]   ;;  %v10082_v33 = vld [vmem:[%s13184_s1 + $0xa8] ss:$12 sps:$4 sm:$0xff]  }
  0x8e   :  { %9407 = vmatpush3.bf16.msra.mxu0 %v10076_v17  ;;  %619 = vmatprep.subr.bf16.mxu1 %v10086_v26  ;;  %v10092_v32 = vld [vmem:[%s13184_s1 + $0x50] ss:$12 sps:$4 sm:$0xff]   ;;  %v10094_v34 = vld [vmem:[%s13184_s1 + $0x4c] ss:$12 sps:$4 sm:$0xff]   ;;  %v10095_v35 = vld [vmem:[%s13184_s1 + $0x68] ss:$12 sps:$4 sm:$0xff]  }
  0x8f   :  { %9408 = vmatprep.subr.bf16.mxu0 %v10077_v18  ;;  %v10967_v36 = vld [vmem:[%s13183_s0 + $0x10] sm:$0xff]  ;;  %13238 = vst [vmem:[#allocation37_spill] sm:$0xff] %v10972_v37  ;;  %v10977_v38 = vld [vmem:[%s13183_s0 + $0x20] sm:$0xff]  ;;  %v10982_v39 = vld [vmem:[%s13183_s0 + $0x28] sm:$0xff]  ;;  %s10705_s26 = smov 120  }
  0x90   :  { %13237 = vst [vmem:[#allocation36_spill] sm:$0xff] %v10967_v36  ;;  %13239 = vst [vmem:[#allocation38_spill] sm:$0xff] %v10977_v38  ;;  %v10097_v40 = vld [vmem:[%s13184_s1 + $0x64] ss:$12 sps:$4 sm:$0xff]   ;;  %v10098_v41 = vld [vmem:[%s13184_s1 + $0x80] ss:$12 sps:$4 sm:$0xff]   ;;  %v326_v42 = vpack.c.bf16 %v10972_v37, %v10967_v36  ;;  %v327_v43 = vpack.c.bf16 %v10982_v39, %v10977_v38 }
  0x91   :  { %620 = vmatpush1.bf16.msra.mxu1 %v10088_v28  ;;  %13240 = vst [vmem:[#allocation39_spill] sm:$0xff] %v10982_v39  ;;  %v10100_v44 = vld [vmem:[%s13184_s1 + $0x7c] ss:$12 sps:$4 sm:$0xff]   ;;  %v11000_v45 = vld [vmem:[%s13183_s0 + $0x30] sm:$0xff]  ;;  %v11010_v47 = vld [vmem:[%s13183_s0 + $0x40] sm:$0xff] }
  0x92   :  { %9409 = vmatpush3.bf16.msra.mxu0 %v10077_v18  ;;  %621 = vmatprep.subr.bf16.mxu1 %v10089_v29  ;;  %13241 = vst [vmem:[#allocation40_spill] sm:$0xff] %v11000_v45  ;;  %v11005_v46 = vld [vmem:[%s13183_s0 + $0x38] sm:$0xff]  ;;  %13243 = vst [vmem:[#allocation42_spill] sm:$0xff] %v11010_v47  ;;  %v11015_v48 = vld [vmem:[%s13183_s0 + $0x48] sm:$0xff] }
  0x93   :  { %9410 = vmatprep.subr.bf16.mxu0 %v10078_v19  ;;  %13242 = vst [vmem:[#allocation41_spill] sm:$0xff] %v11005_v46  ;;  %13244 = vst [vmem:[#allocation43_spill] sm:$0xff] %v11015_v48  ;;  %v328_v49 = vpack.c.bf16 %v11005_v46, %v11000_v45  ;;  %v329_v50 = vpack.c.bf16 %v11015_v48, %v11010_v47  ;;  %v11024_v51 = vld [vmem:[%s13183_s0 + $0x50] sm:$0xff]  ;;  %v11029_v52 = vld [vmem:[%s13183_s0 + $0x58] sm:$0xff] }
  0x94   :  { %13245 = vst [vmem:[#allocation44_spill] sm:$0xff] %v11024_v51  ;;  %13246 = vst [vmem:[#allocation45_spill] sm:$0xff] %v11029_v52  ;;  %v11034_v53 = vld [vmem:[%s13183_s0 + $0x60] sm:$0xff]  ;;  %v11039_v54 = vld [vmem:[%s13183_s0 + $0x68] sm:$0xff]  ;;  %v330_v55 = vpack.c.bf16 %v11029_v52, %v11024_v51 }
  0x95   :  { %622 = vmatpush1.bf16.msra.mxu1 %v10091_v31  ;;  %13247 = vst [vmem:[#allocation46_spill] sm:$0xff] %v11034_v53  ;;  %13248 = vst [vmem:[#allocation47_spill] sm:$0xff] %v11039_v54  ;;  %v331_v56 = vpack.c.bf16 %v11039_v54, %v11034_v53  ;;  %v11048_v57 = vld [vmem:[%s13183_s0 + $0x70] sm:$0xff]  ;;  %v11053_v58 = vld [vmem:[%s13183_s0 + $0x78] sm:$0xff] }
  0x96   :  { %9411 = vmatpush3.bf16.msra.mxu0 %v10078_v19  ;;  %623 = vmatprep.subr.bf16.mxu1 %v10092_v32  ;;  %13249 = vst [vmem:[#allocation48_spill] sm:$0xff] %v11048_v57  ;;  %13250 = vst [vmem:[#allocation49_spill] sm:$0xff] %v11053_v58  ;;  %v332_v59 = vpack.c.bf16 %v11053_v58, %v11048_v57  ;;  %v10101_v60 = vld [vmem:[%s13184_s1 + $0x98] ss:$12 sps:$4 sm:$0xff]   ;;  %v10103_v61 = vld [vmem:[%s13184_s1 + $0x94] ss:$12 sps:$4 sm:$0xff]  }
  0x97   :  { %9412 = vmatprep.subr.bf16.mxu0 %v10079_v23  ;;  %v10104_v62 = vld [vmem:[%s13184_s1 + $0xb0] ss:$12 sps:$4 sm:$0xff]   ;;  %v10106_v63 = vld [vmem:[%s13184_s1 + $0xac] ss:$12 sps:$4 sm:$0xff]   ;;  %v10109_v2 = vld [vmem:[#allocation8 + $0x4] ss:$16 sps:$4 sm:$0xff]  }
  0x98   :  { %v10107_v1 = vld [vmem:[#allocation8] ss:$16 sps:$4 sm:$0xff]   ;;  %v10112_v3 = vld [vmem:[#allocation8 + $0xc] ss:$16 sps:$4 sm:$0xff]   ;;  %v10115_v4 = vld [vmem:[#allocation8 + $0x24] ss:$16 sps:$4 sm:$0xff]  }
  0x99   :  { %624 = vmatpush1.bf16.msra.mxu1 %v10094_v34  ;;  %v10113_v5 = vld [vmem:[#allocation8 + $0x20] ss:$16 sps:$4 sm:$0xff]   ;;  %v10121_v6 = vld [vmem:[#allocation8 + $0x44] ss:$16 sps:$4 sm:$0xff]   ;;  %s10704_s1 = smov 112  }
  0x9a   :  { %9413 = vmatpush3.bf16.msra.mxu0 %v10079_v23  ;;  %625 = vmatprep.subr.bf16.mxu1 %v10095_v35  ;;  %v10119_v7 = vld [vmem:[#allocation8 + $0x40] ss:$16 sps:$4 sm:$0xff]   ;;  %v10127_v8 = vld [vmem:[#allocation8 + $0x64] ss:$16 sps:$4 sm:$0xff]  }
  0x9b   :  { %9414 = vmatprep.subr.bf16.mxu0 %v10080_v27  ;;  %v10125_v9 = vld [vmem:[#allocation8 + $0x60] ss:$16 sps:$4 sm:$0xff]   ;;  %v10133_v10 = vld [vmem:[#allocation8 + $0x84] ss:$16 sps:$4 sm:$0xff]  }
  0x9c   :  { %v10131_v11 = vld [vmem:[#allocation8 + $0x80] ss:$16 sps:$4 sm:$0xff]   ;;  %v10139_v12 = vld [vmem:[#allocation8 + $0xa4] ss:$16 sps:$4 sm:$0xff]  }
  0x9d   :  { %626 = vmatpush1.bf16.msra.mxu1 %v10097_v40  ;;  %v10137_v13 = vld [vmem:[#allocation8 + $0xa0] ss:$16 sps:$4 sm:$0xff]   ;;  %v10145_v14 = vld [vmem:[#allocation8 + $0xc4] ss:$16 sps:$4 sm:$0xff]  }
  0x9e   :  { %9415 = vmatpush3.bf16.msra.mxu0 %v10080_v27  ;;  %627 = vmatprep.subr.bf16.mxu1 %v10098_v41  ;;  %v10143_v15 = vld [vmem:[#allocation8 + $0xc0] ss:$16 sps:$4 sm:$0xff]   ;;  %v10151_v16 = vld [vmem:[#allocation8 + $0xe4] ss:$16 sps:$4 sm:$0xff]  }
  0x9f   :  { %9416 = vmatprep.subr.bf16.mxu0 %v10081_v30  ;;  %v10149_v17 = vld [vmem:[#allocation8 + $0xe0] ss:$16 sps:$4 sm:$0xff]   ;;  %v10157_v18 = vld [vmem:[#allocation8 + $0x104] ss:$16 sps:$4 sm:$0xff]  }
  0xa0   :  { %v10155_v19 = vld [vmem:[#allocation8 + $0x100] ss:$16 sps:$4 sm:$0xff]   ;;  %v10163_v22 = vld [vmem:[#allocation8 + $0x124] ss:$16 sps:$4 sm:$0xff]  }
  0xa1   :  { %628 = vmatpush1.bf16.msra.mxu1 %v10100_v44  ;;  %v10161_v23 = vld [vmem:[#allocation8 + $0x120] ss:$16 sps:$4 sm:$0xff]   ;;  %v10169_v24 = vld [vmem:[#allocation8 + $0x144] ss:$16 sps:$4 sm:$0xff]  }
  0xa2   :  { %9417 = vmatpush3.bf16.msra.mxu0 %v10081_v30  ;;  %629 = vmatprep.subr.bf16.mxu1 %v10101_v60  ;;  %v10167_v25 = vld [vmem:[#allocation8 + $0x140] ss:$16 sps:$4 sm:$0xff]   ;;  %v10175_v26 = vld [vmem:[#allocation8 + $0x164] ss:$16 sps:$4 sm:$0xff]   ;;  %v10110_v60 = vld [vmem:[#allocation8 + $0x8] ss:$16 sps:$4 sm:$0xff]  }
  0xa3   :  { %9418 = vmatprep.subr.bf16.mxu0 %v10082_v33  ;;  %v10173_v27 = vld [vmem:[#allocation8 + $0x160] ss:$16 sps:$4 sm:$0xff]   ;;  %v10181_v28 = vld [vmem:[#allocation8 + $0x184] ss:$16 sps:$4 sm:$0xff]  }
  0xa4   :  { %v10179_v29 = vld [vmem:[#allocation8 + $0x180] ss:$16 sps:$4 sm:$0xff]   ;;  %v10187_v30 = vld [vmem:[#allocation8 + $0x1a4] ss:$16 sps:$4 sm:$0xff]  }
  0xa5   :  { %630 = vmatpush1.bf16.msra.mxu1 %v10103_v61  ;;  %v10185_v31 = vld [vmem:[#allocation8 + $0x1a0] ss:$16 sps:$4 sm:$0xff]  }
  0xa6   :  { %9419 = vmatpush3.bf16.msra.mxu0 %v10082_v33  ;;  %631 = vmatprep.subr.bf16.mxu1 %v10104_v62  ;;  %v11070_v32 = vld [vmem:[#allocation13] ss:$0 sm:$0xff] }
  0xa7   :  { %1184 = vmatprep.subr.bf16.mxu0 %v10109_v2 }
  0xa9   :  { %9421 = vmatmul.mubr.bf16.vlgmr.msra.gmra.mrb[0].mxu0 %v326_v42  ;;  %632 = vmatpush1.bf16.msra.mxu1 %v10106_v63  ;;  %v10118_v63 = vld [vmem:[#allocation8 + $0x2c] ss:$16 sps:$4 sm:$0xff]  }
  0xaa   :  { %9424 = vmatprep.mubr.bf16.mxu0 %v327_v43  ;;  %1297 = vmatprep.subr.bf16.mxu1 %v10112_v3 }
  0xab   :  { %1185 = vmatpush1.bf16.msra.mxu0 %v10107_v1 }
  0xac   :  { %1186 = vmatprep.subr.bf16.mxu0 %v10115_v4 }
  0xaf   :  { %1187 = vmatpush1.bf16.msra.mxu0 %v10113_v5 }
  0xb0   :  { %1188 = vmatprep.subr.bf16.mxu0 %v10121_v6 }
  0xb1   :  { %9425 = vmatmul.mubr.bf16.gmra.mrb[4].mxu0 %v328_v49 }
  0xb2   :  { %9428 = vmatprep.mubr.bf16.mxu0 %v329_v50 }
  0xb3   :  { %1189 = vmatpush1.bf16.msra.mxu0 %v10119_v7 }
  0xb4   :  { %1190 = vmatprep.subr.bf16.mxu0 %v10127_v8  ;;  %v10116_v8 = vld [vmem:[#allocation8 + $0x28] ss:$16 sps:$4 sm:$0xff]  }
  0xb7   :  { %1191 = vmatpush1.bf16.msra.mxu0 %v10125_v9 }
  0xb8   :  { %1192 = vmatprep.subr.bf16.mxu0 %v10133_v10 }
  0xb9   :  { %9429 = vmatmul.mubr.bf16.gmra.mrb[8].mxu0 %v330_v55 }
  0xba   :  { %9432 = vmatprep.mubr.bf16.mxu0 %v331_v56 }
  0xbb   :  { %1193 = vmatpush1.bf16.msra.mxu0 %v10131_v11  ;;  %v10124_v11 = vld [vmem:[#allocation8 + $0x4c] ss:$16 sps:$4 sm:$0xff]  }
  0xbc   :  { %1194 = vmatprep.subr.bf16.mxu0 %v10139_v12 }
  0xbf   :  { %1195 = vmatpush1.bf16.msra.mxu0 %v10137_v13 }
  0xc0   :  { %1196 = vmatprep.subr.bf16.mxu0 %v10145_v14 }
  0xc1   :  { %9433 = vmatmul.mubr.bf16.gmra.mrb[12].mxu0 %v332_v59 }
  0xc3   :  { %1197 = vmatpush1.bf16.msra.mxu0 %v10143_v15  ;;  %v10122_v15 = vld [vmem:[#allocation8 + $0x48] ss:$16 sps:$4 sm:$0xff]  }
  0xc4   :  { %1198 = vmatprep.subr.bf16.mxu0 %v10151_v16 }
  0xc7   :  { %1199 = vmatpush1.bf16.msra.mxu0 %v10149_v17 }
  0xc8   :  { %1200 = vmatprep.subr.bf16.mxu0 %v10157_v18  ;;  %v10130_v18 = vld [vmem:[#allocation8 + $0x6c] ss:$16 sps:$4 sm:$0xff]  }
  0xcb   :  { %1201 = vmatpush1.bf16.msra.mxu0 %v10155_v19 }
  0xcc   :  { %1202 = vmatprep.subr.bf16.mxu0 %v10163_v22 }
  0xcf   :  { %1203 = vmatpush1.bf16.msra.mxu0 %v10161_v23 }
  0xd0   :  { %1204 = vmatprep.subr.bf16.mxu0 %v10169_v24 }
  0xd3   :  { %1205 = vmatpush1.bf16.msra.mxu0 %v10167_v25 }
  0xd4   :  { %1206 = vmatprep.subr.bf16.mxu0 %v10175_v26 }
  0xd7   :  { %1207 = vmatpush1.bf16.msra.mxu0 %v10173_v27 }
  0xd8   :  { %1208 = vmatprep.subr.bf16.mxu0 %v10181_v28  ;;  %v10128_v28 = vld [vmem:[#allocation8 + $0x68] ss:$16 sps:$4 sm:$0xff]  }
  0xdb   :  { %1209 = vmatpush1.bf16.msra.mxu0 %v10179_v29 }
  0xdc   :  { %1210 = vmatprep.subr.bf16.mxu0 %v10187_v30 }
  0xdf   :  { %1211 = vmatpush1.bf16.msra.mxu0 %v10185_v31  ;;  %v10136_v31 = vld [vmem:[#allocation8 + $0x8c] ss:$16 sps:$4 sm:$0xff]  }
 0x17c   :  { %v9422_v33 = vpop.f32.mrb[0].mxu0 }
 0x17d   :  { %v431_v34 = vadd.f32 %v9422_v33, %v11070_v32  ;;  %v422_v35 = vpop.f32.mrb[1].mxu0 }
 0x17e   :  { %v423_v40 = vadd.f32 %v11070_v32, %v422_v35  ;;  %v9423_v41 = vpop.f32.mrb[2].mxu0 }
 0x17f   :  { %v434_v42 = vadd.f32 %v9423_v41, %v11070_v32  ;;  %v425_v43 = vpop.f32.mrb[3].mxu0  ;;  %v487_v49 = vmax.f32 %v431_v34, 0.0 }
 0x180   :  { %v426_v44 = vadd.f32 %v11070_v32, %v425_v43  ;;  %v485_v55 = vmax.f32 %v423_v40, 0.0  ;;  %v10134_v40 = vld [vmem:[#allocation8 + $0x88] ss:$16 sps:$4 sm:$0xff]   ;;  %v10142_v43 = vld [vmem:[#allocation8 + $0xac] ss:$16 sps:$4 sm:$0xff]  }
 0x181   :  { %v488_v50 = vmax.f32 %v434_v42, 0.0 }
 0x182   :  { %v486_v56 = vmax.f32 %v426_v44, 0.0 }
 0x183   :  { %v518_v59 = vpack.c.bf16 %v488_v50, %v487_v49 }
 0x184   :  { %v517_v61 = vpack.c.bf16 %v486_v56, %v485_v55  ;;  %v9426_v62 = vpop.f32.mrb[4].mxu0 }
 0x185   :  { %v447_v1 = vadd.f32 %v9426_v62, %v11070_v32  ;;  %v438_v2 = vpop.f32.mrb[5].mxu0 }
 0x186   :  { %650 = vmatmul.mubr.bf16.vlgmr.msra.gmra.mrb[0].mxu1 %v517_v61  ;;  %v439_v3 = vadd.f32 %v11070_v32, %v438_v2  ;;  %v9427_v4 = vpop.f32.mrb[6].mxu0  ;;  %v10140_v61 = vld [vmem:[#allocation8 + $0xa8] ss:$16 sps:$4 sm:$0xff]  }
 0x187   :  { %v491_v5 = vmax.f32 %v447_v1, 0.0  ;;  %v450_v6 = vadd.f32 %v9427_v4, %v11070_v32  ;;  %v441_v7 = vpop.f32.mrb[7].mxu0  ;;  %659 = vmatprep.mubr.bf16.mxu1 %v13195_v0  ;;  %1298 = vmatpush1.bf16.msra.mxu1 %v10110_v60  ;;  %v10148_v1 = vld [vmem:[#allocation8 + $0xcc] ss:$16 sps:$4 sm:$0xff]  }
 0x188   :  { %v489_v9 = vmax.f32 %v439_v3, 0.0  ;;  %v442_v10 = vadd.f32 %v11070_v32, %v441_v7  ;;  %1299 = vmatprep.subr.bf16.mxu1 %v10118_v63  ;;  %v10154_v7 = vld [vmem:[#allocation8 + $0xec] ss:$16 sps:$4 sm:$0xff]  }
 0x189   :  { %v492_v12 = vmax.f32 %v450_v6, 0.0 }
 0x18a   :  { %v490_v13 = vmax.f32 %v442_v10, 0.0  ;;  %v10158_v10 = vld [vmem:[#allocation8 + $0x108] ss:$16 sps:$4 sm:$0xff]  }
 0x18b   :  { %v520_v14 = vpack.c.bf16 %v492_v12, %v491_v5  ;;  %1300 = vmatpush1.bf16.msra.mxu1 %v10116_v8  ;;  %v10146_v5 = vld [vmem:[#allocation8 + $0xc8] ss:$16 sps:$4 sm:$0xff]   ;;  %v10172_v12 = vld [vmem:[#allocation8 + $0x14c] ss:$16 sps:$4 sm:$0xff]  }
 0x18c   :  { %v519_v16 = vpack.c.bf16 %v490_v13, %v489_v9  ;;  %v9430_v17 = vpop.f32.mrb[8].mxu0  ;;  %1301 = vmatprep.subr.bf16.mxu1 %v10124_v11  ;;  %v10152_v8 = vld [vmem:[#allocation8 + $0xe8] ss:$16 sps:$4 sm:$0xff]   ;;  %v10160_v9 = vld [vmem:[#allocation8 + $0x10c] ss:$16 sps:$4 sm:$0xff]  }
 0x18d   :  { %v463_v19 = vadd.f32 %v9430_v17, %v11070_v32  ;;  %v454_v22 = vpop.f32.mrb[9].mxu0  ;;  %v10164_v11 = vld [vmem:[#allocation8 + $0x128] ss:$16 sps:$4 sm:$0xff]  }
 0x18e   :  { %660 = vmatmul.mubr.bf16.gmra.mrb[4].mxu1 %v518_v59  ;;  %v455_v23 = vadd.f32 %v11070_v32, %v454_v22  ;;  %v9431_v24 = vpop.f32.mrb[10].mxu0  ;;  %v10170_v13 = vld [vmem:[#allocation8 + $0x148] ss:$16 sps:$4 sm:$0xff]   ;;  %v10193_v22 = vld [vmem:[#allocation8 + $0x1c4] ss:$16 sps:$4 sm:$0xff]  }
 0x18f   :  { %669 = vmatprep.mubr.bf16.mxu1 %v13195_v0  ;;  %v495_v25 = vmax.f32 %v463_v19, 0.0  ;;  %v466_v26 = vadd.f32 %v9431_v24, %v11070_v32  ;;  %v457_v27 = vpop.f32.mrb[11].mxu0  ;;  %1302 = vmatpush1.bf16.msra.mxu1 %v10122_v15  ;;  %v10176_v15 = vld [vmem:[#allocation8 + $0x168] ss:$16 sps:$4 sm:$0xff]   ;;  %v10191_v24 = vld [vmem:[#allocation8 + $0x1c0] ss:$16 sps:$4 sm:$0xff]  }
 0x190   :  { %v493_v29 = vmax.f32 %v455_v23, 0.0  ;;  %v458_v30 = vadd.f32 %v11070_v32, %v457_v27  ;;  %1303 = vmatprep.subr.bf16.mxu1 %v10130_v18  ;;  %v10182_v17 = vld [vmem:[#allocation8 + $0x188] ss:$16 sps:$4 sm:$0xff]   ;;  %v10190_v18 = vld [vmem:[#allocation8 + $0x1ac] ss:$16 sps:$4 sm:$0xff]   ;;  %1212 = vmatprep.subr.bf16.mxu0 %v10193_v22 }
 0x191   :  { %v496_v33 = vmax.f32 %v466_v26, 0.0  ;;  %v10188_v19 = vld [vmem:[#allocation8 + $0x1a8] ss:$16 sps:$4 sm:$0xff]   ;;  %v10196_v23 = vld [vmem:[#allocation8 + $0x1cc] ss:$16 sps:$4 sm:$0xff]   ;;  %1213 = vmatpush1.bf16.msra.mxu0 %v10191_v24  ;;  %v1494_v24 = vld [vmem:[#allocation10 + $0xa0] sm:$0xff] }
 0x192   :  { %v494_v34 = vmax.f32 %v458_v30, 0.0  ;;  %v10199_v26 = vld [vmem:[#allocation8 + $0x1e4] ss:$16 sps:$4 sm:$0xff]   ;;  %v10202_v27 = vld [vmem:[#allocation8 + $0x1ec] ss:$16 sps:$4 sm:$0xff]  }
 0x193   :  { %v522_v35 = vpack.c.bf16 %v496_v33, %v495_v25  ;;  %1304 = vmatpush1.bf16.msra.mxu1 %v10128_v28  ;;  %v10194_v25 = vld [vmem:[#allocation8 + $0x1c8] ss:$16 sps:$4 sm:$0xff]   ;;  %v10197_v28 = vld [vmem:[#allocation8 + $0x1e0] ss:$16 sps:$4 sm:$0xff]   ;;  %1214 = vmatprep.subr.bf16.mxu0 %v10199_v26 }
 0x194   :  { %v521_v41 = vpack.c.bf16 %v494_v34, %v493_v29  ;;  %v9434_v42 = vpop.f32.mrb[12].mxu0  ;;  %1305 = vmatprep.subr.bf16.mxu1 %v10136_v31  ;;  %v10200_v29 = vld [vmem:[#allocation8 + $0x1e8] ss:$16 sps:$4 sm:$0xff]   ;;  %v1474_v30 = vld [vmem:[#allocation10] sm:$0xff] }
 0x195   :  { %v479_v44 = vadd.f32 %v9434_v42, %v11070_v32  ;;  %v470_v49 = vpop.f32.mrb[13].mxu0  ;;  %1215 = vmatpush1.bf16.msra.mxu0 %v10197_v28  ;;  %v1478_v31 = vld [vmem:[#allocation10 + $0x20] sm:$0xff]  ;;  %v1475_v33 = vld [vmem:[#allocation10 + $0x8] sm:$0xff] }
 0x196   :  { %670 = vmatmul.mubr.bf16.gmra.mrb[8].mxu1 %v519_v16  ;;  %v471_v50 = vadd.f32 %v11070_v32, %v470_v49  ;;  %v9435_v55 = vpop.f32.mrb[14].mxu0  ;;  %v10184_v16 = vld [vmem:[#allocation8 + $0x18c] ss:$16 sps:$4 sm:$0xff]   ;;  %v8676_v34 = vcombine.low %v1474_v30, %v1478_v31 }
 0x197   :  { %679 = vmatprep.mubr.bf16.mxu1 %v13195_v0  ;;  %v499_v56 = vmax.f32 %v479_v44, 0.0  ;;  %v482_v59 = vadd.f32 %v9435_v55, %v11070_v32  ;;  %v473_v60 = vpop.f32.mrb[15].mxu0  ;;  %1306 = vmatpush1.bf16.msra.mxu1 %v10134_v40  ;;  %v1479_v40 = vld [vmem:[#allocation10 + $0x28] sm:$0xff] }
 0x198   :  { %v497_v62 = vmax.f32 %v471_v50, 0.0  ;;  %v474_v63 = vadd.f32 %v11070_v32, %v473_v60  ;;  %1307 = vmatprep.subr.bf16.mxu1 %v10142_v43  ;;  %v10166_v32 = vld [vmem:[#allocation8 + $0x12c] ss:$16 sps:$4 sm:$0xff]   ;;  %v8679_v42 = vcombine.high %v1475_v33, %v1479_v40  ;;  %v527_v43 = vlaneseq  ;;  %v525_v50 = vld [vmem:[#allocation13 + $0x1] sm:$0x3] }
 0x199   :  { %v500_v2 = vmax.f32 %v482_v59, 0.0  ;;  %v1495_v26 = vld [vmem:[#allocation10 + $0xa8] sm:$0xff] }
 0x19a   :  { %v498_v3 = vmax.f32 %v474_v63, 0.0  ;;  %v11095_v44 = vshrl.u32 %v527_v43, 7  ;;  %v1498_v43 = vld [vmem:[#allocation10 + $0xc0] sm:$0xff] }
 0x19b   :  { %v524_v4 = vpack.c.bf16 %v500_v2, %v499_v56  ;;  %1308 = vmatpush1.bf16.msra.mxu1 %v10140_v61 }
 0x19c   :  { %v523_v6 = vpack.c.bf16 %v498_v3, %v497_v62  ;;  %1309 = vmatprep.subr.bf16.mxu1 %v10148_v1  ;;  %13251 = vst [vmem:[#allocation50_spill] sm:$0xff] %v11095_v44  ;;  %v11098_v49 = vsub.s32 0, %v11095_v44  ;;  %v11101_v55 = vsub.s32 1, %v11095_v44 }
 0x19e   :  { %680 = vmatmul.mubr.bf16.gmra.mrb[12].mxu1 %v520_v14  ;;  %v10178_v14 = vld [vmem:[#allocation8 + $0x16c] ss:$16 sps:$4 sm:$0xff]   ;;  %13252 = vst [vmem:[#allocation51_spill] sm:$0xff] %v11101_v55  ;;  %v11104_v56 = vrot.slane %v525_v50, %v11098_v49  ;;  %v11107_v59 = vrot.slane %v525_v50, %v11101_v55 }
 0x19f   :  { %689 = vmatprep.mubr.bf16.mxu1 %v13195_v0  ;;  %1310 = vmatpush1.bf16.msra.mxu1 %v10146_v5 }
 0x1a0   :  { %1311 = vmatprep.subr.bf16.mxu1 %v10154_v7  ;;  %v1482_v7 = vld [vmem:[#allocation10 + $0x40] sm:$0xff] }
 0x1a3   :  { %1312 = vmatpush1.bf16.msra.mxu1 %v10152_v8 }
 0x1a4   :  { %1313 = vmatprep.subr.bf16.mxu1 %v10160_v9 }
 0x1a6   :  { %690 = vmatmul.mubr.bf16.gmra.mrb[16].mxu1 %v521_v41  ;;  %v8678_v41 = vcombine.low %v1475_v33, %v1479_v40 }
 0x1a7   :  { %699 = vmatprep.mubr.bf16.mxu1 %v13195_v0  ;;  %1314 = vmatpush1.bf16.msra.mxu1 %v10158_v10  ;;  %v1486_v10 = vld [vmem:[#allocation10 + $0x60] sm:$0xff] }
 0x1a8   :  { %1315 = vmatprep.subr.bf16.mxu1 %v10166_v32  ;;  %v1483_v32 = vld [vmem:[#allocation10 + $0x48] sm:$0xff] }
 0x1ab   :  { %1316 = vmatpush1.bf16.msra.mxu1 %v10164_v11  ;;  %v1487_v11 = vld [vmem:[#allocation10 + $0x68] sm:$0xff] }
 0x1ac   :  { %1317 = vmatprep.subr.bf16.mxu1 %v10172_v12 }
 0x1ae   :  { %700 = vmatmul.mubr.bf16.gmra.mrb[20].mxu1 %v522_v35  ;;  %v8677_v35 = vcombine.high %v1474_v30, %v1478_v31  ;;  %v8684_v30 = vcombine.low %v1482_v7, %v1486_v10  ;;  %v8686_v31 = vcombine.low %v1483_v32, %v1487_v11 }
 0x1af   :  { %709 = vmatprep.mubr.bf16.mxu1 %v13195_v0  ;;  %1318 = vmatpush1.bf16.msra.mxu1 %v10170_v13 }
 0x1b0   :  { %1319 = vmatprep.subr.bf16.mxu1 %v10178_v14  ;;  %3084 = vmatprep.subr.bf16.mxu0 %v8677_v35 }
 0x1b3   :  { %1320 = vmatpush1.bf16.msra.mxu1 %v10176_v15 }
 0x1b4   :  { %1321 = vmatprep.subr.bf16.mxu1 %v10184_v16 }
 0x1b6   :  { %710 = vmatmul.mubr.bf16.gmra.mrb[24].mxu1 %v523_v6 }
 0x1b7   :  { %719 = vmatprep.mubr.bf16.mxu1 %v13195_v0  ;;  %1322 = vmatpush1.bf16.msra.mxu1 %v10182_v17  ;;  %v8685_v17 = vcombine.high %v1482_v7, %v1486_v10 }
 0x1b8   :  { %1323 = vmatprep.subr.bf16.mxu1 %v10190_v18  ;;  %v8687_v18 = vcombine.high %v1483_v32, %v1487_v11  ;;  %v1510_v32 = vld [vmem:[#allocation10 + $0x120] sm:$0xff]  ;;  %v1507_v11 = vld [vmem:[#allocation10 + $0x108] sm:$0xff] }
 0x1bb   :  { %1324 = vmatpush1.bf16.msra.mxu1 %v10188_v19  ;;  %v1490_v19 = vld [vmem:[#allocation10 + $0x80] sm:$0xff] }
 0x1bc   :  { %1325 = vmatprep.subr.bf16.mxu1 %v10196_v23  ;;  %v8693_v40 = vcombine.high %v1490_v19, %v1494_v24 }
 0x1be   :  { %720 = vmatmul.mubr.bf16.gmra.mrb[28].mxu1 %v524_v4 }
 0x1bf   :  { %1326 = vmatpush1.bf16.msra.mxu1 %v10194_v25  ;;  %v1491_v25 = vld [vmem:[#allocation10 + $0x88] sm:$0xff] }
 0x1c0   :  { %1327 = vmatprep.subr.bf16.mxu1 %v10202_v27 }
 0x1c3   :  { %1328 = vmatpush1.bf16.msra.mxu1 %v10200_v29 }
 0x1c4   :  { %3310 = vmatprep.subr.bf16.mxu1 %v8679_v42  ;;  %v8695_v42 = vcombine.high %v1491_v25, %v1495_v26 }
 0x259   :  { %v651_v60 = vpop.f32.mrb[0].mxu1 }
 0x25a   :  { %v652_v61 = vadd.f32 %v651_v60, %v11104_v56  ;;  %v653_v62 = vpop.f32.mrb[1].mxu1 }
 0x25b   :  { %v654_v63 = vadd.f32 %v653_v62, %v11107_v59  ;;  %v655_v1 = vpop.f32.mrb[2].mxu1  ;;  %v1499_v62 = vld [vmem:[#allocation10 + $0xc8] sm:$0xff] }
 0x25c   :  { %v656_v2 = vadd.f32 %v655_v1, %v11104_v56  ;;  %v657_v3 = vpop.f32.mrb[3].mxu1  ;;  %v730_v5 = vmax.f32 %v652_v61, 0.0  ;;  %v1502_v61 = vld [vmem:[#allocation10 + $0xe0] sm:$0xff] }
 0x25d   :  { %v658_v4 = vadd.f32 %v657_v3, %v11107_v59  ;;  %v731_v8 = vmax.f32 %v654_v63, 0.0  ;;  %v1503_v63 = vld [vmem:[#allocation10 + $0xe8] sm:$0xff] }
 0x25e   :  { %v732_v6 = vmax.f32 %v656_v2, 0.0  ;;  %v8703_v7 = vcombine.high %v1499_v62, %v1503_v63 }
 0x25f   :  { %v733_v9 = vmax.f32 %v658_v4, 0.0 }
 0x260   :  { %v826_v12 = vpack.c.bf16 %v732_v6, %v730_v5  ;;  %v8701_v6 = vcombine.high %v1498_v43, %v1502_v61 }
 0x261   :  { %v827_v13 = vpack.c.bf16 %v733_v9, %v731_v8  ;;  %v661_v14 = vpop.f32.mrb[4].mxu1  ;;  %v1506_v8 = vld [vmem:[#allocation10 + $0x100] sm:$0xff] }
 0x262   :  { %v662_v15 = vadd.f32 %v661_v14, %v11104_v56  ;;  %v663_v16 = vpop.f32.mrb[5].mxu1 }
 0x263   :  { %v664_v22 = vadd.f32 %v663_v16, %v11107_v59  ;;  %v665_v23 = vpop.f32.mrb[6].mxu1  ;;  %1216 = vmatprep.mubr.bf16.mxu0 %v827_v13  ;;  %1329 = vmatprep.mubr.bf16.mxu1 %v827_v13  ;;  %v8700_v16 = vcombine.low %v1498_v43, %v1502_v61  ;;  %v1522_v61 = vld [vmem:[#allocation10 + $0x180] sm:$0xff] }
 0x264   :  { %v666_v27 = vadd.f32 %v665_v23, %v11104_v56  ;;  %v667_v28 = vpop.f32.mrb[7].mxu1  ;;  %1217 = vmatmul.mubr.bf16.vlgmr.msra.gmra.mrb[16].mxu0 %v826_v12  ;;  %1330 = vmatmul.mubr.bf16.vlgmr.msra.gmra.mrb[32].mxu1 %v826_v12  ;;  %v734_v33 = vmax.f32 %v662_v15, 0.0  ;;  %v1511_v12 = vld [vmem:[#allocation10 + $0x128] sm:$0xff] }
 0x265   :  { %v668_v29 = vadd.f32 %v667_v28, %v11107_v59  ;;  %3085 = vmatpush1.bf16.msra.mxu0 %v8676_v34  ;;  %3311 = vmatpush1.bf16.msra.mxu1 %v8678_v41  ;;  %v735_v50 = vmax.f32 %v664_v22, 0.0  ;;  %v8692_v34 = vcombine.low %v1490_v19, %v1494_v24  ;;  %v8694_v41 = vcombine.low %v1491_v25, %v1495_v26  ;;  %v1514_v24 = vld [vmem:[#allocation10 + $0x140] sm:$0xff]  ;;  %v1515_v28 = vld [vmem:[#allocation10 + $0x148] sm:$0xff] }
 0x266   :  { %v736_v35 = vmax.f32 %v666_v27, 0.0  ;;  %3086 = vmatprep.subr.bf16.mxu0 %v8685_v17  ;;  %3312 = vmatprep.subr.bf16.mxu1 %v8687_v18  ;;  %v8702_v17 = vcombine.low %v1499_v62, %v1503_v63  ;;  %v8709_v22 = vcombine.high %v1506_v8, %v1510_v32  ;;  %v8711_v23 = vcombine.high %v1507_v11, %v1511_v12  ;;  %v1518_v27 = vld [vmem:[#allocation10 + $0x160] sm:$0xff] }
 0x267   :  { %v737_v60 = vmax.f32 %v668_v29, 0.0  ;;  %v1519_v29 = vld [vmem:[#allocation10 + $0x168] sm:$0xff] }
 0x268   :  { %v828_v1 = vpack.c.bf16 %v736_v35, %v734_v33  ;;  %v8708_v35 = vcombine.low %v1506_v8, %v1510_v32  ;;  %v1530_v32 = vld [vmem:[#allocation10 + $0x1c0] sm:$0xff] }
 0x269   :  { %v829_v2 = vpack.c.bf16 %v737_v60, %v735_v50  ;;  %v671_v3 = vpop.f32.mrb[8].mxu1  ;;  %3087 = vmatpush1.bf16.msra.mxu0 %v8684_v30  ;;  %3313 = vmatpush1.bf16.msra.mxu1 %v8686_v31  ;;  %v8717_v50 = vcombine.high %v1514_v24, %v1518_v27  ;;  %v8719_v60 = vcombine.high %v1515_v28, %v1519_v29 }
 0x26a   :  { %v672_v4 = vadd.f32 %v671_v3, %v11104_v56  ;;  %v673_v5 = vpop.f32.mrb[9].mxu1  ;;  %3088 = vmatprep.subr.bf16.mxu0 %v8693_v40  ;;  %3314 = vmatprep.subr.bf16.mxu1 %v8695_v42  ;;  %v8710_v40 = vcombine.low %v1507_v11, %v1511_v12  ;;  %v1527_v3 = vld [vmem:[#allocation10 + $0x1a8] sm:$0xff] }
 0x26b   :  { %v674_v9 = vadd.f32 %v673_v5, %v11107_v59  ;;  %v675_v10 = vpop.f32.mrb[10].mxu1  ;;  %1226 = vmatprep.mubr.bf16.mxu0 %v829_v2  ;;  %1339 = vmatprep.mubr.bf16.mxu1 %v829_v2  ;;  %v1523_v2 = vld [vmem:[#allocation10 + $0x188] sm:$0xff]  ;;  %v8716_v5 = vcombine.low %v1514_v24, %v1518_v27  ;;  %v1538_v27 = vld [vmem:[#allocation10 + $0x200] sm:$0xff] }
 0x26c   :  { %v676_v13 = vadd.f32 %v675_v10, %v11104_v56  ;;  %v677_v14 = vpop.f32.mrb[11].mxu1  ;;  %1227 = vmatmul.mubr.bf16.gmra.mrb[20].mxu0 %v828_v1  ;;  %1340 = vmatmul.mubr.bf16.gmra.mrb[36].mxu1 %v828_v1  ;;  %v738_v18 = vmax.f32 %v672_v4, 0.0  ;;  %v1526_v1 = vld [vmem:[#allocation10 + $0x1a0] sm:$0xff]  ;;  %v8727_v10 = vcombine.high %v1523_v2, %v1527_v3 }
 0x26d   :  { %v678_v15 = vadd.f32 %v677_v14, %v11107_v59  ;;  %3089 = vmatpush1.bf16.msra.mxu0 %v8692_v34  ;;  %3315 = vmatpush1.bf16.msra.mxu1 %v8694_v41  ;;  %v739_v25 = vmax.f32 %v674_v9, 0.0  ;;  %v8725_v9 = vcombine.high %v1522_v61, %v1526_v1  ;;  %v1531_v14 = vld [vmem:[#allocation10 + $0x1c8] sm:$0xff] }
 0x26e   :  { %v740_v19 = vmax.f32 %v676_v13, 0.0  ;;  %3090 = vmatprep.subr.bf16.mxu0 %v8701_v6  ;;  %3316 = vmatprep.subr.bf16.mxu1 %v8703_v7  ;;  %v8718_v6 = vcombine.low %v1515_v28, %v1519_v29  ;;  %v1534_v13 = vld [vmem:[#allocation10 + $0x1e0] sm:$0xff] }
 0x26f   :  { %v741_v26 = vmax.f32 %v678_v15, 0.0  ;;  %v1535_v15 = vld [vmem:[#allocation10 + $0x1e8] sm:$0xff] }
 0x270   :  { %v830_v30 = vpack.c.bf16 %v740_v19, %v738_v18  ;;  %v8724_v19 = vcombine.low %v1522_v61, %v1526_v1  ;;  %v1546_v1 = vld [vmem:[#allocation10 + $0x240] sm:$0xff] }
 0x271   :  { %v831_v31 = vpack.c.bf16 %v741_v26, %v739_v25  ;;  %v681_v33 = vpop.f32.mrb[12].mxu1  ;;  %3091 = vmatpush1.bf16.msra.mxu0 %v8700_v16  ;;  %3317 = vmatpush1.bf16.msra.mxu1 %v8702_v17  ;;  %v8733_v25 = vcombine.high %v1530_v32, %v1534_v13  ;;  %v8735_v26 = vcombine.high %v1531_v14, %v1535_v15 }
 0x272   :  { %v682_v42 = vadd.f32 %v681_v33, %v11104_v56  ;;  %v683_v43 = vpop.f32.mrb[13].mxu1  ;;  %3092 = vmatprep.subr.bf16.mxu0 %v8709_v22  ;;  %3318 = vmatprep.subr.bf16.mxu1 %v8711_v23  ;;  %v8726_v22 = vcombine.low %v1523_v2, %v1527_v3  ;;  %v1543_v33 = vld [vmem:[#allocation10 + $0x228] sm:$0xff] }
 0x273   :  { %v684_v62 = vadd.f32 %v683_v43, %v11107_v59  ;;  %v685_v63 = vpop.f32.mrb[14].mxu1  ;;  %1236 = vmatprep.mubr.bf16.mxu0 %v831_v31  ;;  %1349 = vmatprep.mubr.bf16.mxu1 %v831_v31  ;;  %v1539_v31 = vld [vmem:[#allocation10 + $0x208] sm:$0xff]  ;;  %v8732_v43 = vcombine.low %v1530_v32, %v1534_v13  ;;  %v1554_v13 = vld [vmem:[#allocation10 + $0x280] sm:$0xff] }
 0x274   :  { %v686_v34 = vadd.f32 %v685_v63, %v11104_v56  ;;  %v687_v41 = vpop.f32.mrb[15].mxu1  ;;  %1237 = vmatmul.mubr.bf16.gmra.mrb[24].mxu0 %v830_v30  ;;  %1350 = vmatmul.mubr.bf16.gmra.mrb[40].mxu1 %v830_v30  ;;  %v742_v7 = vmax.f32 %v682_v42, 0.0  ;;  %v1542_v30 = vld [vmem:[#allocation10 + $0x220] sm:$0xff]  ;;  %v8743_v63 = vcombine.high %v1539_v31, %v1543_v33 }
 0x275   :  { %v688_v4 = vadd.f32 %v687_v41, %v11107_v59  ;;  %3093 = vmatpush1.bf16.msra.mxu0 %v8708_v35  ;;  %3319 = vmatpush1.bf16.msra.mxu1 %v8710_v40  ;;  %v743_v11 = vmax.f32 %v684_v62, 0.0  ;;  %v8741_v62 = vcombine.high %v1538_v27, %v1542_v30  ;;  %v1547_v41 = vld [vmem:[#allocation10 + $0x248] sm:$0xff] }
 0x276   :  { %v744_v8 = vmax.f32 %v686_v34, 0.0  ;;  %3094 = vmatprep.subr.bf16.mxu0 %v8717_v50  ;;  %3320 = vmatprep.subr.bf16.mxu1 %v8719_v60  ;;  %v8734_v50 = vcombine.low %v1531_v14, %v1535_v15  ;;  %v1550_v34 = vld [vmem:[#allocation10 + $0x260] sm:$0xff] }
 0x277   :  { %v745_v12 = vmax.f32 %v688_v4, 0.0  ;;  %v1551_v4 = vld [vmem:[#allocation10 + $0x268] sm:$0xff] }
 0x278   :  { %v832_v16 = vpack.c.bf16 %v744_v8, %v742_v7  ;;  %v8740_v8 = vcombine.low %v1538_v27, %v1542_v30  ;;  %v1562_v30 = vld [vmem:[#allocation10 + $0x2c0] sm:$0xff] }
 0x279   :  { %v833_v17 = vpack.c.bf16 %v745_v12, %v743_v11  ;;  %v691_v18 = vpop.f32.mrb[16].mxu1  ;;  %3095 = vmatpush1.bf16.msra.mxu0 %v8716_v5  ;;  %3321 = vmatpush1.bf16.msra.mxu1 %v8718_v6  ;;  %v8749_v11 = vcombine.high %v1546_v1, %v1550_v34  ;;  %v8751_v12 = vcombine.high %v1547_v41, %v1551_v4 }
 0x27a   :  { %v692_v23 = vadd.f32 %v691_v18, %v11104_v56  ;;  %v693_v24 = vpop.f32.mrb[17].mxu1  ;;  %3096 = vmatprep.subr.bf16.mxu0 %v8725_v9  ;;  %3322 = vmatprep.subr.bf16.mxu1 %v8727_v10  ;;  %v8742_v9 = vcombine.low %v1539_v31, %v1543_v33  ;;  %v1559_v18 = vld [vmem:[#allocation10 + $0x2a8] sm:$0xff] }
 0x27b   :  { %v694_v28 = vadd.f32 %v693_v24, %v11107_v59  ;;  %v695_v29 = vpop.f32.mrb[18].mxu1  ;;  %1246 = vmatprep.mubr.bf16.mxu0 %v833_v17  ;;  %1359 = vmatprep.mubr.bf16.mxu1 %v833_v17  ;;  %v1555_v17 = vld [vmem:[#allocation10 + $0x288] sm:$0xff]  ;;  %v8748_v24 = vcombine.low %v1546_v1, %v1550_v34  ;;  %v1570_v34 = vld [vmem:[#allocation10 + $0x300] sm:$0xff] }
 0x27c   :  { %v696_v35 = vadd.f32 %v695_v29, %v11104_v56  ;;  %v697_v40 = vpop.f32.mrb[19].mxu1  ;;  %1247 = vmatmul.mubr.bf16.gmra.mrb[28].mxu0 %v832_v16  ;;  %1360 = vmatmul.mubr.bf16.gmra.mrb[44].mxu1 %v832_v16  ;;  %v746_v60 = vmax.f32 %v692_v23, 0.0  ;;  %v1558_v16 = vld [vmem:[#allocation10 + $0x2a0] sm:$0xff]  ;;  %v8759_v29 = vcombine.high %v1555_v17, %v1559_v18 }
 0x27d   :  { %v698_v42 = vadd.f32 %v697_v40, %v11107_v59  ;;  %3097 = vmatpush1.bf16.msra.mxu0 %v8724_v19  ;;  %3323 = vmatpush1.bf16.msra.mxu1 %v8726_v22  ;;  %v747_v2 = vmax.f32 %v694_v28, 0.0  ;;  %v8757_v28 = vcombine.high %v1554_v13, %v1558_v16  ;;  %v1563_v40 = vld [vmem:[#allocation10 + $0x2c8] sm:$0xff] }
 0x27e   :  { %v748_v61 = vmax.f32 %v696_v35, 0.0  ;;  %3098 = vmatprep.subr.bf16.mxu0 %v8733_v25  ;;  %3324 = vmatprep.subr.bf16.mxu1 %v8735_v26  ;;  %v8750_v25 = vcombine.low %v1547_v41, %v1551_v4  ;;  %v1566_v35 = vld [vmem:[#allocation10 + $0x2e0] sm:$0xff] }
 0x27f   :  { %v749_v3 = vmax.f32 %v698_v42, 0.0  ;;  %v1567_v42 = vld [vmem:[#allocation10 + $0x2e8] sm:$0xff] }
 0x280   :  { %v834_v5 = vpack.c.bf16 %v748_v61, %v746_v60  ;;  %v8756_v61 = vcombine.low %v1554_v13, %v1558_v16  ;;  %v1578_v16 = vld [vmem:[#allocation10 + $0x340] sm:$0xff] }
 0x281   :  { %v835_v6 = vpack.c.bf16 %v749_v3, %v747_v2  ;;  %v701_v7 = vpop.f32.mrb[20].mxu1  ;;  %3099 = vmatpush1.bf16.msra.mxu0 %v8732_v43  ;;  %3325 = vmatpush1.bf16.msra.mxu1 %v8734_v50  ;;  %v8765_v2 = vcombine.high %v1562_v30, %v1566_v35  ;;  %v8767_v3 = vcombine.high %v1563_v40, %v1567_v42 }
 0x282   :  { %v702_v10 = vadd.f32 %v701_v7, %v11104_v56  ;;  %v703_v32 = vpop.f32.mrb[21].mxu1  ;;  %3100 = vmatprep.subr.bf16.mxu0 %v8741_v62  ;;  %3326 = vmatprep.subr.bf16.mxu1 %v8743_v63  ;;  %v8758_v62 = vcombine.low %v1555_v17, %v1559_v18  ;;  %v1575_v7 = vld [vmem:[#allocation10 + $0x328] sm:$0xff] }
 0x283   :  { %v704_v14 = vadd.f32 %v703_v32, %v11107_v59  ;;  %v705_v15 = vpop.f32.mrb[22].mxu1  ;;  %1256 = vmatprep.mubr.bf16.mxu0 %v835_v6  ;;  %1369 = vmatprep.mubr.bf16.mxu1 %v835_v6  ;;  %v1571_v6 = vld [vmem:[#allocation10 + $0x308] sm:$0xff]  ;;  %v8764_v32 = vcombine.low %v1562_v30, %v1566_v35 }
 0x284   :  { %v706_v19 = vadd.f32 %v705_v15, %v11104_v56  ;;  %v707_v22 = vpop.f32.mrb[23].mxu1  ;;  %1257 = vmatmul.mubr.bf16.gmra.mrb[32].mxu0 %v834_v5  ;;  %1370 = vmatmul.mubr.bf16.gmra.mrb[48].mxu1 %v834_v5  ;;  %v750_v26 = vmax.f32 %v702_v10, 0.0  ;;  %v1574_v5 = vld [vmem:[#allocation10 + $0x320] sm:$0xff]  ;;  %v8775_v15 = vcombine.high %v1571_v6, %v1575_v7 }
 0x285   :  { %v708_v23 = vadd.f32 %v707_v22, %v11107_v59  ;;  %3101 = vmatpush1.bf16.msra.mxu0 %v8740_v8  ;;  %3327 = vmatpush1.bf16.msra.mxu1 %v8742_v9  ;;  %v751_v31 = vmax.f32 %v704_v14, 0.0  ;;  %v8773_v14 = vcombine.high %v1570_v34, %v1574_v5  ;;  %v1579_v22 = vld [vmem:[#allocation10 + $0x348] sm:$0xff] }
 0x286   :  { %v752_v27 = vmax.f32 %v706_v19, 0.0  ;;  %3102 = vmatprep.subr.bf16.mxu0 %v8749_v11  ;;  %3328 = vmatprep.subr.bf16.mxu1 %v8751_v12  ;;  %v8766_v11 = vcombine.low %v1563_v40, %v1567_v42  ;;  %v1582_v19 = vld [vmem:[#allocation10 + $0x360] sm:$0xff] }
 0x287   :  { %v753_v33 = vmax.f32 %v708_v23, 0.0  ;;  %v1583_v23 = vld [vmem:[#allocation10 + $0x368] sm:$0xff] }
 0x288   :  { %v836_v43 = vpack.c.bf16 %v752_v27, %v750_v26  ;;  %v8772_v27 = vcombine.low %v1570_v34, %v1574_v5  ;;  %v1591_v5 = vld [vmem:[#allocation10 + $0x3a8] sm:$0xff] }
 0x289   :  { %v837_v50 = vpack.c.bf16 %v753_v33, %v751_v31  ;;  %v711_v60 = vpop.f32.mrb[24].mxu1  ;;  %3103 = vmatpush1.bf16.msra.mxu0 %v8748_v24  ;;  %3329 = vmatpush1.bf16.msra.mxu1 %v8750_v25  ;;  %v8781_v31 = vcombine.high %v1578_v16, %v1582_v19  ;;  %v8783_v33 = vcombine.high %v1579_v22, %v1583_v23 }
 0x28a   :  { %v712_v63 = vadd.f32 %v711_v60, %v11104_v56  ;;  %v713_v1 = vpop.f32.mrb[25].mxu1  ;;  %3104 = vmatprep.subr.bf16.mxu0 %v8757_v28  ;;  %3330 = vmatprep.subr.bf16.mxu1 %v8759_v29  ;;  %v8774_v28 = vcombine.low %v1571_v6, %v1575_v7  ;;  %v8780_v60 = vcombine.low %v1578_v16, %v1582_v19  ;;  %v11141_v16 = vld [vmem:[#allocation10 + $0x400] sm:$0xff] }
 0x28b   :  { %v714_v41 = vadd.f32 %v713_v1, %v11107_v59  ;;  %v715_v4 = vpop.f32.mrb[26].mxu1  ;;  %1266 = vmatprep.mubr.bf16.mxu0 %v837_v50  ;;  %1379 = vmatprep.mubr.bf16.mxu1 %v837_v50 }
 0x28c   :  { %v716_v8 = vadd.f32 %v715_v4, %v11104_v56  ;;  %v717_v9 = vpop.f32.mrb[27].mxu1  ;;  %1267 = vmatmul.mubr.bf16.gmra.mrb[36].mxu0 %v836_v43  ;;  %1380 = vmatmul.mubr.bf16.gmra.mrb[52].mxu1 %v836_v43  ;;  %v754_v12 = vmax.f32 %v712_v63, 0.0 }
 0x28d   :  { %v718_v10 = vadd.f32 %v717_v9, %v11107_v59  ;;  %3105 = vmatpush1.bf16.msra.mxu0 %v8756_v61  ;;  %3331 = vmatpush1.bf16.msra.mxu1 %v8758_v62  ;;  %v755_v17 = vmax.f32 %v714_v41, 0.0  ;;  %v8782_v61 = vcombine.low %v1579_v22, %v1583_v23  ;;  %v1587_v41 = vld [vmem:[#allocation10 + $0x388] sm:$0xff]  ;;  %v1594_v9 = vld [vmem:[#allocation10 + $0x3c0] sm:$0xff] }
 0x28e   :  { %v756_v13 = vmax.f32 %v716_v8, 0.0  ;;  %3106 = vmatprep.subr.bf16.mxu0 %v8765_v2  ;;  %3332 = vmatprep.subr.bf16.mxu1 %v8767_v3  ;;  %v8790_v7 = vcombine.low %v1587_v41, %v1591_v5  ;;  %v8791_v8 = vcombine.high %v1587_v41, %v1591_v5  ;;  %v11149_v22 = vld [vmem:[#allocation10 + $0x428] sm:$0xff] }
 0x28f   :  { %v757_v18 = vmax.f32 %v718_v10, 0.0  ;;  %v1598_v10 = vld [vmem:[#allocation10 + $0x3e0] sm:$0xff] }
 0x290   :  { %v838_v24 = vpack.c.bf16 %v756_v13, %v754_v12  ;;  %v1599_v12 = vld [vmem:[#allocation10 + $0x3e8] sm:$0xff]  ;;  %v8796_v13 = vcombine.low %v1594_v9, %v1598_v10 }
 0x291   :  { %v839_v25 = vpack.c.bf16 %v757_v18, %v755_v17  ;;  %v721_v26 = vpop.f32.mrb[28].mxu1  ;;  %3107 = vmatpush1.bf16.msra.mxu0 %v8764_v32  ;;  %3333 = vmatpush1.bf16.msra.mxu1 %v8766_v11  ;;  %v1595_v32 = vld [vmem:[#allocation10 + $0x3c8] sm:$0xff]  ;;  %v8797_v11 = vcombine.high %v1594_v9, %v1598_v10  ;;  %v11143_v17 = vld [vmem:[#allocation10 + $0x420] sm:$0xff] }
 0x292   :  { %v722_v29 = vadd.f32 %v721_v26, %v11104_v56  ;;  %v723_v30 = vpop.f32.mrb[29].mxu1  ;;  %3108 = vmatprep.subr.bf16.mxu0 %v8773_v14  ;;  %3334 = vmatprep.subr.bf16.mxu1 %v8775_v15  ;;  %v8798_v14 = vcombine.low %v1595_v32, %v1599_v12  ;;  %v8799_v15 = vcombine.high %v1595_v32, %v1599_v12  ;;  %v11145_v18 = vld [vmem:[#allocation10 + $0x408] sm:$0xff]  ;;  %v11158_v26 = vsub.s32 2, %v11095_v44  ;;  %v11197_v32 = vld [vmem:[#allocation10 + $0x480] sm:$0xff] }
 0x293   :  { %v724_v35 = vadd.f32 %v723_v30, %v11107_v59  ;;  %v725_v40 = vpop.f32.mrb[30].mxu1  ;;  %1276 = vmatprep.mubr.bf16.mxu0 %v839_v25  ;;  %1389 = vmatprep.mubr.bf16.mxu1 %v839_v25  ;;  %v8805_v19 = vcombine.high %v11141_v16, %v11143_v17  ;;  %v8804_v23 = vcombine.low %v11141_v16, %v11143_v17  ;;  %v11263_v16 = vld [vmem:[#allocation10 + $0x528] sm:$0xff] }
 0x294   :  { %v726_v42 = vadd.f32 %v725_v40, %v11104_v56  ;;  %v727_v43 = vpop.f32.mrb[31].mxu1  ;;  %1277 = vmatmul.mubr.bf16.gmra.mrb[40].mxu0 %v838_v24  ;;  %1390 = vmatmul.mubr.bf16.gmra.mrb[56].mxu1 %v838_v24  ;;  %v758_v62 = vmax.f32 %v722_v29, 0.0  ;;  %v1586_v56 = vld [vmem:[#allocation10 + $0x380] sm:$0xff]  ;;  %v8806_v24 = vcombine.low %v11145_v18, %v11149_v22  ;;  %v8807_v25 = vcombine.high %v11145_v18, %v11149_v22 }
 0x295   :  { %v728_v50 = vadd.f32 %v727_v43, %v11107_v59  ;;  %3109 = vmatpush1.bf16.msra.mxu0 %v8772_v27  ;;  %3335 = vmatpush1.bf16.msra.mxu1 %v8774_v28  ;;  %v759_v1 = vmax.f32 %v724_v35, 0.0  ;;  %v1590_v59 = vld [vmem:[#allocation10 + $0x3a0] sm:$0xff]  ;;  %13253 = vst [vmem:[#allocation52_spill] sm:$0xff] %v11158_v26  ;;  %v11161_v28 = vsub.s32 3, %v11095_v44 }
 0x296   :  { %v760_v63 = vmax.f32 %v726_v42, 0.0  ;;  %3110 = vmatprep.subr.bf16.mxu0 %v8781_v31  ;;  %3336 = vmatprep.subr.bf16.mxu1 %v8783_v33  ;;  %v8789_v4 = vcombine.high %v1586_v56, %v1590_v59  ;;  %v8788_v6 = vcombine.low %v1586_v56, %v1590_v59  ;;  %v842_v27 = vld [vmem:[#allocation13 + $0x3] sm:$0xf] }
 0x297   :  { %v761_v2 = vmax.f32 %v728_v50, 0.0  ;;  %13254 = vst [vmem:[#allocation53_spill] sm:$0xff] %v11161_v28  ;;  %v11164_v29 = vrot.slane %v842_v27, %v11098_v49  ;;  %v11167_v30 = vrot.slane %v842_v27, %v11158_v26  ;;  %v11170_v31 = vrot.slane %v842_v27, %v11101_v55  ;;  %v11175_v42 = vld [vmem:[#allocation10 + $0x440] sm:$0xff] }
 0x298   :  { %v840_v3 = vpack.c.bf16 %v760_v63, %v758_v62  ;;  %v11173_v33 = vrot.slane %v842_v27, %v11161_v28  ;;  %v11177_v43 = vld [vmem:[#allocation10 + $0x460] sm:$0xff]  ;;  %v11181_v63 = vld [vmem:[#allocation10 + $0x448] sm:$0xff] }
 0x299   :  { %v841_v34 = vpack.c.bf16 %v761_v2, %v759_v1  ;;  %3111 = vmatpush1.bf16.msra.mxu0 %v8780_v60  ;;  %3337 = vmatpush1.bf16.msra.mxu1 %v8782_v61  ;;  %v11183_v1 = vld [vmem:[#allocation10 + $0x468] sm:$0xff]  ;;  %v1722_v28 = vld [vmem:[#allocation10 + $0x7c0] sm:$0xff] }
 0x29a   :  { %3112 = vmatprep.subr.bf16.mxu0 %v8789_v4  ;;  %3338 = vmatprep.subr.bf16.mxu1 %v8791_v8 }
 0x29b   :  { %1286 = vmatprep.mubr.bf16.mxu0 %v841_v34  ;;  %1399 = vmatprep.mubr.bf16.mxu1 %v841_v34 }
 0x29c   :  { %1287 = vmatmul.mubr.bf16.gmra.mrb[44].mxu0 %v840_v3  ;;  %1400 = vmatmul.mubr.bf16.gmra.mrb[60].mxu1 %v840_v3 }
 0x29d   :  { %3113 = vmatpush1.bf16.msra.mxu0 %v8788_v6  ;;  %3339 = vmatpush1.bf16.msra.mxu1 %v8790_v7  ;;  %v8813_v6 = vcombine.high %v11175_v42, %v11177_v43 }
 0x29e   :  { %3114 = vmatprep.subr.bf16.mxu0 %v8797_v11  ;;  %3340 = vmatprep.subr.bf16.mxu1 %v8799_v15  ;;  %v11199_v11 = vld [vmem:[#allocation10 + $0x4a0] sm:$0xff] }
 0x2a1   :  { %3115 = vmatpush1.bf16.msra.mxu0 %v8796_v13  ;;  %3341 = vmatpush1.bf16.msra.mxu1 %v8798_v14 }
 0x2a2   :  { %3197 = vmatprep.subr.bf16.mxu0 %v8805_v19  ;;  %3423 = vmatprep.subr.bf16.mxu1 %v8807_v25  ;;  %v11201_v19 = vld [vmem:[#allocation10 + $0x488] sm:$0xff] }
 0x2a3   :  { %v11203_v25 = vld [vmem:[#allocation10 + $0x4a8] sm:$0xff] }
 0x337   :  { %v1218_v35 = vpop.f32.mrb[16].mxu0  ;;  %v1331_v40 = vpop.f32.mrb[32].mxu1 }
 0x338   :  { %v1219_v50 = vadd.f32 %v1218_v35, %v11164_v29  ;;  %v1332_v60 = vadd.f32 %v1331_v40, %v11167_v30  ;;  %v1220_v61 = vpop.f32.mrb[17].mxu0  ;;  %v1333_v62 = vpop.f32.mrb[33].mxu1 }
 0x339   :  { %v1221_v2 = vadd.f32 %v1220_v61, %v11170_v31  ;;  %v1334_v3 = vadd.f32 %v1333_v62, %v11173_v33  ;;  %v1222_v34 = vpop.f32.mrb[18].mxu0  ;;  %v1335_v56 = vpop.f32.mrb[34].mxu1  ;;  %v11205_v62 = vld [vmem:[#allocation10 + $0x4c0] sm:$0xff] }
 0x33a   :  { %v1223_v59 = vadd.f32 %v1222_v34, %v11164_v29  ;;  %v1336_v41 = vadd.f32 %v1335_v56, %v11167_v30  ;;  %v1224_v4 = vpop.f32.mrb[19].mxu0  ;;  %v1337_v5 = vpop.f32.mrb[35].mxu1  ;;  %v1410_v12 = vmax.f32 %v1219_v50, 0.0  ;;  %v1412_v13 = vmax.f32 %v1332_v60, 0.0  ;;  %v11207_v34 = vld [vmem:[#allocation10 + $0x4e0] sm:$0xff] }
 0x33b   :  { %v1225_v7 = vadd.f32 %v1224_v4, %v11170_v31  ;;  %v1338_v8 = vadd.f32 %v1337_v5, %v11173_v33  ;;  %v1411_v27 = vmax.f32 %v1221_v2, 0.0  ;;  %v1413_v35 = vmax.f32 %v1334_v3, 0.0 }
 0x33c   :  { %v1414_v14 = vmax.f32 %v1223_v59, 0.0  ;;  %v1416_v15 = vmax.f32 %v1336_v41, 0.0  ;;  %v8815_v50 = vcombine.high %v11181_v63, %v11183_v1 }
 0x33d   :  { %v1415_v40 = vmax.f32 %v1225_v7, 0.0  ;;  %v1417_v61 = vmax.f32 %v1338_v8, 0.0  ;;  %v11225_v8 = vld [vmem:[#allocation10 + $0x4c8] sm:$0xff] }
 0x33e   :  { %v11209_v56 = vpack.c.bf16 %v1414_v14, %v1410_v12  ;;  %v11211_v4 = vpack.c.bf16 %v1416_v15, %v1412_v13  ;;  %v11227_v12 = vld [vmem:[#allocation10 + $0x4e8] sm:$0xff] }
 0x33f   :  { %v11217_v59 = vpack.c.bf16 %v1415_v40, %v1411_v27  ;;  %v11219_v2 = vpack.c.bf16 %v1417_v61, %v1413_v35  ;;  %v1228_v3 = vpop.f32.mrb[20].mxu0  ;;  %v1341_v41 = vpop.f32.mrb[36].mxu1  ;;  %v8823_v35 = vcombine.high %v11201_v19, %v11203_v25 }
 0x340   :  { %v1229_v13 = vadd.f32 %v1228_v3, %v11164_v29  ;;  %v1342_v14 = vadd.f32 %v1341_v41, %v11167_v30  ;;  %v1230_v15 = vpop.f32.mrb[21].mxu0  ;;  %v1343_v27 = vpop.f32.mrb[37].mxu1  ;;  %v11259_v3 = vld [vmem:[#allocation10 + $0x520] sm:$0xff] }
 0x341   :  { %v1231_v61 = vadd.f32 %v1230_v15, %v11170_v31  ;;  %v1344_v0 = vadd.f32 %v1343_v27, %v11173_v33  ;;  %v1232_v7 = vpop.f32.mrb[22].mxu0  ;;  %v1345_v5 = vpop.f32.mrb[38].mxu1  ;;  %3116 = vmatprep.mubr.bf16.mxu0 %v11217_v59  ;;  %3342 = vmatprep.mubr.bf16.mxu1 %v11217_v59 }
 0x342   :  { %v1233_v41 = vadd.f32 %v1232_v7, %v11164_v29  ;;  %v1346_v60 = vadd.f32 %v1345_v5, %v11167_v30  ;;  %v1234_v10 = vpop.f32.mrb[23].mxu0  ;;  %v1347_v9 = vpop.f32.mrb[39].mxu1  ;;  %3117 = vmatmul.mubr.bf16.vlgmr.msra.gmra.mrb[48].mxu0 %v11209_v56  ;;  %3343 = vmatmul.mubr.bf16.vlgmr.msra.gmra.mrb[64].mxu1 %v11209_v56  ;;  %v8831_v5 = vcombine.high %v11225_v8, %v11227_v12  ;;  %v11257_v7 = vld [vmem:[#allocation10 + $0x500] sm:$0xff]  ;;  %v1418_v15 = vmax.f32 %v1229_v13, 0.0 }
 0x343   :  { %v1235_v27 = vadd.f32 %v1234_v10, %v11170_v31  ;;  %v1348_v40 = vadd.f32 %v1347_v9, %v11173_v33  ;;  %3198 = vmatpush1.bf16.msra.mxu0 %v8804_v23  ;;  %3424 = vmatpush1.bf16.msra.mxu1 %v8806_v24  ;;  %v1420_v58 = vmax.f32 %v1342_v14, 0.0  ;;  %v11261_v9 = vld [vmem:[#allocation10 + $0x508] sm:$0xff]  ;;  %v1419_v17 = vmax.f32 %v1231_v61, 0.0  ;;  %v11322_v13 = vld [vmem:[#allocation10 + $0x580] sm:$0xff] }
 0x344   :  { %v1422_v10 = vmax.f32 %v1233_v41, 0.0  ;;  %v1424_v57 = vmax.f32 %v1346_v60, 0.0  ;;  %3199 = vmatprep.subr.bf16.mxu0 %v8813_v6  ;;  %3425 = vmatprep.subr.bf16.mxu1 %v8815_v50  ;;  %v1421_v18 = vmax.f32 %v1344_v0, 0.0  ;;  %v11273_v6 = vld [vmem:[#allocation10 + $0x540] sm:$0xff]  ;;  %v13255_v0 = vcombine.low %v11175_v42, %v11177_v43  ;;  %v11296_v43 = vld [vmem:[#allocation10 + $0x548] sm:$0xff] }
 0x345   :  { %v1423_v22 = vmax.f32 %v1235_v27, 0.0  ;;  %v1425_v23 = vmax.f32 %v1348_v40, 0.0  ;;  %v11275_v50 = vld [vmem:[#allocation10 + $0x560] sm:$0xff]  ;;  %v13256_v40 = vcombine.low %v11181_v63, %v11183_v1  ;;  %v8839_v42 = vcombine.high %v11261_v9, %v11263_v16  ;;  %v11298_v63 = vld [vmem:[#allocation10 + $0x568] sm:$0xff] }
 0x346   :  { %v11265_v24 = vpack.c.bf16 %v1422_v10, %v1418_v15  ;;  %v11267_v54 = vpack.c.bf16 %v1424_v57, %v1420_v58  ;;  %v11324_v60 = vld [vmem:[#allocation10 + $0x5a0] sm:$0xff] }
 0x347   :  { %v11277_v14 = vpack.c.bf16 %v1423_v22, %v1419_v17  ;;  %v11279_v61 = vpack.c.bf16 %v1425_v23, %v1421_v18  ;;  %3200 = vmatpush1.bf16.msra.mxu0 %v13255_v0  ;;  %v1238_v57 = vpop.f32.mrb[24].mxu0  ;;  %v1351_v58 = vpop.f32.mrb[40].mxu1  ;;  %3426 = vmatpush1.bf16.msra.mxu1 %v13256_v40  ;;  %v13257_v18 = vcombine.high %v11197_v32, %v11199_v11 }
 0x348   :  { %v1239_v15 = vadd.f32 %v1238_v57, %v11164_v29  ;;  %v1352_v27 = vadd.f32 %v1351_v58, %v11167_v30  ;;  %v1240_v10 = vpop.f32.mrb[25].mxu0  ;;  %v1353_v17 = vpop.f32.mrb[41].mxu1  ;;  %3427 = vmatprep.subr.bf16.mxu1 %v8823_v35  ;;  %v13258_v35 = vcombine.low %v11197_v32, %v11199_v11 }
 0x349   :  { %3201 = vmatprep.subr.bf16.mxu0 %v13257_v18  ;;  %v1241_v1 = vadd.f32 %v1240_v10, %v11170_v31  ;;  %v1354_v22 = vadd.f32 %v1353_v17, %v11173_v33  ;;  %v1242_v23 = vpop.f32.mrb[26].mxu0  ;;  %v1355_v0 = vpop.f32.mrb[42].mxu1  ;;  %3126 = vmatprep.mubr.bf16.mxu0 %v11277_v14 }
 0x34a   :  { %3352 = vmatprep.mubr.bf16.mxu1 %v11277_v14  ;;  %v1243_v57 = vadd.f32 %v1242_v23, %v11164_v29  ;;  %v1356_v58 = vadd.f32 %v1355_v0, %v11167_v30  ;;  %v1244_v40 = vpop.f32.mrb[27].mxu0  ;;  %v1357_v18 = vpop.f32.mrb[43].mxu1  ;;  %3127 = vmatmul.mubr.bf16.gmra.mrb[52].mxu0 %v11265_v24  ;;  %v13259_v23 = vcombine.low %v11201_v19, %v11203_v25  ;;  %v1426_v10 = vmax.f32 %v1239_v15, 0.0 }
 0x34b   :  { %3353 = vmatmul.mubr.bf16.gmra.mrb[68].mxu1 %v11265_v24  ;;  %v1245_v17 = vadd.f32 %v1244_v40, %v11170_v31  ;;  %v1358_v41 = vadd.f32 %v1357_v18, %v11173_v33  ;;  %3202 = vmatpush1.bf16.msra.mxu0 %v13258_v35  ;;  %v1428_v53 = vmax.f32 %v1352_v27, 0.0  ;;  %v13260_v18 = vcombine.high %v11205_v62, %v11207_v34  ;;  %v11329_v35 = vld [vmem:[#allocation10 + $0x588] sm:$0xff] }
 0x34c   :  { %3428 = vmatpush1.bf16.msra.mxu1 %v13259_v23  ;;  %v1430_v40 = vmax.f32 %v1243_v57, 0.0  ;;  %v1432_v52 = vmax.f32 %v1356_v58, 0.0  ;;  %v1427_v32 = vmax.f32 %v1241_v1, 0.0  ;;  %v1429_v11 = vmax.f32 %v1354_v22, 0.0  ;;  %v11331_v23 = vld [vmem:[#allocation10 + $0x5a8] sm:$0xff]  ;;  %v11353_v58 = vld [vmem:[#allocation10 + $0x5c0] sm:$0xff] }
 0x34d   :  { %3203 = vmatprep.subr.bf16.mxu0 %v13260_v18  ;;  %3429 = vmatprep.subr.bf16.mxu1 %v8831_v5  ;;  %v1431_v19 = vmax.f32 %v1245_v17, 0.0  ;;  %v1433_v25 = vmax.f32 %v1358_v41, 0.0  ;;  %v8847_v15 = vcombine.high %v11296_v43, %v11298_v63  ;;  %v13261_v41 = vcombine.low %v11205_v62, %v11207_v34 }
 0x34e   :  { %v11333_v0 = vpack.c.bf16 %v1430_v40, %v1426_v10  ;;  %v11335_v51 = vpack.c.bf16 %v1432_v52, %v1428_v53  ;;  %v13262_v52 = vcombine.low %v11225_v8, %v11227_v12  ;;  %v11355_v10 = vld [vmem:[#allocation10 + $0x5e0] sm:$0xff]  ;;  %v13263_v34 = vcombine.high %v11257_v7, %v11259_v3  ;;  %v11386_v8 = vld [vmem:[#allocation10 + $0x5c8] sm:$0xff] }
 0x34f   :  { %v11341_v57 = vpack.c.bf16 %v1431_v19, %v1427_v32  ;;  %v11343_v5 = vpack.c.bf16 %v1433_v25, %v1429_v11  ;;  %3204 = vmatpush1.bf16.msra.mxu0 %v13261_v41  ;;  %v1248_v1 = vpop.f32.mrb[28].mxu0  ;;  %v1361_v22 = vpop.f32.mrb[44].mxu1  ;;  %v8855_v25 = vcombine.high %v11329_v35, %v11331_v23  ;;  %v11388_v53 = vld [vmem:[#allocation10 + $0x5e8] sm:$0xff] }
 0x350   :  { %3430 = vmatpush1.bf16.msra.mxu1 %v13262_v52  ;;  %v1249_v17 = vadd.f32 %v1248_v1, %v11164_v29  ;;  %v1362_v40 = vadd.f32 %v1361_v22, %v11167_v30  ;;  %v1250_v18 = vpop.f32.mrb[29].mxu0  ;;  %v1363_v62 = vpop.f32.mrb[45].mxu1  ;;  %3205 = vmatprep.subr.bf16.mxu0 %v13263_v34  ;;  %v13264_v34 = vcombine.low %v11257_v7, %v11259_v3  ;;  %v11393_v3 = vld [vmem:[#allocation10 + $0x600] sm:$0xff] }
 0x351   :  { %3431 = vmatprep.subr.bf16.mxu1 %v8839_v42  ;;  %v1251_v12 = vadd.f32 %v1250_v18, %v11170_v31  ;;  %v1364_v32 = vadd.f32 %v1363_v62, %v11173_v33  ;;  %v1252_v11 = vpop.f32.mrb[30].mxu0  ;;  %v1365_v19 = vpop.f32.mrb[46].mxu1  ;;  %3136 = vmatprep.mubr.bf16.mxu0 %v11341_v57  ;;  %v11395_v7 = vld [vmem:[#allocation10 + $0x620] sm:$0xff] }
 0x352   :  { %3362 = vmatprep.mubr.bf16.mxu1 %v11341_v57  ;;  %v1253_v41 = vadd.f32 %v1252_v11, %v11164_v29  ;;  %v1366_v42 = vadd.f32 %v1365_v19, %v11167_v30  ;;  %v1254_v1 = vpop.f32.mrb[31].mxu0  ;;  %v1367_v22 = vpop.f32.mrb[47].mxu1  ;;  %3137 = vmatmul.mubr.bf16.gmra.mrb[56].mxu0 %v11333_v0  ;;  %v13265_v11 = vcombine.low %v11261_v9, %v11263_v16  ;;  %v1434_v52 = vmax.f32 %v1249_v17, 0.0 }
 0x353   :  { %3363 = vmatmul.mubr.bf16.gmra.mrb[72].mxu1 %v11333_v0  ;;  %v1255_v18 = vadd.f32 %v1254_v1, %v11170_v31  ;;  %v1368_v62 = vadd.f32 %v1367_v22, %v11173_v33  ;;  %3206 = vmatpush1.bf16.msra.mxu0 %v13264_v34  ;;  %v1436_v27 = vmax.f32 %v1362_v40, 0.0  ;;  %v13266_v22 = vcombine.high %v11273_v6, %v11275_v50 }
 0x354   :  { %3432 = vmatpush1.bf16.msra.mxu1 %v13265_v11  ;;  %v1438_v1 = vmax.f32 %v1253_v41, 0.0  ;;  %v1440_v48 = vmax.f32 %v1366_v42, 0.0  ;;  %v1435_v9 = vmax.f32 %v1251_v12, 0.0  ;;  %v1437_v16 = vmax.f32 %v1364_v32, 0.0  ;;  %v11405_v41 = vld [vmem:[#allocation10 + $0x608] sm:$0xff] }
 0x355   :  { %3207 = vmatprep.subr.bf16.mxu0 %v13266_v22  ;;  %3433 = vmatprep.subr.bf16.mxu1 %v8847_v15  ;;  %v1439_v34 = vmax.f32 %v1255_v18, 0.0  ;;  %v1441_v11 = vmax.f32 %v1368_v62, 0.0  ;;  %v8862_v17 = vcombine.low %v11386_v8, %v11388_v53  ;;  %v8863_v40 = vcombine.high %v11386_v8, %v11388_v53  ;;  %v11407_v15 = vld [vmem:[#allocation10 + $0x628] sm:$0xff] }
 0x356   :  { %v11397_v19 = vpack.c.bf16 %v1438_v1, %v1434_v52  ;;  %v11399_v47 = vpack.c.bf16 %v1440_v48, %v1436_v27  ;;  %v13267_v32 = vcombine.low %v11273_v6, %v11275_v50  ;;  %v13268_v52 = vcombine.low %v11296_v43, %v11298_v63  ;;  %v11428_v50 = vld [vmem:[#allocation10 + $0x640] sm:$0xff]  ;;  %v11456_v6 = vld [vmem:[#allocation10 + $0x668] sm:$0xff] }
 0x357   :  { %v11409_v42 = vpack.c.bf16 %v1439_v34, %v1435_v9  ;;  %v11411_v12 = vpack.c.bf16 %v1441_v11, %v1437_v16  ;;  %v1258_v48 = vpop.f32.mrb[32].mxu0  ;;  %v1371_v27 = vpop.f32.mrb[48].mxu1  ;;  %v8869_v53 = vcombine.high %v11393_v3, %v11395_v7  ;;  %v13269_v22 = vcombine.high %v11322_v13, %v11324_v60  ;;  %v11430_v43 = vld [vmem:[#allocation10 + $0x660] sm:$0xff] }
 0x358   :  { %3208 = vmatpush1.bf16.msra.mxu0 %v13267_v32  ;;  %3434 = vmatpush1.bf16.msra.mxu1 %v13268_v52  ;;  %v1259_v8 = vadd.f32 %v1258_v48, %v11164_v29  ;;  %v1372_v18 = vadd.f32 %v1371_v27, %v11167_v30  ;;  %v1260_v62 = vpop.f32.mrb[33].mxu0  ;;  %v1373_v1 = vpop.f32.mrb[49].mxu1  ;;  %v8871_v52 = vcombine.high %v11405_v41, %v11407_v15 }
 0x359   :  { %3209 = vmatprep.subr.bf16.mxu0 %v13269_v22  ;;  %3435 = vmatprep.subr.bf16.mxu1 %v8855_v25  ;;  %v1261_v63 = vadd.f32 %v1260_v62, %v11170_v31  ;;  %v1374_v9 = vadd.f32 %v1373_v1, %v11173_v33  ;;  %v1262_v16 = vpop.f32.mrb[34].mxu0  ;;  %v1375_v34 = vpop.f32.mrb[50].mxu1  ;;  %v13270_v22 = vcombine.low %v11322_v13, %v11324_v60  ;;  %v11454_v25 = vld [vmem:[#allocation10 + $0x648] sm:$0xff] }
 0x35a   :  { %3146 = vmatprep.mubr.bf16.mxu0 %v11409_v42  ;;  %3372 = vmatprep.mubr.bf16.mxu1 %v11409_v42  ;;  %v1263_v11 = vadd.f32 %v1262_v16, %v11164_v29  ;;  %v1376_v32 = vadd.f32 %v1375_v34, %v11167_v30  ;;  %v1264_v48 = vpop.f32.mrb[35].mxu0  ;;  %v1377_v27 = vpop.f32.mrb[51].mxu1  ;;  %v13271_v16 = vcombine.low %v11329_v35, %v11331_v23  ;;  %v1442_v46 = vmax.f32 %v1259_v8, 0.0 }
 0x35b   :  { %3147 = vmatmul.mubr.bf16.gmra.mrb[60].mxu0 %v11397_v19  ;;  %3373 = vmatmul.mubr.bf16.gmra.mrb[76].mxu1 %v11397_v19  ;;  %v1265_v62 = vadd.f32 %v1264_v48, %v11170_v31  ;;  %v1378_v1 = vadd.f32 %v1377_v27, %v11173_v33  ;;  %v8877_v34 = vcombine.high %v11428_v50, %v11430_v43  ;;  %v1444_v45 = vmax.f32 %v1372_v18, 0.0 }
 0x35c   :  { %3210 = vmatpush1.bf16.msra.mxu0 %v13270_v22  ;;  %3436 = vmatpush1.bf16.msra.mxu1 %v13271_v16  ;;  %v1446_v48 = vmax.f32 %v1263_v11, 0.0  ;;  %v1448_v37 = vmax.f32 %v1376_v32, 0.0  ;;  %v13272_v27 = vcombine.high %v11353_v58, %v11355_v10  ;;  %v1443_v13 = vmax.f32 %v1261_v63, 0.0  ;;  %v11461_v22 = vld [vmem:[#allocation10 + $0x680] sm:$0xff] }
 0x35d   :  { %3437 = vmatprep.subr.bf16.mxu1 %v8863_v40  ;;  %v1445_v60 = vmax.f32 %v1374_v9, 0.0  ;;  %v1447_v35 = vmax.f32 %v1265_v62, 0.0  ;;  %v1449_v23 = vmax.f32 %v1378_v1, 0.0  ;;  %v11463_v16 = vld [vmem:[#allocation10 + $0x6a0] sm:$0xff]  ;;  %v8876_v8 = vcombine.low %v11428_v50, %v11430_v43 }
 0x35e   :  { %3211 = vmatprep.subr.bf16.mxu0 %v13272_v27  ;;  %v11465_v36 = vpack.c.bf16 %v1446_v48, %v1442_v46  ;;  %v11467_v39 = vpack.c.bf16 %v1448_v37, %v1444_v45  ;;  %v8878_v18 = vcombine.low %v11454_v25, %v11456_v6  ;;  %v13273_v63 = vcombine.low %v11353_v58, %v11355_v10  ;;  %v11482_v45 = vld [vmem:[#allocation10 + $0x688] sm:$0xff] }
 0x35f   :  { %v11473_v11 = vpack.c.bf16 %v1447_v35, %v1443_v13  ;;  %v11475_v40 = vpack.c.bf16 %v1449_v23, %v1445_v60  ;;  %v1268_v9 = vpop.f32.mrb[36].mxu0  ;;  %v1381_v32 = vpop.f32.mrb[52].mxu1  ;;  %v8879_v37 = vcombine.high %v11454_v25, %v11456_v6  ;;  %v11484_v46 = vld [vmem:[#allocation10 + $0x6a8] sm:$0xff]  ;;  %v8885_v58 = vcombine.high %v11461_v22, %v11463_v16 }
 0x360   :  { %3212 = vmatpush1.bf16.msra.mxu0 %v13273_v63  ;;  %3438 = vmatpush1.bf16.msra.mxu1 %v8862_v17  ;;  %v1269_v50 = vadd.f32 %v1268_v9, %v11164_v29  ;;  %v1382_v43 = vadd.f32 %v1381_v32, %v11167_v30  ;;  %v1270_v62 = vpop.f32.mrb[37].mxu0  ;;  %v1383_v1 = vpop.f32.mrb[53].mxu1  ;;  %v8886_v60 = vcombine.low %v11482_v45, %v11484_v46 }
 0x361   :  { %3213 = vmatprep.subr.bf16.mxu0 %v8869_v53  ;;  %3439 = vmatprep.subr.bf16.mxu1 %v8871_v52  ;;  %v1271_v10 = vadd.f32 %v1270_v62, %v11170_v31  ;;  %v1384_v17 = vadd.f32 %v1383_v1, %v11173_v33  ;;  %v1272_v6 = vpop.f32.mrb[38].mxu0  ;;  %v1385_v25 = vpop.f32.mrb[54].mxu1  ;;  %v13274_v63 = vcombine.low %v11393_v3, %v11395_v7  ;;  %v11512_v62 = vld [vmem:[#allocation10 + $0x6c0] sm:$0xff]  ;;  %v11518_v3 = vld [vmem:[#allocation10 + $0x6e8] sm:$0xff] }
 0x362   :  { %3156 = vmatprep.mubr.bf16.mxu0 %v11473_v11  ;;  %3382 = vmatprep.mubr.bf16.mxu1 %v11473_v11  ;;  %v1273_v27 = vadd.f32 %v1272_v6, %v11164_v29  ;;  %v1386_v53 = vadd.f32 %v1385_v25, %v11167_v30  ;;  %v1274_v52 = vpop.f32.mrb[39].mxu0  ;;  %v1387_v13 = vpop.f32.mrb[55].mxu1  ;;  %v13275_v9 = vcombine.low %v11405_v41, %v11407_v15  ;;  %v11514_v1 = vld [vmem:[#allocation10 + $0x6e0] sm:$0xff]  ;;  %v1450_v6 = vmax.f32 %v1269_v50, 0.0 }
 0x363   :  { %3157 = vmatmul.mubr.bf16.gmra.mrb[64].mxu0 %v11465_v36  ;;  %3383 = vmatmul.mubr.bf16.gmra.mrb[80].mxu1 %v11465_v36  ;;  %v1275_v35 = vadd.f32 %v1274_v52, %v11170_v31  ;;  %v1388_v23 = vadd.f32 %v1387_v13, %v11173_v33  ;;  %v8887_v32 = vcombine.high %v11482_v45, %v11484_v46  ;;  %v1452_v25 = vmax.f32 %v1382_v43, 0.0  ;;  %v11516_v13 = vld [vmem:[#allocation10 + $0x6c8] sm:$0xff] }
 0x364   :  { %3214 = vmatpush1.bf16.msra.mxu0 %v13274_v63  ;;  %3440 = vmatpush1.bf16.msra.mxu1 %v13275_v9  ;;  %v1454_v52 = vmax.f32 %v1273_v27, 0.0  ;;  %v1456_v48 = vmax.f32 %v1386_v53, 0.0  ;;  %v1451_v7 = vmax.f32 %v1271_v10, 0.0  ;;  %v1453_v41 = vmax.f32 %v1384_v17, 0.0 }
 0x365   :  { %3215 = vmatprep.subr.bf16.mxu0 %v8877_v34  ;;  %3441 = vmatprep.subr.bf16.mxu1 %v8879_v37  ;;  %v1455_v15 = vmax.f32 %v1275_v35, 0.0  ;;  %v1457_v63 = vmax.f32 %v1388_v23, 0.0  ;;  %v8892_v46 = vcombine.low %v11512_v62, %v11514_v1  ;;  %v8893_v50 = vcombine.high %v11512_v62, %v11514_v1  ;;  %v11528_v34 = vld [vmem:[#allocation10 + $0x700] sm:$0xff] }
 0x366   :  { %v11520_v9 = vpack.c.bf16 %v1454_v52, %v1450_v6  ;;  %v11522_v45 = vpack.c.bf16 %v1456_v48, %v1452_v25  ;;  %v11530_v37 = vld [vmem:[#allocation10 + $0x720] sm:$0xff]  ;;  %v8894_v48 = vcombine.low %v11516_v13, %v11518_v3  ;;  %v8895_v1 = vcombine.high %v11516_v13, %v11518_v3  ;;  %v11542_v6 = vld [vmem:[#allocation10 + $0x708] sm:$0xff] }
 0x367   :  { %v11532_v43 = vpack.c.bf16 %v1455_v15, %v1451_v7  ;;  %v11534_v10 = vpack.c.bf16 %v1457_v63, %v1453_v41  ;;  %v1278_v17 = vpop.f32.mrb[40].mxu0  ;;  %v1391_v27 = vpop.f32.mrb[56].mxu1  ;;  %v8900_v15 = vcombine.low %v11528_v34, %v11530_v37 }
 0x368   :  { %3216 = vmatpush1.bf16.msra.mxu0 %v8876_v8  ;;  %3442 = vmatpush1.bf16.msra.mxu1 %v8878_v18  ;;  %v1279_v53 = vadd.f32 %v1278_v17, %v11164_v29  ;;  %v1392_v35 = vadd.f32 %v1391_v27, %v11167_v30  ;;  %v1280_v23 = vpop.f32.mrb[41].mxu0  ;;  %v1393_v62 = vpop.f32.mrb[57].mxu1  ;;  %v11544_v8 = vld [vmem:[#allocation10 + $0x728] sm:$0xff]  ;;  %v13276_v27 = vcombine.low %v11461_v22, %v11463_v16 }
 0x369   :  { %3217 = vmatprep.subr.bf16.mxu0 %v8885_v58  ;;  %3443 = vmatprep.subr.bf16.mxu1 %v8887_v32  ;;  %v1281_v18 = vadd.f32 %v1280_v23, %v11170_v31  ;;  %v1394_v25 = vadd.f32 %v1393_v62, %v11173_v33  ;;  %v1282_v52 = vpop.f32.mrb[42].mxu0  ;;  %v1395_v7 = vpop.f32.mrb[58].mxu1  ;;  %v8901_v58 = vcombine.high %v11528_v34, %v11530_v37  ;;  %v11565_v62 = vld [vmem:[#allocation10 + $0x740] sm:$0xff]  ;;  %v1707_v22 = vld [vmem:[#allocation10 + $0x748] sm:$0xff] }
 0x36a   :  { %3166 = vmatprep.mubr.bf16.mxu0 %v11532_v43  ;;  %3392 = vmatprep.mubr.bf16.mxu1 %v11532_v43  ;;  %v1283_v32 = vadd.f32 %v1282_v52, %v11164_v29  ;;  %v1396_v13 = vadd.f32 %v1395_v7, %v11167_v30  ;;  %v1284_v3 = vpop.f32.mrb[43].mxu0  ;;  %v1397_v41 = vpop.f32.mrb[59].mxu1  ;;  %v8903_v23 = vcombine.high %v11542_v6, %v11544_v8  ;;  %v11567_v52 = vld [vmem:[#allocation10 + $0x760] sm:$0xff]  ;;  %v1458_v7 = vmax.f32 %v1279_v53, 0.0  ;;  %v1711_v16 = vld [vmem:[#allocation10 + $0x768] sm:$0xff] }
 0x36b   :  { %3167 = vmatmul.mubr.bf16.gmra.mrb[68].mxu0 %v11520_v9  ;;  %3393 = vmatmul.mubr.bf16.gmra.mrb[84].mxu1 %v11520_v9  ;;  %v1285_v63 = vadd.f32 %v1284_v3, %v11170_v31  ;;  %v1398_v17 = vadd.f32 %v1397_v41, %v11173_v33  ;;  %v1460_v38 = vmax.f32 %v1392_v35, 0.0  ;;  %v1459_v37 = vmax.f32 %v1281_v18, 0.0 }
 0x36c   :  { %3218 = vmatpush1.bf16.msra.mxu0 %v13276_v27  ;;  %3444 = vmatpush1.bf16.msra.mxu1 %v8886_v60  ;;  %v1462_v21 = vmax.f32 %v1283_v32, 0.0  ;;  %v1464_v34 = vmax.f32 %v1396_v13, 0.0  ;;  %v1461_v3 = vmax.f32 %v1394_v25, 0.0  ;;  %v8902_v44 = vcombine.low %v11542_v6, %v11544_v8  ;;  %v11583_v25 = vld [vmem:[#allocation10 + $0x780] sm:$0xff] }
 0x36d   :  { %3219 = vmatprep.subr.bf16.mxu0 %v8893_v50  ;;  %3445 = vmatprep.subr.bf16.mxu1 %v8895_v1  ;;  %v1463_v41 = vmax.f32 %v1285_v63, 0.0  ;;  %v1465_v20 = vmax.f32 %v1398_v17, 0.0  ;;  %v8909_v53 = vcombine.high %v11565_v62, %v11567_v52  ;;  %v1719_v63 = vld [vmem:[#allocation10 + $0x7a8] sm:$0xff] }
 0x36e   :  { %v11569_v60 = vpack.c.bf16 %v1462_v21, %v1458_v7  ;;  %v11571_v27 = vpack.c.bf16 %v1464_v34, %v1460_v38  ;;  %v8908_v21 = vcombine.low %v11565_v62, %v11567_v52  ;;  %v11585_v38 = vld [vmem:[#allocation10 + $0x7a0] sm:$0xff]  ;;  %v8910_v7 = vcombine.low %v1707_v22, %v1711_v16 }
 0x36f   :  { %v11577_v35 = vpack.c.bf16 %v1463_v41, %v1459_v37  ;;  %v11579_v50 = vpack.c.bf16 %v1465_v20, %v1461_v3  ;;  %v1288_v1 = vpop.f32.mrb[44].mxu0  ;;  %v1401_v18 = vpop.f32.mrb[60].mxu1  ;;  %v8911_v20 = vcombine.high %v1707_v22, %v1711_v16  ;;  %v8917_v3 = vcombine.high %v11583_v25, %v11585_v38 }
 0x370   :  { %3220 = vmatpush1.bf16.msra.mxu0 %v8892_v46  ;;  %3446 = vmatpush1.bf16.msra.mxu1 %v8894_v48  ;;  %v1289_v6 = vadd.f32 %v1288_v1, %v11164_v29  ;;  %v1402_v8 = vadd.f32 %v1401_v18, %v11167_v30  ;;  %v1290_v32 = vpop.f32.mrb[45].mxu0  ;;  %v1403_v13 = vpop.f32.mrb[61].mxu1  ;;  %v1715_v46 = vld [vmem:[#allocation10 + $0x788] sm:$0xff] }
 0x371   :  { %3221 = vmatprep.subr.bf16.mxu0 %v8901_v58  ;;  %3447 = vmatprep.subr.bf16.mxu1 %v8903_v23  ;;  %v1291_v48 = vadd.f32 %v1290_v32, %v11170_v31  ;;  %v1404_v17 = vadd.f32 %v1403_v13, %v11173_v33  ;;  %v1292_v62 = vpop.f32.mrb[46].mxu0  ;;  %v1405_v52 = vpop.f32.mrb[62].mxu1  ;;  %v8919_v22 = vcombine.high %v1715_v46, %v1719_v63 }
 0x372   :  { %3176 = vmatprep.mubr.bf16.mxu0 %v11577_v35  ;;  %3402 = vmatprep.mubr.bf16.mxu1 %v11577_v35  ;;  %v1293_v34 = vadd.f32 %v1292_v62, %v11164_v29  ;;  %v1406_v37 = vadd.f32 %v1405_v52, %v11167_v30  ;;  %v1294_v58 = vpop.f32.mrb[47].mxu0  ;;  %v1407_v23 = vpop.f32.mrb[63].mxu1  ;;  %v1466_v16 = vmax.f32 %v1289_v6, 0.0  ;;  %v1468_v29 = vmax.f32 %v1402_v8, 0.0 }
 0x373   :  { %3177 = vmatmul.mubr.bf16.gmra.mrb[72].mxu0 %v11569_v60  ;;  %3403 = vmatmul.mubr.bf16.gmra.mrb[88].mxu1 %v11569_v60  ;;  %v1295_v41 = vadd.f32 %v1294_v58, %v11170_v31  ;;  %v1408_v1 = vadd.f32 %v1407_v23, %v11173_v33  ;;  %v1467_v32 = vmax.f32 %v1291_v48, 0.0  ;;  %v1469_v13 = vmax.f32 %v1404_v17, 0.0  ;;  %v1726_v31 = vld [vmem:[#allocation10 + $0x7e0] sm:$0xff]  ;;  %v1723_v33 = vld [vmem:[#allocation10 + $0x7c8] sm:$0xff]  ;;  %v1476_v17 = vld [vmem:[#allocation10 + $0x10] sm:$0xff] }
 0x374   :  { %3222 = vmatpush1.bf16.msra.mxu0 %v8900_v15  ;;  %3448 = vmatpush1.bf16.msra.mxu1 %v8902_v44  ;;  %v1470_v18 = vmax.f32 %v1293_v34, 0.0  ;;  %v1472_v30 = vmax.f32 %v1406_v37, 0.0  ;;  %v1727_v15 = vld [vmem:[#allocation10 + $0x7e8] sm:$0xff]  ;;  %v8918_v8 = vcombine.low %v1715_v46, %v1719_v63  ;;  %v1480_v34 = vld [vmem:[#allocation10 + $0x30] sm:$0xff] }
 0x375   :  { %3223 = vmatprep.subr.bf16.mxu0 %v8909_v53  ;;  %3449 = vmatprep.subr.bf16.mxu1 %v8911_v20  ;;  %v1471_v62 = vmax.f32 %v1295_v41, 0.0  ;;  %v1473_v52 = vmax.f32 %v1408_v1, 0.0  ;;  %v8916_v53 = vcombine.low %v11583_v25, %v11585_v38  ;;  %v8925_v20 = vcombine.high %v1722_v28, %v1726_v31  ;;  %v1484_v37 = vld [vmem:[#allocation10 + $0x50] sm:$0xff]  ;;  %v1489_v41 = vld [vmem:[#allocation10 + $0x78] sm:$0xff] }
 0x376   :  { %v11601_v55 = vpack.c.bf16 %v1470_v18, %v1466_v16  ;;  %v11603_v26 = vpack.c.bf16 %v1472_v30, %v1468_v29  ;;  %v8927_v48 = vcombine.high %v1723_v33, %v1727_v15  ;;  %v8924_v25 = vcombine.low %v1722_v28, %v1726_v31  ;;  %v1488_v58 = vld [vmem:[#allocation10 + $0x70] sm:$0xff]  ;;  %v1493_v30 = vld [vmem:[#allocation10 + $0x98] sm:$0xff] }
 0x377   :  { %v11605_v44 = vpack.c.bf16 %v1471_v62, %v1467_v32  ;;  %v11607_v6 = vpack.c.bf16 %v1473_v52, %v1469_v13  ;;  %v8926_v38 = vcombine.low %v1723_v33, %v1727_v15  ;;  %v8681_v46 = vcombine.high %v1476_v17, %v1480_v34  ;;  %v1492_v28 = vld [vmem:[#allocation10 + $0x90] sm:$0xff]  ;;  %v1497_v32 = vld [vmem:[#allocation10 + $0xb8] sm:$0xff] }
 0x378   :  { %3224 = vmatpush1.bf16.msra.mxu0 %v8908_v21  ;;  %3450 = vmatpush1.bf16.msra.mxu1 %v8910_v7  ;;  %v1477_v21 = vld [vmem:[#allocation10 + $0x18] sm:$0xff]  ;;  %v8680_v23 = vcombine.low %v1476_v17, %v1480_v34  ;;  %v1496_v16 = vld [vmem:[#allocation10 + $0xb0] sm:$0xff]  ;;  %v8688_v18 = vcombine.low %v1484_v37, %v1488_v58  ;;  %v8699_v52 = vcombine.high %v1493_v30, %v1497_v32 }
 0x379   :  { %3225 = vmatprep.subr.bf16.mxu0 %v8917_v3  ;;  %3451 = vmatprep.subr.bf16.mxu1 %v8919_v22  ;;  %v1481_v7 = vld [vmem:[#allocation10 + $0x38] sm:$0xff]  ;;  %v8689_v22 = vcombine.high %v1484_v37, %v1488_v58  ;;  %v8697_v13 = vcombine.high %v1492_v28, %v1496_v16  ;;  %v1500_v31 = vld [vmem:[#allocation10 + $0xd0] sm:$0xff]  ;;  %v8696_v15 = vcombine.low %v1492_v28, %v1496_v16 }
 0x37a   :  { %3186 = vmatprep.mubr.bf16.mxu0 %v11605_v44  ;;  %3412 = vmatprep.mubr.bf16.mxu1 %v11605_v44  ;;  %v8683_v63 = vcombine.high %v1477_v21, %v1481_v7  ;;  %v1485_v3 = vld [vmem:[#allocation10 + $0x58] sm:$0xff]  ;;  %v8682_v1 = vcombine.low %v1477_v21, %v1481_v7  ;;  %v1504_v33 = vld [vmem:[#allocation10 + $0xf0] sm:$0xff] }
 0x37b   :  { %3187 = vmatmul.mubr.bf16.gmra.mrb[76].mxu0 %v11601_v55  ;;  %3413 = vmatmul.mubr.bf16.gmra.mrb[92].mxu1 %v11601_v55  ;;  %v8691_v29 = vcombine.high %v1485_v3, %v1489_v41  ;;  %v8690_v62 = vcombine.low %v1485_v3, %v1489_v41  ;;  %v1508_v17 = vld [vmem:[#allocation10 + $0x110] sm:$0xff]  ;;  %v8704_v7 = vcombine.low %v1500_v31, %v1504_v33  ;;  %v1517_v41 = vld [vmem:[#allocation10 + $0x158] sm:$0xff] }
 0x37c   :  { %3226 = vmatpush1.bf16.msra.mxu0 %v8916_v53  ;;  %3229 = vmatprep.mubr.bf16.mxu0 %v11219_v2  ;;  %v1501_v53 = vld [vmem:[#allocation10 + $0xd8] sm:$0xff]  ;;  %v1512_v34 = vld [vmem:[#allocation10 + $0x130] sm:$0xff] }
 0x37d   :  { %3452 = vmatpush1.bf16.msra.mxu1 %v8918_v8  ;;  %3455 = vmatprep.mubr.bf16.mxu1 %v11219_v2  ;;  %v1505_v8 = vld [vmem:[#allocation10 + $0xf8] sm:$0xff]  ;;  %v1516_v58 = vld [vmem:[#allocation10 + $0x150] sm:$0xff]  ;;  %v8712_v3 = vcombine.low %v1508_v17, %v1512_v34 }
 0x37e   :  { %3227 = vmatprep.subr.bf16.mxu0 %v8925_v20  ;;  %3453 = vmatprep.subr.bf16.mxu1 %v8927_v48  ;;  %v8698_v20 = vcombine.low %v1493_v30, %v1497_v32  ;;  %v8705_v48 = vcombine.high %v1500_v31, %v1504_v33  ;;  %v8707_v21 = vcombine.high %v1501_v53, %v1505_v8  ;;  %v1524_v16 = vld [vmem:[#allocation10 + $0x190] sm:$0xff]  ;;  %v1525_v32 = vld [vmem:[#allocation10 + $0x198] sm:$0xff] }
 0x37f   :  { %v1532_v33 = vld [vmem:[#allocation10 + $0x1d0] sm:$0xff] }
 0x380   :  { %3228 = vmatpush1.bf16.msra.mxu0 %v8924_v25  ;;  %v1509_v25 = vld [vmem:[#allocation10 + $0x118] sm:$0xff] }
 0x381   :  { %3454 = vmatpush1.bf16.msra.mxu1 %v8926_v38  ;;  %3536 = vmatprep.subr.bf16.mxu0 %v8681_v46  ;;  %v1513_v38 = vld [vmem:[#allocation10 + $0x138] sm:$0xff]  ;;  %v8713_v46 = vcombine.high %v1508_v17, %v1512_v34  ;;  %v1540_v34 = vld [vmem:[#allocation10 + $0x210] sm:$0xff] }
 0x382   :  { %3762 = vmatprep.subr.bf16.mxu1 %v8683_v63  ;;  %v8706_v63 = vcombine.low %v1501_v53, %v1505_v8  ;;  %v8715_v37 = vcombine.high %v1509_v25, %v1513_v38  ;;  %v1533_v8 = vld [vmem:[#allocation10 + $0x1d8] sm:$0xff] }
 0x383   :  { %3230 = vmatmul.mubr.bf16.vlgmr.msra.gmra.mrb[48].mxu0 %v11211_v4 }
 0x384   :  { %3456 = vmatmul.mubr.bf16.vlgmr.msra.gmra.mrb[64].mxu1 %v11211_v4  ;;  %3537 = vmatpush1.bf16.msra.mxu0 %v8680_v23  ;;  %v1520_v23 = vld [vmem:[#allocation10 + $0x170] sm:$0xff] }
 0x385   :  { %3239 = vmatprep.mubr.bf16.mxu0 %v11279_v61  ;;  %3465 = vmatprep.mubr.bf16.mxu1 %v11279_v61  ;;  %v8721_v28 = vcombine.high %v1516_v58, %v1520_v23  ;;  %v8720_v30 = vcombine.low %v1516_v58, %v1520_v23  ;;  %v1548_v23 = vld [vmem:[#allocation10 + $0x250] sm:$0xff] }
 0x386   :  { %3763 = vmatpush1.bf16.msra.mxu1 %v8682_v1  ;;  %3538 = vmatprep.subr.bf16.mxu0 %v8689_v22  ;;  %v1521_v1 = vld [vmem:[#allocation10 + $0x178] sm:$0xff]  ;;  %v8714_v22 = vcombine.low %v1509_v25, %v1513_v38 }
 0x387   :  { %3764 = vmatprep.subr.bf16.mxu1 %v8691_v29  ;;  %v1528_v29 = vld [vmem:[#allocation10 + $0x1b0] sm:$0xff]  ;;  %v1541_v38 = vld [vmem:[#allocation10 + $0x218] sm:$0xff] }
 0x388   :  { %3539 = vmatpush1.bf16.msra.mxu0 %v8688_v18  ;;  %v8723_v18 = vcombine.high %v1517_v41, %v1521_v1  ;;  %v8728_v53 = vcombine.low %v1524_v16, %v1528_v29 }
 0x389   :  { %3540 = vmatprep.subr.bf16.mxu0 %v8697_v13  ;;  %v1529_v13 = vld [vmem:[#allocation10 + $0x1b8] sm:$0xff] }
 0x38a   :  { %3765 = vmatpush1.bf16.msra.mxu1 %v8690_v62  ;;  %v8729_v62 = vcombine.high %v1524_v16, %v1528_v29  ;;  %v8731_v31 = vcombine.high %v1525_v32, %v1529_v13  ;;  %v1556_v29 = vld [vmem:[#allocation10 + $0x290] sm:$0xff] }
 0x38b   :  { %3240 = vmatmul.mubr.bf16.gmra.mrb[52].mxu0 %v11267_v54  ;;  %3766 = vmatprep.subr.bf16.mxu1 %v8699_v52  ;;  %v8722_v52 = vcombine.low %v1517_v41, %v1521_v1  ;;  %v1549_v1 = vld [vmem:[#allocation10 + $0x258] sm:$0xff] }
 0x38c   :  { %3466 = vmatmul.mubr.bf16.gmra.mrb[68].mxu1 %v11267_v54  ;;  %3541 = vmatpush1.bf16.msra.mxu0 %v8696_v15  ;;  %v1536_v15 = vld [vmem:[#allocation10 + $0x1f0] sm:$0xff] }
 0x38d   :  { %3249 = vmatprep.mubr.bf16.mxu0 %v11343_v5  ;;  %3475 = vmatprep.mubr.bf16.mxu1 %v11343_v5  ;;  %v8737_v17 = vcombine.high %v1532_v33, %v1536_v15  ;;  %v8736_v25 = vcombine.low %v1532_v33, %v1536_v15  ;;  %v1564_v15 = vld [vmem:[#allocation10 + $0x2d0] sm:$0xff] }
 0x38e   :  { %3767 = vmatpush1.bf16.msra.mxu1 %v8698_v20  ;;  %3542 = vmatprep.subr.bf16.mxu0 %v8705_v48  ;;  %v1537_v20 = vld [vmem:[#allocation10 + $0x1f8] sm:$0xff]  ;;  %v8730_v48 = vcombine.low %v1525_v32, %v1529_v13 }
 0x38f   :  { %3768 = vmatprep.subr.bf16.mxu1 %v8707_v21  ;;  %v1544_v21 = vld [vmem:[#allocation10 + $0x230] sm:$0xff]  ;;  %v1557_v13 = vld [vmem:[#allocation10 + $0x298] sm:$0xff] }
 0x390   :  { %3543 = vmatpush1.bf16.msra.mxu0 %v8704_v7  ;;  %v8739_v7 = vcombine.high %v1533_v8, %v1537_v20  ;;  %v8744_v41 = vcombine.low %v1540_v34, %v1544_v21 }
 0x391   :  { %3544 = vmatprep.subr.bf16.mxu0 %v8713_v46  ;;  %v1545_v46 = vld [vmem:[#allocation10 + $0x238] sm:$0xff] }
 0x392   :  { %3769 = vmatpush1.bf16.msra.mxu1 %v8706_v63  ;;  %v8745_v63 = vcombine.high %v1540_v34, %v1544_v21  ;;  %v8747_v58 = vcombine.high %v1541_v38, %v1545_v46  ;;  %v1572_v21 = vld [vmem:[#allocation10 + $0x310] sm:$0xff] }
 0x393   :  { %3250 = vmatmul.mubr.bf16.gmra.mrb[56].mxu0 %v11335_v51  ;;  %3770 = vmatprep.subr.bf16.mxu1 %v8715_v37  ;;  %v8738_v37 = vcombine.low %v1533_v8, %v1537_v20  ;;  %v1565_v20 = vld [vmem:[#allocation10 + $0x2d8] sm:$0xff] }
 0x394   :  { %3476 = vmatmul.mubr.bf16.gmra.mrb[72].mxu1 %v11335_v51  ;;  %3545 = vmatpush1.bf16.msra.mxu0 %v8712_v3  ;;  %v1552_v3 = vld [vmem:[#allocation10 + $0x270] sm:$0xff] }
 0x395   :  { %3259 = vmatprep.mubr.bf16.mxu0 %v11411_v12  ;;  %3485 = vmatprep.mubr.bf16.mxu1 %v11411_v12  ;;  %v8753_v16 = vcombine.high %v1548_v23, %v1552_v3  ;;  %v8752_v32 = vcombine.low %v1548_v23, %v1552_v3  ;;  %v1580_v3 = vld [vmem:[#allocation10 + $0x350] sm:$0xff] }
 0x396   :  { %3771 = vmatpush1.bf16.msra.mxu1 %v8714_v22  ;;  %3546 = vmatprep.subr.bf16.mxu0 %v8721_v28  ;;  %v1553_v22 = vld [vmem:[#allocation10 + $0x278] sm:$0xff]  ;;  %v8746_v28 = vcombine.low %v1541_v38, %v1545_v46 }
 0x397   :  { %3772 = vmatprep.subr.bf16.mxu1 %v8723_v18  ;;  %v1560_v18 = vld [vmem:[#allocation10 + $0x2b0] sm:$0xff]  ;;  %v1573_v46 = vld [vmem:[#allocation10 + $0x318] sm:$0xff] }
 0x398   :  { %3547 = vmatpush1.bf16.msra.mxu0 %v8720_v30  ;;  %v8755_v30 = vcombine.high %v1549_v1, %v1553_v22  ;;  %v8760_v8 = vcombine.low %v1556_v29, %v1560_v18 }
 0x399   :  { %3548 = vmatprep.subr.bf16.mxu0 %v8729_v62  ;;  %v1561_v62 = vld [vmem:[#allocation10 + $0x2b8] sm:$0xff] }
 0x39a   :  { %3773 = vmatpush1.bf16.msra.mxu1 %v8722_v52  ;;  %v8761_v52 = vcombine.high %v1556_v29, %v1560_v18  ;;  %v8763_v33 = vcombine.high %v1557_v13, %v1561_v62  ;;  %v1588_v18 = vld [vmem:[#allocation10 + $0x390] sm:$0xff] }
 0x39b   :  { %3260 = vmatmul.mubr.bf16.gmra.mrb[60].mxu0 %v11399_v47  ;;  %3774 = vmatprep.subr.bf16.mxu1 %v8731_v31  ;;  %v8754_v31 = vcombine.low %v1549_v1, %v1553_v22  ;;  %v1581_v22 = vld [vmem:[#allocation10 + $0x358] sm:$0xff] }
 0x39c   :  { %3486 = vmatmul.mubr.bf16.gmra.mrb[76].mxu1 %v11399_v47  ;;  %3549 = vmatpush1.bf16.msra.mxu0 %v8728_v53  ;;  %v1568_v53 = vld [vmem:[#allocation10 + $0x2f0] sm:$0xff] }
 0x39d   :  { %3269 = vmatprep.mubr.bf16.mxu0 %v11475_v40  ;;  %3495 = vmatprep.mubr.bf16.mxu1 %v11475_v40  ;;  %v8769_v34 = vcombine.high %v1564_v15, %v1568_v53  ;;  %v8768_v38 = vcombine.low %v1564_v15, %v1568_v53  ;;  %v1596_v53 = vld [vmem:[#allocation10 + $0x3d0] sm:$0xff] }
 0x39e   :  { %3775 = vmatpush1.bf16.msra.mxu1 %v8730_v48  ;;  %3550 = vmatprep.subr.bf16.mxu0 %v8737_v17  ;;  %v1569_v48 = vld [vmem:[#allocation10 + $0x2f8] sm:$0xff]  ;;  %v8762_v17 = vcombine.low %v1557_v13, %v1561_v62 }
 0x39f   :  { %3776 = vmatprep.subr.bf16.mxu1 %v8739_v7  ;;  %v1576_v7 = vld [vmem:[#allocation10 + $0x330] sm:$0xff]  ;;  %v1589_v62 = vld [vmem:[#allocation10 + $0x398] sm:$0xff] }
 0x3a0   :  { %3551 = vmatpush1.bf16.msra.mxu0 %v8736_v25  ;;  %v8771_v25 = vcombine.high %v1565_v20, %v1569_v48  ;;  %v8776_v1 = vcombine.low %v1572_v21, %v1576_v7 }
 0x3a1   :  { %3552 = vmatprep.subr.bf16.mxu0 %v8745_v63  ;;  %v1577_v63 = vld [vmem:[#allocation10 + $0x338] sm:$0xff] }
 0x3a2   :  { %3777 = vmatpush1.bf16.msra.mxu1 %v8738_v37  ;;  %v8777_v37 = vcombine.high %v1572_v21, %v1576_v7  ;;  %v8779_v23 = vcombine.high %v1573_v46, %v1577_v63  ;;  %v1604_v7 = vld [vmem:[#allocation10 + $0x410] sm:$0xff] }
 0x3a3   :  { %3270 = vmatmul.mubr.bf16.gmra.mrb[64].mxu0 %v11467_v39  ;;  %3778 = vmatprep.subr.bf16.mxu1 %v8747_v58  ;;  %v8770_v58 = vcombine.low %v1565_v20, %v1569_v48  ;;  %v1597_v48 = vld [vmem:[#allocation10 + $0x3d8] sm:$0xff] }
 0x3a4   :  { %3496 = vmatmul.mubr.bf16.gmra.mrb[80].mxu1 %v11467_v39  ;;  %3553 = vmatpush1.bf16.msra.mxu0 %v8744_v41  ;;  %v1584_v41 = vld [vmem:[#allocation10 + $0x370] sm:$0xff] }
 0x3a5   :  { %3279 = vmatprep.mubr.bf16.mxu0 %v11534_v10  ;;  %3505 = vmatprep.mubr.bf16.mxu1 %v11534_v10  ;;  %v8785_v29 = vcombine.high %v1580_v3, %v1584_v41  ;;  %v8784_v13 = vcombine.low %v1580_v3, %v1584_v41  ;;  %v1612_v3 = vld [vmem:[#allocation10 + $0x450] sm:$0xff] }
 0x3a6   :  { %3779 = vmatpush1.bf16.msra.mxu1 %v8746_v28  ;;  %3554 = vmatprep.subr.bf16.mxu0 %v8753_v16  ;;  %v1585_v28 = vld [vmem:[#allocation10 + $0x378] sm:$0xff]  ;;  %v8778_v16 = vcombine.low %v1573_v46, %v1577_v63  ;;  %v1616_v41 = vld [vmem:[#allocation10 + $0x470] sm:$0xff] }
 0x3a7   :  { %3780 = vmatprep.subr.bf16.mxu1 %v8755_v30  ;;  %v1592_v30 = vld [vmem:[#allocation10 + $0x3b0] sm:$0xff]  ;;  %v1605_v63 = vld [vmem:[#allocation10 + $0x418] sm:$0xff] }
 0x3a8   :  { %3555 = vmatpush1.bf16.msra.mxu0 %v8752_v32  ;;  %v8787_v32 = vcombine.high %v1581_v22, %v1585_v28  ;;  %v8792_v20 = vcombine.low %v1588_v18, %v1592_v30 }
 0x3a9   :  { %3556 = vmatprep.subr.bf16.mxu0 %v8761_v52  ;;  %v1593_v52 = vld [vmem:[#allocation10 + $0x3b8] sm:$0xff] }
 0x3aa   :  { %3781 = vmatpush1.bf16.msra.mxu1 %v8754_v31  ;;  %v8793_v31 = vcombine.high %v1588_v18, %v1592_v30  ;;  %v8795_v15 = vcombine.high %v1589_v62, %v1593_v52  ;;  %v1620_v30 = vld [vmem:[#allocation10 + $0x490] sm:$0xff] }
 0x3ab   :  { %3280 = vmatmul.mubr.bf16.gmra.mrb[68].mxu0 %v11522_v45  ;;  %3782 = vmatprep.subr.bf16.mxu1 %v8763_v33  ;;  %v8786_v33 = vcombine.low %v1581_v22, %v1585_v28  ;;  %v1613_v28 = vld [vmem:[#allocation10 + $0x458] sm:$0xff] }
 0x3ac   :  { %3506 = vmatmul.mubr.bf16.gmra.mrb[84].mxu1 %v11522_v45  ;;  %3557 = vmatpush1.bf16.msra.mxu0 %v8760_v8  ;;  %v1600_v8 = vld [vmem:[#allocation10 + $0x3f0] sm:$0xff] }
 0x3ad   :  { %3289 = vmatprep.mubr.bf16.mxu0 %v11579_v50  ;;  %3515 = vmatprep.mubr.bf16.mxu1 %v11579_v50  ;;  %v8801_v21 = vcombine.high %v1596_v53, %v1600_v8  ;;  %v8800_v46 = vcombine.low %v1596_v53, %v1600_v8  ;;  %v1632_v53 = vld [vmem:[#allocation10 + $0x4f0] sm:$0xff] }
 0x3ae   :  { %3783 = vmatpush1.bf16.msra.mxu1 %v8762_v17  ;;  %3558 = vmatprep.subr.bf16.mxu0 %v8769_v34  ;;  %v1601_v17 = vld [vmem:[#allocation10 + $0x3f8] sm:$0xff]  ;;  %v8794_v34 = vcombine.low %v1589_v62, %v1593_v52 }
 0x3af   :  { %3784 = vmatprep.subr.bf16.mxu1 %v8771_v25  ;;  %v1608_v25 = vld [vmem:[#allocation10 + $0x430] sm:$0xff]  ;;  %v1621_v62 = vld [vmem:[#allocation10 + $0x498] sm:$0xff] }
 0x3b0   :  { %3559 = vmatpush1.bf16.msra.mxu0 %v8768_v38  ;;  %v8803_v38 = vcombine.high %v1597_v48, %v1601_v17  ;;  %v8808_v22 = vcombine.low %v1604_v7, %v1608_v25  ;;  %v1625_v52 = vld [vmem:[#allocation10 + $0x4b8] sm:$0xff] }
 0x3b1   :  { %3560 = vmatprep.subr.bf16.mxu0 %v8777_v37  ;;  %v1609_v37 = vld [vmem:[#allocation10 + $0x438] sm:$0xff]  ;;  %v8827_v8 = vcombine.high %v1621_v62, %v1625_v52 }
 0x3b2   :  { %3785 = vmatpush1.bf16.msra.mxu1 %v8770_v58  ;;  %v8809_v58 = vcombine.high %v1604_v7, %v1608_v25  ;;  %v8810_v18 = vcombine.low %v1605_v63, %v1609_v37  ;;  %v1636_v7 = vld [vmem:[#allocation10 + $0x510] sm:$0xff] }
 0x3b3   :  { %3290 = vmatmul.mubr.bf16.gmra.mrb[72].mxu0 %v11571_v27  ;;  %3786 = vmatprep.subr.bf16.mxu1 %v8779_v23  ;;  %v8802_v23 = vcombine.low %v1597_v48, %v1601_v17  ;;  %v1629_v48 = vld [vmem:[#allocation10 + $0x4d8] sm:$0xff] }
 0x3b4   :  { %3516 = vmatmul.mubr.bf16.gmra.mrb[88].mxu1 %v11571_v27  ;;  %3561 = vmatpush1.bf16.msra.mxu0 %v8776_v1  ;;  %v8811_v1 = vcombine.high %v1605_v63, %v1609_v37  ;;  %v1633_v17 = vld [vmem:[#allocation10 + $0x4f8] sm:$0xff] }
 0x3b5   :  { %3299 = vmatprep.mubr.bf16.mxu0 %v11607_v6  ;;  %3525 = vmatprep.mubr.bf16.mxu1 %v11607_v6  ;;  %v8834_v37 = vcombine.low %v1629_v48, %v1633_v17 }
 0x3b6   :  { %3787 = vmatpush1.bf16.msra.mxu1 %v8778_v16  ;;  %3562 = vmatprep.subr.bf16.mxu0 %v8785_v29  ;;  %v1617_v16 = vld [vmem:[#allocation10 + $0x478] sm:$0xff]  ;;  %v8817_v29 = vcombine.high %v1612_v3, %v1616_v41 }
 0x3b7   :  { %3788 = vmatprep.subr.bf16.mxu1 %v8787_v32  ;;  %v1624_v32 = vld [vmem:[#allocation10 + $0x4b0] sm:$0xff] }
 0x3b8   :  { %3563 = vmatpush1.bf16.msra.mxu0 %v8784_v13  ;;  %v8816_v13 = vcombine.low %v1612_v3, %v1616_v41 }
 0x3b9   :  { %3564 = vmatprep.subr.bf16.mxu0 %v8793_v31  ;;  %v8825_v31 = vcombine.high %v1620_v30, %v1624_v32 }
 0x3ba   :  { %3789 = vmatpush1.bf16.msra.mxu1 %v8786_v33  ;;  %v8818_v33 = vcombine.low %v1613_v28, %v1617_v16 }
 0x3bb   :  { %3300 = vmatmul.mubr.bf16.gmra.mrb[76].mxu0 %v11603_v26  ;;  %3790 = vmatprep.subr.bf16.mxu1 %v8795_v15  ;;  %v1628_v15 = vld [vmem:[#allocation10 + $0x4d0] sm:$0xff] }
 0x3bc   :  { %3526 = vmatmul.mubr.bf16.gmra.mrb[92].mxu1 %v11603_v26  ;;  %3565 = vmatpush1.bf16.msra.mxu0 %v8792_v20  ;;  %v8824_v20 = vcombine.low %v1620_v30, %v1624_v32  ;;  %v8832_v25 = vcombine.low %v1628_v15, %v1632_v53  ;;  %v1653_v30 = vld [vmem:[#allocation10 + $0x598] sm:$0xff] }
 0x3bd   :  { %3568 = vmatprep.mubr.bf16.mxu0 %v11217_v59  ;;  %3794 = vmatprep.mubr.bf16.mxu1 %v11217_v59  ;;  %v8819_v59 = vcombine.high %v1613_v28, %v1617_v16  ;;  %v1657_v32 = vld [vmem:[#allocation10 + $0x5b8] sm:$0xff] }
 0x3be   :  { %3791 = vmatpush1.bf16.msra.mxu1 %v8794_v34  ;;  %3566 = vmatprep.subr.bf16.mxu0 %v8801_v21  ;;  %v8833_v34 = vcombine.high %v1628_v15, %v1632_v53  ;;  %v8826_v21 = vcombine.low %v1621_v62, %v1625_v52  ;;  %v1660_v62 = vld [vmem:[#allocation10 + $0x5d0] sm:$0xff]  ;;  %v1661_v15 = vld [vmem:[#allocation10 + $0x5d8] sm:$0xff] }
 0x3bf   :  { %3792 = vmatprep.subr.bf16.mxu1 %v8803_v38  ;;  %v1637_v38 = vld [vmem:[#allocation10 + $0x518] sm:$0xff]  ;;  %v1664_v52 = vld [vmem:[#allocation10 + $0x5f0] sm:$0xff] }
 0x3c0   :  { %3567 = vmatpush1.bf16.msra.mxu0 %v8800_v46  ;;  %v1641_v46 = vld [vmem:[#allocation10 + $0x538] sm:$0xff] }
 0x3c1   :  { %3649 = vmatprep.subr.bf16.mxu0 %v8809_v58  ;;  %v1644_v58 = vld [vmem:[#allocation10 + $0x550] sm:$0xff]  ;;  %v8843_v3 = vcombine.high %v1637_v38, %v1641_v46  ;;  %v8842_v16 = vcombine.low %v1637_v38, %v1641_v46  ;;  %v1665_v53 = vld [vmem:[#allocation10 + $0x5f8] sm:$0xff] }
 0x3c2   :  { %3793 = vmatpush1.bf16.msra.mxu1 %v8802_v23  ;;  %v1648_v23 = vld [vmem:[#allocation10 + $0x570] sm:$0xff] }
 0x3c3   :  { %3569 = vmatmul.mubr.bf16.vlgmr.msra.gmra.mrb[80].mxu0 %v11209_v56  ;;  %3875 = vmatprep.subr.bf16.mxu1 %v8811_v1  ;;  %v1645_v1 = vld [vmem:[#allocation10 + $0x558] sm:$0xff]  ;;  %v8849_v28 = vcombine.high %v1644_v58, %v1648_v23 }
 0x3c4   :  { %3650 = vmatpush1.bf16.msra.mxu0 %v8808_v22  ;;  %3578 = vmatprep.mubr.bf16.mxu0 %v11277_v14  ;;  %v1649_v22 = vld [vmem:[#allocation10 + $0x578] sm:$0xff] }
 0x3c5   :  { %3795 = vmatmul.mubr.bf16.vlgmr.msra.gmra.mrb[96].mxu1 %v11209_v56  ;;  %3651 = vmatprep.subr.bf16.mxu0 %v8817_v29  ;;  %v1640_v56 = vld [vmem:[#allocation10 + $0x530] sm:$0xff] }
 0x3c6   :  { %3804 = vmatprep.mubr.bf16.mxu1 %v11277_v14  ;;  %3876 = vmatpush1.bf16.msra.mxu1 %v8810_v18  ;;  %v8835_v14 = vcombine.high %v1629_v48, %v1633_v17  ;;  %v8841_v63 = vcombine.high %v1636_v7, %v1640_v56  ;;  %v8840_v41 = vcombine.low %v1636_v7, %v1640_v56  ;;  %v1652_v29 = vld [vmem:[#allocation10 + $0x590] sm:$0xff] }
 0x3c7   :  { %3877 = vmatprep.subr.bf16.mxu1 %v8819_v59  ;;  %v8848_v18 = vcombine.low %v1644_v58, %v1648_v23  ;;  %v1668_v48 = vld [vmem:[#allocation10 + $0x610] sm:$0xff]  ;;  %v8864_v17 = vcombine.low %v1660_v62, %v1664_v52  ;;  %v8866_v56 = vcombine.low %v1661_v15, %v1665_v53 }
 0x3c8   :  { %3652 = vmatpush1.bf16.msra.mxu0 %v8816_v13  ;;  %v8850_v13 = vcombine.low %v1645_v1, %v1649_v22 }
 0x3c9   :  { %3653 = vmatprep.subr.bf16.mxu0 %v8825_v31  ;;  %v8859_v31 = vcombine.high %v1653_v30, %v1657_v32 }
 0x3ca   :  { %3878 = vmatpush1.bf16.msra.mxu1 %v8818_v33 }
 0x3cb   :  { %3579 = vmatmul.mubr.bf16.gmra.mrb[84].mxu0 %v11265_v24  ;;  %3879 = vmatprep.subr.bf16.mxu1 %v8827_v8  ;;  %v8865_v8 = vcombine.high %v1660_v62, %v1664_v52  ;;  %v1700_v62 = vld [vmem:[#allocation10 + $0x710] sm:$0xff] }
 0x3cc   :  { %3654 = vmatpush1.bf16.msra.mxu0 %v8824_v20  ;;  %3588 = vmatprep.mubr.bf16.mxu0 %v11341_v57  ;;  %v8858_v20 = vcombine.low %v1653_v30, %v1657_v32  ;;  %v1693_v30 = vld [vmem:[#allocation10 + $0x6d8] sm:$0xff] }
 0x3cd   :  { %3805 = vmatmul.mubr.bf16.gmra.mrb[100].mxu1 %v11265_v24  ;;  %3655 = vmatprep.subr.bf16.mxu0 %v8833_v34  ;;  %v1656_v24 = vld [vmem:[#allocation10 + $0x5b0] sm:$0xff]  ;;  %v1669_v34 = vld [vmem:[#allocation10 + $0x618] sm:$0xff] }
 0x3ce   :  { %3814 = vmatprep.mubr.bf16.mxu1 %v11341_v57  ;;  %3880 = vmatpush1.bf16.msra.mxu1 %v8826_v21  ;;  %v8851_v57 = vcombine.high %v1645_v1, %v1649_v22  ;;  %v8857_v59 = vcombine.high %v1652_v29, %v1656_v24  ;;  %v8856_v33 = vcombine.low %v1652_v29, %v1656_v24  ;;  %v1673_v21 = vld [vmem:[#allocation10 + $0x638] sm:$0xff]  ;;  %v1692_v29 = vld [vmem:[#allocation10 + $0x6d0] sm:$0xff] }
 0x3cf   :  { %3881 = vmatprep.subr.bf16.mxu1 %v8835_v14  ;;  %v1676_v14 = vld [vmem:[#allocation10 + $0x650] sm:$0xff]  ;;  %v8875_v38 = vcombine.high %v1669_v34, %v1673_v21  ;;  %v8874_v23 = vcombine.low %v1669_v34, %v1673_v21  ;;  %v1685_v1 = vld [vmem:[#allocation10 + $0x698] sm:$0xff] }
 0x3d0   :  { %3656 = vmatpush1.bf16.msra.mxu0 %v8832_v25  ;;  %v1680_v25 = vld [vmem:[#allocation10 + $0x670] sm:$0xff]  ;;  %v1689_v22 = vld [vmem:[#allocation10 + $0x6b8] sm:$0xff] }
 0x3d1   :  { %3657 = vmatprep.subr.bf16.mxu0 %v8841_v63  ;;  %v1677_v63 = vld [vmem:[#allocation10 + $0x658] sm:$0xff]  ;;  %v8881_v58 = vcombine.high %v1676_v14, %v1680_v25  ;;  %v1696_v24 = vld [vmem:[#allocation10 + $0x6f0] sm:$0xff] }
 0x3d2   :  { %3882 = vmatpush1.bf16.msra.mxu1 %v8834_v37  ;;  %v1681_v37 = vld [vmem:[#allocation10 + $0x678] sm:$0xff]  ;;  %v8896_v52 = vcombine.low %v1692_v29, %v1696_v24 }
 0x3d3   :  { %3589 = vmatmul.mubr.bf16.gmra.mrb[88].mxu0 %v11333_v0  ;;  %3883 = vmatprep.subr.bf16.mxu1 %v8843_v3  ;;  %v1684_v3 = vld [vmem:[#allocation10 + $0x690] sm:$0xff]  ;;  %v1697_v32 = vld [vmem:[#allocation10 + $0x6f8] sm:$0xff] }
 0x3d4   :  { %3658 = vmatpush1.bf16.msra.mxu0 %v8840_v41  ;;  %3598 = vmatprep.mubr.bf16.mxu0 %v11409_v42  ;;  %v8880_v41 = vcombine.low %v1676_v14, %v1680_v25  ;;  %v1717_v14 = vld [vmem:[#allocation10 + $0x798] sm:$0xff] }
 0x3d5   :  { %3815 = vmatmul.mubr.bf16.gmra.mrb[104].mxu1 %v11333_v0  ;;  %3659 = vmatprep.subr.bf16.mxu0 %v8849_v28  ;;  %v1672_v0 = vld [vmem:[#allocation10 + $0x630] sm:$0xff]  ;;  %v1721_v25 = vld [vmem:[#allocation10 + $0x7b8] sm:$0xff] }
 0x3d6   :  { %3824 = vmatprep.mubr.bf16.mxu1 %v11409_v42  ;;  %3884 = vmatpush1.bf16.msra.mxu1 %v8842_v16  ;;  %v8867_v42 = vcombine.high %v1661_v15, %v1665_v53  ;;  %v8873_v7 = vcombine.high %v1668_v48, %v1672_v0  ;;  %v8872_v46 = vcombine.low %v1668_v48, %v1672_v0 }
 0x3d7   :  { %3885 = vmatprep.subr.bf16.mxu1 %v8851_v57  ;;  %v8882_v16 = vcombine.low %v1677_v63, %v1681_v37  ;;  %v8891_v57 = vcombine.high %v1685_v1, %v1689_v22  ;;  %v8898_v53 = vcombine.low %v1693_v30, %v1697_v32 }
 0x3d8   :  { %3660 = vmatpush1.bf16.msra.mxu0 %v8848_v18 }
 0x3d9   :  { %3661 = vmatprep.subr.bf16.mxu0 %v8857_v59  ;;  %v8897_v59 = vcombine.high %v1692_v29, %v1696_v24  ;;  %v10207_v29 = vld [vmem:[#allocation12 + $0x48] sm:$0xff]   ;;  %v10206_v24 = vld [vmem:[#allocation12 + $0x80] sm:$0xff]  }
 0x3da   :  { %3886 = vmatpush1.bf16.msra.mxu1 %v8850_v13  ;;  %v8890_v13 = vcombine.low %v1685_v1, %v1689_v22  ;;  %v10203_v1 = vld [vmem:[#allocation12 + $0x40] sm:$0xff]  }
 0x3db   :  { %3599 = vmatmul.mubr.bf16.gmra.mrb[92].mxu0 %v11397_v19  ;;  %3887 = vmatprep.subr.bf16.mxu1 %v8859_v31  ;;  %v1701_v31 = vld [vmem:[#allocation10 + $0x718] sm:$0xff] }
 0x3dc   :  { %3662 = vmatpush1.bf16.msra.mxu0 %v8856_v33  ;;  %3608 = vmatprep.mubr.bf16.mxu0 %v11473_v11  ;;  %v1705_v33 = vld [vmem:[#allocation10 + $0x738] sm:$0xff] }
 0x3dd   :  { %3825 = vmatmul.mubr.bf16.gmra.mrb[108].mxu1 %v11397_v19  ;;  %3663 = vmatprep.subr.bf16.mxu0 %v8865_v8  ;;  %v1688_v19 = vld [vmem:[#allocation10 + $0x6b0] sm:$0xff]  ;;  %v8907_v48 = vcombine.high %v1701_v31, %v1705_v33  ;;  %v8906_v21 = vcombine.low %v1701_v31, %v1705_v33  ;;  %v10223_v31 = vld [vmem:[#allocation12 + $0x68] sm:$0xff]   ;;  %v10222_v33 = vld [vmem:[#allocation12 + $0xa0] sm:$0xff]  }
 0x3de   :  { %3834 = vmatprep.mubr.bf16.mxu1 %v11473_v11  ;;  %3888 = vmatpush1.bf16.msra.mxu1 %v8858_v20  ;;  %v8883_v11 = vcombine.high %v1677_v63, %v1681_v37  ;;  %v8889_v28 = vcombine.high %v1684_v3, %v1688_v19  ;;  %v8888_v18 = vcombine.low %v1684_v3, %v1688_v19  ;;  %v1708_v8 = vld [vmem:[#allocation10 + $0x750] sm:$0xff]  ;;  %v1725_v3 = vld [vmem:[#allocation10 + $0x7d8] sm:$0xff] }
 0x3df   :  { %3889 = vmatprep.subr.bf16.mxu1 %v8867_v42  ;;  %v1712_v20 = vld [vmem:[#allocation10 + $0x770] sm:$0xff]  ;;  %v1709_v42 = vld [vmem:[#allocation10 + $0x758] sm:$0xff] }
 0x3e0   :  { %3664 = vmatpush1.bf16.msra.mxu0 %v8864_v17  ;;  %v1713_v17 = vld [vmem:[#allocation10 + $0x778] sm:$0xff]  ;;  %v8913_v34 = vcombine.high %v1708_v8, %v1712_v20  ;;  %v1724_v63 = vld [vmem:[#allocation10 + $0x7d0] sm:$0xff] }
 0x3e1   :  { %3665 = vmatprep.subr.bf16.mxu0 %v8873_v7  ;;  %v1716_v7 = vld [vmem:[#allocation10 + $0x790] sm:$0xff]  ;;  %v1729_v19 = vld [vmem:[#allocation10 + $0x7f8] sm:$0xff] }
 0x3e2   :  { %3890 = vmatpush1.bf16.msra.mxu1 %v8866_v56  ;;  %v8912_v56 = vcombine.low %v1708_v8, %v1712_v20  ;;  %v1728_v37 = vld [vmem:[#allocation10 + $0x7f0] sm:$0xff]  ;;  %v8930_v22 = vcombine.low %v1725_v3, %v1729_v19 }
 0x3e3   :  { %3609 = vmatmul.mubr.bf16.gmra.mrb[96].mxu0 %v11465_v36  ;;  %3891 = vmatprep.subr.bf16.mxu1 %v8875_v38  ;;  %v10228_v8 = vld [vmem:[#allocation12 + $0xf0] sm:$0xff]  }
 0x3e4   :  { %3666 = vmatpush1.bf16.msra.mxu0 %v8872_v46  ;;  %3618 = vmatprep.mubr.bf16.mxu0 %v11532_v43  ;;  %v8914_v46 = vcombine.low %v1709_v42, %v1713_v17  ;;  %v10229_v20 = vld [vmem:[#allocation12 + $0x30] sm:$0xff]  }
 0x3e5   :  { %3835 = vmatmul.mubr.bf16.gmra.mrb[112].mxu1 %v11465_v36  ;;  %3667 = vmatprep.subr.bf16.mxu0 %v8881_v58  ;;  %v1704_v36 = vld [vmem:[#allocation10 + $0x730] sm:$0xff]  ;;  %v8923_v58 = vcombine.high %v1717_v14, %v1721_v25 }
 0x3e6   :  { %3844 = vmatprep.mubr.bf16.mxu1 %v11532_v43  ;;  %3892 = vmatpush1.bf16.msra.mxu1 %v8874_v23  ;;  %v8899_v43 = vcombine.high %v1693_v30, %v1697_v32  ;;  %v8905_v15 = vcombine.high %v1700_v62, %v1704_v36  ;;  %v8904_v0 = vcombine.low %v1700_v62, %v1704_v36  ;;  %v10212_v30 = vld [vmem:[#allocation12 + $0xd0] sm:$0xff]   ;;  %v10216_v62 = vld [vmem:[#allocation12 + $0xd8] sm:$0xff]  }
 0x3e7   :  { %3893 = vmatprep.subr.bf16.mxu1 %v8883_v11  ;;  %v8929_v11 = vcombine.high %v1724_v63, %v1728_v37  ;;  %v10213_v32 = vld [vmem:[#allocation12 + $0x10] sm:$0xff]   ;;  %v10218_v36 = vld [vmem:[#allocation12 + $0x98] sm:$0xff]  }
 0x3e8   :  { %3668 = vmatpush1.bf16.msra.mxu0 %v8880_v41  ;;  %v8922_v41 = vcombine.low %v1717_v14, %v1721_v25 }
 0x3e9   :  { %3669 = vmatprep.subr.bf16.mxu0 %v8889_v28  ;;  %v10204_v28 = vld [vmem:[#allocation12 + $0xc0] sm:$0xff]  }
 0x3ea   :  { %3894 = vmatpush1.bf16.msra.mxu1 %v8882_v16  ;;  %v10205_v16 = vld [vmem:[#allocation12] sm:$0xff]  }
 0x3eb   :  { %3619 = vmatmul.mubr.bf16.gmra.mrb[100].mxu0 %v11520_v9  ;;  %3895 = vmatprep.subr.bf16.mxu1 %v8891_v57  ;;  %v10208_v57 = vld [vmem:[#allocation12 + $0xc8] sm:$0xff]  }
 0x3ec   :  { %3670 = vmatpush1.bf16.msra.mxu0 %v8888_v18  ;;  %3628 = vmatprep.mubr.bf16.mxu0 %v11577_v35  ;;  %v10210_v18 = vld [vmem:[#allocation12 + $0x88] sm:$0xff]  }
 0x3ed   :  { %3845 = vmatmul.mubr.bf16.gmra.mrb[116].mxu1 %v11520_v9  ;;  %3671 = vmatprep.subr.bf16.mxu0 %v8897_v59  ;;  %v1720_v9 = vld [vmem:[#allocation10 + $0x7b0] sm:$0xff]  ;;  %v10215_v59 = vld [vmem:[#allocation12 + $0x58] sm:$0xff]  }
 0x3ee   :  { %3854 = vmatprep.mubr.bf16.mxu1 %v11577_v35  ;;  %3896 = vmatpush1.bf16.msra.mxu1 %v8890_v13  ;;  %v8915_v35 = vcombine.high %v1709_v42, %v1713_v17  ;;  %v8921_v38 = vcombine.high %v1716_v7, %v1720_v9  ;;  %v8920_v23 = vcombine.low %v1716_v7, %v1720_v9  ;;  %v10214_v13 = vld [vmem:[#allocation12 + $0x90] sm:$0xff]   ;;  %v10232_v42 = vld [vmem:[#allocation12 + $0xf8] sm:$0xff]  }
 0x3ef   :  { %3897 = vmatprep.subr.bf16.mxu1 %v8899_v43  ;;  %v10220_v43 = vld [vmem:[#allocation12 + $0xe0] sm:$0xff]   ;;  %v10234_v17 = vld [vmem:[#allocation12 + $0xb8] sm:$0xff]  }
 0x3f0   :  { %3672 = vmatpush1.bf16.msra.mxu0 %v8896_v52  ;;  %v10221_v52 = vld [vmem:[#allocation12 + $0x20] sm:$0xff]  }
 0x3f1   :  { %3673 = vmatprep.subr.bf16.mxu0 %v8905_v15  ;;  %v10224_v15 = vld [vmem:[#allocation12 + $0xe8] sm:$0xff]  }
 0x3f2   :  { %3898 = vmatpush1.bf16.msra.mxu1 %v8898_v53  ;;  %v10226_v53 = vld [vmem:[#allocation12 + $0xa8] sm:$0xff]  }
 0x3f3   :  { %3629 = vmatmul.mubr.bf16.gmra.mrb[104].mxu0 %v11569_v60  ;;  %3899 = vmatprep.subr.bf16.mxu1 %v8907_v48  ;;  %v10231_v48 = vld [vmem:[#allocation12 + $0x78] sm:$0xff]  }
 0x3f4   :  { %3674 = vmatpush1.bf16.msra.mxu0 %v8904_v0  ;;  %3638 = vmatprep.mubr.bf16.mxu0 %v11605_v44  ;;  %v10230_v0 = vld [vmem:[#allocation12 + $0xb0] sm:$0xff]  }
 0x3f5   :  { %3855 = vmatmul.mubr.bf16.gmra.mrb[120].mxu1 %v11569_v60  ;;  %3675 = vmatprep.subr.bf16.mxu0 %v8913_v34  ;;  %v8931_v60 = vcombine.high %v1725_v3, %v1729_v19  ;;  %v10237_v34 = vld [vmem:[#allocation12 + $0x1c0] sm:$0xff]  }
 0x3f6   :  { %3864 = vmatprep.mubr.bf16.mxu1 %v11605_v44  ;;  %3900 = vmatpush1.bf16.msra.mxu1 %v8906_v21  ;;  %v8928_v44 = vcombine.low %v1724_v63, %v1728_v37 }
 0x3f7   :  { %3901 = vmatprep.subr.bf16.mxu1 %v8915_v35 }
 0x3f8   :  { %3676 = vmatpush1.bf16.msra.mxu0 %v8912_v56 }
 0x3f9   :  { %3677 = vmatprep.subr.bf16.mxu0 %v8921_v38 }
 0x3fa   :  { %3902 = vmatpush1.bf16.msra.mxu1 %v8914_v46 }
 0x3fb   :  { %3639 = vmatmul.mubr.bf16.gmra.mrb[108].mxu0 %v11601_v55  ;;  %3903 = vmatprep.subr.bf16.mxu1 %v8923_v58 }
 0x3fc   :  { %3678 = vmatpush1.bf16.msra.mxu0 %v8920_v23  ;;  %3681 = vmatprep.mubr.bf16.mxu0 %v11219_v2 }
 0x3fd   :  { %3865 = vmatmul.mubr.bf16.gmra.mrb[124].mxu1 %v11601_v55  ;;  %3679 = vmatprep.subr.bf16.mxu0 %v8929_v11  ;;  %v10209_v55 = vld [vmem:[#allocation12 + $0x8] sm:$0xff]  }
 0x3fe   :  { %3904 = vmatpush1.bf16.msra.mxu1 %v8922_v41  ;;  %3907 = vmatprep.mubr.bf16.mxu1 %v11219_v2  ;;  %v10211_v2 = vld [vmem:[#allocation12 + $0x50] sm:$0xff]  }
 0x3ff   :  { %3905 = vmatprep.subr.bf16.mxu1 %v8931_v60 }
 0x400   :  { %3680 = vmatpush1.bf16.msra.mxu0 %v8928_v44 }
 0x401   :  { %9068 = vmatprep.subr.bf16.mxu0 %v10203_v1 }
 0x402   :  { %3906 = vmatpush1.bf16.msra.mxu1 %v8930_v22 }
 0x403   :  { %3682 = vmatmul.mubr.bf16.vlgmr.msra.gmra.mrb[80].mxu0 %v11211_v4  ;;  %9132 = vmatprep.subr.bf16.mxu1 %v10204_v28 }
 0x404   :  { %3691 = vmatprep.mubr.bf16.mxu0 %v11279_v61  ;;  %9069 = vmatpush3.bf16.msra.mxu0 %v10205_v16 }
 0x405   :  { %3908 = vmatmul.mubr.bf16.vlgmr.msra.gmra.mrb[96].mxu1 %v11211_v4  ;;  %9070 = vmatprep.subr.bf16.mxu0 %v10207_v29  ;;  %v10217_v4 = vld [vmem:[#allocation12 + $0x18] sm:$0xff]  }
 0x406   :  { %3917 = vmatprep.mubr.bf16.mxu1 %v11279_v61  ;;  %9133 = vmatpush3.bf16.msra.mxu1 %v10206_v24  ;;  %v10219_v61 = vld [vmem:[#allocation12 + $0x60] sm:$0xff]  }
 0x407   :  { %9134 = vmatprep.subr.bf16.mxu1 %v10208_v57 }
 0x408   :  { %9071 = vmatpush3.bf16.msra.mxu0 %v10209_v55 }
 0x409   :  { %9072 = vmatprep.subr.bf16.mxu0 %v10211_v2  ;;  %v10236_v2 = vld [vmem:[#allocation12 + $0x100] sm:$0xff]  }
 0x40a   :  { %9135 = vmatpush3.bf16.msra.mxu1 %v10210_v18 }
 0x40b   :  { %3692 = vmatmul.mubr.bf16.gmra.mrb[84].mxu0 %v11267_v54  ;;  %9136 = vmatprep.subr.bf16.mxu1 %v10212_v30 }
 0x40c   :  { %3701 = vmatprep.mubr.bf16.mxu0 %v11343_v5  ;;  %9073 = vmatpush3.bf16.msra.mxu0 %v10213_v32 }
 0x40d   :  { %3918 = vmatmul.mubr.bf16.gmra.mrb[100].mxu1 %v11267_v54  ;;  %9074 = vmatprep.subr.bf16.mxu0 %v10215_v59  ;;  %v10225_v54 = vld [vmem:[#allocation12 + $0x28] sm:$0xff]  }
 0x40e   :  { %3927 = vmatprep.mubr.bf16.mxu1 %v11343_v5  ;;  %9137 = vmatpush3.bf16.msra.mxu1 %v10214_v13  ;;  %v10227_v5 = vld [vmem:[#allocation12 + $0x70] sm:$0xff]   ;;  %v10238_v13 = vld [vmem:[#allocation12 + $0x180] sm:$0xff]  }
 0x40f   :  { %9138 = vmatprep.subr.bf16.mxu1 %v10216_v62  ;;  %v10239_v62 = vld [vmem:[#allocation12 + $0x148] sm:$0xff]  }
 0x410   :  { %9075 = vmatpush3.bf16.msra.mxu0 %v10217_v4 }
 0x411   :  { %9076 = vmatprep.subr.bf16.mxu0 %v10219_v61 }
 0x412   :  { %9139 = vmatpush3.bf16.msra.mxu1 %v10218_v36 }
 0x413   :  { %3702 = vmatmul.mubr.bf16.gmra.mrb[88].mxu0 %v11335_v51  ;;  %9140 = vmatprep.subr.bf16.mxu1 %v10220_v43 }
 0x414   :  { %3711 = vmatprep.mubr.bf16.mxu0 %v11411_v12  ;;  %9077 = vmatpush3.bf16.msra.mxu0 %v10221_v52  ;;  %v10241_v52 = vld [vmem:[#allocation12 + $0x1c8] sm:$0xff]  }
 0x415   :  { %3928 = vmatmul.mubr.bf16.gmra.mrb[104].mxu1 %v11335_v51  ;;  %9078 = vmatprep.subr.bf16.mxu0 %v10223_v31  ;;  %v10233_v51 = vld [vmem:[#allocation12 + $0x38] sm:$0xff]  }
 0x416   :  { %3937 = vmatprep.mubr.bf16.mxu1 %v11411_v12  ;;  %9141 = vmatpush3.bf16.msra.mxu1 %v10222_v33  ;;  %v10235_v12 = vld [vmem:[#allocation12 + $0x140] sm:$0xff]  }
 0x417   :  { %9142 = vmatprep.subr.bf16.mxu1 %v10224_v15 }
 0x418   :  { %9079 = vmatpush3.bf16.msra.mxu0 %v10225_v54 }
 0x419   :  { %9080 = vmatprep.subr.bf16.mxu0 %v10227_v5 }
 0x41a   :  { %9143 = vmatpush3.bf16.msra.mxu1 %v10226_v53 }
 0x41b   :  { %3712 = vmatmul.mubr.bf16.gmra.mrb[92].mxu0 %v11399_v47  ;;  %9144 = vmatprep.subr.bf16.mxu1 %v10228_v8 }
 0x41c   :  { %3721 = vmatprep.mubr.bf16.mxu0 %v11475_v40  ;;  %9081 = vmatpush3.bf16.msra.mxu0 %v10229_v20  ;;  %v10240_v20 = vld [vmem:[#allocation12 + $0x108] sm:$0xff]  }
 0x41d   :  { %3938 = vmatmul.mubr.bf16.gmra.mrb[108].mxu1 %v11399_v47  ;;  %9082 = vmatprep.subr.bf16.mxu0 %v10231_v48 }
 0x41e   :  { %3947 = vmatprep.mubr.bf16.mxu1 %v11475_v40  ;;  %9145 = vmatpush3.bf16.msra.mxu1 %v10230_v0  ;;  %v13277_v40 = vld [vmem:[#allocation52_spill] sm:$0xff] }
 0x41f   :  { %9146 = vmatprep.subr.bf16.mxu1 %v10232_v42 }
 0x420   :  { %9083 = vmatpush3.bf16.msra.mxu0 %v10233_v51  ;;  %v10242_v51 = vld [vmem:[#allocation12 + $0x188] sm:$0xff]  }
 0x421   :  { %9196 = vmatprep.subr.bf16.mxu0 %v10235_v12  ;;  %v10243_v12 = vld [vmem:[#allocation12 + $0x150] sm:$0xff]  }
 0x422   :  { %9147 = vmatpush3.bf16.msra.mxu1 %v10234_v17 }
 0x423   :  { %3722 = vmatmul.mubr.bf16.gmra.mrb[96].mxu0 %v11467_v39  ;;  %9260 = vmatprep.subr.bf16.mxu1 %v10237_v34 }
 0x424   :  { %3731 = vmatprep.mubr.bf16.mxu0 %v11534_v10 }
 0x425   :  { %3948 = vmatmul.mubr.bf16.gmra.mrb[112].mxu1 %v11467_v39  ;;  %v11711_v39 = vld [vmem:[#allocation13 + $0x7] sm:$0xff] }
 0x426   :  { %3957 = vmatprep.mubr.bf16.mxu1 %v11534_v10  ;;  %v11715_v47 = vrot.slane %v11711_v39, %v11098_v49  ;;  %v13278_v10 = vld [vmem:[#allocation51_spill] sm:$0xff] }
 0x42b   :  { %3732 = vmatmul.mubr.bf16.gmra.mrb[100].mxu0 %v11522_v45 }
 0x42c   :  { %3741 = vmatprep.mubr.bf16.mxu0 %v11579_v50 }
 0x42d   :  { %3958 = vmatmul.mubr.bf16.gmra.mrb[116].mxu1 %v11522_v45  ;;  %v11719_v45 = vrot.slane %v11711_v39, %v13277_v40 }
 0x42e   :  { %3967 = vmatprep.mubr.bf16.mxu1 %v11579_v50  ;;  %v11723_v50 = vrot.slane %v11711_v39, %v13278_v10 }
 0x433   :  { %3742 = vmatmul.mubr.bf16.gmra.mrb[104].mxu0 %v11571_v27 }
 0x434   :  { %3751 = vmatprep.mubr.bf16.mxu0 %v11607_v6 }
 0x435   :  { %3968 = vmatmul.mubr.bf16.gmra.mrb[120].mxu1 %v11571_v27  ;;  %v13279_v27 = vld [vmem:[#allocation53_spill] sm:$0xff] }
 0x436   :  { %3977 = vmatprep.mubr.bf16.mxu1 %v11607_v6  ;;  %v11727_v6 = vrot.slane %v11711_v39, %v13279_v27 }
 0x43b   :  { %3752 = vmatmul.mubr.bf16.gmra.mrb[108].mxu0 %v11603_v26 }
 0x43d   :  { %3978 = vmatmul.mubr.bf16.gmra.mrb[124].mxu1 %v11603_v26 }
 0x456   :  { %v3231_v21 = vpop.f32.mrb[48].mxu0 }
 0x457   :  { %v9470_v26 = vadd.f32 %v3231_v21, %v11715_v47  ;;  %v3457_v7 = vpop.f32.mrb[64].mxu1  ;;  %v3233_v9 = vpop.f32.mrb[49].mxu0 }
 0x458   :  { %v9502_v35 = vadd.f32 %v3457_v7, %v11719_v45  ;;  %v9471_v56 = vadd.f32 %v3233_v9, %v11723_v50  ;;  %v3459_v14 = vpop.f32.mrb[65].mxu1  ;;  %v3235_v25 = vpop.f32.mrb[50].mxu0  ;;  %v10245_v7 = vld [vmem:[#allocation12 + $0x1d0] sm:$0xff]  }
 0x459   :  { %v9503_v38 = vadd.f32 %v3459_v14, %v11727_v6  ;;  %v9472_v46 = vadd.f32 %v3235_v25, %v11715_v47  ;;  %v3461_v63 = vpop.f32.mrb[66].mxu1  ;;  %v3237_v37 = vpop.f32.mrb[51].mxu0  ;;  %v3988_v19 = vmax.f32 %v9470_v26, 0.0 }
 0x45a   :  { %v9504_v58 = vadd.f32 %v3461_v63, %v11719_v45  ;;  %v9473_v23 = vadd.f32 %v3237_v37, %v11723_v50  ;;  %v3463_v3 = vpop.f32.mrb[67].mxu1  ;;  %v3990_v60 = vmax.f32 %v9502_v35, 0.0  ;;  %v3989_v44 = vmax.f32 %v9471_v56, 0.0 }
 0x45b   :  { %v3996_v11 = vmax.f32 %v9472_v46, 0.0  ;;  %v9505_v41 = vadd.f32 %v3463_v3, %v11727_v6  ;;  %v3991_v28 = vmax.f32 %v9503_v38, 0.0  ;;  %v10244_v46 = vld [vmem:[#allocation12 + $0x110] sm:$0xff]  }
 0x45c   :  { %v3998_v1 = vmax.f32 %v9504_v58, 0.0  ;;  %v3997_v22 = vmax.f32 %v9473_v23, 0.0  ;;  %v10246_v3 = vld [vmem:[#allocation12 + $0x190] sm:$0xff]  }
 0x45d   :  { %v4244_v16 = vpack.c.bf16 %v3996_v11, %v3988_v19  ;;  %v3999_v29 = vmax.f32 %v9505_v41, 0.0  ;;  %v10247_v19 = vld [vmem:[#allocation12 + $0x158] sm:$0xff]  }
 0x45e   :  { %v4246_v24 = vpack.c.bf16 %v3998_v1, %v3990_v60  ;;  %v4245_v57 = vpack.c.bf16 %v3997_v22, %v3989_v44  ;;  %v3241_v55 = vpop.f32.mrb[52].mxu0  ;;  %v10249_v1 = vld [vmem:[#allocation12 + $0x1d8] sm:$0xff]  }
 0x45f   :  { %v4247_v18 = vpack.c.bf16 %v3999_v29, %v3991_v28  ;;  %v9474_v30 = vadd.f32 %v3241_v55, %v11715_v47  ;;  %v3467_v32 = vpop.f32.mrb[68].mxu1  ;;  %v3243_v59 = vpop.f32.mrb[53].mxu0 }
 0x460   :  { %v9506_v4 = vadd.f32 %v3467_v32, %v11719_v45  ;;  %v9475_v61 = vadd.f32 %v3243_v59, %v11723_v50  ;;  %v3469_v36 = vpop.f32.mrb[69].mxu1  ;;  %v3245_v43 = vpop.f32.mrb[54].mxu0  ;;  %4731 = vmatprep.mubr.bf16.mxu0 %v4245_v57  ;;  %v10250_v59 = vld [vmem:[#allocation12 + $0x198] sm:$0xff]  }
 0x461   :  { %v9507_v31 = vadd.f32 %v3469_v36, %v11727_v6  ;;  %v9476_v33 = vadd.f32 %v3245_v43, %v11715_v47  ;;  %v3471_v15 = vpop.f32.mrb[70].mxu1  ;;  %4828 = vmatprep.mubr.bf16.mxu1 %v4247_v18  ;;  %v3247_v54 = vpop.f32.mrb[55].mxu0  ;;  %4732 = vmatmul.mubr.bf16.vlgmr.msra.gmra.mrb[112].mxu0 %v4244_v16  ;;  %v4004_v48 = vmax.f32 %v9474_v30, 0.0  ;;  %v10253_v43 = vld [vmem:[#allocation12 + $0x1e0] sm:$0xff]  }
 0x462   :  { %v9508_v5 = vadd.f32 %v3471_v15, %v11719_v45  ;;  %v9477_v53 = vadd.f32 %v3247_v54, %v11723_v50  ;;  %v3473_v8 = vpop.f32.mrb[71].mxu1  ;;  %4829 = vmatmul.mubr.bf16.vlgmr.msra.gmra.mrb[128].mxu1 %v4246_v24  ;;  %9197 = vmatpush3.bf16.msra.mxu0 %v10236_v2  ;;  %v4006_v17 = vmax.f32 %v9506_v4, 0.0  ;;  %v4005_v34 = vmax.f32 %v9475_v61, 0.0  ;;  %v10248_v2 = vld [vmem:[#allocation12 + $0x118] sm:$0xff]  }
 0x463   :  { %v4012_v0 = vmax.f32 %v9476_v33, 0.0  ;;  %v9509_v42 = vadd.f32 %v3473_v8, %v11727_v6  ;;  %9261 = vmatpush3.bf16.msra.mxu1 %v10238_v13  ;;  %9198 = vmatprep.subr.bf16.mxu0 %v10239_v62  ;;  %v4007_v9 = vmax.f32 %v9507_v31, 0.0  ;;  %v10251_v13 = vld [vmem:[#allocation12 + $0x160] sm:$0xff]  }
 0x464   :  { %v4014_v21 = vmax.f32 %v9508_v5, 0.0  ;;  %v4013_v26 = vmax.f32 %v9477_v53, 0.0  ;;  %9262 = vmatprep.subr.bf16.mxu1 %v10241_v52  ;;  %v10252_v53 = vld [vmem:[#allocation12 + $0x120] sm:$0xff]  }
 0x465   :  { %v4252_v35 = vpack.c.bf16 %v4012_v0, %v4004_v48  ;;  %v4015_v56 = vmax.f32 %v9509_v42, 0.0  ;;  %v10254_v42 = vld [vmem:[#allocation12 + $0x1a0] sm:$0xff]  }
 0x466   :  { %v4254_v14 = vpack.c.bf16 %v4014_v21, %v4006_v17  ;;  %v4253_v25 = vpack.c.bf16 %v4013_v26, %v4005_v34  ;;  %v3251_v38 = vpop.f32.mrb[56].mxu0  ;;  %9199 = vmatpush3.bf16.msra.mxu0 %v10240_v20  ;;  %v10257_v26 = vld [vmem:[#allocation12 + $0x1e8] sm:$0xff]  }
 0x467   :  { %v4255_v63 = vpack.c.bf16 %v4015_v56, %v4007_v9  ;;  %v9478_v37 = vadd.f32 %v3251_v38, %v11715_v47  ;;  %v3477_v58 = vpop.f32.mrb[72].mxu1  ;;  %v3253_v23 = vpop.f32.mrb[57].mxu0  ;;  %9263 = vmatpush3.bf16.msra.mxu1 %v10242_v51  ;;  %9200 = vmatprep.subr.bf16.mxu0 %v10243_v12  ;;  %v10255_v51 = vld [vmem:[#allocation12 + $0x168] sm:$0xff]  }
 0x468   :  { %v9510_v11 = vadd.f32 %v3477_v58, %v11719_v45  ;;  %v9479_v41 = vadd.f32 %v3253_v23, %v11723_v50  ;;  %v3479_v60 = vpop.f32.mrb[73].mxu1  ;;  %v3255_v44 = vpop.f32.mrb[58].mxu0  ;;  %4739 = vmatprep.mubr.bf16.mxu0 %v4253_v25  ;;  %9264 = vmatprep.subr.bf16.mxu1 %v10245_v7  ;;  %v10258_v23 = vld [vmem:[#allocation12 + $0x1a8] sm:$0xff]  }
 0x469   :  { %v9511_v22 = vadd.f32 %v3479_v60, %v11727_v6  ;;  %v9480_v28 = vadd.f32 %v3255_v44, %v11715_v47  ;;  %v3481_v16 = vpop.f32.mrb[74].mxu1  ;;  %4836 = vmatprep.mubr.bf16.mxu1 %v4255_v63  ;;  %v3257_v29 = vpop.f32.mrb[59].mxu0  ;;  %4740 = vmatmul.mubr.bf16.gmra.mrb[116].mxu0 %v4252_v35  ;;  %v4020_v18 = vmax.f32 %v9478_v37, 0.0  ;;  %v10261_v44 = vld [vmem:[#allocation12 + $0x1f0] sm:$0xff]  }
 0x46a   :  { %v9512_v24 = vadd.f32 %v3481_v16, %v11719_v45  ;;  %v9481_v57 = vadd.f32 %v3257_v29, %v11723_v50  ;;  %v3483_v55 = vpop.f32.mrb[75].mxu1  ;;  %4837 = vmatmul.mubr.bf16.gmra.mrb[132].mxu1 %v4254_v14  ;;  %9201 = vmatpush3.bf16.msra.mxu0 %v10244_v46  ;;  %v4022_v62 = vmax.f32 %v9510_v11, 0.0  ;;  %v4021_v4 = vmax.f32 %v9479_v41, 0.0  ;;  %v10256_v46 = vld [vmem:[#allocation12 + $0x128] sm:$0xff]  }
 0x46b   :  { %v4028_v30 = vmax.f32 %v9480_v28, 0.0  ;;  %v9513_v32 = vadd.f32 %v3483_v55, %v11727_v6  ;;  %9265 = vmatpush3.bf16.msra.mxu1 %v10246_v3  ;;  %9202 = vmatprep.subr.bf16.mxu0 %v10247_v19  ;;  %v4023_v52 = vmax.f32 %v9511_v22, 0.0  ;;  %v10259_v3 = vld [vmem:[#allocation12 + $0x170] sm:$0xff]  }
 0x46c   :  { %v4030_v61 = vmax.f32 %v9512_v24, 0.0  ;;  %v4029_v36 = vmax.f32 %v9481_v57, 0.0  ;;  %9266 = vmatprep.subr.bf16.mxu1 %v10249_v1  ;;  %v10260_v57 = vld [vmem:[#allocation12 + $0x130] sm:$0xff]  }
 0x46d   :  { %v4260_v31 = vpack.c.bf16 %v4028_v30, %v4020_v18  ;;  %v4031_v33 = vmax.f32 %v9513_v32, 0.0  ;;  %v10262_v32 = vld [vmem:[#allocation12 + $0x1b0] sm:$0xff]  }
 0x46e   :  { %v4262_v15 = vpack.c.bf16 %v4030_v61, %v4022_v62  ;;  %v4261_v54 = vpack.c.bf16 %v4029_v36, %v4021_v4  ;;  %v3261_v5 = vpop.f32.mrb[60].mxu0  ;;  %9203 = vmatpush3.bf16.msra.mxu0 %v10248_v2  ;;  %v10265_v36 = vld [vmem:[#allocation12 + $0x1f8] sm:$0xff]  }
 0x46f   :  { %v4263_v8 = vpack.c.bf16 %v4031_v33, %v4023_v52  ;;  %v9482_v20 = vadd.f32 %v3261_v5, %v11715_v47  ;;  %v3487_v48 = vpop.f32.mrb[76].mxu1  ;;  %v3263_v0 = vpop.f32.mrb[61].mxu0  ;;  %9267 = vmatpush3.bf16.msra.mxu1 %v10250_v59  ;;  %9204 = vmatprep.subr.bf16.mxu0 %v10251_v13  ;;  %v10263_v59 = vld [vmem:[#allocation12 + $0x178] sm:$0xff]  }
 0x470   :  { %v9514_v12 = vadd.f32 %v3487_v48, %v11719_v45  ;;  %v9483_v17 = vadd.f32 %v3263_v0, %v11723_v50  ;;  %v3489_v34 = vpop.f32.mrb[77].mxu1  ;;  %v3265_v21 = vpop.f32.mrb[62].mxu0  ;;  %4747 = vmatprep.mubr.bf16.mxu0 %v4261_v54  ;;  %9268 = vmatprep.subr.bf16.mxu1 %v10253_v43  ;;  %v10266_v0 = vld [vmem:[#allocation12 + $0x1b8] sm:$0xff]  }
 0x471   :  { %v9515_v7 = vadd.f32 %v3489_v34, %v11727_v6  ;;  %v9484_v9 = vadd.f32 %v3265_v21, %v11715_v47  ;;  %v3491_v35 = vpop.f32.mrb[78].mxu1  ;;  %4844 = vmatprep.mubr.bf16.mxu1 %v4263_v8  ;;  %v3267_v56 = vpop.f32.mrb[63].mxu0  ;;  %4748 = vmatmul.mubr.bf16.gmra.mrb[120].mxu0 %v4260_v31  ;;  %v4036_v63 = vmax.f32 %v9482_v20, 0.0 }
 0x472   :  { %v9516_v14 = vadd.f32 %v3491_v35, %v11719_v45  ;;  %v9485_v25 = vadd.f32 %v3267_v56, %v11723_v50  ;;  %v3493_v38 = vpop.f32.mrb[79].mxu1  ;;  %4845 = vmatmul.mubr.bf16.gmra.mrb[136].mxu1 %v4262_v15  ;;  %9205 = vmatpush3.bf16.msra.mxu0 %v10252_v53  ;;  %v4038_v19 = vmax.f32 %v9514_v12, 0.0  ;;  %v4037_v11 = vmax.f32 %v9483_v17, 0.0  ;;  %v10264_v53 = vld [vmem:[#allocation12 + $0x138] sm:$0xff]  }
 0x473   :  { %v4044_v37 = vmax.f32 %v9484_v9, 0.0  ;;  %v9517_v58 = vadd.f32 %v3493_v38, %v11727_v6  ;;  %9269 = vmatpush3.bf16.msra.mxu1 %v10254_v42  ;;  %9206 = vmatprep.subr.bf16.mxu0 %v10255_v51  ;;  %v4039_v1 = vmax.f32 %v9515_v7, 0.0 }
 0x474   :  { %v4046_v41 = vmax.f32 %v9516_v14, 0.0  ;;  %v4045_v60 = vmax.f32 %v9485_v25, 0.0  ;;  %9270 = vmatprep.subr.bf16.mxu1 %v10257_v26 }
 0x475   :  { %v4268_v22 = vpack.c.bf16 %v4044_v37, %v4036_v63  ;;  %v4047_v28 = vmax.f32 %v9517_v58, 0.0 }
 0x476   :  { %v4270_v16 = vpack.c.bf16 %v4046_v41, %v4038_v19  ;;  %v4269_v29 = vpack.c.bf16 %v4045_v60, %v4037_v11  ;;  %v3271_v24 = vpop.f32.mrb[64].mxu0  ;;  %9207 = vmatpush3.bf16.msra.mxu0 %v10256_v46 }
 0x477   :  { %v4271_v55 = vpack.c.bf16 %v4047_v28, %v4039_v1  ;;  %v9486_v2 = vadd.f32 %v3271_v24, %v11715_v47  ;;  %v3497_v18 = vpop.f32.mrb[80].mxu1  ;;  %v3273_v30 = vpop.f32.mrb[65].mxu0  ;;  %9271 = vmatpush3.bf16.msra.mxu1 %v10258_v23  ;;  %9208 = vmatprep.subr.bf16.mxu0 %v10259_v3 }
 0x478   :  { %v9518_v13 = vadd.f32 %v3497_v18, %v11719_v45  ;;  %v9487_v62 = vadd.f32 %v3273_v30, %v11723_v50  ;;  %v3499_v4 = vpop.f32.mrb[81].mxu1  ;;  %v3275_v61 = vpop.f32.mrb[66].mxu0  ;;  %4755 = vmatprep.mubr.bf16.mxu0 %v4269_v29  ;;  %9272 = vmatprep.subr.bf16.mxu1 %v10261_v44 }
 0x479   :  { %v9519_v43 = vadd.f32 %v3499_v4, %v11727_v6  ;;  %v9488_v52 = vadd.f32 %v3275_v61, %v11715_v47  ;;  %v3501_v31 = vpop.f32.mrb[82].mxu1  ;;  %4852 = vmatprep.mubr.bf16.mxu1 %v4271_v55  ;;  %v3277_v33 = vpop.f32.mrb[67].mxu0  ;;  %4756 = vmatmul.mubr.bf16.gmra.mrb[124].mxu0 %v4268_v22  ;;  %v4052_v8 = vmax.f32 %v9486_v2, 0.0 }
 0x47a   :  { %v9520_v15 = vadd.f32 %v3501_v31, %v11719_v45  ;;  %v9489_v54 = vadd.f32 %v3277_v33, %v11723_v50  ;;  %v3503_v5 = vpop.f32.mrb[83].mxu1  ;;  %4853 = vmatmul.mubr.bf16.gmra.mrb[140].mxu1 %v4270_v16  ;;  %9209 = vmatpush3.bf16.msra.mxu0 %v10260_v57  ;;  %v4054_v42 = vmax.f32 %v9518_v13, 0.0  ;;  %v4053_v51 = vmax.f32 %v9487_v62, 0.0 }
 0x47b   :  { %v4060_v20 = vmax.f32 %v9488_v52, 0.0  ;;  %v9521_v48 = vadd.f32 %v3503_v5, %v11727_v6  ;;  %9273 = vmatpush3.bf16.msra.mxu1 %v10262_v32  ;;  %9210 = vmatprep.subr.bf16.mxu0 %v10263_v59  ;;  %v4055_v34 = vmax.f32 %v9519_v43, 0.0 }
 0x47c   :  { %v4062_v12 = vmax.f32 %v9520_v15, 0.0  ;;  %v4061_v17 = vmax.f32 %v9489_v54, 0.0  ;;  %9274 = vmatprep.subr.bf16.mxu1 %v10265_v36 }
 0x47d   :  { %v4276_v21 = vpack.c.bf16 %v4060_v20, %v4052_v8  ;;  %v4063_v26 = vmax.f32 %v9521_v48, 0.0 }
 0x47e   :  { %v4278_v7 = vpack.c.bf16 %v4062_v12, %v4054_v42  ;;  %v4277_v9 = vpack.c.bf16 %v4061_v17, %v4053_v51  ;;  %v3281_v35 = vpop.f32.mrb[68].mxu0  ;;  %9211 = vmatpush3.bf16.msra.mxu0 %v10264_v53 }
 0x47f   :  { %v4279_v56 = vpack.c.bf16 %v4063_v26, %v4055_v34  ;;  %v9490_v14 = vadd.f32 %v3281_v35, %v11715_v47  ;;  %v3507_v25 = vpop.f32.mrb[84].mxu1  ;;  %v3283_v38 = vpop.f32.mrb[69].mxu0  ;;  %9275 = vmatpush3.bf16.msra.mxu1 %v10266_v0 }
 0x480   :  { %v9522_v46 = vadd.f32 %v3507_v25, %v11719_v45  ;;  %v9491_v63 = vadd.f32 %v3283_v38, %v11723_v50  ;;  %v3509_v37 = vpop.f32.mrb[85].mxu1  ;;  %v3285_v58 = vpop.f32.mrb[70].mxu0  ;;  %4763 = vmatprep.mubr.bf16.mxu0 %v4277_v9 }
 0x481   :  { %v9523_v23 = vadd.f32 %v3509_v37, %v11727_v6  ;;  %v9492_v3 = vadd.f32 %v3285_v58, %v11715_v47  ;;  %v3511_v19 = vpop.f32.mrb[86].mxu1  ;;  %4860 = vmatprep.mubr.bf16.mxu1 %v4279_v56  ;;  %v3287_v11 = vpop.f32.mrb[71].mxu0  ;;  %4764 = vmatmul.mubr.bf16.gmra.mrb[128].mxu0 %v4276_v21  ;;  %v4068_v1 = vmax.f32 %v9490_v14, 0.0 }
 0x482   :  { %v9524_v41 = vadd.f32 %v3511_v19, %v11719_v45  ;;  %v9493_v60 = vadd.f32 %v3287_v11, %v11723_v50  ;;  %v3513_v44 = vpop.f32.mrb[87].mxu1  ;;  %4861 = vmatmul.mubr.bf16.gmra.mrb[144].mxu1 %v4278_v7  ;;  %v4070_v16 = vmax.f32 %v9522_v46, 0.0  ;;  %v4069_v29 = vmax.f32 %v9491_v63, 0.0 }
 0x483   :  { %v4076_v22 = vmax.f32 %v9492_v3, 0.0  ;;  %v9525_v28 = vadd.f32 %v3513_v44, %v11727_v6  ;;  %v4071_v55 = vmax.f32 %v9523_v23, 0.0 }
 0x484   :  { %v4078_v24 = vmax.f32 %v9524_v41, 0.0  ;;  %v4077_v57 = vmax.f32 %v9493_v60, 0.0 }
 0x485   :  { %v4284_v2 = vpack.c.bf16 %v4076_v22, %v4068_v1  ;;  %v4079_v18 = vmax.f32 %v9525_v28, 0.0 }
 0x486   :  { %v4286_v30 = vpack.c.bf16 %v4078_v24, %v4070_v16  ;;  %v4285_v32 = vpack.c.bf16 %v4077_v57, %v4069_v29  ;;  %v3291_v59 = vpop.f32.mrb[72].mxu0 }
 0x487   :  { %v4287_v13 = vpack.c.bf16 %v4079_v18, %v4071_v55  ;;  %v9494_v62 = vadd.f32 %v3291_v59, %v11715_v47  ;;  %v3517_v4 = vpop.f32.mrb[88].mxu1  ;;  %v3293_v61 = vpop.f32.mrb[73].mxu0 }
 0x488   :  { %v9526_v36 = vadd.f32 %v3517_v4, %v11719_v45  ;;  %v9495_v43 = vadd.f32 %v3293_v61, %v11723_v50  ;;  %v3519_v52 = vpop.f32.mrb[89].mxu1  ;;  %v3295_v31 = vpop.f32.mrb[74].mxu0  ;;  %4771 = vmatprep.mubr.bf16.mxu0 %v4285_v32 }
 0x489   :  { %v9527_v33 = vadd.f32 %v3519_v52, %v11727_v6  ;;  %v9496_v15 = vadd.f32 %v3295_v31, %v11715_v47  ;;  %v3521_v54 = vpop.f32.mrb[90].mxu1  ;;  %4868 = vmatprep.mubr.bf16.mxu1 %v4287_v13  ;;  %v3297_v5 = vpop.f32.mrb[75].mxu0  ;;  %4772 = vmatmul.mubr.bf16.gmra.mrb[132].mxu0 %v4284_v2  ;;  %v4084_v48 = vmax.f32 %v9494_v62, 0.0 }
 0x48a   :  { %v9528_v53 = vadd.f32 %v3521_v54, %v11719_v45  ;;  %v9497_v8 = vadd.f32 %v3297_v5, %v11723_v50  ;;  %v3523_v20 = vpop.f32.mrb[91].mxu1  ;;  %4869 = vmatmul.mubr.bf16.gmra.mrb[148].mxu1 %v4286_v30  ;;  %v4086_v51 = vmax.f32 %v9526_v36, 0.0  ;;  %v4085_v12 = vmax.f32 %v9495_v43, 0.0 }
 0x48b   :  { %v4092_v0 = vmax.f32 %v9496_v15, 0.0  ;;  %v9529_v42 = vadd.f32 %v3523_v20, %v11727_v6  ;;  %v4087_v21 = vmax.f32 %v9527_v33, 0.0 }
 0x48c   :  { %v4094_v17 = vmax.f32 %v9528_v53, 0.0  ;;  %v4093_v34 = vmax.f32 %v9497_v8, 0.0 }
 0x48d   :  { %v4292_v26 = vpack.c.bf16 %v4092_v0, %v4084_v48  ;;  %v4095_v7 = vmax.f32 %v9529_v42, 0.0 }
 0x48e   :  { %v4294_v9 = vpack.c.bf16 %v4094_v17, %v4086_v51  ;;  %v4293_v35 = vpack.c.bf16 %v4093_v34, %v4085_v12  ;;  %v3301_v56 = vpop.f32.mrb[76].mxu0 }
 0x48f   :  { %v4295_v14 = vpack.c.bf16 %v4095_v7, %v4087_v21  ;;  %v9498_v25 = vadd.f32 %v3301_v56, %v11715_v47  ;;  %v3527_v38 = vpop.f32.mrb[92].mxu1  ;;  %v3303_v46 = vpop.f32.mrb[77].mxu0 }
 0x490   :  { %v9530_v63 = vadd.f32 %v3527_v38, %v11719_v45  ;;  %v9499_v37 = vadd.f32 %v3303_v46, %v11723_v50  ;;  %v3529_v58 = vpop.f32.mrb[93].mxu1  ;;  %v3305_v23 = vpop.f32.mrb[78].mxu0  ;;  %4779 = vmatprep.mubr.bf16.mxu0 %v4293_v35 }
 0x491   :  { %v9531_v3 = vadd.f32 %v3529_v58, %v11727_v6  ;;  %v9500_v19 = vadd.f32 %v3305_v23, %v11715_v47  ;;  %v3531_v11 = vpop.f32.mrb[94].mxu1  ;;  %4876 = vmatprep.mubr.bf16.mxu1 %v4295_v14  ;;  %v3307_v41 = vpop.f32.mrb[79].mxu0  ;;  %4780 = vmatmul.mubr.bf16.gmra.mrb[136].mxu0 %v4292_v26  ;;  %v4100_v22 = vmax.f32 %v9498_v25, 0.0 }
 0x492   :  { %v9532_v60 = vadd.f32 %v3531_v11, %v11719_v45  ;;  %v9501_v44 = vadd.f32 %v3307_v41, %v11723_v50  ;;  %v3533_v1 = vpop.f32.mrb[95].mxu1  ;;  %4877 = vmatmul.mubr.bf16.gmra.mrb[152].mxu1 %v4294_v9  ;;  %v4102_v29 = vmax.f32 %v9530_v63, 0.0  ;;  %v4101_v24 = vmax.f32 %v9499_v37, 0.0  ;;  %v13280_v45 = vld [vmem:[#allocation50_spill] sm:$0xff] }
 0x493   :  { %v4108_v28 = vmax.f32 %v9500_v19, 0.0  ;;  %v9533_v16 = vadd.f32 %v3533_v1, %v11727_v6  ;;  %v4103_v2 = vmax.f32 %v9531_v3, 0.0  ;;  %v13224_v50 = vsub.s32 4, %v13280_v45 }
 0x494   :  { %v4110_v57 = vmax.f32 %v9532_v60, 0.0  ;;  %v4109_v55 = vmax.f32 %v9501_v44, 0.0  ;;  %v13223_v13 = vsub.s32 5, %v13280_v45  ;;  %v13222_v6 = vsub.s32 6, %v13280_v45 }
 0x495   :  { %v4300_v47 = vpack.c.bf16 %v4108_v28, %v4100_v22  ;;  %v4111_v18 = vmax.f32 %v9533_v16, 0.0  ;;  %v13221_v62 = vsub.s32 7, %v13280_v45  ;;  %v11800_v4 = vrot.slane %v11711_v39, %v13224_v50 }
 0x496   :  { %v4302_v30 = vpack.c.bf16 %v4110_v57, %v4102_v29  ;;  %v4301_v32 = vpack.c.bf16 %v4109_v55, %v4101_v24  ;;  %v11805_v61 = vrot.slane %v11711_v39, %v13223_v13  ;;  %v11810_v36 = vrot.slane %v11711_v39, %v13222_v6 }
 0x497   :  { %v4303_v59 = vpack.c.bf16 %v4111_v18, %v4103_v2  ;;  %v11815_v52 = vrot.slane %v11711_v39, %v13221_v62 }
 0x498   :  { %4787 = vmatprep.mubr.bf16.mxu0 %v4301_v32 }
 0x499   :  { %4884 = vmatprep.mubr.bf16.mxu1 %v4303_v59  ;;  %4788 = vmatmul.mubr.bf16.gmra.mrb[140].mxu0 %v4300_v47 }
 0x49a   :  { %4885 = vmatmul.mubr.bf16.gmra.mrb[156].mxu1 %v4302_v30 }
 0x4d6   :  { %v3683_v43 = vpop.f32.mrb[80].mxu0 }
 0x4d7   :  { %v9534_v31 = vadd.f32 %v3683_v43, %v11800_v4  ;;  %v3685_v33 = vpop.f32.mrb[81].mxu0 }
 0x4d8   :  { %v3909_v15 = vpop.f32.mrb[96].mxu1  ;;  %v9535_v54 = vadd.f32 %v3685_v33, %v11805_v61  ;;  %v3687_v5 = vpop.f32.mrb[82].mxu0 }
 0x4d9   :  { %v9566_v53 = vadd.f32 %v3909_v15, %v11810_v36  ;;  %v3911_v8 = vpop.f32.mrb[97].mxu1  ;;  %v9536_v20 = vadd.f32 %v3687_v5, %v11800_v4  ;;  %v3689_v48 = vpop.f32.mrb[83].mxu0  ;;  %v3992_v39 = vmax.f32 %v9534_v31, 0.0 }
 0x4da   :  { %v9567_v0 = vadd.f32 %v3911_v8, %v11815_v52  ;;  %v3913_v42 = vpop.f32.mrb[98].mxu1  ;;  %v9537_v51 = vadd.f32 %v3689_v48, %v11805_v61  ;;  %v3993_v21 = vmax.f32 %v9535_v54, 0.0 }
 0x4db   :  { %v4000_v12 = vmax.f32 %v9536_v20, 0.0  ;;  %v9568_v17 = vadd.f32 %v3913_v42, %v11810_v36  ;;  %v3915_v34 = vpop.f32.mrb[99].mxu1  ;;  %v3994_v9 = vmax.f32 %v9566_v53, 0.0 }
 0x4dc   :  { %v4001_v26 = vmax.f32 %v9537_v51, 0.0  ;;  %v9569_v7 = vadd.f32 %v3915_v34, %v11815_v52  ;;  %v3995_v14 = vmax.f32 %v9567_v0, 0.0 }
 0x4dd   :  { %v4248_v35 = vpack.c.bf16 %v4000_v12, %v3992_v39  ;;  %v4002_v56 = vmax.f32 %v9568_v17, 0.0 }
 0x4de   :  { %v4249_v25 = vpack.c.bf16 %v4001_v26, %v3993_v21  ;;  %v4003_v38 = vmax.f32 %v9569_v7, 0.0  ;;  %v3693_v46 = vpop.f32.mrb[84].mxu0 }
 0x4df   :  { %v4250_v63 = vpack.c.bf16 %v4002_v56, %v3994_v9  ;;  %v9538_v37 = vadd.f32 %v3693_v46, %v11800_v4  ;;  %v3695_v58 = vpop.f32.mrb[85].mxu0 }
 0x4e0   :  { %v4251_v23 = vpack.c.bf16 %v4003_v38, %v3995_v14  ;;  %v3919_v3 = vpop.f32.mrb[100].mxu1  ;;  %v9539_v19 = vadd.f32 %v3695_v58, %v11805_v61  ;;  %v3697_v11 = vpop.f32.mrb[86].mxu0  ;;  %4925 = vmatprep.mubr.bf16.mxu0 %v4249_v25 }
 0x4e1   :  { %v9570_v41 = vadd.f32 %v3919_v3, %v11810_v36  ;;  %v3921_v60 = vpop.f32.mrb[101].mxu1  ;;  %v9540_v44 = vadd.f32 %v3697_v11, %v11800_v4  ;;  %v3699_v1 = vpop.f32.mrb[87].mxu0  ;;  %4926 = vmatmul.mubr.bf16.vlgmr.msra.gmra.mrb[144].mxu0 %v4248_v35  ;;  %v4008_v29 = vmax.f32 %v9538_v37, 0.0 }
 0x4e2   :  { %v9571_v22 = vadd.f32 %v3921_v60, %v11815_v52  ;;  %v3923_v28 = vpop.f32.mrb[102].mxu1  ;;  %5022 = vmatprep.mubr.bf16.mxu1 %v4251_v23  ;;  %v9541_v16 = vadd.f32 %v3699_v1, %v11805_v61  ;;  %v4009_v2 = vmax.f32 %v9539_v19, 0.0 }
 0x4e3   :  { %v4016_v24 = vmax.f32 %v9540_v44, 0.0  ;;  %v9572_v57 = vadd.f32 %v3923_v28, %v11810_v36  ;;  %v3925_v55 = vpop.f32.mrb[103].mxu1  ;;  %5023 = vmatmul.mubr.bf16.vlgmr.msra.gmra.mrb[160].mxu1 %v4250_v63  ;;  %v4010_v30 = vmax.f32 %v9570_v41, 0.0 }
 0x4e4   :  { %v4017_v47 = vmax.f32 %v9541_v16, 0.0  ;;  %v9573_v18 = vadd.f32 %v3925_v55, %v11815_v52  ;;  %v4011_v43 = vmax.f32 %v9571_v22, 0.0 }
 0x4e5   :  { %v4256_v32 = vpack.c.bf16 %v4016_v24, %v4008_v29  ;;  %v4018_v59 = vmax.f32 %v9572_v57, 0.0 }
 0x4e6   :  { %v4257_v31 = vpack.c.bf16 %v4017_v47, %v4009_v2  ;;  %v4019_v33 = vmax.f32 %v9573_v18, 0.0  ;;  %v3703_v15 = vpop.f32.mrb[88].mxu0 }
 0x4e7   :  { %v4258_v54 = vpack.c.bf16 %v4018_v59, %v4010_v30  ;;  %v9542_v5 = vadd.f32 %v3703_v15, %v11800_v4  ;;  %v3705_v53 = vpop.f32.mrb[89].mxu0 }
 0x4e8   :  { %v4259_v8 = vpack.c.bf16 %v4019_v33, %v4011_v43  ;;  %v3929_v20 = vpop.f32.mrb[104].mxu1  ;;  %v9543_v48 = vadd.f32 %v3705_v53, %v11805_v61  ;;  %v3707_v0 = vpop.f32.mrb[90].mxu0  ;;  %4933 = vmatprep.mubr.bf16.mxu0 %v4257_v31 }
 0x4e9   :  { %v9574_v42 = vadd.f32 %v3929_v20, %v11810_v36  ;;  %v3931_v51 = vpop.f32.mrb[105].mxu1  ;;  %v9544_v39 = vadd.f32 %v3707_v0, %v11800_v4  ;;  %v3709_v12 = vpop.f32.mrb[91].mxu0  ;;  %4934 = vmatmul.mubr.bf16.gmra.mrb[148].mxu0 %v4256_v32  ;;  %v4024_v26 = vmax.f32 %v9542_v5, 0.0 }
 0x4ea   :  { %v9575_v17 = vadd.f32 %v3931_v51, %v11815_v52  ;;  %v3933_v34 = vpop.f32.mrb[106].mxu1  ;;  %5030 = vmatprep.mubr.bf16.mxu1 %v4259_v8  ;;  %v9545_v21 = vadd.f32 %v3709_v12, %v11805_v61  ;;  %v4025_v56 = vmax.f32 %v9543_v48, 0.0 }
 0x4eb   :  { %v4032_v7 = vmax.f32 %v9544_v39, 0.0  ;;  %v9576_v9 = vadd.f32 %v3933_v34, %v11810_v36  ;;  %v3935_v35 = vpop.f32.mrb[107].mxu1  ;;  %5031 = vmatmul.mubr.bf16.gmra.mrb[164].mxu1 %v4258_v54  ;;  %v4026_v38 = vmax.f32 %v9574_v42, 0.0 }
 0x4ec   :  { %v4033_v14 = vmax.f32 %v9545_v21, 0.0  ;;  %v9577_v25 = vadd.f32 %v3935_v35, %v11815_v52  ;;  %v4027_v37 = vmax.f32 %v9575_v17, 0.0 }
 0x4ed   :  { %v4264_v46 = vpack.c.bf16 %v4032_v7, %v4024_v26  ;;  %v4034_v63 = vmax.f32 %v9576_v9, 0.0 }
 0x4ee   :  { %v4265_v58 = vpack.c.bf16 %v4033_v14, %v4025_v56  ;;  %v4035_v23 = vmax.f32 %v9577_v25, 0.0  ;;  %v3713_v3 = vpop.f32.mrb[92].mxu0 }
 0x4ef   :  { %v4266_v19 = vpack.c.bf16 %v4034_v63, %v4026_v38  ;;  %v9546_v11 = vadd.f32 %v3713_v3, %v11800_v4  ;;  %v3715_v41 = vpop.f32.mrb[93].mxu0 }
 0x4f0   :  { %v4267_v60 = vpack.c.bf16 %v4035_v23, %v4027_v37  ;;  %v3939_v44 = vpop.f32.mrb[108].mxu1  ;;  %v9547_v1 = vadd.f32 %v3715_v41, %v11805_v61  ;;  %v3717_v22 = vpop.f32.mrb[94].mxu0  ;;  %4941 = vmatprep.mubr.bf16.mxu0 %v4265_v58 }
 0x4f1   :  { %v9578_v28 = vadd.f32 %v3939_v44, %v11810_v36  ;;  %v3941_v16 = vpop.f32.mrb[109].mxu1  ;;  %v9548_v29 = vadd.f32 %v3717_v22, %v11800_v4  ;;  %v3719_v24 = vpop.f32.mrb[95].mxu0  ;;  %4942 = vmatmul.mubr.bf16.gmra.mrb[152].mxu0 %v4264_v46  ;;  %v4040_v47 = vmax.f32 %v9546_v11, 0.0 }
 0x4f2   :  { %v9579_v57 = vadd.f32 %v3941_v16, %v11815_v52  ;;  %v3943_v55 = vpop.f32.mrb[110].mxu1  ;;  %5038 = vmatprep.mubr.bf16.mxu1 %v4267_v60  ;;  %v9549_v2 = vadd.f32 %v3719_v24, %v11805_v61  ;;  %v4041_v59 = vmax.f32 %v9547_v1, 0.0 }
 0x4f3   :  { %v4048_v18 = vmax.f32 %v9548_v29, 0.0  ;;  %v9580_v30 = vadd.f32 %v3943_v55, %v11810_v36  ;;  %v3945_v32 = vpop.f32.mrb[111].mxu1  ;;  %5039 = vmatmul.mubr.bf16.gmra.mrb[168].mxu1 %v4266_v19  ;;  %v4042_v33 = vmax.f32 %v9578_v28, 0.0 }
 0x4f4   :  { %v4049_v43 = vmax.f32 %v9549_v2, 0.0  ;;  %v9581_v31 = vadd.f32 %v3945_v32, %v11815_v52  ;;  %v4043_v5 = vmax.f32 %v9579_v57, 0.0 }
 0x4f5   :  { %v4272_v15 = vpack.c.bf16 %v4048_v18, %v4040_v47  ;;  %v4050_v54 = vmax.f32 %v9580_v30, 0.0 }
 0x4f6   :  { %v4273_v53 = vpack.c.bf16 %v4049_v43, %v4041_v59  ;;  %v4051_v8 = vmax.f32 %v9581_v31, 0.0  ;;  %v3723_v20 = vpop.f32.mrb[96].mxu0 }
 0x4f7   :  { %v4274_v48 = vpack.c.bf16 %v4050_v54, %v4042_v33  ;;  %v9550_v0 = vadd.f32 %v3723_v20, %v11800_v4  ;;  %v3725_v42 = vpop.f32.mrb[97].mxu0 }
 0x4f8   :  { %v4275_v51 = vpack.c.bf16 %v4051_v8, %v4043_v5  ;;  %v3949_v39 = vpop.f32.mrb[112].mxu1  ;;  %v9551_v12 = vadd.f32 %v3725_v42, %v11805_v61  ;;  %v3727_v17 = vpop.f32.mrb[98].mxu0  ;;  %4949 = vmatprep.mubr.bf16.mxu0 %v4273_v53 }
 0x4f9   :  { %v9582_v34 = vadd.f32 %v3949_v39, %v11810_v36  ;;  %v3951_v21 = vpop.f32.mrb[113].mxu1  ;;  %v9552_v26 = vadd.f32 %v3727_v17, %v11800_v4  ;;  %v3729_v7 = vpop.f32.mrb[99].mxu0  ;;  %4950 = vmatmul.mubr.bf16.gmra.mrb[156].mxu0 %v4272_v15  ;;  %v4056_v14 = vmax.f32 %v9550_v0, 0.0 }
 0x4fa   :  { %v9583_v9 = vadd.f32 %v3951_v21, %v11815_v52  ;;  %v3953_v35 = vpop.f32.mrb[114].mxu1  ;;  %5046 = vmatprep.mubr.bf16.mxu1 %v4275_v51  ;;  %v9553_v56 = vadd.f32 %v3729_v7, %v11805_v61  ;;  %v4057_v63 = vmax.f32 %v9551_v12, 0.0 }
 0x4fb   :  { %v4064_v25 = vmax.f32 %v9552_v26, 0.0  ;;  %v9584_v38 = vadd.f32 %v3953_v35, %v11810_v36  ;;  %v3955_v46 = vpop.f32.mrb[115].mxu1  ;;  %5047 = vmatmul.mubr.bf16.gmra.mrb[172].mxu1 %v4274_v48  ;;  %v4058_v23 = vmax.f32 %v9582_v34, 0.0 }
 0x4fc   :  { %v4065_v37 = vmax.f32 %v9553_v56, 0.0  ;;  %v9585_v58 = vadd.f32 %v3955_v46, %v11815_v52  ;;  %v4059_v11 = vmax.f32 %v9583_v9, 0.0 }
 0x4fd   :  { %v4280_v3 = vpack.c.bf16 %v4064_v25, %v4056_v14  ;;  %v4066_v19 = vmax.f32 %v9584_v38, 0.0 }
 0x4fe   :  { %v4281_v41 = vpack.c.bf16 %v4065_v37, %v4057_v63  ;;  %v4067_v60 = vmax.f32 %v9585_v58, 0.0  ;;  %v3733_v44 = vpop.f32.mrb[100].mxu0 }
 0x4ff   :  { %v4282_v1 = vpack.c.bf16 %v4066_v19, %v4058_v23  ;;  %v9554_v22 = vadd.f32 %v3733_v44, %v11800_v4  ;;  %v3735_v28 = vpop.f32.mrb[101].mxu0 }
 0x500   :  { %v4283_v16 = vpack.c.bf16 %v4067_v60, %v4059_v11  ;;  %v3959_v29 = vpop.f32.mrb[116].mxu1  ;;  %v9555_v24 = vadd.f32 %v3735_v28, %v11805_v61  ;;  %v3737_v57 = vpop.f32.mrb[102].mxu0  ;;  %4957 = vmatprep.mubr.bf16.mxu0 %v4281_v41 }
 0x501   :  { %v9586_v55 = vadd.f32 %v3959_v29, %v11810_v36  ;;  %v3961_v2 = vpop.f32.mrb[117].mxu1  ;;  %v9556_v47 = vadd.f32 %v3737_v57, %v11800_v4  ;;  %v3739_v18 = vpop.f32.mrb[103].mxu0  ;;  %4958 = vmatmul.mubr.bf16.gmra.mrb[160].mxu0 %v4280_v3  ;;  %v4072_v43 = vmax.f32 %v9554_v22, 0.0 }
 0x502   :  { %v9587_v30 = vadd.f32 %v3961_v2, %v11815_v52  ;;  %v3963_v32 = vpop.f32.mrb[118].mxu1  ;;  %5054 = vmatprep.mubr.bf16.mxu1 %v4283_v16  ;;  %v9557_v59 = vadd.f32 %v3739_v18, %v11805_v61  ;;  %v4073_v54 = vmax.f32 %v9555_v24, 0.0 }
 0x503   :  { %v4080_v31 = vmax.f32 %v9556_v47, 0.0  ;;  %v9588_v33 = vadd.f32 %v3963_v32, %v11810_v36  ;;  %v3965_v15 = vpop.f32.mrb[119].mxu1  ;;  %5055 = vmatmul.mubr.bf16.gmra.mrb[176].mxu1 %v4282_v1  ;;  %v4074_v8 = vmax.f32 %v9586_v55, 0.0 }
 0x504   :  { %v4081_v5 = vmax.f32 %v9557_v59, 0.0  ;;  %v9589_v53 = vadd.f32 %v3965_v15, %v11815_v52  ;;  %v4075_v0 = vmax.f32 %v9587_v30, 0.0 }
 0x505   :  { %v4288_v20 = vpack.c.bf16 %v4080_v31, %v4072_v43  ;;  %v4082_v48 = vmax.f32 %v9588_v33, 0.0 }
 0x506   :  { %v4289_v42 = vpack.c.bf16 %v4081_v5, %v4073_v54  ;;  %v4083_v51 = vmax.f32 %v9589_v53, 0.0  ;;  %v3743_v39 = vpop.f32.mrb[104].mxu0 }
 0x507   :  { %v4290_v12 = vpack.c.bf16 %v4082_v48, %v4074_v8  ;;  %v9558_v17 = vadd.f32 %v3743_v39, %v11800_v4  ;;  %v3745_v34 = vpop.f32.mrb[105].mxu0 }
 0x508   :  { %v4291_v21 = vpack.c.bf16 %v4083_v51, %v4075_v0  ;;  %v3969_v26 = vpop.f32.mrb[120].mxu1  ;;  %v9559_v7 = vadd.f32 %v3745_v34, %v11805_v61  ;;  %v3747_v9 = vpop.f32.mrb[106].mxu0  ;;  %4965 = vmatprep.mubr.bf16.mxu0 %v4289_v42 }
 0x509   :  { %v9590_v35 = vadd.f32 %v3969_v26, %v11810_v36  ;;  %v3971_v56 = vpop.f32.mrb[121].mxu1  ;;  %v9560_v14 = vadd.f32 %v3747_v9, %v11800_v4  ;;  %v3749_v25 = vpop.f32.mrb[107].mxu0  ;;  %4966 = vmatmul.mubr.bf16.gmra.mrb[164].mxu0 %v4288_v20  ;;  %v4088_v37 = vmax.f32 %v9558_v17, 0.0 }
 0x50a   :  { %v9591_v38 = vadd.f32 %v3971_v56, %v11815_v52  ;;  %v3973_v46 = vpop.f32.mrb[122].mxu1  ;;  %5062 = vmatprep.mubr.bf16.mxu1 %v4291_v21  ;;  %v9561_v63 = vadd.f32 %v3749_v25, %v11805_v61  ;;  %v4089_v19 = vmax.f32 %v9559_v7, 0.0  ;;  %v11881_v7 = vld [vmem:[#allocation13 + $0xf] ss:$0 sm:$0xff] }
 0x50b   :  { %v4096_v58 = vmax.f32 %v9560_v14, 0.0  ;;  %v9592_v23 = vadd.f32 %v3973_v46, %v11810_v36  ;;  %v3975_v3 = vpop.f32.mrb[123].mxu1  ;;  %5063 = vmatmul.mubr.bf16.gmra.mrb[180].mxu1 %v4290_v12  ;;  %v4090_v60 = vmax.f32 %v9590_v35, 0.0 }
 0x50c   :  { %v4097_v11 = vmax.f32 %v9561_v63, 0.0  ;;  %v9593_v41 = vadd.f32 %v3975_v3, %v11815_v52  ;;  %v4091_v22 = vmax.f32 %v9591_v38, 0.0 }
 0x50d   :  { %v4296_v44 = vpack.c.bf16 %v4096_v58, %v4088_v37  ;;  %v4098_v1 = vmax.f32 %v9592_v23, 0.0 }
 0x50e   :  { %v4297_v28 = vpack.c.bf16 %v4097_v11, %v4089_v19  ;;  %v4099_v16 = vmax.f32 %v9593_v41, 0.0  ;;  %v3753_v29 = vpop.f32.mrb[108].mxu0 }
 0x50f   :  { %v4298_v24 = vpack.c.bf16 %v4098_v1, %v4090_v60  ;;  %v9562_v57 = vadd.f32 %v3753_v29, %v11800_v4  ;;  %v3755_v55 = vpop.f32.mrb[109].mxu0 }
 0x510   :  { %v4299_v2 = vpack.c.bf16 %v4099_v16, %v4091_v22  ;;  %v3979_v47 = vpop.f32.mrb[124].mxu1  ;;  %v9563_v18 = vadd.f32 %v3755_v55, %v11805_v61  ;;  %v3757_v30 = vpop.f32.mrb[110].mxu0  ;;  %4973 = vmatprep.mubr.bf16.mxu0 %v4297_v28 }
 0x511   :  { %v9594_v32 = vadd.f32 %v3979_v47, %v11810_v36  ;;  %v3981_v59 = vpop.f32.mrb[125].mxu1  ;;  %v9564_v43 = vadd.f32 %v3757_v30, %v11800_v4  ;;  %v3759_v31 = vpop.f32.mrb[111].mxu0  ;;  %4974 = vmatmul.mubr.bf16.gmra.mrb[168].mxu0 %v4296_v44  ;;  %v4104_v5 = vmax.f32 %v9562_v57, 0.0 }
 0x512   :  { %v9595_v33 = vadd.f32 %v3981_v59, %v11815_v52  ;;  %v3983_v15 = vpop.f32.mrb[126].mxu1  ;;  %5070 = vmatprep.mubr.bf16.mxu1 %v4299_v2  ;;  %v9565_v54 = vadd.f32 %v3759_v31, %v11805_v61  ;;  %v4105_v48 = vmax.f32 %v9563_v18, 0.0 }
 0x513   :  { %v4112_v53 = vmax.f32 %v9564_v43, 0.0  ;;  %v9596_v8 = vadd.f32 %v3983_v15, %v11810_v36  ;;  %v3985_v20 = vpop.f32.mrb[127].mxu1  ;;  %5071 = vmatmul.mubr.bf16.gmra.mrb[184].mxu1 %v4298_v24  ;;  %v4106_v51 = vmax.f32 %v9594_v32, 0.0 }
 0x514   :  { %v4113_v0 = vmax.f32 %v9565_v54, 0.0  ;;  %v9597_v42 = vadd.f32 %v3985_v20, %v11815_v52  ;;  %v4107_v12 = vmax.f32 %v9595_v33, 0.0 }
 0x515   :  { %v4304_v4 = vpack.c.bf16 %v4112_v53, %v4104_v5  ;;  %v4114_v39 = vmax.f32 %v9596_v8, 0.0 }
 0x516   :  { %v4305_v17 = vpack.c.bf16 %v4113_v0, %v4105_v48  ;;  %v4115_v34 = vmax.f32 %v9597_v42, 0.0 }
 0x517   :  { %v4306_v21 = vpack.c.bf16 %v4114_v39, %v4106_v51 }
 0x518   :  { %v4307_v26 = vpack.c.bf16 %v4115_v34, %v4107_v12  ;;  %4981 = vmatprep.mubr.bf16.mxu0 %v4305_v17 }
 0x519   :  { %4982 = vmatmul.mubr.bf16.gmra.mrb[172].mxu0 %v4304_v4 }
 0x51a   :  { %5078 = vmatprep.mubr.bf16.mxu1 %v4307_v26 }
 0x51b   :  { %5079 = vmatmul.mubr.bf16.gmra.mrb[188].mxu1 %v4306_v21 }
 0x534   :  { %v9084_v61 = vpop.f32.mrb[112].mxu0 }
 0x535   :  { %v9148_v36 = vpop.f32.mrb[128].mxu1  ;;  %v9085_v9 = vpop.f32.mrb[113].mxu0 }
 0x536   :  { %v9086_v35 = vadd.f32 %v9085_v9, %v9084_v61  ;;  %v9149_v56 = vpop.f32.mrb[129].mxu1  ;;  %v9087_v52 = vpop.f32.mrb[114].mxu0 }
 0x537   :  { %v9150_v14 = vadd.f32 %v9149_v56, %v9148_v36  ;;  %v9151_v25 = vpop.f32.mrb[130].mxu1  ;;  %v9088_v38 = vpop.f32.mrb[115].mxu0 }
 0x538   :  { %v4734_v46 = vadd.f32 %v9086_v35, %v11881_v7  ;;  %v9089_v63 = vadd.f32 %v9088_v38, %v9087_v52  ;;  %v9152_v37 = vpop.f32.mrb[131].mxu1 }
 0x539   :  { %v9153_v58 = vadd.f32 %v9152_v37, %v9151_v25 }
 0x53a   :  { %v11884_v23 = vadd.f32 %v9150_v14, %v4734_v46  ;;  %v4737_v3 = vadd.f32 %v9089_v63, %v11881_v7 }
 0x53c   :  { %v11887_v19 = vadd.f32 %v9153_v58, %v4737_v3  ;;  %v9090_v11 = vpop.f32.mrb[116].mxu0 }
 0x53d   :  { %v9154_v41 = vpop.f32.mrb[132].mxu1  ;;  %v9091_v60 = vpop.f32.mrb[117].mxu0 }
 0x53e   :  { %v9092_v44 = vadd.f32 %v9091_v60, %v9090_v11  ;;  %v9155_v1 = vpop.f32.mrb[133].mxu1  ;;  %v9093_v22 = vpop.f32.mrb[118].mxu0 }
 0x53f   :  { %v9156_v28 = vadd.f32 %v9155_v1, %v9154_v41  ;;  %v9157_v16 = vpop.f32.mrb[134].mxu1  ;;  %v9094_v29 = vpop.f32.mrb[119].mxu0 }
 0x540   :  { %v4742_v24 = vadd.f32 %v9092_v44, %v11881_v7  ;;  %v9095_v57 = vadd.f32 %v9094_v29, %v9093_v22  ;;  %v9158_v55 = vpop.f32.mrb[135].mxu1 }
 0x541   :  { %v9159_v2 = vadd.f32 %v9158_v55, %v9157_v16 }
 0x542   :  { %v11890_v47 = vadd.f32 %v9156_v28, %v4742_v24  ;;  %v4745_v18 = vadd.f32 %v9095_v57, %v11881_v7 }
 0x544   :  { %v11893_v30 = vadd.f32 %v9159_v2, %v4745_v18  ;;  %v9096_v32 = vpop.f32.mrb[120].mxu0 }
 0x545   :  { %v9160_v59 = vpop.f32.mrb[136].mxu1  ;;  %v9097_v43 = vpop.f32.mrb[121].mxu0 }
 0x546   :  { %v9098_v31 = vadd.f32 %v9097_v43, %v9096_v32  ;;  %v9161_v33 = vpop.f32.mrb[137].mxu1  ;;  %v9099_v15 = vpop.f32.mrb[122].mxu0 }
 0x547   :  { %v9162_v54 = vadd.f32 %v9161_v33, %v9160_v59  ;;  %v9163_v5 = vpop.f32.mrb[138].mxu1  ;;  %v9100_v53 = vpop.f32.mrb[123].mxu0 }
 0x548   :  { %v4750_v8 = vadd.f32 %v9098_v31, %v11881_v7  ;;  %v9101_v20 = vadd.f32 %v9100_v53, %v9099_v15  ;;  %v9164_v48 = vpop.f32.mrb[139].mxu1 }
 0x549   :  { %v9165_v0 = vadd.f32 %v9164_v48, %v9163_v5 }
 0x54a   :  { %v11896_v42 = vadd.f32 %v9162_v54, %v4750_v8  ;;  %v4753_v51 = vadd.f32 %v9101_v20, %v11881_v7 }
 0x54c   :  { %v11899_v4 = vadd.f32 %v9165_v0, %v4753_v51  ;;  %v9102_v39 = vpop.f32.mrb[124].mxu0 }
 0x54d   :  { %v9166_v12 = vpop.f32.mrb[140].mxu1  ;;  %v9103_v17 = vpop.f32.mrb[125].mxu0 }
 0x54e   :  { %v9104_v34 = vadd.f32 %v9103_v17, %v9102_v39  ;;  %v9167_v21 = vpop.f32.mrb[141].mxu1  ;;  %v9105_v26 = vpop.f32.mrb[126].mxu0 }
 0x54f   :  { %v9168_v61 = vadd.f32 %v9167_v21, %v9166_v12  ;;  %v9169_v36 = vpop.f32.mrb[142].mxu1  ;;  %v9106_v9 = vpop.f32.mrb[127].mxu0 }
 0x550   :  { %v4758_v35 = vadd.f32 %v9104_v34, %v11881_v7  ;;  %v9107_v56 = vadd.f32 %v9106_v9, %v9105_v26  ;;  %v9170_v52 = vpop.f32.mrb[143].mxu1 }
 0x551   :  { %v9171_v14 = vadd.f32 %v9170_v52, %v9169_v36 }
 0x552   :  { %v11902_v25 = vadd.f32 %v9168_v61, %v4758_v35  ;;  %v4761_v38 = vadd.f32 %v9107_v56, %v11881_v7 }
 0x554   :  { %v11905_v46 = vadd.f32 %v9171_v14, %v4761_v38  ;;  %v9108_v63 = vpop.f32.mrb[128].mxu0 }
 0x555   :  { %v9172_v37 = vpop.f32.mrb[144].mxu1  ;;  %v9109_v58 = vpop.f32.mrb[129].mxu0 }
 0x556   :  { %v9110_v3 = vadd.f32 %v9109_v58, %v9108_v63  ;;  %v9173_v11 = vpop.f32.mrb[145].mxu1  ;;  %v9111_v41 = vpop.f32.mrb[130].mxu0 }
 0x557   :  { %v9174_v60 = vadd.f32 %v9173_v11, %v9172_v37  ;;  %v9175_v44 = vpop.f32.mrb[146].mxu1  ;;  %v9112_v1 = vpop.f32.mrb[131].mxu0 }
 0x558   :  { %v4766_v22 = vadd.f32 %v9110_v3, %v11881_v7  ;;  %v9113_v28 = vadd.f32 %v9112_v1, %v9111_v41  ;;  %v9176_v16 = vpop.f32.mrb[147].mxu1 }
 0x559   :  { %v9177_v29 = vadd.f32 %v9176_v16, %v9175_v44 }
 0x55a   :  { %v11908_v24 = vadd.f32 %v9174_v60, %v4766_v22  ;;  %v4769_v57 = vadd.f32 %v9113_v28, %v11881_v7 }
 0x55c   :  { %v11911_v55 = vadd.f32 %v9177_v29, %v4769_v57  ;;  %v9114_v2 = vpop.f32.mrb[132].mxu0 }
 0x55d   :  { %v9178_v18 = vpop.f32.mrb[148].mxu1  ;;  %v9115_v32 = vpop.f32.mrb[133].mxu0 }
 0x55e   :  { %v9116_v59 = vadd.f32 %v9115_v32, %v9114_v2  ;;  %v9179_v43 = vpop.f32.mrb[149].mxu1  ;;  %v9117_v31 = vpop.f32.mrb[134].mxu0 }
 0x55f   :  { %v9180_v33 = vadd.f32 %v9179_v43, %v9178_v18  ;;  %v9181_v15 = vpop.f32.mrb[150].mxu1  ;;  %v9118_v54 = vpop.f32.mrb[135].mxu0 }
 0x560   :  { %v4774_v5 = vadd.f32 %v9116_v59, %v11881_v7  ;;  %v9119_v53 = vadd.f32 %v9118_v54, %v9117_v31  ;;  %v9182_v8 = vpop.f32.mrb[151].mxu1 }
 0x561   :  { %v9183_v20 = vadd.f32 %v9182_v8, %v9181_v15 }
 0x562   :  { %v11914_v48 = vadd.f32 %v9180_v33, %v4774_v5  ;;  %v4777_v0 = vadd.f32 %v9119_v53, %v11881_v7 }
 0x564   :  { %v11917_v51 = vadd.f32 %v9183_v20, %v4777_v0  ;;  %v9120_v39 = vpop.f32.mrb[136].mxu0 }
 0x565   :  { %v9184_v12 = vpop.f32.mrb[152].mxu1  ;;  %v9121_v17 = vpop.f32.mrb[137].mxu0 }
 0x566   :  { %v9122_v34 = vadd.f32 %v9121_v17, %v9120_v39  ;;  %v9185_v21 = vpop.f32.mrb[153].mxu1  ;;  %v9123_v26 = vpop.f32.mrb[138].mxu0 }
 0x567   :  { %v9186_v61 = vadd.f32 %v9185_v21, %v9184_v12  ;;  %v9187_v36 = vpop.f32.mrb[154].mxu1  ;;  %v9124_v9 = vpop.f32.mrb[139].mxu0 }
 0x568   :  { %v4782_v35 = vadd.f32 %v9122_v34, %v11881_v7  ;;  %v9125_v56 = vadd.f32 %v9124_v9, %v9123_v26  ;;  %v9188_v52 = vpop.f32.mrb[155].mxu1 }
 0x569   :  { %v9189_v14 = vadd.f32 %v9188_v52, %v9187_v36 }
 0x56a   :  { %v11920_v38 = vadd.f32 %v9186_v61, %v4782_v35  ;;  %v4785_v63 = vadd.f32 %v9125_v56, %v11881_v7 }
 0x56c   :  { %v11923_v37 = vadd.f32 %v9189_v14, %v4785_v63  ;;  %v9126_v58 = vpop.f32.mrb[140].mxu0 }
 0x56d   :  { %v9190_v3 = vpop.f32.mrb[156].mxu1  ;;  %v9127_v11 = vpop.f32.mrb[141].mxu0 }
 0x56e   :  { %v9128_v41 = vadd.f32 %v9127_v11, %v9126_v58  ;;  %v9191_v60 = vpop.f32.mrb[157].mxu1  ;;  %v9129_v44 = vpop.f32.mrb[142].mxu0 }
 0x56f   :  { %v9192_v1 = vadd.f32 %v9191_v60, %v9190_v3  ;;  %v9193_v22 = vpop.f32.mrb[158].mxu1  ;;  %v9130_v28 = vpop.f32.mrb[143].mxu0 }
 0x570   :  { %v4790_v16 = vadd.f32 %v9128_v41, %v11881_v7  ;;  %v9131_v29 = vadd.f32 %v9130_v28, %v9129_v44  ;;  %v9194_v57 = vpop.f32.mrb[159].mxu1 }
 0x571   :  { %v9195_v2 = vadd.f32 %v9194_v57, %v9193_v22 }
 0x572   :  { %v11926_v18 = vadd.f32 %v9192_v1, %v4790_v16  ;;  %v4793_v32 = vadd.f32 %v9131_v29, %v11881_v7 }
 0x574   :  { %v11929_v59 = vadd.f32 %v9195_v2, %v4793_v32 }
 0x5b4   :  { %v9212_v43 = vpop.f32.mrb[144].mxu0 }
 0x5b5   :  { %v9213_v31 = vpop.f32.mrb[145].mxu0 }
 0x5b6   :  { %v9276_v33 = vpop.f32.mrb[160].mxu1  ;;  %v9214_v15 = vadd.f32 %v9213_v31, %v9212_v43  ;;  %v9215_v54 = vpop.f32.mrb[146].mxu0 }
 0x5b7   :  { %v9277_v5 = vpop.f32.mrb[161].mxu1  ;;  %v9216_v53 = vpop.f32.mrb[147].mxu0 }
 0x5b8   :  { %v4928_v8 = vadd.f32 %v9214_v15, %v11884_v23  ;;  %v9278_v20 = vadd.f32 %v9277_v5, %v9276_v33  ;;  %v9279_v0 = vpop.f32.mrb[162].mxu1  ;;  %v9217_v39 = vadd.f32 %v9216_v53, %v9215_v54 }
 0x5b9   :  { %v9280_v12 = vpop.f32.mrb[163].mxu1 }
 0x5ba   :  { %v11932_v17 = vadd.f32 %v9278_v20, %v4928_v8  ;;  %v4931_v34 = vadd.f32 %v9217_v39, %v11887_v19  ;;  %v9281_v7 = vadd.f32 %v9280_v12, %v9279_v0 }
 0x5bc   :  { %v5087_v21 = vmul.f32 1.442695, %v11932_v17  ;;  %v11936_v26 = vadd.f32 %v9281_v7, %v4931_v34  ;;  %v9218_v61 = vpop.f32.mrb[148].mxu0 }
 0x5bd   :  { %v9219_v36 = vpop.f32.mrb[149].mxu0 }
 0x5be   :  { %10267 = vpow2.f32 %v5087_v21  ;;  %v5089_v9 = vmul.f32 1.442695, %v11936_v26  ;;  %v9282_v35 = vpop.f32.mrb[164].mxu1  ;;  %v9220_v23 = vadd.f32 %v9219_v36, %v9218_v61  ;;  %v9221_v56 = vpop.f32.mrb[150].mxu0 }
 0x5bf   :  { %v9283_v52 = vpop.f32.mrb[165].mxu1  ;;  %v9222_v14 = vpop.f32.mrb[151].mxu0 }
 0x5c0   :  { %10269 = vpow2.f32 %v5089_v9  ;;  %v4936_v63 = vadd.f32 %v9220_v23, %v11890_v47  ;;  %v9284_v58 = vadd.f32 %v9283_v52, %v9282_v35  ;;  %v9285_v19 = vpop.f32.mrb[166].mxu1  ;;  %v9223_v3 = vadd.f32 %v9222_v14, %v9221_v56 }
 0x5c1   :  { %v9286_v11 = vpop.f32.mrb[167].mxu1 }
 0x5c2   :  { %v11940_v41 = vadd.f32 %v9284_v58, %v4936_v63  ;;  %v4939_v60 = vadd.f32 %v9223_v3, %v11893_v30  ;;  %v9287_v44 = vadd.f32 %v9286_v11, %v9285_v19 }
 0x5c4   :  { %v5091_v1 = vmul.f32 1.442695, %v11940_v41  ;;  %v11944_v22 = vadd.f32 %v9287_v44, %v4939_v60  ;;  %v9224_v28 = vpop.f32.mrb[152].mxu0 }
 0x5c5   :  { %v9225_v16 = vpop.f32.mrb[153].mxu0 }
 0x5c6   :  { %10271 = vpow2.f32 %v5091_v1  ;;  %v5093_v29 = vmul.f32 1.442695, %v11944_v22  ;;  %v9288_v57 = vpop.f32.mrb[168].mxu1  ;;  %v9226_v47 = vadd.f32 %v9225_v16, %v9224_v28  ;;  %v9227_v2 = vpop.f32.mrb[154].mxu0 }
 0x5c7   :  { %v9289_v32 = vpop.f32.mrb[169].mxu1  ;;  %v9228_v43 = vpop.f32.mrb[155].mxu0 }
 0x5c8   :  { %v10268_v31 = vpop.eup %10267  ;;  %10273 = vpow2.f32 %v5093_v29  ;;  %v4944_v33 = vadd.f32 %v9226_v47, %v11896_v42  ;;  %v9290_v30 = vadd.f32 %v9289_v32, %v9288_v57  ;;  %v9291_v15 = vpop.f32.mrb[170].mxu1  ;;  %v9229_v54 = vadd.f32 %v9228_v43, %v9227_v2 }
 0x5c9   :  { %v5119_v5 = vadd.f32 2e-08, %v10268_v31  ;;  %v9292_v53 = vpop.f32.mrb[171].mxu1 }
 0x5ca   :  { %v10270_v8 = vpop.eup %10269  ;;  %v11948_v20 = vadd.f32 %v9290_v30, %v4944_v33  ;;  %v4947_v0 = vadd.f32 %v9229_v54, %v11899_v4  ;;  %v9293_v39 = vadd.f32 %v9292_v53, %v9291_v15 }
 0x5cb   :  { %10275 = vrcp.f32 %v5119_v5  ;;  %v5120_v12 = vadd.f32 2e-08, %v10270_v8 }
 0x5cc   :  { %v5095_v34 = vmul.f32 1.442695, %v11948_v20  ;;  %v11952_v7 = vadd.f32 %v9293_v39, %v4947_v0  ;;  %v9230_v21 = vpop.f32.mrb[156].mxu0 }
 0x5cd   :  { %10277 = vrcp.f32 %v5120_v12  ;;  %v9231_v42 = vpop.f32.mrb[157].mxu0 }
 0x5ce   :  { %10279 = vpow2.f32 %v5095_v34  ;;  %v5097_v61 = vmul.f32 1.442695, %v11952_v7  ;;  %v9294_v36 = vpop.f32.mrb[172].mxu1  ;;  %v9232_v9 = vadd.f32 %v9231_v42, %v9230_v21  ;;  %v9233_v35 = vpop.f32.mrb[158].mxu0 }
 0x5cf   :  { %v9295_v23 = vpop.f32.mrb[173].mxu1  ;;  %v9234_v56 = vpop.f32.mrb[159].mxu0 }
 0x5d0   :  { %v10272_v52 = vpop.eup %10271  ;;  %10281 = vpow2.f32 %v5097_v61  ;;  %v4952_v4 = vadd.f32 %v9232_v9, %v11902_v25  ;;  %v9296_v14 = vadd.f32 %v9295_v23, %v9294_v36  ;;  %v9297_v63 = vpop.f32.mrb[174].mxu1  ;;  %v9235_v58 = vadd.f32 %v9234_v56, %v9233_v35 }
 0x5d1   :  { %v5121_v19 = vadd.f32 2e-08, %v10272_v52  ;;  %v9298_v3 = vpop.f32.mrb[175].mxu1 }
 0x5d2   :  { %v10274_v11 = vpop.eup %10273  ;;  %v11956_v60 = vadd.f32 %v9296_v14, %v4952_v4  ;;  %v4955_v44 = vadd.f32 %v9235_v58, %v11905_v46  ;;  %v9299_v1 = vadd.f32 %v9298_v3, %v9297_v63 }
 0x5d3   :  { %10283 = vrcp.f32 %v5121_v19  ;;  %v5122_v28 = vadd.f32 2e-08, %v10274_v11 }
 0x5d4   :  { %v5099_v16 = vmul.f32 1.442695, %v11956_v60  ;;  %v11960_v29 = vadd.f32 %v9299_v1, %v4955_v44  ;;  %v9236_v57 = vpop.f32.mrb[160].mxu0 }
 0x5d5   :  { %v11962_v47 = vpop.eup %10275  ;;  %v9237_v25 = vpop.f32.mrb[161].mxu0 }
 0x5d6   :  { %10285 = vpow2.f32 %v5099_v16  ;;  %v5101_v2 = vmul.f32 1.442695, %v11960_v29  ;;  %v9300_v32 = vpop.f32.mrb[176].mxu1  ;;  %v9238_v43 = vadd.f32 %v9237_v25, %v9236_v57  ;;  %v9239_v31 = vpop.f32.mrb[162].mxu0  ;;  %5199 = vrot.lane.b32.xlu0 %v11962_v47, %s10704_s1 }
 0x5d7   :  { %v11967_v46 = vpop.eup %10277  ;;  %10287 = vrcp.f32 %v5122_v28  ;;  %v9301_v33 = vpop.f32.mrb[177].mxu1 }
 0x5d8   :  { %v9240_v30 = vpop.f32.mrb[163].mxu0  ;;  %v10280_v15 = vpop.eup %10279  ;;  %10289 = vpow2.f32 %v5101_v2  ;;  %v4960_v54 = vadd.f32 %v9238_v43, %v11908_v24  ;;  %v9302_v5 = vadd.f32 %v9301_v33, %v9300_v32  ;;  %5265 = vrot.lane.b32.xlu1 %v11967_v46, %s10705_s26 }
 0x5d9   :  { %v9303_v53 = vpop.f32.mrb[178].mxu1  ;;  %v9241_v8 = vadd.f32 %v9240_v30, %v9239_v31  ;;  %v5123_v0 = vadd.f32 2e-08, %v10280_v15 }
 0x5da   :  { %v9304_v39 = vpop.f32.mrb[179].mxu1  ;;  %v10282_v12 = vpop.eup %10281  ;;  %v11972_v34 = vadd.f32 %v9302_v5, %v4960_v54  ;;  %5263 = vrot.lane.b32.xlu0 %v11962_v47, %s10705_s26 }
 0x5db   :  { %v4963_v21 = vadd.f32 %v9241_v8, %v11911_v55  ;;  %v9305_v42 = vadd.f32 %v9304_v39, %v9303_v53  ;;  %10291 = vrcp.f32 %v5123_v0  ;;  %v5124_v24 = vadd.f32 2e-08, %v10282_v12 }
 0x5dc   :  { %v5103_v61 = vmul.f32 1.442695, %v11972_v34  ;;  %v9242_v9 = vpop.f32.mrb[164].mxu0 }
 0x5dd   :  { %v11978_v36 = vadd.f32 %v9305_v42, %v4963_v21  ;;  %v11980_v35 = vpop.eup %10283  ;;  %v9243_v23 = vpop.f32.mrb[165].mxu0 }
 0x5de   :  { %10293 = vpow2.f32 %v5103_v61  ;;  %v9306_v52 = vpop.f32.mrb[180].mxu1  ;;  %v9244_v4 = vadd.f32 %v9243_v23, %v9242_v9  ;;  %v9245_v55 = vpop.f32.mrb[166].mxu0  ;;  %5203 = vrot.lane.b32.xlu1 %v11980_v35, %s10704_s1  ;;  %5201 = vrot.lane.b32.xlu0 %v11967_v46, %s10704_s1 }
 0x5df   :  { %v5105_v56 = vmul.f32 1.442695, %v11978_v36  ;;  %10295 = vrcp.f32 %v5124_v24  ;;  %v9307_v14 = vpop.f32.mrb[181].mxu1  ;;  %v9246_v63 = vpop.f32.mrb[167].mxu0 }
 0x5e0   :  { %v10286_v58 = vpop.eup %10285  ;;  %v4968_v19 = vadd.f32 %v9244_v4, %v11914_v48  ;;  %v9308_v3 = vadd.f32 %v9307_v14, %v9306_v52  ;;  %v9309_v11 = vpop.f32.mrb[182].mxu1  ;;  %v9247_v44 = vadd.f32 %v9246_v63, %v9245_v55 }
 0x5e1   :  { %10297 = vpow2.f32 %v5105_v56  ;;  %v11988_v1 = vpop.eup %10287  ;;  %v5125_v28 = vadd.f32 2e-08, %v10286_v58  ;;  %v9310_v16 = vpop.f32.mrb[183].mxu1 }
 0x5e2   :  { %v10290_v57 = vpop.eup %10289  ;;  %v11990_v25 = vadd.f32 %v9308_v3, %v4968_v19  ;;  %v4971_v2 = vadd.f32 %v9247_v44, %v11917_v51  ;;  %v9311_v32 = vadd.f32 %v9310_v16, %v9309_v11  ;;  %5205 = vrot.lane.b32.xlu1 %v11988_v1, %s10704_s1  ;;  %5267 = vrot.lane.b32.xlu0 %v11980_v35, %s10705_s26 }
 0x5e3   :  { %10299 = vrcp.f32 %v5125_v28  ;;  %v5126_v48 = vadd.f32 2e-08, %v10290_v57 }
 0x5e4   :  { %v5107_v43 = vmul.f32 1.442695, %v11990_v25  ;;  %v11998_v31 = vadd.f32 %v9311_v32, %v4971_v2  ;;  %v9248_v33 = vpop.f32.mrb[168].mxu0 }
 0x5e5   :  { %v12000_v30 = vpop.eup %10291  ;;  %v9249_v15 = vpop.f32.mrb[169].mxu0 }
 0x5e6   :  { %10301 = vpow2.f32 %v5107_v43  ;;  %v5109_v51 = vmul.f32 1.442695, %v11998_v31  ;;  %v9312_v54 = vpop.f32.mrb[184].mxu1  ;;  %v9250_v5 = vadd.f32 %v9249_v15, %v9248_v33  ;;  %v9251_v53 = vpop.f32.mrb[170].mxu0  ;;  %5269 = vrot.lane.b32.xlu1 %v11988_v1, %s10705_s26  ;;  %5207 = vrot.lane.b32.xlu0 %v12000_v30, %s10704_s1 }
 0x5e7   :  { %10303 = vrcp.f32 %v5126_v48  ;;  %v9313_v8 = vpop.f32.mrb[185].mxu1  ;;  %v9252_v0 = vpop.f32.mrb[171].mxu0 }
 0x5e8   :  { %v10294_v39 = vpop.eup %10293  ;;  %10305 = vpow2.f32 %v5109_v51  ;;  %v4976_v12 = vadd.f32 %v9250_v5, %v11920_v38  ;;  %v9314_v21 = vadd.f32 %v9313_v8, %v9312_v54  ;;  %v9315_v42 = vpop.f32.mrb[186].mxu1  ;;  %v9253_v24 = vadd.f32 %v9252_v0, %v9251_v53 }
 0x5e9   :  { %v12008_v61 = vpop.eup %10295  ;;  %v5127_v9 = vadd.f32 2e-08, %v10294_v39  ;;  %v9316_v23 = vpop.f32.mrb[187].mxu1 }
 0x5ea   :  { %v12010_v52 = vadd.f32 %v9314_v21, %v4976_v12  ;;  %v4979_v4 = vadd.f32 %v9253_v24, %v11923_v37  ;;  %v9317_v55 = vadd.f32 %v9316_v23, %v9315_v42  ;;  %5209 = vrot.lane.b32.xlu1 %v12008_v61, %s10704_s1  ;;  %5271 = vrot.lane.b32.xlu0 %v12000_v30, %s10705_s26 }
 0x5eb   :  { %v10298_v56 = vpop.eup %10297  ;;  %10307 = vrcp.f32 %v5127_v9 }
 0x5ec   :  { %v5128_v38 = vadd.f32 2e-08, %v10298_v56  ;;  %v5111_v14 = vmul.f32 1.442695, %v12010_v52  ;;  %v12018_v63 = vadd.f32 %v9317_v55, %v4979_v4  ;;  %v9254_v58 = vpop.f32.mrb[172].mxu0 }
 0x5ed   :  { %v12020_v19 = vpop.eup %10299  ;;  %v9255_v3 = vpop.f32.mrb[173].mxu0 }
 0x5ee   :  { %10309 = vpow2.f32 %v5111_v14  ;;  %v5113_v37 = vmul.f32 1.442695, %v12018_v63  ;;  %v9318_v11 = vpop.f32.mrb[188].mxu1  ;;  %v9256_v44 = vadd.f32 %v9255_v3, %v9254_v58  ;;  %v9257_v28 = vpop.f32.mrb[174].mxu0  ;;  %5273 = vrot.lane.b32.xlu1 %v12008_v61, %s10705_s26  ;;  %5211 = vrot.lane.b32.xlu0 %v12020_v19, %s10704_s1 }
 0x5ef   :  { %10311 = vrcp.f32 %v5128_v38  ;;  %v9319_v16 = vpop.f32.mrb[189].mxu1  ;;  %v9258_v57 = vpop.f32.mrb[175].mxu0 }
 0x5f0   :  { %v10302_v2 = vpop.eup %10301  ;;  %10313 = vpow2.f32 %v5113_v37  ;;  %v4984_v32 = vadd.f32 %v9256_v44, %v11926_v18  ;;  %v9320_v48 = vadd.f32 %v9319_v16, %v9318_v11  ;;  %v9321_v43 = vpop.f32.mrb[190].mxu1  ;;  %v9259_v33 = vadd.f32 %v9258_v57, %v9257_v28 }
 0x5f1   :  { %v12028_v15 = vpop.eup %10303  ;;  %v5129_v51 = vadd.f32 2e-08, %v10302_v2  ;;  %v9322_v54 = vpop.f32.mrb[191].mxu1  ;;  %v5167_v16 = vadd.f32 1.0, %v11962_v47 }
 0x5f2   :  { %v10306_v5 = vpop.eup %10305  ;;  %v12030_v53 = vadd.f32 %v9320_v48, %v4984_v32  ;;  %v4987_v8 = vadd.f32 %v9259_v33, %v11929_v59  ;;  %v9323_v0 = vadd.f32 %v9322_v54, %v9321_v43  ;;  %5213 = vrot.lane.b32.xlu1 %v12028_v15, %s10704_s1  ;;  %5275 = vrot.lane.b32.xlu0 %v12020_v19, %s10705_s26  ;;  %v5169_v33 = vadd.f32 1.0, %v11980_v35 }
 0x5f3   :  { %10315 = vrcp.f32 %v5129_v51  ;;  %v5130_v18 = vadd.f32 2e-08, %v10306_v5  ;;  %v5168_v51 = vadd.f32 1.0, %v11967_v46 }
 0x5f4   :  { %v5115_v39 = vmul.f32 1.442695, %v12030_v53  ;;  %v12038_v12 = vadd.f32 %v9323_v0, %v4987_v8  ;;  %v5170_v0 = vadd.f32 1.0, %v11988_v1  ;;  %v5171_v1 = vadd.f32 1.0, %v12000_v30 }
 0x5f5   :  { %v12040_v21 = vpop.eup %10307 }
 0x5f6   :  { %10317 = vpow2.f32 %v5115_v39  ;;  %v5117_v42 = vmul.f32 1.442695, %v12038_v12  ;;  %5277 = vrot.lane.b32.xlu1 %v12028_v15, %s10705_s26  ;;  %5215 = vrot.lane.b32.xlu0 %v12040_v21, %s10704_s1 }
 0x5f7   :  { %10319 = vrcp.f32 %v5130_v18 }
 0x5f8   :  { %v10310_v59 = vpop.eup %10309  ;;  %10321 = vpow2.f32 %v5117_v42 }
 0x5f9   :  { %v12047_v24 = vpop.eup %10311  ;;  %v5131_v9 = vadd.f32 2e-08, %v10310_v59 }
 0x5fa   :  { %v10314_v23 = vpop.eup %10313  ;;  %5217 = vrot.lane.b32.xlu1 %v12047_v24, %s10704_s1  ;;  %5279 = vrot.lane.b32.xlu0 %v12040_v21, %s10705_s26 }
 0x5fb   :  { %10323 = vrcp.f32 %v5131_v9  ;;  %v5132_v56 = vadd.f32 2e-08, %v10314_v23 }
 0x5fd   :  { %v12053_v4 = vpop.eup %10315  ;;  %10325 = vrcp.f32 %v5132_v56 }
 0x5fe   :  { %5281 = vrot.lane.b32.xlu1 %v12047_v24, %s10705_s26  ;;  %5219 = vrot.lane.b32.xlu0 %v12053_v4, %s10704_s1 }
 0x600   :  { %v10318_v55 = vpop.eup %10317 }
 0x601   :  { %v12059_v38 = vpop.eup %10319  ;;  %v5133_v14 = vadd.f32 2e-08, %v10318_v55 }
 0x602   :  { %v10322_v58 = vpop.eup %10321  ;;  %5221 = vrot.lane.b32.xlu1 %v12059_v38, %s10704_s1  ;;  %5283 = vrot.lane.b32.xlu0 %v12053_v4, %s10705_s26 }
 0x603   :  { %10327 = vrcp.f32 %v5133_v14  ;;  %v5134_v3 = vadd.f32 2e-08, %v10322_v58 }
 0x605   :  { %v12065_v37 = vpop.eup %10323  ;;  %10329 = vrcp.f32 %v5134_v3 }
 0x606   :  { %5285 = vrot.lane.b32.xlu1 %v12059_v38, %s10705_s26  ;;  %5223 = vrot.lane.b32.xlu0 %v12065_v37, %s10704_s1 }
 0x607   :  { %v12071_v11 = vpop.eup %10325 }
 0x60a   :  { %5225 = vrot.lane.b32.xlu1 %v12071_v11, %s10704_s1 }
 0x60d   :  { %v12075_v44 = vpop.eup %10327 }
 0x60e   :  { %5227 = vrot.lane.b32.xlu0 %v12075_v44, %s10704_s1 }
 0x60f   :  { %v12079_v28 = vpop.eup %10329 }
 0x610   :  { %5229 = vrot.lane.b32.xlu1 %v12079_v28, %s10704_s1 }
 0x612   :  { %5287 = vrot.lane.b32.xlu0 %v12065_v37, %s10705_s26 }
 0x614   :  { %5289 = vrot.lane.b32.xlu1 %v12071_v11, %s10705_s26 }
 0x616   :  { %5291 = vrot.lane.b32.xlu0 %v12075_v44, %s10705_s26 }
 0x618   :  { %5293 = vrot.lane.b32.xlu1 %v12079_v28, %s10705_s26 }
 0x648   :  { %v5200_v57 = vpop.permute.xlu0 %5199 }
 0x649   :  { %v5247_v2 = vadd.f32 %v5200_v57, %v5167_v16 }
 0x64a   :  { %v5266_v32 = vpop.permute.xlu1 %5265 }
 0x64b   :  { %10331 = vrcp.f32 %v5247_v2  ;;  %5423 = vrot.lane.b32.xlu0 %v5247_v2, %s10705_s26  ;;  %v12104_v42 = vmul.f32 %v5266_v32, %v11936_v26  ;;  %v5172_v26 = vadd.f32 1.0, %v12008_v61  ;;  %v5173_v61 = vadd.f32 1.0, %v12020_v19 }
 0x64c   :  { %v5264_v48 = vpop.permute.xlu0 %5263 }
 0x64d   :  { %v12094_v43 = vmul.f32 %v5264_v48, %v11932_v17 }
 0x64f   :  { %5343 = vrot.lane.b32.xlu0 %v12094_v43, %s10704_s1 }
 0x650   :  { %v5204_v54 = vpop.permute.xlu1 %5203  ;;  %v5202_v5 = vpop.permute.xlu0 %5201 }
 0x651   :  { %v5249_v47 = vadd.f32 %v5204_v54, %v5169_v33  ;;  %v5248_v8 = vadd.f32 %v5202_v5, %v5168_v51  ;;  %v5174_v5 = vadd.f32 1.0, %v12028_v15  ;;  %v5175_v15 = vadd.f32 1.0, %v12040_v21 }
 0x653   :  { %10333 = vrcp.f32 %v5249_v47  ;;  %5425 = vrot.lane.b32.xlu1 %v5248_v8, %s10705_s26  ;;  %5427 = vrot.lane.b32.xlu0 %v5249_v47, %s10705_s26 }
 0x654   :  { %10335 = vrcp.f32 %v5248_v8  ;;  %v5206_v17 = vpop.permute.xlu1 %5205  ;;  %v5268_v18 = vpop.permute.xlu0 %5267 }
 0x655   :  { %v10332_v39 = vpop.eup %10331  ;;  %v5250_v35 = vadd.f32 %v5206_v17, %v5170_v0  ;;  %v12107_v46 = vmul.f32 %v5268_v18, %v11940_v41 }
 0x656   :  { %v5535_v59 = vadd.f32 1e-08, %v10332_v39 }
 0x657   :  { %10337 = vrcp.f32 %v5250_v35  ;;  %5345 = vrot.lane.b32.xlu1 %v12104_v42, %s10704_s1  ;;  %5347 = vrot.lane.b32.xlu0 %v12107_v46, %s10704_s1 }
 0x658   :  { %10339 = vlog2.f32 %v5535_v59  ;;  %v5270_v9 = vpop.permute.xlu1 %5269  ;;  %v5208_v23 = vpop.permute.xlu0 %5207 }
 0x659   :  { %v5251_v56 = vadd.f32 %v5208_v23, %v5171_v1  ;;  %v12118_v58 = vmul.f32 %v5270_v9, %v11944_v22 }
 0x65b   :  { %10341 = vrcp.f32 %v5251_v56  ;;  %5429 = vrot.lane.b32.xlu1 %v5250_v35, %s10705_s26  ;;  %5431 = vrot.lane.b32.xlu0 %v5251_v56, %s10705_s26 }
 0x65c   :  { %v5210_v41 = vpop.permute.xlu1 %5209  ;;  %v5272_v55 = vpop.permute.xlu0 %5271 }
 0x65d   :  { %v10334_v14 = vpop.eup %10333  ;;  %v5252_v3 = vadd.f32 %v5210_v41, %v5172_v26  ;;  %v12121_v30 = vmul.f32 %v5272_v55, %v11948_v20  ;;  %v5176_v26 = vadd.f32 1.0, %v12047_v24  ;;  %v5177_v24 = vadd.f32 1.0, %v12053_v4 }
 0x65e   :  { %v10336_v16 = vpop.eup %10335  ;;  %v5537_v57 = vadd.f32 1e-08, %v10334_v14 }
 0x65f   :  { %v5536_v2 = vadd.f32 1e-08, %v10336_v16  ;;  %10343 = vrcp.f32 %v5252_v3  ;;  %5349 = vrot.lane.b32.xlu1 %v12118_v58, %s10704_s1  ;;  %5351 = vrot.lane.b32.xlu0 %v12121_v30, %s10704_s1 }
 0x660   :  { %10345 = vlog2.f32 %v5537_v57  ;;  %v5274_v32 = vpop.permute.xlu1 %5273  ;;  %v5212_v22 = vpop.permute.xlu0 %5211 }
 0x661   :  { %v10338_v48 = vpop.eup %10337  ;;  %10347 = vlog2.f32 %v5536_v2  ;;  %v5253_v33 = vadd.f32 %v5212_v22, %v5173_v61  ;;  %v12134_v0 = vmul.f32 %v5274_v32, %v11952_v7 }
 0x662   :  { %v10340_v20 = vpop.eup %10339  ;;  %v5538_v51 = vadd.f32 1e-08, %v10338_v48 }
 0x663   :  { %v12128_v54 = vmul.f32 0.6931472, %v10340_v20  ;;  %10349 = vrcp.f32 %v5253_v33  ;;  %5433 = vrot.lane.b32.xlu1 %v5252_v3, %s10705_s26  ;;  %5435 = vrot.lane.b32.xlu0 %v5253_v33, %s10705_s26 }
 0x664   :  { %10351 = vlog2.f32 %v5538_v51  ;;  %v5214_v47 = vpop.permute.xlu1 %5213  ;;  %v5276_v19 = vpop.permute.xlu0 %5275 }
 0x665   :  { %v10342_v8 = vpop.eup %10341  ;;  %v5254_v17 = vadd.f32 %v5214_v47, %v5174_v5  ;;  %v12137_v18 = vmul.f32 %v5276_v19, %v11956_v60  ;;  %v5178_v5 = vadd.f32 1.0, %v12059_v38 }
 0x666   :  { %v5539_v39 = vadd.f32 1e-08, %v10342_v8 }
 0x667   :  { %10353 = vrcp.f32 %v5254_v17  ;;  %5353 = vrot.lane.b32.xlu1 %v12134_v0, %s10704_s1  ;;  %5355 = vrot.lane.b32.xlu0 %v12137_v18, %s10704_s1 }
 0x668   :  { %10355 = vlog2.f32 %v5539_v39  ;;  %v5278_v35 = vpop.permute.xlu1 %5277  ;;  %v5216_v59 = vpop.permute.xlu0 %5215 }
 0x669   :  { %v10344_v1 = vpop.eup %10343  ;;  %v5255_v7 = vadd.f32 %v5216_v59, %v5175_v15  ;;  %v12152_v3 = vmul.f32 %v5278_v35, %v11960_v29  ;;  %v5179_v59 = vadd.f32 1.0, %v12065_v37 }
 0x66a   :  { %v10346_v9 = vpop.eup %10345  ;;  %v5540_v23 = vadd.f32 1e-08, %v10344_v1 }
 0x66b   :  { %v10348_v56 = vpop.eup %10347  ;;  %v12144_v60 = vmul.f32 0.6931472, %v10346_v9  ;;  %10357 = vrcp.f32 %v5255_v7  ;;  %5437 = vrot.lane.b32.xlu1 %v5254_v17, %s10705_s26  ;;  %5439 = vrot.lane.b32.xlu0 %v5255_v7, %s10705_s26 }
 0x66c   :  { %v12149_v41 = vmul.f32 0.6931472, %v10348_v56  ;;  %10359 = vlog2.f32 %v5540_v23  ;;  %v5218_v21 = vpop.permute.xlu1 %5217  ;;  %v5280_v55 = vpop.permute.xlu0 %5279 }
 0x66d   :  { %v10350_v14 = vpop.eup %10349  ;;  %v5256_v16 = vadd.f32 %v5218_v21, %v5176_v26  ;;  %v12155_v57 = vmul.f32 %v5280_v55, %v11972_v34  ;;  %v5180_v26 = vadd.f32 1.0, %v12071_v11 }
 0x66e   :  { %v10352_v2 = vpop.eup %10351  ;;  %v5541_v61 = vadd.f32 1e-08, %v10350_v14 }
 0x66f   :  { %v12157_v32 = vmul.f32 0.6931472, %v10352_v2  ;;  %10361 = vrcp.f32 %v5256_v16  ;;  %5357 = vrot.lane.b32.xlu1 %v12152_v3, %s10704_s1  ;;  %5359 = vrot.lane.b32.xlu0 %v12155_v57, %s10704_s1 }
 0x670   :  { %10363 = vlog2.f32 %v5541_v61  ;;  %v5282_v29 = vpop.permute.xlu1 %5281  ;;  %v5220_v22 = vpop.permute.xlu0 %5219  ;;  %v5181_v61 = vadd.f32 1.0, %v12075_v44 }
 0x671   :  { %v10354_v48 = vpop.eup %10353  ;;  %v5257_v33 = vadd.f32 %v5220_v22, %v5177_v24  ;;  %v12170_v8 = vmul.f32 %v5282_v29, %v11978_v36 }
 0x672   :  { %v10356_v34 = vpop.eup %10355  ;;  %v5542_v20 = vadd.f32 1e-08, %v10354_v48  ;;  %v5182_v48 = vadd.f32 1.0, %v12079_v28 }
 0x673   :  { %v12164_v51 = vmul.f32 0.6931472, %v10356_v34  ;;  %10365 = vrcp.f32 %v5257_v33  ;;  %5441 = vrot.lane.b32.xlu1 %v5256_v16, %s10705_s26  ;;  %5443 = vrot.lane.b32.xlu0 %v5257_v33, %s10705_s26 }
 0x674   :  { %10367 = vlog2.f32 %v5542_v20  ;;  %v5222_v47 = vpop.permute.xlu1 %5221  ;;  %v5284_v19 = vpop.permute.xlu0 %5283 }
 0x675   :  { %v10358_v4 = vpop.eup %10357  ;;  %v5258_v17 = vadd.f32 %v5222_v47, %v5178_v5  ;;  %v12191_v44 = vmul.f32 %v5284_v19, %v11990_v25 }
 0x676   :  { %v10360_v39 = vpop.eup %10359  ;;  %v5543_v15 = vadd.f32 1e-08, %v10358_v4 }
 0x677   :  { %v12172_v35 = vmul.f32 0.6931472, %v10360_v39  ;;  %10369 = vrcp.f32 %v5258_v17  ;;  %5361 = vrot.lane.b32.xlu1 %v12170_v8, %s10704_s1 }
 0x678   :  { %10371 = vlog2.f32 %v5543_v15  ;;  %v5286_v38 = vpop.permute.xlu1 %5285  ;;  %v5224_v1 = vpop.permute.xlu0 %5223 }
 0x679   :  { %v10362_v7 = vpop.eup %10361  ;;  %v5259_v9 = vadd.f32 %v5224_v1, %v5179_v59  ;;  %v12197_v59 = vmul.f32 %v5286_v38, %v11998_v31 }
 0x67a   :  { %v10364_v23 = vpop.eup %10363  ;;  %v5544_v56 = vadd.f32 1e-08, %v10362_v7 }
 0x67b   :  { %v12177_v36 = vmul.f32 0.6931472, %v10364_v23  ;;  %10373 = vrcp.f32 %v5259_v9  ;;  %5445 = vrot.lane.b32.xlu1 %v5258_v17, %s10705_s26  ;;  %5447 = vrot.lane.b32.xlu0 %v5259_v9, %s10705_s26 }
 0x67c   :  { %10375 = vlog2.f32 %v5544_v56  ;;  %v5226_v21 = vpop.permute.xlu1 %5225 }
 0x67d   :  { %13281 = vst [vmem:[#allocation52_spill] sm:$0xff] %v12177_v36  ;;  %v10366_v55 = vpop.eup %10365  ;;  %v5260_v37 = vadd.f32 %v5226_v21, %v5180_v26 }
 0x67e   :  { %v10368_v14 = vpop.eup %10367  ;;  %v5545_v16 = vadd.f32 1e-08, %v10366_v55 }
 0x67f   :  { %v12182_v2 = vmul.f32 0.6931472, %v10368_v14  ;;  %10377 = vrcp.f32 %v5260_v37  ;;  %5449 = vrot.lane.b32.xlu1 %v5260_v37, %s10705_s26 }
 0x680   :  { %10379 = vlog2.f32 %v5545_v16  ;;  %v5228_v24 = vpop.permute.xlu0 %5227 }
 0x681   :  { %13282 = vst [vmem:[#allocation51_spill] sm:$0xff] %v12182_v2  ;;  %v10370_v29 = vpop.eup %10369  ;;  %v5261_v22 = vadd.f32 %v5228_v24, %v5181_v61 }
 0x682   :  { %v10372_v11 = vpop.eup %10371  ;;  %v5546_v33 = vadd.f32 1e-08, %v10370_v29  ;;  %v5230_v34 = vpop.permute.xlu1 %5229 }
 0x683   :  { %v12187_v20 = vmul.f32 0.6931472, %v10372_v11  ;;  %10381 = vrcp.f32 %v5261_v22  ;;  %v5262_v5 = vadd.f32 %v5230_v34, %v5182_v48  ;;  %5451 = vrot.lane.b32.xlu0 %v5261_v22, %s10705_s26 }
 0x684   :  { %10383 = vlog2.f32 %v5546_v33  ;;  %v5288_v47 = vpop.permute.xlu0 %5287 }
 0x685   :  { %13283 = vst [vmem:[#allocation53_spill] sm:$0xff] %v12187_v20  ;;  %v10374_v4 = vpop.eup %10373  ;;  %10385 = vrcp.f32 %v5262_v5  ;;  %5453 = vrot.lane.b32.xlu1 %v5262_v5, %s10705_s26  ;;  %v12202_v7 = vmul.f32 %v5288_v47, %v12010_v52 }
 0x686   :  { %v10376_v17 = vpop.eup %10375  ;;  %v5547_v28 = vadd.f32 1e-08, %v10374_v4  ;;  %v5290_v39 = vpop.permute.xlu1 %5289 }
 0x687   :  { %v12194_v15 = vmul.f32 0.6931472, %v10376_v17  ;;  %5363 = vrot.lane.b32.xlu0 %v12191_v44, %s10704_s1  ;;  %v12209_v56 = vmul.f32 %v5290_v39, %v12018_v63 }
 0x688   :  { %10387 = vlog2.f32 %v5547_v28  ;;  %v5292_v9 = vpop.permute.xlu0 %5291 }
 0x689   :  { %13284 = vst [vmem:[#allocation50_spill] sm:$0xff] %v12194_v15  ;;  %v10378_v1 = vpop.eup %10377  ;;  %5365 = vrot.lane.b32.xlu1 %v12197_v59, %s10704_s1  ;;  %v12214_v52 = vmul.f32 %v5292_v9, %v12030_v53 }
 0x68a   :  { %v10380_v25 = vpop.eup %10379  ;;  %v5548_v19 = vadd.f32 1e-08, %v10378_v1  ;;  %v5294_v31 = vpop.permute.xlu1 %5293 }
 0x68b   :  { %v12206_v23 = vmul.f32 0.6931472, %v10380_v25  ;;  %5367 = vrot.lane.b32.xlu0 %v12202_v7, %s10704_s1  ;;  %v12221_v63 = vmul.f32 %v5294_v31, %v12038_v12 }
 0x68c   :  { %10389 = vlog2.f32 %v5548_v19 }
 0x68d   :  { %13285 = vst [vmem:[#allocation54_spill] sm:$0xff] %v12206_v23  ;;  %v10382_v38 = vpop.eup %10381  ;;  %5369 = vrot.lane.b32.xlu1 %v12209_v56, %s10704_s1 }
 0x68e   :  { %v10384_v26 = vpop.eup %10383  ;;  %v5549_v21 = vadd.f32 1e-08, %v10382_v38 }
 0x68f   :  { %v10386_v55 = vpop.eup %10385  ;;  %v12218_v37 = vmul.f32 0.6931472, %v10384_v26  ;;  %5371 = vrot.lane.b32.xlu0 %v12214_v52, %s10704_s1 }
 0x690   :  { %10391 = vlog2.f32 %v5549_v21  ;;  %v5550_v14 = vadd.f32 1e-08, %v10386_v55 }
 0x691   :  { %13286 = vst [vmem:[#allocation55_spill] sm:$0xff] %v12218_v37  ;;  %5373 = vrot.lane.b32.xlu1 %v12221_v63, %s10704_s1 }
 0x692   :  { %v10388_v53 = vpop.eup %10387  ;;  %10393 = vlog2.f32 %v5550_v14 }
 0x693   :  { %v12227_v16 = vmul.f32 0.6931472, %v10388_v53 }
 0x695   :  { %13287 = vst [vmem:[#allocation56_spill] sm:$0xff] %v12227_v16 }
 0x696   :  { %v10390_v61 = vpop.eup %10389 }
 0x697   :  { %v12229_v24 = vmul.f32 0.6931472, %v10390_v61 }
 0x699   :  { %13288 = vst [vmem:[#allocation57_spill] sm:$0xff] %v12229_v24 }
 0x69a   :  { %v10392_v29 = vpop.eup %10391 }
 0x69b   :  { %v12231_v22 = vmul.f32 0.6931472, %v10392_v29 }
 0x69c   :  { %v10394_v12 = vpop.eup %10393 }
 0x69d   :  { %13289 = vst [vmem:[#allocation58_spill] sm:$0xff] %v12231_v22  ;;  %v12233_v48 = vmul.f32 0.6931472, %v10394_v12 }
 0x69f   :  { %13290 = vst [vmem:[#allocation59_spill] sm:$0xff] %v12233_v48 }
 0x6bd   :  { %v5424_v11 = vpop.permute.xlu0 %5423 }
 0x6be   :  { %10395 = vrcp.f32 %v5424_v11 }
 0x6c1   :  { %v5344_v33 = vpop.permute.xlu0 %5343 }
 0x6c2   :  { %v5391_v47 = vadd.f32 %v5344_v33, %v12094_v43 }
 0x6c5   :  { %v5426_v34 = vpop.permute.xlu1 %5425  ;;  %v5428_v5 = vpop.permute.xlu0 %5427 }
 0x6c6   :  { %10397 = vrcp.f32 %v5426_v34 }
 0x6c7   :  { %10399 = vrcp.f32 %v5428_v5 }
 0x6c8   :  { %v10396_v4 = vpop.eup %10395 }
 0x6c9   :  { %v12236_v17 = vmul.f32 %v10396_v4, %v5391_v47  ;;  %v5346_v28 = vpop.permute.xlu1 %5345  ;;  %v5348_v39 = vpop.permute.xlu0 %5347 }
 0x6ca   :  { %v5392_v19 = vadd.f32 %v5346_v28, %v12104_v42  ;;  %v5393_v31 = vadd.f32 %v5348_v39, %v12107_v46 }
 0x6cd   :  { %v5430_v1 = vpop.permute.xlu1 %5429  ;;  %v5432_v25 = vpop.permute.xlu0 %5431 }
 0x6ce   :  { %10401 = vrcp.f32 %v5430_v1 }
 0x6cf   :  { %10403 = vrcp.f32 %v5432_v25 }
 0x6d0   :  { %v10398_v9 = vpop.eup %10397 }
 0x6d1   :  { %v10400_v38 = vpop.eup %10399  ;;  %v12240_v26 = vmul.f32 %v10398_v9, %v5392_v19  ;;  %v5350_v21 = vpop.permute.xlu1 %5349 }
 0x6d2   :  { %v5352_v43 = vpop.permute.xlu0 %5351  ;;  %v12242_v55 = vmul.f32 %v10400_v38, %v5393_v31  ;;  %v5394_v61 = vadd.f32 %v5350_v21, %v12118_v58 }
 0x6d3   :  { %v5395_v42 = vadd.f32 %v5352_v43, %v12121_v30 }
 0x6d5   :  { %v5434_v14 = vpop.permute.xlu1 %5433 }
 0x6d6   :  { %v5436_v53 = vpop.permute.xlu0 %5435  ;;  %10405 = vrcp.f32 %v5434_v14 }
 0x6d7   :  { %10407 = vrcp.f32 %v5436_v53 }
 0x6d8   :  { %v10402_v29 = vpop.eup %10401 }
 0x6d9   :  { %v10404_v12 = vpop.eup %10403  ;;  %v12246_v11 = vmul.f32 %v10402_v29, %v5394_v61  ;;  %v5354_v46 = vpop.permute.xlu1 %5353 }
 0x6da   :  { %v5356_v33 = vpop.permute.xlu0 %5355  ;;  %v12248_v34 = vmul.f32 %v10404_v12, %v5395_v42  ;;  %v5396_v4 = vadd.f32 %v5354_v46, %v12134_v0 }
 0x6db   :  { %v5397_v58 = vadd.f32 %v5356_v33, %v12137_v18 }
 0x6dd   :  { %v5438_v5 = vpop.permute.xlu1 %5437 }
 0x6de   :  { %v5440_v47 = vpop.permute.xlu0 %5439  ;;  %10409 = vrcp.f32 %v5438_v5 }
 0x6df   :  { %10411 = vrcp.f32 %v5440_v47 }
 0x6e0   :  { %v10406_v28 = vpop.eup %10405 }
 0x6e1   :  { %v10408_v39 = vpop.eup %10407  ;;  %v12252_v1 = vmul.f32 %v10406_v28, %v5396_v4  ;;  %v5358_v30 = vpop.permute.xlu1 %5357 }
 0x6e2   :  { %v12254_v25 = vmul.f32 %v10408_v39, %v5397_v58  ;;  %v5360_v19 = vpop.permute.xlu0 %5359  ;;  %v5398_v31 = vadd.f32 %v5358_v30, %v12152_v3 }
 0x6e3   :  { %v5399_v21 = vadd.f32 %v5360_v19, %v12155_v57 }
 0x6e4   :  { %13291 = vst [vmem:[#allocation60_spill] sm:$0xff] %v12254_v25 }
 0x6e5   :  { %v5442_v9 = vpop.permute.xlu1 %5441 }
 0x6e6   :  { %10413 = vrcp.f32 %v5442_v9  ;;  %v5444_v18 = vpop.permute.xlu0 %5443 }
 0x6e7   :  { %10415 = vrcp.f32 %v5444_v18 }
 0x6e8   :  { %v10410_v38 = vpop.eup %10409 }
 0x6e9   :  { %v10412_v43 = vpop.eup %10411  ;;  %v12258_v0 = vmul.f32 %v10410_v38, %v5398_v31  ;;  %v5362_v14 = vpop.permute.xlu1 %5361 }
 0x6ea   :  { %v12260_v53 = vmul.f32 %v10412_v43, %v5399_v21  ;;  %v5400_v29 = vadd.f32 %v5362_v14, %v12170_v8 }
 0x6eb   :  { %13292 = vst [vmem:[#allocation61_spill] sm:$0xff] %v12258_v0 }
 0x6ec   :  { %13293 = vst [vmem:[#allocation62_spill] sm:$0xff] %v12260_v53 }
 0x6ed   :  { %v5446_v61 = vpop.permute.xlu1 %5445  ;;  %v5448_v46 = vpop.permute.xlu0 %5447 }
 0x6ee   :  { %10417 = vrcp.f32 %v5446_v61 }
 0x6ef   :  { %10419 = vrcp.f32 %v5448_v46 }
 0x6f0   :  { %v10414_v42 = vpop.eup %10413 }
 0x6f1   :  { %v12263_v12 = vmul.f32 %v10414_v42, %v5400_v29  ;;  %v5450_v3 = vpop.permute.xlu1 %5449  ;;  %v10416_v4 = vpop.eup %10415 }
 0x6f2   :  { %10421 = vrcp.f32 %v5450_v3 }
 0x6f3   :  { %13294 = vst [vmem:[#allocation63_spill] sm:$0xff] %v12263_v12 }
 0x6f5   :  { %v5452_v33 = vpop.permute.xlu0 %5451 }
 0x6f6   :  { %10423 = vrcp.f32 %v5452_v33 }
 0x6f7   :  { %v5454_v57 = vpop.permute.xlu1 %5453 }
 0x6f8   :  { %10425 = vrcp.f32 %v5454_v57  ;;  %v10418_v39 = vpop.eup %10417 }
 0x6f9   :  { %v5364_v5 = vpop.permute.xlu0 %5363  ;;  %v10420_v31 = vpop.eup %10419 }
 0x6fa   :  { %v5401_v47 = vadd.f32 %v5364_v5, %v12191_v44 }
 0x6fb   :  { %v5366_v28 = vpop.permute.xlu1 %5365 }
 0x6fc   :  { %v12266_v58 = vmul.f32 %v10416_v4, %v5401_v47  ;;  %v5402_v8 = vadd.f32 %v5366_v28, %v12197_v59  ;;  %v10422_v44 = vpop.eup %10421 }
 0x6fd   :  { %v5368_v30 = vpop.permute.xlu0 %5367 }
 0x6fe   :  { %13295 = vst [vmem:[#allocation64_spill] sm:$0xff] %v12266_v58  ;;  %v12269_v19 = vmul.f32 %v10418_v39, %v5402_v8  ;;  %v5403_v9 = vadd.f32 %v5368_v30, %v12202_v7 }
 0x6ff   :  { %v5370_v38 = vpop.permute.xlu1 %5369 }
 0x700   :  { %13296 = vst [vmem:[#allocation65_spill] sm:$0xff] %v12269_v19  ;;  %v12272_v21 = vmul.f32 %v10420_v31, %v5403_v9  ;;  %v5404_v43 = vadd.f32 %v5370_v38, %v12209_v56  ;;  %v10424_v29 = vpop.eup %10423 }
 0x701   :  { %v5372_v14 = vpop.permute.xlu0 %5371 }
 0x702   :  { %13297 = vst [vmem:[#allocation66_spill] sm:$0xff] %v12272_v21  ;;  %v12275_v18 = vmul.f32 %v10422_v44, %v5404_v43  ;;  %v5405_v61 = vadd.f32 %v5372_v14, %v12214_v52  ;;  %v10426_v3 = vpop.eup %10425 }
 0x703   :  { %v5374_v59 = vpop.permute.xlu1 %5373 }
 0x704   :  { %13298 = vst [vmem:[#allocation67_spill] sm:$0xff] %v12275_v18  ;;  %v12278_v42 = vmul.f32 %v10424_v29, %v5405_v61  ;;  %v5406_v46 = vadd.f32 %v5374_v59, %v12221_v63 }
 0x706   :  { %13299 = vst [vmem:[#allocation68_spill] sm:$0xff] %v12278_v42  ;;  %v12281_v7 = vmul.f32 %v10426_v3, %v5406_v46 }
 0x708   :  { %13300 = vst [vmem:[#allocation69_spill] sm:$0xff] %v12281_v7 }
 0x709   :  { %10669 = dma.done.wait [#allocation7], 1024 }
 0x70a   :  { %10670 = vsyncadd [#allocation7], 4294966272 }
 0x70b   :  { %10671 = dma.done.wait [#allocation7 + $0x1], 32768 }
 0x70c   :  { %10672 = vsyncadd [#allocation7 + $0x1], 4294934528 }
 0x70d   :  { %10673 = dma.done.wait [#allocation7 + $0x2], 8192 }
 0x70e   :  { %10674 = vsyncadd [#allocation7 + $0x2], 4294959104 }
 0x70f   :  { %10675 = dma.done.wait [#allocation7 + $0x3], 2048 }
 0x710   :  { %10676 = vsyncadd [#allocation7 + $0x3], 4294965248  ;;  %v13301_v56 = vld [vmem:[#allocation34_spill] sm:$0xff]  ;;  %v13302_v33 = vld [vmem:[#allocation35_spill] sm:$0xff] }
 0x711   :  { %v10427_v52 = vpack.i.bf16 %v13302_v33, %v13301_v56  ;;  %v13303_v57 = vld [vmem:[#allocation38_spill] sm:$0xff]  ;;  %v13304_v5 = vld [vmem:[#allocation39_spill] sm:$0xff] }
 0x712   :  { %v10437_v47 = vpack.i.bf16 %v13304_v5, %v13303_v57 }
 0x713   :  { %10677 = dma.done.wait [#allocation7 + $0x4], 1024 }
 0x714   :  { %10678 = vsyncadd [#allocation7 + $0x4], 4294966272  ;;  %v13305_v63 = vmov 0   ;;  %s10706_s29 = smov 104   ;;  %v13306_v4 = vld [vmem:[#allocation36_spill] sm:$0xff]  ;;  %v13307_v28 = vld [vmem:[#allocation37_spill] sm:$0xff] }
 0x715   :  { %5823 = vmatprep.mubr.bf16.mxu0 %v13305_v63  ;;  %5883 = vmatprep.mubr.bf16.mxu1 %v13305_v63  ;;  %v10432_v8 = vpack.i.bf16 %v13307_v28, %v13306_v4  ;;  %v13308_v39 = vld [vmem:[#allocation40_spill] sm:$0xff]  ;;  %v13309_v30 = vld [vmem:[#allocation41_spill] sm:$0xff]  ;;  %v13310_v31 = vld [vmem:[#allocation42_spill] sm:$0xff]  ;;  %vm5674_vm0 = vcmask 64512   ;;  %vm5691_vm1 = vcmask 97280   ;;  %vm5766_vm2 = vcmask 130048  }
 0x716   :  { %10428 = vrot.lane.b32.xlu0 %v10427_v52, %s10706_s29  ;;  %10438 = vrot.lane.b32.xlu1 %v10437_v47, %s10706_s29  ;;  %v10442_v9 = vpack.i.bf16 %v13309_v30, %v13308_v39  ;;  %v13311_v38 = vld [vmem:[#allocation43_spill] sm:$0xff]  ;;  %v13312_v44 = vld [vmem:[#allocation44_spill] sm:$0xff]  ;;  %v13313_v14 = vld [vmem:[#allocation45_spill] sm:$0xff]  ;;  %s10707_s30 = smov 48   ;;  %vm8511_vm3 = vcmask 523648  }
 0x717   :  { %v10447_v43 = vpack.i.bf16 %v13311_v38, %v13310_v31  ;;  %v10452_v61 = vpack.i.bf16 %v13313_v14, %v13312_v44  ;;  %v5709_v29 = vld [vmem:[#allocation2 + $0x8] sm:$0xff]  ;;  %v5708_v59 = vld [vmem:[#allocation2] sm:$0xff]  ;;  %v13316_v33 = vld [vmem:[#allocation48_spill] sm:$0xff] }
 0x718   :  { %5791 = vmatprep.subr.bf16.mxu0 %v5709_v29  ;;  %9468 = vmatprep.subr.bf16.mxu1 %v5709_v29  ;;  %v13314_v46 = vld [vmem:[#allocation46_spill] sm:$0xff]  ;;  %v13315_v3 = vld [vmem:[#allocation47_spill] sm:$0xff]  ;;  %v13317_v52 = vld [vmem:[#allocation49_spill] sm:$0xff] }
 0x719   :  { %5792 = vmatpush1.bf16.msra.mxu0 %v5708_v59  ;;  %9469 = vmatpush1.bf16.msra.mxu1 %v5708_v59  ;;  %v10457_v56 = vpack.i.bf16 %v13315_v3, %v13314_v46  ;;  %v10462_v57 = vpack.i.bf16 %v13317_v52, %v13316_v33  ;;  %v5711_v5 = vld [vmem:[#allocation2 + $0x18] sm:$0xff]  ;;  %v5713_v47 = vld [vmem:[#allocation2 + $0x28] sm:$0xff]  ;;  %v5712_v59 = vld [vmem:[#allocation2 + $0x20] sm:$0xff] }
 0x71a   :  { %10433 = vrot.lane.b32.xlu0 %v10432_v8, %s10706_s29  ;;  %10443 = vrot.lane.b32.xlu1 %v10442_v9, %s10706_s29  ;;  %v6446_v62 = vld [vmem:[#allocation3 + $0x258] sm:$0xff]  ;;  %v6443_v13 = vld [vmem:[#allocation3 + $0x240] sm:$0xff] }
 0x71b   :  { %5904 = vmatprep.subr.bf16.mxu1 %v5711_v5  ;;  %6017 = vmatprep.subr.bf16.mxu0 %v5713_v47 }
 0x71e   :  { %10448 = vrot.lane.b32.xlu0 %v10447_v43, %s10706_s29  ;;  %10453 = vrot.lane.b32.xlu1 %v10452_v61, %s10706_s29 }
 0x722   :  { %10458 = vrot.lane.b32.xlu0 %v10457_v56, %s10706_s29  ;;  %10463 = vrot.lane.b32.xlu1 %v10462_v57, %s10706_s29 }
 0x788   :  { %v10429_v4 = vpop.permute.xlu0 %10428  ;;  %v10439_v28 = vpop.permute.xlu1 %10438 }
 0x789   :  { %v10431_v8 = vunpack.i.h.bf16 %v10429_v4  ;;  %v10430_v39 = vunpack.i.l.bf16 %v10429_v4  ;;  %v10441_v52 = vunpack.i.h.bf16 %v10439_v28  ;;  %v10440_v47 = vunpack.i.l.bf16 %v10439_v28 }
 0x78b   :  { %v5676_v30 = vsel %vm5674_vm0, %v12240_v26, %v10431_v8  ;;  %v5675_v9 = vsel %vm5674_vm0, %v12236_v17, %v10430_v39  ;;  %v5680_v8 = vsel %vm5674_vm0, %v12252_v1, %v10441_v52 }
 0x78c   :  { %v5693_v31 = vsel %vm5691_vm1, %v5676_v30, 0.0  ;;  %v5692_v38 = vsel %vm5691_vm1, %v5675_v9, 0.0  ;;  %v10434_v43 = vpop.permute.xlu0 %10433  ;;  %v10444_v44 = vpop.permute.xlu1 %10443  ;;  %v5679_v9 = vsel %vm5674_vm0, %v12248_v34, %v10440_v47 }
 0x78d   :  { %v12307_v14 = vpack.c.bf16 %v5693_v31, %v5692_v38  ;;  %v10436_v61 = vunpack.i.h.bf16 %v10434_v43  ;;  %v10435_v29 = vunpack.i.l.bf16 %v10434_v43  ;;  %v10445_v52 = vunpack.i.l.bf16 %v10444_v44 }
 0x78f   :  { %v5678_v46 = vsel %vm5674_vm0, %v12246_v11, %v10436_v61  ;;  %v5677_v3 = vsel %vm5674_vm0, %v12242_v55, %v10435_v29  ;;  %8997 = vmatmul.mubr.msk.bf16.vlgmr.msra.gmra.mrb[176].mxu0 %vm5766_vm2, %v12307_v14  ;;  %v5697_v29 = vsel %vm5691_vm1, %v5680_v8, 0.0 }
 0x790   :  { %v5695_v56 = vsel %vm5691_vm1, %v5678_v46, 0.0  ;;  %v5694_v33 = vsel %vm5691_vm1, %v5677_v3, 0.0  ;;  %v10449_v57 = vpop.permute.xlu0 %10448  ;;  %5833 = vmatprep.mubr.bf16.mxu0 %v13305_v63  ;;  %v12318_v5 = vpop.permute.xlu1 %10453  ;;  %6018 = vmatpush1.bf16.msra.mxu0 %v5712_v59  ;;  %v5696_v46 = vsel %vm5691_vm1, %v5679_v9, 0.0  ;;  %v10446_v3 = vunpack.i.h.bf16 %v10444_v44 }
 0x791   :  { %v12320_v4 = vpack.c.bf16 %v5695_v56, %v5694_v33 }
 0x792   :  { %v5682_v44 = vsel %vm5674_vm0, %v12258_v0, %v10446_v3  ;;  %v6372_v3 = vld [vmem:[#allocation3 + $0x8] sm:$0xff] }
 0x793   :  { %6713 = vmatprep.subr.bf16.mxu0 %v6372_v3  ;;  %v6376_v3 = vld [vmem:[#allocation3 + $0x28] sm:$0xff] }
 0x794   :  { %v10459_v39 = vpop.permute.xlu0 %10458  ;;  %v10464_v30 = vpop.permute.xlu1 %10463 }
 0x795   :  { %v10461_v31 = vunpack.i.h.bf16 %v10459_v39  ;;  %v10460_v38 = vunpack.i.l.bf16 %v10459_v39  ;;  %v10466_v43 = vunpack.i.h.bf16 %v10464_v30  ;;  %v10465_v61 = vunpack.i.l.bf16 %v10464_v30  ;;  %v5710_v30 = vld [vmem:[#allocation2 + $0x10] sm:$0xff] }
 0x797   :  { %v5688_v59 = vsel %vm5674_vm0, %v12275_v18, %v10461_v31  ;;  %v5687_v28 = vsel %vm5674_vm0, %v12272_v21, %v10460_v38  ;;  %8998 = vmatmul.mubr.msk.bf16.gmra.mrb[180].mxu0 %vm5766_vm2, %v12320_v4  ;;  %v5690_v8 = vsel %vm5674_vm0, %v12281_v7, %v10466_v43  ;;  %v5689_v39 = vsel %vm5674_vm0, %v12278_v42, %v10465_v61  ;;  %v5715_v31 = vld [vmem:[#allocation2 + $0x38] sm:$0xff]  ;;  %v6455_v7 = vld [vmem:[#allocation3 + $0x2a0] sm:$0xff]  ;;  %v6461_v21 = vld [vmem:[#allocation3 + $0x2d0] sm:$0xff] }
 0x798   :  { %v5705_v56 = vsel %vm5691_vm1, %v5688_v59, 0.0  ;;  %v5704_v33 = vsel %vm5691_vm1, %v5687_v28, 0.0  ;;  %5843 = vmatprep.mubr.bf16.mxu0 %v13305_v63  ;;  %v12343_v38 = vpack.c.bf16 %v5697_v29, %v5696_v46  ;;  %v5707_v9 = vsel %vm5691_vm1, %v5690_v8, 0.0  ;;  %v6469_v18 = vld [vmem:[#allocation3 + $0x310] sm:$0xff] }
 0x799   :  { %v12337_v47 = vpack.c.bf16 %v5705_v56, %v5704_v33  ;;  %v5706_v59 = vsel %vm5691_vm1, %v5689_v39, 0.0  ;;  %v5681_v43 = vsel %vm5674_vm0, %v12254_v25, %v10445_v52  ;;  %v5699_v29 = vsel %vm5691_vm1, %v5682_v44, 0.0 }
 0x79a   :  { %v12354_v61 = vpack.c.bf16 %v5707_v9, %v5706_v59  ;;  %v5698_v28 = vsel %vm5691_vm1, %v5681_v43, 0.0  ;;  %v10451_v46 = vunpack.i.h.bf16 %v10449_v57  ;;  %v10450_v56 = vunpack.i.l.bf16 %v10449_v57  ;;  %v5714_v9 = vld [vmem:[#allocation2 + $0x30] sm:$0xff]  ;;  %v6374_v59 = vld [vmem:[#allocation3 + $0x18] sm:$0xff] }
 0x79b   :  { %9003 = vmatmul.mubr.msk.bf16.vlgmr.msra.gmra.mrb[192].mxu1 %vm5766_vm2, %v12337_v47  ;;  %v12361_v33 = vpack.c.bf16 %v5699_v29, %v5698_v28 }
 0x79c   :  { %5893 = vmatprep.mubr.bf16.mxu1 %v13305_v63  ;;  %5905 = vmatpush1.bf16.msra.mxu1 %v5710_v30  ;;  %v5684_v52 = vsel %vm5674_vm0, %v12263_v12, %v10451_v46  ;;  %v5683_v8 = vsel %vm5674_vm0, %v12260_v53, %v10450_v56  ;;  %v10456_v30 = vunpack.i.h.bf16 %v12318_v5  ;;  %v6371_v56 = vld [vmem:[#allocation3] sm:$0xff] }
 0x79d   :  { %6130 = vmatprep.subr.bf16.mxu1 %v5715_v31  ;;  %v5701_v57 = vsel %vm5691_vm1, %v5684_v52, 0.0  ;;  %v5700_v39 = vsel %vm5691_vm1, %v5683_v8, 0.0  ;;  %v10455_v31 = vunpack.i.l.bf16 %v12318_v5  ;;  %v6375_v52 = vld [vmem:[#allocation3 + $0x20] sm:$0xff]  ;;  %v6380_v8 = vld [vmem:[#allocation3 + $0x48] sm:$0xff] }
 0x79e   :  { %v12377_v44 = vpack.c.bf16 %v5701_v57, %v5700_v39  ;;  %v5686_v43 = vsel %vm5674_vm0, %v12269_v19, %v10456_v30  ;;  %v6379_v57 = vld [vmem:[#allocation3 + $0x40] sm:$0xff]  ;;  %v6384_v39 = vld [vmem:[#allocation3 + $0x68] sm:$0xff] }
 0x79f   :  { %8999 = vmatmul.mubr.msk.bf16.gmra.mrb[184].mxu0 %vm5766_vm2, %v12343_v38  ;;  %v5685_v29 = vsel %vm5674_vm0, %v12266_v58, %v10455_v31  ;;  %v5703_v5 = vsel %vm5691_vm1, %v5686_v43, 0.0  ;;  %v6383_v30 = vld [vmem:[#allocation3 + $0x60] sm:$0xff]  ;;  %v6388_v31 = vld [vmem:[#allocation3 + $0x88] sm:$0xff]  ;;  %v6477_v58 = vld [vmem:[#allocation3 + $0x350] sm:$0xff] }
 0x7a0   :  { %5853 = vmatprep.mubr.bf16.mxu0 %v13305_v63  ;;  %v5702_v28 = vsel %vm5691_vm1, %v5685_v29, 0.0  ;;  %v6391_v43 = vld [vmem:[#allocation3 + $0xa0] sm:$0xff]  ;;  %v6396_v29 = vld [vmem:[#allocation3 + $0xc8] sm:$0xff] }
 0x7a1   :  { %v12391_v46 = vpack.c.bf16 %v5703_v5, %v5702_v28  ;;  %v6395_v5 = vld [vmem:[#allocation3 + $0xc0] sm:$0xff]  ;;  %v6400_v28 = vld [vmem:[#allocation3 + $0xe8] sm:$0xff] }
 0x7a3   :  { %9004 = vmatmul.mubr.msk.bf16.gmra.mrb[196].mxu1 %vm5766_vm2, %v12354_v61 }
 0x7a4   :  { %5936 = vmatprep.mubr.bf16.mxu1 %v13305_v63 }
 0x7a7   :  { %9000 = vmatmul.mubr.msk.bf16.gmra.mrb[188].mxu0 %vm5766_vm2, %v12361_v33 }
 0x7a8   :  { %5863 = vmatprep.mubr.bf16.mxu0 %v13305_v63 }
 0x7ab   :  { %9005 = vmatmul.mubr.msk.bf16.vlgmr.msra.gmra.mrb[200].mxu1 %vm5766_vm2, %v12307_v14 }
 0x7ac   :  { %5946 = vmatprep.mubr.bf16.mxu1 %v13305_v63  ;;  %6131 = vmatpush1.bf16.msra.mxu1 %v5714_v9  ;;  %v6387_v9 = vld [vmem:[#allocation3 + $0x80] sm:$0xff] }
 0x7ad   :  { %7165 = vmatprep.subr.bf16.mxu1 %v6374_v59  ;;  %v6392_v59 = vld [vmem:[#allocation3 + $0xa8] sm:$0xff] }
 0x7af   :  { %9001 = vmatmul.mubr.msk.bf16.gmra.mrb[192].mxu0 %vm5766_vm2, %v12377_v44 }
 0x7b0   :  { %5873 = vmatprep.mubr.bf16.mxu0 %v13305_v63 }
 0x7b3   :  { %9006 = vmatmul.mubr.msk.bf16.gmra.mrb[204].mxu1 %vm5766_vm2, %v12320_v4 }
 0x7b4   :  { %5956 = vmatprep.mubr.bf16.mxu1 %v13305_v63 }
 0x7b7   :  { %9002 = vmatmul.mubr.msk.bf16.gmra.mrb[196].mxu0 %vm5766_vm2, %v12391_v46 }
 0x7b8   :  { %6049 = vmatprep.mubr.bf16.mxu0 %v13305_v63 }
 0x7bb   :  { %9007 = vmatmul.mubr.msk.bf16.gmra.mrb[208].mxu1 %vm5766_vm2, %v12343_v38 }
 0x7bc   :  { %5966 = vmatprep.mubr.bf16.mxu1 %v13305_v63 }
 0x7bf   :  { %9013 = vmatmul.mubr.msk.bf16.vlgmr.msra.gmra.mrb[200].mxu0 %vm5766_vm2, %v12307_v14 }
 0x7c0   :  { %6059 = vmatprep.mubr.bf16.mxu0 %v13305_v63  ;;  %6714 = vmatpush1.bf16.msra.mxu0 %v6371_v56  ;;  %v6399_v56 = vld [vmem:[#allocation3 + $0xe0] sm:$0xff] }
 0x7c1   :  { %6715 = vmatprep.subr.bf16.mxu0 %v6376_v3  ;;  %v6404_v3 = vld [vmem:[#allocation3 + $0x108] sm:$0xff] }
 0x7c3   :  { %9008 = vmatmul.mubr.msk.bf16.gmra.mrb[212].mxu1 %vm5766_vm2, %v12361_v33 }
 0x7c4   :  { %5976 = vmatprep.mubr.bf16.mxu1 %v13305_v63  ;;  %6716 = vmatpush1.bf16.msra.mxu0 %v6375_v52  ;;  %v6403_v52 = vld [vmem:[#allocation3 + $0x100] sm:$0xff] }
 0x7c5   :  { %6717 = vmatprep.subr.bf16.mxu0 %v6380_v8  ;;  %v6408_v8 = vld [vmem:[#allocation3 + $0x128] sm:$0xff] }
 0x7c7   :  { %9014 = vmatmul.mubr.msk.bf16.gmra.mrb[204].mxu0 %vm5766_vm2, %v12320_v4 }
 0x7c8   :  { %6069 = vmatprep.mubr.bf16.mxu0 %v13305_v63  ;;  %6718 = vmatpush1.bf16.msra.mxu0 %v6379_v57  ;;  %v6407_v57 = vld [vmem:[#allocation3 + $0x120] sm:$0xff] }
 0x7c9   :  { %6719 = vmatprep.subr.bf16.mxu0 %v6384_v39  ;;  %v6412_v39 = vld [vmem:[#allocation3 + $0x148] sm:$0xff] }
 0x7cb   :  { %9009 = vmatmul.mubr.msk.bf16.gmra.mrb[216].mxu1 %vm5766_vm2, %v12377_v44 }
 0x7cc   :  { %5986 = vmatprep.mubr.bf16.mxu1 %v13305_v63  ;;  %6720 = vmatpush1.bf16.msra.mxu0 %v6383_v30  ;;  %v6411_v30 = vld [vmem:[#allocation3 + $0x140] sm:$0xff] }
 0x7cd   :  { %6721 = vmatprep.subr.bf16.mxu0 %v6388_v31  ;;  %v6416_v31 = vld [vmem:[#allocation3 + $0x168] sm:$0xff] }
 0x7cf   :  { %9015 = vmatmul.mubr.msk.bf16.gmra.mrb[208].mxu0 %vm5766_vm2, %v12343_v38 }
 0x7d0   :  { %6079 = vmatprep.mubr.bf16.mxu0 %v13305_v63  ;;  %6722 = vmatpush1.bf16.msra.mxu0 %v6387_v9  ;;  %v6373_v9 = vld [vmem:[#allocation3 + $0x10] sm:$0xff] }
 0x7d1   :  { %6723 = vmatprep.subr.bf16.mxu0 %v6392_v59  ;;  %v6378_v59 = vld [vmem:[#allocation3 + $0x38] sm:$0xff] }
 0x7d3   :  { %9010 = vmatmul.mubr.msk.bf16.gmra.mrb[220].mxu1 %vm5766_vm2, %v12391_v46 }
 0x7d4   :  { %5996 = vmatprep.mubr.bf16.mxu1 %v13305_v63  ;;  %6724 = vmatpush1.bf16.msra.mxu0 %v6391_v43  ;;  %v6415_v43 = vld [vmem:[#allocation3 + $0x160] sm:$0xff] }
 0x7d5   :  { %6725 = vmatprep.subr.bf16.mxu0 %v6396_v29  ;;  %v6420_v29 = vld [vmem:[#allocation3 + $0x188] sm:$0xff] }
 0x7d7   :  { %9016 = vmatmul.mubr.msk.bf16.gmra.mrb[212].mxu0 %vm5766_vm2, %v12361_v33 }
 0x7d8   :  { %6089 = vmatprep.mubr.bf16.mxu0 %v13305_v63  ;;  %6726 = vmatpush1.bf16.msra.mxu0 %v6395_v5  ;;  %v6377_v5 = vld [vmem:[#allocation3 + $0x30] sm:$0xff] }
 0x7d9   :  { %6727 = vmatprep.subr.bf16.mxu0 %v6400_v28  ;;  %v6382_v28 = vld [vmem:[#allocation3 + $0x58] sm:$0xff] }
 0x7db   :  { %9011 = vmatmul.mubr.msk.bf16.gmra.mrb[224].mxu1 %vm5766_vm2, %v12337_v47 }
 0x7dc   :  { %6006 = vmatprep.mubr.bf16.mxu1 %v13305_v63  ;;  %6728 = vmatpush1.bf16.msra.mxu0 %v6399_v56  ;;  %v6419_v56 = vld [vmem:[#allocation3 + $0x180] sm:$0xff] }
 0x7dd   :  { %6729 = vmatprep.subr.bf16.mxu0 %v6404_v3  ;;  %v6424_v3 = vld [vmem:[#allocation3 + $0x1a8] sm:$0xff] }
 0x7df   :  { %9017 = vmatmul.mubr.msk.bf16.gmra.mrb[216].mxu0 %vm5766_vm2, %v12377_v44 }
 0x7e0   :  { %6099 = vmatprep.mubr.bf16.mxu0 %v13305_v63  ;;  %6730 = vmatpush1.bf16.msra.mxu0 %v6403_v52  ;;  %v6381_v52 = vld [vmem:[#allocation3 + $0x50] sm:$0xff] }
 0x7e1   :  { %6731 = vmatprep.subr.bf16.mxu0 %v6408_v8  ;;  %v6423_v8 = vld [vmem:[#allocation3 + $0x1a0] sm:$0xff] }
 0x7e3   :  { %9012 = vmatmul.mubr.msk.bf16.gmra.mrb[228].mxu1 %vm5766_vm2, %v12354_v61 }
 0x7e4   :  { %6162 = vmatprep.mubr.bf16.mxu1 %v13305_v63  ;;  %6732 = vmatpush1.bf16.msra.mxu0 %v6407_v57  ;;  %v6428_v57 = vld [vmem:[#allocation3 + $0x1c8] sm:$0xff] }
 0x7e5   :  { %6733 = vmatprep.subr.bf16.mxu0 %v6412_v39  ;;  %v6385_v39 = vld [vmem:[#allocation3 + $0x70] sm:$0xff] }
 0x7e7   :  { %9018 = vmatmul.mubr.msk.bf16.gmra.mrb[220].mxu0 %vm5766_vm2, %v12391_v46 }
 0x7e8   :  { %6109 = vmatprep.mubr.bf16.mxu0 %v13305_v63  ;;  %6734 = vmatpush1.bf16.msra.mxu0 %v6411_v30  ;;  %v6390_v30 = vld [vmem:[#allocation3 + $0x98] sm:$0xff] }
 0x7e9   :  { %6735 = vmatprep.subr.bf16.mxu0 %v6416_v31  ;;  %v6427_v31 = vld [vmem:[#allocation3 + $0x1c0] sm:$0xff] }
 0x7eb   :  { %9021 = vmatmul.mubr.msk.bf16.vlgmr.msra.gmra.mrb[232].mxu1 %vm5766_vm2, %v12307_v14  ;;  %v6386_v14 = vld [vmem:[#allocation3 + $0x78] sm:$0xff] }
 0x7ec   :  { %6172 = vmatprep.mubr.bf16.mxu1 %v13305_v63  ;;  %7166 = vmatpush1.bf16.msra.mxu1 %v6373_v9  ;;  %v6432_v9 = vld [vmem:[#allocation3 + $0x1e8] sm:$0xff] }
 0x7ed   :  { %7167 = vmatprep.subr.bf16.mxu1 %v6378_v59  ;;  %6736 = vmatpush1.bf16.msra.mxu0 %v6415_v43  ;;  %v6389_v59 = vld [vmem:[#allocation3 + $0x90] sm:$0xff]  ;;  %v6394_v43 = vld [vmem:[#allocation3 + $0xb8] sm:$0xff] }
 0x7ee   :  { %6737 = vmatprep.subr.bf16.mxu0 %v6420_v29  ;;  %v6436_v29 = vld [vmem:[#allocation3 + $0x208] sm:$0xff] }
 0x7ef   :  { %9019 = vmatmul.mubr.msk.bf16.gmra.mrb[224].mxu0 %vm5766_vm2, %v12337_v47 }
 0x7f0   :  { %6119 = vmatprep.mubr.bf16.mxu0 %v13305_v63  ;;  %7168 = vmatpush1.bf16.msra.mxu1 %v6377_v5  ;;  %v6393_v5 = vld [vmem:[#allocation3 + $0xb0] sm:$0xff] }
 0x7f1   :  { %7169 = vmatprep.subr.bf16.mxu1 %v6382_v28  ;;  %6738 = vmatpush1.bf16.msra.mxu0 %v6419_v56  ;;  %v6398_v28 = vld [vmem:[#allocation3 + $0xd8] sm:$0xff]  ;;  %v6397_v56 = vld [vmem:[#allocation3 + $0xd0] sm:$0xff] }
 0x7f2   :  { %6739 = vmatprep.subr.bf16.mxu0 %v6424_v3  ;;  %v6402_v3 = vld [vmem:[#allocation3 + $0xf8] sm:$0xff] }
 0x7f3   :  { %9022 = vmatmul.mubr.msk.bf16.gmra.mrb[236].mxu1 %vm5766_vm2, %v12320_v4  ;;  %v6431_v4 = vld [vmem:[#allocation3 + $0x1e0] sm:$0xff] }
 0x7f4   :  { %6182 = vmatprep.mubr.bf16.mxu1 %v13305_v63  ;;  %7170 = vmatpush1.bf16.msra.mxu1 %v6381_v52  ;;  %v6406_v52 = vld [vmem:[#allocation3 + $0x118] sm:$0xff] }
 0x7f5   :  { %7171 = vmatprep.subr.bf16.mxu1 %v6386_v14  ;;  %6740 = vmatpush1.bf16.msra.mxu0 %v6423_v8  ;;  %v6405_v14 = vld [vmem:[#allocation3 + $0x110] sm:$0xff]  ;;  %v6410_v8 = vld [vmem:[#allocation3 + $0x138] sm:$0xff] }
 0x7f6   :  { %6741 = vmatprep.subr.bf16.mxu0 %v6428_v57  ;;  %v6409_v57 = vld [vmem:[#allocation3 + $0x130] sm:$0xff] }
 0x7f7   :  { %9020 = vmatmul.mubr.msk.bf16.gmra.mrb[228].mxu0 %vm5766_vm2, %v12354_v61 }
 0x7f8   :  { %7172 = vmatpush1.bf16.msra.mxu1 %v6385_v39  ;;  %v6414_v39 = vld [vmem:[#allocation3 + $0x158] sm:$0xff] }
 0x7f9   :  { %7173 = vmatprep.subr.bf16.mxu1 %v6390_v30  ;;  %6742 = vmatpush1.bf16.msra.mxu0 %v6427_v31  ;;  %v6418_v30 = vld [vmem:[#allocation3 + $0x178] sm:$0xff]  ;;  %v6417_v31 = vld [vmem:[#allocation3 + $0x170] sm:$0xff] }
 0x7fa   :  { %6743 = vmatprep.subr.bf16.mxu0 %v6432_v9  ;;  %v6422_v9 = vld [vmem:[#allocation3 + $0x198] sm:$0xff] }
 0x7fb   :  { %9023 = vmatmul.mubr.msk.bf16.gmra.mrb[240].mxu1 %vm5766_vm2, %v12343_v38  ;;  %v6401_v38 = vld [vmem:[#allocation3 + $0xf0] sm:$0xff] }
 0x7fc   :  { %6192 = vmatprep.mubr.bf16.mxu1 %v13305_v63  ;;  %7174 = vmatpush1.bf16.msra.mxu1 %v6389_v59  ;;  %v6426_v59 = vld [vmem:[#allocation3 + $0x1b8] sm:$0xff] }
 0x7fd   :  { %7175 = vmatprep.subr.bf16.mxu1 %v6394_v43  ;;  %6744 = vmatpush1.bf16.msra.mxu0 %v6431_v4  ;;  %v6425_v43 = vld [vmem:[#allocation3 + $0x1b0] sm:$0xff]  ;;  %v6430_v4 = vld [vmem:[#allocation3 + $0x1d8] sm:$0xff] }
 0x7fe   :  { %6826 = vmatprep.subr.bf16.mxu0 %v6436_v29  ;;  %v6434_v29 = vld [vmem:[#allocation3 + $0x1f8] sm:$0xff] }
 0x800   :  { %7176 = vmatpush1.bf16.msra.mxu1 %v6393_v5  ;;  %v6433_v5 = vld [vmem:[#allocation3 + $0x1f0] sm:$0xff] }
 0x801   :  { %7177 = vmatprep.subr.bf16.mxu1 %v6398_v28  ;;  %v6438_v28 = vld [vmem:[#allocation3 + $0x218] sm:$0xff] }
 0x803   :  { %9024 = vmatmul.mubr.msk.bf16.gmra.mrb[244].mxu1 %vm5766_vm2, %v12361_v33  ;;  %v6413_v33 = vld [vmem:[#allocation3 + $0x150] sm:$0xff] }
 0x804   :  { %6202 = vmatprep.mubr.bf16.mxu1 %v13305_v63  ;;  %7178 = vmatpush1.bf16.msra.mxu1 %v6397_v56 }
 0x805   :  { %7179 = vmatprep.subr.bf16.mxu1 %v6402_v3 }
 0x808   :  { %7180 = vmatpush1.bf16.msra.mxu1 %v6401_v38 }
 0x809   :  { %7181 = vmatprep.subr.bf16.mxu1 %v6406_v52 }
 0x80b   :  { %9025 = vmatmul.mubr.msk.bf16.gmra.mrb[248].mxu1 %vm5766_vm2, %v12377_v44  ;;  %v6421_v44 = vld [vmem:[#allocation3 + $0x190] sm:$0xff] }
 0x80c   :  { %6212 = vmatprep.mubr.bf16.mxu1 %v13305_v63  ;;  %7182 = vmatpush1.bf16.msra.mxu1 %v6405_v14 }
 0x80d   :  { %7183 = vmatprep.subr.bf16.mxu1 %v6410_v8 }
 0x810   :  { %7184 = vmatpush1.bf16.msra.mxu1 %v6409_v57 }
 0x811   :  { %7185 = vmatprep.subr.bf16.mxu1 %v6414_v39 }
 0x813   :  { %9026 = vmatmul.mubr.msk.bf16.gmra.mrb[252].mxu1 %vm5766_vm2, %v12391_v46  ;;  %v6429_v46 = vld [vmem:[#allocation3 + $0x1d0] sm:$0xff] }
 0x814   :  { %6222 = vmatprep.mubr.bf16.mxu1 %v13305_v63  ;;  %7186 = vmatpush1.bf16.msra.mxu1 %v6413_v33 }
 0x815   :  { %7187 = vmatprep.subr.bf16.mxu1 %v6418_v30 }
 0x818   :  { %7188 = vmatpush1.bf16.msra.mxu1 %v6417_v31 }
 0x819   :  { %7189 = vmatprep.subr.bf16.mxu1 %v6422_v9 }
 0x81b   :  { %9027 = vmatmul.mubr.msk.bf16.gmra.mrb[0].mxu1 %vm5766_vm2, %v12337_v47  ;;  %v12463_v47 = vld [vmem:[#allocation13 + $0x10] sm:$0xff] }
 0x81c   :  { %6232 = vmatprep.mubr.bf16.mxu1 %v13305_v63  ;;  %7190 = vmatpush1.bf16.msra.mxu1 %v6421_v44  ;;  %v12467_v63 = vrot.slane %v12463_v47, %v11098_v49  ;;  %v12471_v56 = vrot.slane %v12463_v47, %v13278_v10 }
 0x81d   :  { %7191 = vmatprep.subr.bf16.mxu1 %v6426_v59 }
 0x820   :  { %7192 = vmatpush1.bf16.msra.mxu1 %v6425_v43 }
 0x821   :  { %7193 = vmatprep.subr.bf16.mxu1 %v6430_v4 }
 0x823   :  { %9028 = vmatmul.mubr.msk.bf16.gmra.mrb[4].mxu1 %vm5766_vm2, %v12354_v61 }
 0x824   :  { %7194 = vmatpush1.bf16.msra.mxu1 %v6429_v46 }
 0x825   :  { %7195 = vmatprep.subr.bf16.mxu1 %v6434_v29  ;;  %v6435_v29 = vld [vmem:[#allocation3 + $0x200] sm:$0xff] }
 0x828   :  { %7196 = vmatpush1.bf16.msra.mxu1 %v6433_v5  ;;  %v6437_v5 = vld [vmem:[#allocation3 + $0x210] sm:$0xff] }
 0x829   :  { %7278 = vmatprep.subr.bf16.mxu1 %v6438_v28 }
 0x862   :  { %v5825_v3 = vpop.f32.mrb[176].mxu0 }
 0x863   :  { %v5826_v38 = vadd.f32 %v5825_v3, %v12467_v63  ;;  %v5827_v61 = vpop.f32.mrb[177].mxu0 }
 0x864   :  { %v5828_v52 = vadd.f32 %v5827_v61, %v12471_v56  ;;  %v5829_v14 = vpop.f32.mrb[178].mxu0  ;;  %v6440_v61 = vld [vmem:[#allocation3 + $0x228] sm:$0xff] }
 0x865   :  { %v5830_v8 = vadd.f32 %v5829_v14, %v12467_v63  ;;  %v5831_v57 = vpop.f32.mrb[179].mxu0  ;;  %v6243_v33 = vmax.f32 %v5826_v38, 0.0  ;;  %v6442_v14 = vld [vmem:[#allocation3 + $0x238] sm:$0xff] }
 0x866   :  { %v5832_v39 = vadd.f32 %v5831_v57, %v12471_v56  ;;  %v6244_v31 = vmax.f32 %v5828_v52, 0.0 }
 0x867   :  { %v6251_v30 = vmax.f32 %v5830_v8, 0.0 }
 0x868   :  { %v6252_v9 = vmax.f32 %v5832_v39, 0.0 }
 0x869   :  { %v6627_v44 = vpack.c.bf16 %v6251_v30, %v6243_v33  ;;  %v6439_v30 = vld [vmem:[#allocation3 + $0x220] sm:$0xff] }
 0x86a   :  { %v6628_v59 = vpack.c.bf16 %v6252_v9, %v6244_v31  ;;  %v5835_v43 = vpop.f32.mrb[180].mxu0  ;;  %v6441_v31 = vld [vmem:[#allocation3 + $0x230] sm:$0xff] }
 0x86b   :  { %v5836_v4 = vadd.f32 %v5835_v43, %v12467_v63  ;;  %v5837_v46 = vpop.f32.mrb[181].mxu0 }
 0x86c   :  { %v5838_v28 = vadd.f32 %v5837_v46, %v12471_v56  ;;  %v5839_v3 = vpop.f32.mrb[182].mxu0  ;;  %6745 = vmatprep.mubr.bf16.mxu0 %v6628_v59  ;;  %7197 = vmatprep.mubr.bf16.mxu1 %v6628_v59 }
 0x86d   :  { %v5840_v38 = vadd.f32 %v5839_v3, %v12467_v63  ;;  %v5841_v8 = vpop.f32.mrb[183].mxu0  ;;  %6746 = vmatmul.mubr.bf16.vlgmr.msra.gmra.mrb[232].mxu0 %v6627_v44  ;;  %7198 = vmatmul.mubr.bf16.vlgmr.msra.gmra.mrb[8].mxu1 %v6627_v44  ;;  %v6259_v39 = vmax.f32 %v5836_v4, 0.0  ;;  %v6444_v3 = vld [vmem:[#allocation3 + $0x248] sm:$0xff] }
 0x86e   :  { %v5842_v52 = vadd.f32 %v5841_v8, %v12471_v56  ;;  %6827 = vmatpush1.bf16.msra.mxu0 %v6435_v29  ;;  %7279 = vmatpush1.bf16.msra.mxu1 %v6437_v5  ;;  %v5885_v57 = vpop.f32.mrb[192].mxu1  ;;  %v6260_v43 = vmax.f32 %v5838_v28, 0.0 }
 0x86f   :  { %v6267_v33 = vmax.f32 %v5840_v38, 0.0  ;;  %6828 = vmatprep.subr.bf16.mxu0 %v6440_v61  ;;  %7280 = vmatprep.subr.bf16.mxu1 %v6442_v14  ;;  %v5886_v9 = vadd.f32 %v5885_v57, %v12467_v63  ;;  %v5887_v59 = vpop.f32.mrb[193].mxu1 }
 0x870   :  { %v6268_v46 = vmax.f32 %v5842_v52, 0.0  ;;  %v5888_v44 = vadd.f32 %v5887_v59, %v12471_v56  ;;  %v5889_v6 = vpop.f32.mrb[194].mxu1  ;;  %v6445_v59 = vld [vmem:[#allocation3 + $0x250] sm:$0xff] }
 0x871   :  { %v6635_v8 = vpack.c.bf16 %v6267_v33, %v6259_v39  ;;  %v6339_v29 = vmax.f32 %v5886_v9, 0.0  ;;  %v5890_v5 = vadd.f32 %v5889_v6, %v12467_v63  ;;  %v5891_v4 = vpop.f32.mrb[195].mxu1  ;;  %v6448_v6 = vld [vmem:[#allocation3 + $0x268] sm:$0xff]  ;;  %v6450_v9 = vld [vmem:[#allocation3 + $0x278] sm:$0xff] }
 0x872   :  { %v6636_v38 = vpack.c.bf16 %v6268_v46, %v6260_v43  ;;  %6829 = vmatpush1.bf16.msra.mxu0 %v6439_v30  ;;  %v5845_v61 = vpop.f32.mrb[184].mxu0  ;;  %7281 = vmatpush1.bf16.msra.mxu1 %v6441_v31  ;;  %v6340_v14 = vmax.f32 %v5888_v44, 0.0  ;;  %v5892_v57 = vadd.f32 %v5891_v4, %v12471_v56 }
 0x873   :  { %v5846_v28 = vadd.f32 %v5845_v61, %v12467_v63  ;;  %v5847_v52 = vpop.f32.mrb[185].mxu0  ;;  %6830 = vmatprep.subr.bf16.mxu0 %v6444_v3  ;;  %7282 = vmatprep.subr.bf16.mxu1 %v6446_v62  ;;  %v6347_v50 = vmax.f32 %v5890_v5, 0.0 }
 0x874   :  { %v5848_v39 = vadd.f32 %v5847_v52, %v12471_v56  ;;  %v5849_v33 = vpop.f32.mrb[186].mxu0  ;;  %6755 = vmatprep.mubr.bf16.mxu0 %v6636_v38  ;;  %7207 = vmatprep.mubr.bf16.mxu1 %v6636_v38  ;;  %v6348_v30 = vmax.f32 %v5892_v57, 0.0  ;;  %v6447_v38 = vld [vmem:[#allocation3 + $0x260] sm:$0xff]  ;;  %v6449_v57 = vld [vmem:[#allocation3 + $0x270] sm:$0xff] }
 0x875   :  { %v5850_v31 = vadd.f32 %v5849_v33, %v12467_v63  ;;  %v5851_v43 = vpop.f32.mrb[187].mxu0  ;;  %6756 = vmatmul.mubr.bf16.gmra.mrb[236].mxu0 %v6635_v8  ;;  %7208 = vmatmul.mubr.bf16.gmra.mrb[12].mxu1 %v6635_v8  ;;  %v12488_v46 = vpack.c.bf16 %v6347_v50, %v6339_v29  ;;  %v6275_v5 = vmax.f32 %v5846_v28, 0.0 }
 0x876   :  { %v5852_v3 = vadd.f32 %v5851_v43, %v12471_v56  ;;  %6831 = vmatpush1.bf16.msra.mxu0 %v6443_v13  ;;  %7283 = vmatpush1.bf16.msra.mxu1 %v6445_v59  ;;  %v12491_v62 = vpack.c.bf16 %v6348_v30, %v6340_v14  ;;  %v5895_v44 = vpop.f32.mrb[196].mxu1  ;;  %v6276_v33 = vmax.f32 %v5848_v39, 0.0  ;;  %v6452_v43 = vld [vmem:[#allocation3 + $0x288] sm:$0xff]  ;;  %v6454_v13 = vld [vmem:[#allocation3 + $0x298] sm:$0xff] }
 0x877   :  { %v6283_v4 = vmax.f32 %v5850_v31, 0.0  ;;  %6832 = vmatprep.subr.bf16.mxu0 %v6448_v6  ;;  %7284 = vmatprep.subr.bf16.mxu1 %v6450_v9  ;;  %v5896_v61 = vadd.f32 %v5895_v44, %v12467_v63  ;;  %v5897_v52 = vpop.f32.mrb[197].mxu1 }
 0x878   :  { %v6284_v8 = vmax.f32 %v5852_v3, 0.0  ;;  %v5898_v50 = vadd.f32 %v5897_v52, %v12471_v56  ;;  %v5899_v29 = vpop.f32.mrb[198].mxu1  ;;  %v6451_v52 = vld [vmem:[#allocation3 + $0x280] sm:$0xff] }
 0x879   :  { %v6643_v59 = vpack.c.bf16 %v6283_v4, %v6275_v5  ;;  %v6355_v14 = vmax.f32 %v5896_v61, 0.0  ;;  %v5900_v30 = vadd.f32 %v5899_v29, %v12467_v63  ;;  %v5901_v28 = vpop.f32.mrb[199].mxu1  ;;  %v12500_v5 = vrot.slane %v12463_v47, %v13277_v40  ;;  %v6453_v4 = vld [vmem:[#allocation3 + $0x290] sm:$0xff] }
 0x87a   :  { %v6644_v31 = vpack.c.bf16 %v6284_v8, %v6276_v33  ;;  %6833 = vmatpush1.bf16.msra.mxu0 %v6447_v38  ;;  %v5855_v6 = vpop.f32.mrb[188].mxu0  ;;  %7285 = vmatpush1.bf16.msra.mxu1 %v6449_v57  ;;  %v6356_v9 = vmax.f32 %v5898_v50, 0.0  ;;  %v5902_v44 = vadd.f32 %v5901_v28, %v12471_v56  ;;  %v12505_v33 = vrot.slane %v12463_v47, %v13279_v27  ;;  %v6456_v8 = vld [vmem:[#allocation3 + $0x2a8] sm:$0xff]  ;;  %v6458_v50 = vld [vmem:[#allocation3 + $0x2b8] sm:$0xff] }
 0x87b   :  { %v5856_v39 = vadd.f32 %v5855_v6, %v12467_v63  ;;  %v5857_v3 = vpop.f32.mrb[189].mxu0  ;;  %v6363_v42 = vmax.f32 %v5900_v30, 0.0  ;;  %6834 = vmatprep.subr.bf16.mxu0 %v6452_v43  ;;  %7286 = vmatprep.subr.bf16.mxu1 %v6454_v13 }
 0x87c   :  { %v5858_v61 = vadd.f32 %v5857_v3, %v12471_v56  ;;  %v5859_v38 = vpop.f32.mrb[190].mxu0  ;;  %6765 = vmatprep.mubr.bf16.mxu0 %v6644_v31  ;;  %7217 = vmatprep.mubr.bf16.mxu1 %v6644_v31  ;;  %v6364_v57 = vmax.f32 %v5902_v44, 0.0 }
 0x87d   :  { %v5860_v29 = vadd.f32 %v5859_v38, %v12467_v63  ;;  %v12508_v43 = vpack.c.bf16 %v6363_v42, %v6355_v14  ;;  %v5861_v13 = vpop.f32.mrb[191].mxu0  ;;  %6766 = vmatmul.mubr.bf16.gmra.mrb[240].mxu0 %v6643_v59  ;;  %7218 = vmatmul.mubr.bf16.gmra.mrb[16].mxu1 %v6643_v59  ;;  %v6291_v6 = vmax.f32 %v5856_v39, 0.0  ;;  %v6457_v42 = vld [vmem:[#allocation3 + $0x2b0] sm:$0xff] }
 0x87e   :  { %v5862_v30 = vadd.f32 %v5861_v13, %v12471_v56  ;;  %v12511_v28 = vpack.c.bf16 %v6364_v57, %v6356_v9  ;;  %6835 = vmatpush1.bf16.msra.mxu0 %v6451_v52  ;;  %v5938_v31 = vpop.f32.mrb[200].mxu1  ;;  %7287 = vmatpush1.bf16.msra.mxu1 %v6453_v4  ;;  %v6292_v14 = vmax.f32 %v5858_v61, 0.0  ;;  %v6460_v13 = vld [vmem:[#allocation3 + $0x2c8] sm:$0xff]  ;;  %v6462_v9 = vld [vmem:[#allocation3 + $0x2d8] sm:$0xff] }
 0x87f   :  { %v6299_v44 = vmax.f32 %v5860_v29, 0.0  ;;  %v5939_v3 = vadd.f32 %v5938_v31, %v12500_v5  ;;  %v5940_v22 = vpop.f32.mrb[201].mxu1  ;;  %6836 = vmatprep.subr.bf16.mxu0 %v6456_v8  ;;  %7288 = vmatprep.subr.bf16.mxu1 %v6458_v50 }
 0x880   :  { %v6300_v38 = vmax.f32 %v5862_v30, 0.0  ;;  %v5941_v59 = vadd.f32 %v5940_v22, %v12505_v33  ;;  %v5942_v48 = vpop.f32.mrb[202].mxu1  ;;  %v6459_v22 = vld [vmem:[#allocation3 + $0x2c0] sm:$0xff] }
 0x881   :  { %v6651_v57 = vpack.c.bf16 %v6299_v44, %v6291_v6  ;;  %v5943_v52 = vadd.f32 %v5942_v48, %v12500_v5  ;;  %v5944_v4 = vpop.f32.mrb[203].mxu1  ;;  %v6245_v8 = vmax.f32 %v5939_v3, 0.0 }
 0x882   :  { %v6652_v39 = vpack.c.bf16 %v6300_v38, %v6292_v14  ;;  %v5945_v29 = vadd.f32 %v5944_v4, %v12505_v33  ;;  %6837 = vmatpush1.bf16.msra.mxu0 %v6455_v7  ;;  %v5865_v31 = vpop.f32.mrb[192].mxu0  ;;  %7289 = vmatpush1.bf16.msra.mxu1 %v6457_v42  ;;  %v6246_v16 = vmax.f32 %v5941_v59, 0.0  ;;  %v6464_v14 = vld [vmem:[#allocation3 + $0x2e8] sm:$0xff]  ;;  %v6466_v7 = vld [vmem:[#allocation3 + $0x2f8] sm:$0xff] }
 0x883   :  { %v6253_v50 = vmax.f32 %v5943_v52, 0.0  ;;  %v5866_v61 = vadd.f32 %v5865_v31, %v12467_v63  ;;  %v5867_v30 = vpop.f32.mrb[193].mxu0  ;;  %6838 = vmatprep.subr.bf16.mxu0 %v6460_v13  ;;  %7290 = vmatprep.subr.bf16.mxu1 %v6462_v9  ;;  %v6463_v31 = vld [vmem:[#allocation3 + $0x2e0] sm:$0xff] }
 0x884   :  { %v6254_v6 = vmax.f32 %v5945_v29, 0.0  ;;  %v5868_v48 = vadd.f32 %v5867_v30, %v12471_v56  ;;  %v5869_v44 = vpop.f32.mrb[194].mxu0  ;;  %6775 = vmatprep.mubr.bf16.mxu0 %v6652_v39  ;;  %7227 = vmatprep.mubr.bf16.mxu1 %v6652_v39 }
 0x885   :  { %v12519_v38 = vpack.c.bf16 %v6253_v50, %v6245_v8  ;;  %v5870_v3 = vadd.f32 %v5869_v44, %v12467_v63  ;;  %v5871_v42 = vpop.f32.mrb[195].mxu0  ;;  %6776 = vmatmul.mubr.bf16.gmra.mrb[244].mxu0 %v6651_v57  ;;  %7228 = vmatmul.mubr.bf16.gmra.mrb[20].mxu1 %v6651_v57  ;;  %v6307_v52 = vmax.f32 %v5866_v61, 0.0  ;;  %v6465_v8 = vld [vmem:[#allocation3 + $0x2f0] sm:$0xff]  ;;  %v6470_v44 = vld [vmem:[#allocation3 + $0x318] sm:$0xff] }
 0x886   :  { %v12522_v13 = vpack.c.bf16 %v6254_v6, %v6246_v16  ;;  %v5872_v9 = vadd.f32 %v5871_v42, %v12471_v56  ;;  %6839 = vmatpush1.bf16.msra.mxu0 %v6459_v22  ;;  %v5948_v59 = vpop.f32.mrb[204].mxu1  ;;  %7291 = vmatpush1.bf16.msra.mxu1 %v6461_v21  ;;  %v6308_v50 = vmax.f32 %v5868_v48, 0.0  ;;  %v6468_v6 = vld [vmem:[#allocation3 + $0x308] sm:$0xff] }
 0x887   :  { %v6315_v4 = vmax.f32 %v5870_v3, 0.0  ;;  %v5949_v39 = vadd.f32 %v5948_v59, %v12500_v5  ;;  %v5950_v29 = vpop.f32.mrb[205].mxu1  ;;  %6840 = vmatprep.subr.bf16.mxu0 %v6464_v14  ;;  %7292 = vmatprep.subr.bf16.mxu1 %v6466_v7 }
 0x888   :  { %v6316_v30 = vmax.f32 %v5872_v9, 0.0  ;;  %v5951_v57 = vadd.f32 %v5950_v29, %v12505_v33  ;;  %v5952_v16 = vpop.f32.mrb[206].mxu1  ;;  %v6467_v29 = vld [vmem:[#allocation3 + $0x300] sm:$0xff] }
 0x889   :  { %v6659_v42 = vpack.c.bf16 %v6315_v4, %v6307_v52  ;;  %v5953_v22 = vadd.f32 %v5952_v16, %v12500_v5  ;;  %v5954_v21 = vpop.f32.mrb[207].mxu1  ;;  %v6261_v14 = vmax.f32 %v5949_v39, 0.0 }
 0x88a   :  { %v6660_v61 = vpack.c.bf16 %v6316_v30, %v6308_v50  ;;  %v5955_v3 = vadd.f32 %v5954_v21, %v12505_v33  ;;  %6841 = vmatpush1.bf16.msra.mxu0 %v6463_v31  ;;  %v5875_v59 = vpop.f32.mrb[196].mxu0  ;;  %7293 = vmatpush1.bf16.msra.mxu1 %v6465_v8  ;;  %v6262_v24 = vmax.f32 %v5951_v57, 0.0  ;;  %v6472_v50 = vld [vmem:[#allocation3 + $0x328] sm:$0xff]  ;;  %v6474_v31 = vld [vmem:[#allocation3 + $0x338] sm:$0xff] }
 0x88b   :  { %v6269_v7 = vmax.f32 %v5953_v22, 0.0  ;;  %v5876_v48 = vadd.f32 %v5875_v59, %v12467_v63  ;;  %v5877_v9 = vpop.f32.mrb[197].mxu0  ;;  %6842 = vmatprep.subr.bf16.mxu0 %v6468_v6  ;;  %7294 = vmatprep.subr.bf16.mxu1 %v6470_v44  ;;  %v6471_v59 = vld [vmem:[#allocation3 + $0x320] sm:$0xff] }
 0x88c   :  { %v6270_v52 = vmax.f32 %v5955_v3, 0.0  ;;  %v5878_v4 = vadd.f32 %v5877_v9, %v12471_v56  ;;  %v5879_v16 = vpop.f32.mrb[198].mxu0  ;;  %6785 = vmatprep.mubr.bf16.mxu0 %v6660_v61  ;;  %7237 = vmatprep.mubr.bf16.mxu1 %v6660_v61 }
 0x88d   :  { %v12531_v30 = vpack.c.bf16 %v6269_v7, %v6261_v14  ;;  %v5880_v39 = vadd.f32 %v5879_v16, %v12467_v63  ;;  %v5881_v8 = vpop.f32.mrb[199].mxu0  ;;  %6786 = vmatmul.mubr.bf16.gmra.mrb[248].mxu0 %v6659_v42  ;;  %7238 = vmatmul.mubr.bf16.gmra.mrb[24].mxu1 %v6659_v42  ;;  %v6323_v22 = vmax.f32 %v5876_v48, 0.0  ;;  %v13318_v63 = vsub.s32 4, %v13280_v45 }
 0x88e   :  { %v12534_v6 = vpack.c.bf16 %v6270_v52, %v6262_v24  ;;  %v5882_v44 = vadd.f32 %v5881_v8, %v12471_v56  ;;  %6843 = vmatpush1.bf16.msra.mxu0 %v6467_v29  ;;  %v5958_v57 = vpop.f32.mrb[208].mxu1  ;;  %7295 = vmatpush1.bf16.msra.mxu1 %v6469_v18  ;;  %v6473_v24 = vld [vmem:[#allocation3 + $0x330] sm:$0xff]  ;;  %v6324_v42 = vmax.f32 %v5878_v4, 0.0  ;;  %v13319_v18 = vsub.s32 5, %v13280_v45  ;;  %v6476_v29 = vld [vmem:[#allocation3 + $0x348] sm:$0xff]  ;;  %v6478_v52 = vld [vmem:[#allocation3 + $0x358] sm:$0xff] }
 0x88f   :  { %v6331_v21 = vmax.f32 %v5880_v39, 0.0  ;;  %v5959_v61 = vadd.f32 %v5958_v57, %v12500_v5  ;;  %v5960_v3 = vpop.f32.mrb[209].mxu1  ;;  %6844 = vmatprep.subr.bf16.mxu0 %v6472_v50  ;;  %7296 = vmatprep.subr.bf16.mxu1 %v6474_v31  ;;  %v12541_v14 = vrot.slane %v12463_v47, %v13318_v63 }
 0x890   :  { %v6332_v7 = vmax.f32 %v5882_v44, 0.0  ;;  %v5961_v56 = vadd.f32 %v5960_v3, %v12505_v33  ;;  %v5962_v9 = vpop.f32.mrb[210].mxu1  ;;  %v12547_v48 = vrot.slane %v12463_v47, %v13319_v18  ;;  %v6475_v18 = vld [vmem:[#allocation3 + $0x340] sm:$0xff] }
 0x891   :  { %v6667_v16 = vpack.c.bf16 %v6331_v21, %v6323_v22  ;;  %v5963_v50 = vadd.f32 %v5962_v9, %v12500_v5  ;;  %v5964_v31 = vpop.f32.mrb[211].mxu1  ;;  %v6277_v44 = vmax.f32 %v5959_v61, 0.0 }
 0x892   :  { %v6668_v39 = vpack.c.bf16 %v6332_v7, %v6324_v42  ;;  %v5965_v8 = vadd.f32 %v5964_v31, %v12505_v33  ;;  %6845 = vmatpush1.bf16.msra.mxu0 %v6471_v59  ;;  %v6051_v4 = vpop.f32.mrb[200].mxu0  ;;  %7297 = vmatpush1.bf16.msra.mxu1 %v6473_v24  ;;  %v6278_v23 = vmax.f32 %v5961_v56, 0.0  ;;  %v6480_v42 = vld [vmem:[#allocation3 + $0x368] sm:$0xff]  ;;  %v6482_v7 = vld [vmem:[#allocation3 + $0x378] sm:$0xff] }
 0x893   :  { %v6285_v57 = vmax.f32 %v5963_v50, 0.0  ;;  %v6052_v3 = vadd.f32 %v6051_v4, %v12541_v14  ;;  %v6053_v63 = vpop.f32.mrb[201].mxu0  ;;  %6846 = vmatprep.subr.bf16.mxu0 %v6476_v29  ;;  %7298 = vmatprep.subr.bf16.mxu1 %v6478_v52  ;;  %v6479_v4 = vld [vmem:[#allocation3 + $0x360] sm:$0xff] }
 0x894   :  { %v6286_v22 = vmax.f32 %v5965_v8, 0.0  ;;  %v6054_v21 = vadd.f32 %v6053_v63, %v12547_v48  ;;  %v6055_v9 = vpop.f32.mrb[202].mxu0  ;;  %6795 = vmatprep.mubr.bf16.mxu0 %v6668_v39  ;;  %7247 = vmatprep.mubr.bf16.mxu1 %v6668_v39 }
 0x895   :  { %v12553_v59 = vpack.c.bf16 %v6285_v57, %v6277_v44  ;;  %v6056_v61 = vadd.f32 %v6055_v9, %v12541_v14  ;;  %v6057_v24 = vpop.f32.mrb[203].mxu0  ;;  %6796 = vmatmul.mubr.bf16.gmra.mrb[252].mxu0 %v6667_v16  ;;  %7248 = vmatmul.mubr.bf16.gmra.mrb[28].mxu1 %v6667_v16  ;;  %v6247_v50 = vmax.f32 %v6052_v3, 0.0  ;;  %v6481_v44 = vld [vmem:[#allocation3 + $0x370] sm:$0xff] }
 0x896   :  { %v12556_v29 = vpack.c.bf16 %v6286_v22, %v6278_v23  ;;  %v6058_v52 = vadd.f32 %v6057_v24, %v12547_v48  ;;  %6847 = vmatpush1.bf16.msra.mxu0 %v6475_v18  ;;  %v5968_v56 = vpop.f32.mrb[212].mxu1  ;;  %7299 = vmatpush1.bf16.msra.mxu1 %v6477_v58  ;;  %v6248_v57 = vmax.f32 %v6054_v21, 0.0  ;;  %v6484_v18 = vld [vmem:[#allocation3 + $0x388] sm:$0xff]  ;;  %v6486_v58 = vld [vmem:[#allocation3 + $0x398] sm:$0xff] }
 0x897   :  { %v6255_v31 = vmax.f32 %v6056_v61, 0.0  ;;  %v5969_v39 = vadd.f32 %v5968_v56, %v12500_v5  ;;  %v5970_v8 = vpop.f32.mrb[213].mxu1  ;;  %6848 = vmatprep.subr.bf16.mxu0 %v6480_v42  ;;  %6805 = vmatprep.mubr.bf16.mxu0 %v12491_v62 }
 0x898   :  { %v6256_v16 = vmax.f32 %v6058_v52, 0.0  ;;  %v5971_v23 = vadd.f32 %v5970_v8, %v12505_v33  ;;  %v5972_v63 = vpop.f32.mrb[214].mxu1  ;;  %7257 = vmatprep.mubr.bf16.mxu1 %v12491_v62  ;;  %7300 = vmatprep.subr.bf16.mxu1 %v6482_v7  ;;  %v6483_v7 = vld [vmem:[#allocation3 + $0x380] sm:$0xff] }
 0x899   :  { %v12563_v3 = vpack.c.bf16 %v6255_v31, %v6247_v50  ;;  %v5973_v22 = vadd.f32 %v5972_v63, %v12500_v5  ;;  %v5974_v9 = vpop.f32.mrb[215].mxu1  ;;  %v6293_v24 = vmax.f32 %v5969_v39, 0.0  ;;  %v6485_v50 = vld [vmem:[#allocation3 + $0x390] sm:$0xff]  ;;  %v6490_v39 = vld [vmem:[#allocation3 + $0x3b8] sm:$0xff] }
 0x89a   :  { %v12566_v42 = vpack.c.bf16 %v6256_v16, %v6248_v57  ;;  %v5975_v61 = vadd.f32 %v5974_v9, %v12505_v33  ;;  %6849 = vmatpush1.bf16.msra.mxu0 %v6479_v4  ;;  %v6061_v21 = vpop.f32.mrb[204].mxu0  ;;  %7301 = vmatpush1.bf16.msra.mxu1 %v6481_v44  ;;  %v6294_v31 = vmax.f32 %v5971_v23, 0.0  ;;  %v6488_v16 = vld [vmem:[#allocation3 + $0x3a8] sm:$0xff] }
 0x89b   :  { %v6301_v52 = vmax.f32 %v5973_v22, 0.0  ;;  %v6062_v56 = vadd.f32 %v6061_v21, %v12541_v14  ;;  %v6063_v62 = vpop.f32.mrb[205].mxu0  ;;  %6850 = vmatprep.subr.bf16.mxu0 %v6484_v18  ;;  %7302 = vmatprep.subr.bf16.mxu1 %v6486_v58 }
 0x89c   :  { %v6302_v8 = vmax.f32 %v5975_v61, 0.0  ;;  %v6064_v63 = vadd.f32 %v6063_v62, %v12547_v48  ;;  %v6065_v57 = vpop.f32.mrb[206].mxu0 }
 0x89d   :  { %v12571_v19 = vpack.c.bf16 %v6301_v52, %v6293_v24  ;;  %v6066_v4 = vadd.f32 %v6065_v57, %v12541_v14  ;;  %v6067_v44 = vpop.f32.mrb[207].mxu0  ;;  %6806 = vmatmul.mubr.bf16.gmra.mrb[0].mxu0 %v12488_v46  ;;  %7258 = vmatmul.mubr.bf16.gmra.mrb[32].mxu1 %v12488_v46  ;;  %v6263_v22 = vmax.f32 %v6062_v56, 0.0  ;;  %v6487_v24 = vld [vmem:[#allocation3 + $0x3a0] sm:$0xff]  ;;  %v6489_v52 = vld [vmem:[#allocation3 + $0x3b0] sm:$0xff] }
 0x89e   :  { %v12576_v18 = vpack.c.bf16 %v6302_v8, %v6294_v31  ;;  %v6068_v58 = vadd.f32 %v6067_v44, %v12547_v48  ;;  %6851 = vmatpush1.bf16.msra.mxu0 %v6483_v7  ;;  %v5978_v23 = vpop.f32.mrb[216].mxu1  ;;  %7303 = vmatpush1.bf16.msra.mxu1 %v6485_v50  ;;  %v6264_v62 = vmax.f32 %v6064_v63, 0.0  ;;  %v6492_v7 = vld [vmem:[#allocation3 + $0x3c8] sm:$0xff]  ;;  %v6494_v50 = vld [vmem:[#allocation3 + $0x3d8] sm:$0xff] }
 0x89f   :  { %v6271_v9 = vmax.f32 %v6066_v4, 0.0  ;;  %v5979_v61 = vadd.f32 %v5978_v23, %v12500_v5  ;;  %v5980_v21 = vpop.f32.mrb[217].mxu1  ;;  %6852 = vmatprep.subr.bf16.mxu0 %v6488_v16  ;;  %6815 = vmatprep.mubr.bf16.mxu0 %v12511_v28 }
 0x8a0   :  { %v6272_v46 = vmax.f32 %v6068_v58, 0.0  ;;  %v5981_v31 = vadd.f32 %v5980_v21, %v12505_v33  ;;  %v5982_v8 = vpop.f32.mrb[218].mxu1  ;;  %7267 = vmatprep.mubr.bf16.mxu1 %v12511_v28  ;;  %7304 = vmatprep.subr.bf16.mxu1 %v6490_v39  ;;  %v6491_v39 = vld [vmem:[#allocation3 + $0x3c0] sm:$0xff] }
 0x8a1   :  { %v12583_v56 = vpack.c.bf16 %v6271_v9, %v6263_v22  ;;  %v5983_v57 = vadd.f32 %v5982_v8, %v12500_v5  ;;  %v5984_v4 = vpop.f32.mrb[219].mxu1  ;;  %v6309_v58 = vmax.f32 %v5979_v61, 0.0  ;;  %v6496_v61 = vld [vmem:[#allocation3 + $0x3e8] sm:$0xff] }
 0x8a2   :  { %v12586_v16 = vpack.c.bf16 %v6272_v46, %v6264_v62  ;;  %v5985_v44 = vadd.f32 %v5984_v4, %v12505_v33  ;;  %6853 = vmatpush1.bf16.msra.mxu0 %v6487_v24  ;;  %v6071_v63 = vpop.f32.mrb[208].mxu0  ;;  %7305 = vmatpush1.bf16.msra.mxu1 %v6489_v52  ;;  %v6310_v22 = vmax.f32 %v5981_v31, 0.0  ;;  %v6493_v62 = vld [vmem:[#allocation3 + $0x3d0] sm:$0xff]  ;;  %v6498_v52 = vld [vmem:[#allocation3 + $0x3f8] sm:$0xff] }
 0x8a3   :  { %v6317_v23 = vmax.f32 %v5983_v57, 0.0  ;;  %v6072_v21 = vadd.f32 %v6071_v63, %v12541_v14  ;;  %v6073_v28 = vpop.f32.mrb[209].mxu0  ;;  %6854 = vmatprep.subr.bf16.mxu0 %v6492_v7  ;;  %7306 = vmatprep.subr.bf16.mxu1 %v6494_v50 }
 0x8a4   :  { %v6318_v9 = vmax.f32 %v5985_v44, 0.0  ;;  %v6074_v8 = vadd.f32 %v6073_v28, %v12547_v48  ;;  %v6075_v37 = vpop.f32.mrb[210].mxu0 }
 0x8a5   :  { %v12591_v46 = vpack.c.bf16 %v6317_v23, %v6309_v58  ;;  %v6076_v24 = vadd.f32 %v6075_v37, %v12541_v14  ;;  %v6077_v4 = vpop.f32.mrb[211].mxu0  ;;  %6816 = vmatmul.mubr.bf16.gmra.mrb[4].mxu0 %v12508_v43  ;;  %7268 = vmatmul.mubr.bf16.gmra.mrb[36].mxu1 %v12508_v43  ;;  %v6279_v57 = vmax.f32 %v6072_v21, 0.0  ;;  %v6495_v58 = vld [vmem:[#allocation3 + $0x3e0] sm:$0xff] }
 0x8a6   :  { %v12596_v7 = vpack.c.bf16 %v6318_v9, %v6310_v22  ;;  %v6078_v31 = vadd.f32 %v6077_v4, %v12547_v48  ;;  %6855 = vmatpush1.bf16.msra.mxu0 %v6491_v39  ;;  %v5988_v50 = vpop.f32.mrb[220].mxu1  ;;  %6858 = vmatprep.mubr.bf16.mxu0 %v12522_v13  ;;  %v6280_v43 = vmax.f32 %v6074_v8, 0.0  ;;  %v6497_v39 = vld [vmem:[#allocation3 + $0x3f0] sm:$0xff]  ;;  %v6500_v9 = vld [vmem:[#allocation3 + $0x408] sm:$0xff] }
 0x8a7   :  { %v6287_v44 = vmax.f32 %v6076_v24, 0.0  ;;  %v5989_v63 = vadd.f32 %v5988_v50, %v12500_v5  ;;  %7307 = vmatpush1.bf16.msra.mxu1 %v6493_v62  ;;  %7310 = vmatprep.mubr.bf16.mxu1 %v12522_v13  ;;  %v5990_v37 = vpop.f32.mrb[221].mxu1  ;;  %v6502_v50 = vld [vmem:[#allocation3 + $0x418] sm:$0xff] }
 0x8a8   :  { %v6288_v23 = vmax.f32 %v6078_v31, 0.0  ;;  %v5991_v28 = vadd.f32 %v5990_v37, %v12505_v33  ;;  %v5992_v22 = vpop.f32.mrb[222].mxu1  ;;  %6856 = vmatprep.subr.bf16.mxu0 %v6496_v61  ;;  %7308 = vmatprep.subr.bf16.mxu1 %v6498_v52  ;;  %v6499_v52 = vld [vmem:[#allocation3 + $0x400] sm:$0xff] }
 0x8a9   :  { %v12603_v4 = vpack.c.bf16 %v6287_v44, %v6279_v57  ;;  %v5993_v21 = vadd.f32 %v5992_v22, %v12500_v5  ;;  %v5994_v24 = vpop.f32.mrb[223].mxu1  ;;  %v6325_v31 = vmax.f32 %v5989_v63, 0.0  ;;  %v6501_v63 = vld [vmem:[#allocation3 + $0x410] sm:$0xff] }
 0x8aa   :  { %v12606_v62 = vpack.c.bf16 %v6288_v23, %v6280_v43  ;;  %v5995_v13 = vadd.f32 %v5994_v24, %v12505_v33  ;;  %6857 = vmatpush1.bf16.msra.mxu0 %v6495_v58  ;;  %v6081_v8 = vpop.f32.mrb[212].mxu0  ;;  %v6326_v57 = vmax.f32 %v5991_v28, 0.0 }
 0x8ab   :  { %v6333_v53 = vmax.f32 %v5993_v21, 0.0  ;;  %v6082_v37 = vadd.f32 %v6081_v8, %v12541_v14  ;;  %7309 = vmatpush1.bf16.msra.mxu1 %v6497_v39  ;;  %v6083_v61 = vpop.f32.mrb[213].mxu0  ;;  %6939 = vmatprep.subr.bf16.mxu0 %v6500_v9  ;;  %v6504_v21 = vld [vmem:[#allocation3 + $0x428] sm:$0xff]  ;;  %v6506_v9 = vld [vmem:[#allocation3 + $0x438] sm:$0xff]  ;;  %v6503_v8 = vld [vmem:[#allocation3 + $0x420] sm:$0xff] }
 0x8ac   :  { %v6334_v44 = vmax.f32 %v5995_v13, 0.0  ;;  %v6084_v22 = vadd.f32 %v6083_v61, %v12547_v48  ;;  %v6085_v20 = vpop.f32.mrb[214].mxu0  ;;  %7391 = vmatprep.subr.bf16.mxu1 %v6502_v50 }
 0x8ad   :  { %v12611_v43 = vpack.c.bf16 %v6333_v53, %v6325_v31  ;;  %v6086_v23 = vadd.f32 %v6085_v20, %v12541_v14  ;;  %v6087_v58 = vpop.f32.mrb[215].mxu0  ;;  %6859 = vmatmul.mubr.bf16.vlgmr.msra.gmra.mrb[232].mxu0 %v12519_v38  ;;  %v6295_v13 = vmax.f32 %v6082_v37, 0.0 }
 0x8ae   :  { %v12615_v24 = vpack.c.bf16 %v6334_v44, %v6326_v57  ;;  %v6088_v39 = vadd.f32 %v6087_v58, %v12547_v48  ;;  %6940 = vmatpush1.bf16.msra.mxu0 %v6499_v52  ;;  %7311 = vmatmul.mubr.bf16.vlgmr.msra.gmra.mrb[8].mxu1 %v12519_v38  ;;  %v5998_v28 = vpop.f32.mrb[224].mxu1  ;;  %v6296_v31 = vmax.f32 %v6084_v22, 0.0  ;;  %v6508_v38 = vld [vmem:[#allocation3 + $0x448] sm:$0xff]  ;;  %v6505_v58 = vld [vmem:[#allocation3 + $0x430] sm:$0xff] }
 0x8af   :  { %v6303_v50 = vmax.f32 %v6086_v23, 0.0  ;;  %v5999_v53 = vadd.f32 %v5998_v28, %v12500_v5  ;;  %6868 = vmatprep.mubr.bf16.mxu0 %v12534_v6  ;;  %7320 = vmatprep.mubr.bf16.mxu1 %v12534_v6  ;;  %v6000_v20 = vpop.f32.mrb[225].mxu1 }
 0x8b0   :  { %v6304_v61 = vmax.f32 %v6088_v39, 0.0  ;;  %7392 = vmatpush1.bf16.msra.mxu1 %v6501_v63  ;;  %v6001_v57 = vadd.f32 %v6000_v20, %v12505_v33  ;;  %v6002_v52 = vpop.f32.mrb[226].mxu1  ;;  %6941 = vmatprep.subr.bf16.mxu0 %v6504_v21  ;;  %v6510_v39 = vld [vmem:[#allocation3 + $0x458] sm:$0xff] }
 0x8b1   :  { %v12623_v44 = vpack.c.bf16 %v6303_v50, %v6295_v13  ;;  %v6003_v37 = vadd.f32 %v6002_v52, %v12500_v5  ;;  %v6004_v23 = vpop.f32.mrb[227].mxu1  ;;  %7393 = vmatprep.subr.bf16.mxu1 %v6506_v9  ;;  %v6341_v63 = vmax.f32 %v5999_v53, 0.0  ;;  %v6507_v13 = vld [vmem:[#allocation3 + $0x440] sm:$0xff]  ;;  %v6509_v53 = vld [vmem:[#allocation3 + $0x450] sm:$0xff] }
 0x8b2   :  { %v12626_v28 = vpack.c.bf16 %v6304_v61, %v6296_v31  ;;  %v6005_v6 = vadd.f32 %v6004_v23, %v12505_v33  ;;  %6942 = vmatpush1.bf16.msra.mxu0 %v6503_v8  ;;  %v6091_v22 = vpop.f32.mrb[216].mxu0  ;;  %v6342_v50 = vmax.f32 %v6001_v57, 0.0 }
 0x8b3   :  { %v6349_v12 = vmax.f32 %v6003_v37, 0.0  ;;  %v6092_v20 = vadd.f32 %v6091_v22, %v12541_v14  ;;  %v6093_v21 = vpop.f32.mrb[217].mxu0  ;;  %6943 = vmatprep.subr.bf16.mxu0 %v6508_v38  ;;  %v6512_v37 = vld [vmem:[#allocation3 + $0x468] sm:$0xff] }
 0x8b4   :  { %v6350_v15 = vmax.f32 %v6005_v6, 0.0  ;;  %7394 = vmatpush1.bf16.msra.mxu1 %v6505_v58  ;;  %v6094_v9 = vadd.f32 %v6093_v21, %v12547_v48  ;;  %v6095_v52 = vpop.f32.mrb[218].mxu0  ;;  %v6514_v58 = vld [vmem:[#allocation3 + $0x478] sm:$0xff] }
 0x8b5   :  { %v12631_v31 = vpack.c.bf16 %v6349_v12, %v6341_v63  ;;  %v6096_v61 = vadd.f32 %v6095_v52, %v12541_v14  ;;  %v6097_v8 = vpop.f32.mrb[219].mxu0  ;;  %6869 = vmatmul.mubr.bf16.gmra.mrb[236].mxu0 %v12531_v30  ;;  %7395 = vmatprep.subr.bf16.mxu1 %v6510_v39  ;;  %v6311_v6 = vmax.f32 %v6092_v20, 0.0  ;;  %v6511_v63 = vld [vmem:[#allocation3 + $0x460] sm:$0xff] }
 0x8b6   :  { %v12635_v23 = vpack.c.bf16 %v6350_v15, %v6342_v50  ;;  %v6098_v38 = vadd.f32 %v6097_v8, %v12547_v48  ;;  %6944 = vmatpush1.bf16.msra.mxu0 %v6507_v13  ;;  %7321 = vmatmul.mubr.bf16.gmra.mrb[12].mxu1 %v12531_v30  ;;  %v6008_v57 = vpop.f32.mrb[228].mxu1  ;;  %v6312_v21 = vmax.f32 %v6094_v9, 0.0  ;;  %v6516_v30 = vld [vmem:[#allocation3 + $0x488] sm:$0xff]  ;;  %v6513_v8 = vld [vmem:[#allocation3 + $0x470] sm:$0xff] }
 0x8b7   :  { %v6319_v12 = vmax.f32 %v6096_v61, 0.0  ;;  %v6009_v22 = vadd.f32 %v6008_v57, %v12500_v5  ;;  %6878 = vmatprep.mubr.bf16.mxu0 %v12556_v29  ;;  %7330 = vmatprep.mubr.bf16.mxu1 %v12556_v29  ;;  %v6010_v39 = vpop.f32.mrb[229].mxu1 }
 0x8b8   :  { %v6320_v15 = vmax.f32 %v6098_v38, 0.0  ;;  %7396 = vmatpush1.bf16.msra.mxu1 %v6509_v53  ;;  %v6011_v50 = vadd.f32 %v6010_v39, %v12505_v33  ;;  %v6012_v13 = vpop.f32.mrb[230].mxu1  ;;  %6945 = vmatprep.subr.bf16.mxu0 %v6512_v37  ;;  %v6518_v38 = vld [vmem:[#allocation3 + $0x498] sm:$0xff] }
 0x8b9   :  { %v12643_v52 = vpack.c.bf16 %v6319_v12, %v6311_v6  ;;  %v6013_v20 = vadd.f32 %v6012_v13, %v12500_v5  ;;  %v6014_v61 = vpop.f32.mrb[231].mxu1  ;;  %7397 = vmatprep.subr.bf16.mxu1 %v6514_v58  ;;  %v6357_v53 = vmax.f32 %v6009_v22, 0.0  ;;  %v6515_v6 = vld [vmem:[#allocation3 + $0x480] sm:$0xff]  ;;  %v13320_v12 = vsub.s32 6, %v13280_v45 }
 0x8ba   :  { %v12646_v57 = vpack.c.bf16 %v6320_v15, %v6312_v21  ;;  %v6015_v29 = vadd.f32 %v6014_v61, %v12505_v33  ;;  %6946 = vmatpush1.bf16.msra.mxu0 %v6511_v63  ;;  %v6101_v9 = vpop.f32.mrb[220].mxu0  ;;  %v6358_v58 = vmax.f32 %v6011_v50, 0.0  ;;  %v13321_v15 = vsub.s32 7, %v13280_v45  ;;  %v6517_v61 = vld [vmem:[#allocation3 + $0x490] sm:$0xff]  ;;  %v6520_v50 = vld [vmem:[#allocation3 + $0x4a8] sm:$0xff] }
 0x8bb   :  { %v6365_v25 = vmax.f32 %v6013_v20, 0.0  ;;  %v6102_v39 = vadd.f32 %v6101_v9, %v12541_v14  ;;  %v6103_v37 = vpop.f32.mrb[221].mxu0  ;;  %6947 = vmatprep.subr.bf16.mxu0 %v6516_v30  ;;  %v12653_v5 = vrot.slane %v12463_v47, %v13320_v12 }
 0x8bc   :  { %v6366_v21 = vmax.f32 %v6015_v29, 0.0  ;;  %7398 = vmatpush1.bf16.msra.mxu1 %v6513_v8  ;;  %v6104_v33 = vadd.f32 %v6103_v37, %v12547_v48  ;;  %v6105_v63 = vpop.f32.mrb[222].mxu0  ;;  %v12659_v22 = vrot.slane %v12463_v47, %v13321_v15  ;;  %v6522_v47 = vld [vmem:[#allocation3 + $0x4b8] sm:$0xff]  ;;  %v6519_v37 = vld [vmem:[#allocation3 + $0x4a0] sm:$0xff] }
 0x8bd   :  { %v12661_v13 = vpack.c.bf16 %v6365_v25, %v6357_v53  ;;  %v6106_v30 = vadd.f32 %v6105_v63, %v12541_v14  ;;  %v6107_v20 = vpop.f32.mrb[223].mxu0  ;;  %6879 = vmatmul.mubr.bf16.gmra.mrb[240].mxu0 %v12553_v59  ;;  %7399 = vmatprep.subr.bf16.mxu1 %v6518_v38  ;;  %v6327_v9 = vmax.f32 %v6102_v39, 0.0 }
 0x8be   :  { %v12665_v29 = vpack.c.bf16 %v6366_v21, %v6358_v58  ;;  %v6108_v8 = vadd.f32 %v6107_v20, %v12547_v48  ;;  %6948 = vmatpush1.bf16.msra.mxu0 %v6515_v6  ;;  %7331 = vmatmul.mubr.bf16.gmra.mrb[16].mxu1 %v12553_v59  ;;  %v6164_v45 = vpop.f32.mrb[232].mxu1  ;;  %v6328_v12 = vmax.f32 %v6104_v33, 0.0  ;;  %v6524_v59 = vld [vmem:[#allocation3 + $0x4c8] sm:$0xff] }
 0x8bf   :  { %v6335_v25 = vmax.f32 %v6106_v30, 0.0  ;;  %v6165_v53 = vadd.f32 %v6164_v45, %v12653_v5  ;;  %6888 = vmatprep.mubr.bf16.mxu0 %v12576_v18  ;;  %7340 = vmatprep.mubr.bf16.mxu1 %v12576_v18  ;;  %v6166_v38 = vpop.f32.mrb[233].mxu1  ;;  %v6521_v30 = vld [vmem:[#allocation3 + $0x4b0] sm:$0xff] }
 0x8c0   :  { %v6336_v58 = vmax.f32 %v6108_v8, 0.0  ;;  %7400 = vmatpush1.bf16.msra.mxu1 %v6517_v61  ;;  %v6167_v21 = vadd.f32 %v6166_v38, %v12659_v22  ;;  %v6168_v6 = vpop.f32.mrb[234].mxu1  ;;  %6949 = vmatprep.subr.bf16.mxu0 %v6520_v50  ;;  %v6526_v8 = vld [vmem:[#allocation3 + $0x4d8] sm:$0xff] }
 0x8c1   :  { %v12673_v63 = vpack.c.bf16 %v6335_v25, %v6327_v9  ;;  %v6169_v39 = vadd.f32 %v6168_v6, %v12653_v5  ;;  %v6170_v15 = vpop.f32.mrb[235].mxu1  ;;  %7401 = vmatprep.subr.bf16.mxu1 %v6522_v47  ;;  %v6249_v61 = vmax.f32 %v6165_v53, 0.0  ;;  %v6523_v9 = vld [vmem:[#allocation3 + $0x4c0] sm:$0xff]  ;;  %v6525_v53 = vld [vmem:[#allocation3 + $0x4d0] sm:$0xff] }
 0x8c2   :  { %v12676_v20 = vpack.c.bf16 %v6336_v58, %v6328_v12  ;;  %v6171_v18 = vadd.f32 %v6170_v15, %v12659_v22  ;;  %6950 = vmatpush1.bf16.msra.mxu0 %v6519_v37  ;;  %v6111_v33 = vpop.f32.mrb[224].mxu0  ;;  %v6250_v25 = vmax.f32 %v6167_v21, 0.0 }
 0x8c3   :  { %v6257_v45 = vmax.f32 %v6169_v39, 0.0  ;;  %v6112_v38 = vadd.f32 %v6111_v33, %v12541_v14  ;;  %v6113_v50 = vpop.f32.mrb[225].mxu0  ;;  %6951 = vmatprep.subr.bf16.mxu0 %v6524_v59  ;;  %v6528_v39 = vld [vmem:[#allocation3 + $0x4e8] sm:$0xff] }
 0x8c4   :  { %v6258_v36 = vmax.f32 %v6171_v18, 0.0  ;;  %7402 = vmatpush1.bf16.msra.mxu1 %v6521_v30  ;;  %v6114_v47 = vadd.f32 %v6113_v50, %v12547_v48  ;;  %v6115_v6 = vpop.f32.mrb[226].mxu0  ;;  %v6530_v30 = vld [vmem:[#allocation3 + $0x4f8] sm:$0xff] }
 0x8c5   :  { %v12681_v12 = vpack.c.bf16 %v6257_v45, %v6249_v61  ;;  %v6116_v58 = vadd.f32 %v6115_v6, %v12541_v14  ;;  %v6117_v37 = vpop.f32.mrb[227].mxu0  ;;  %6889 = vmatmul.mubr.bf16.gmra.mrb[244].mxu0 %v12571_v19  ;;  %7403 = vmatprep.subr.bf16.mxu1 %v6526_v8  ;;  %v6343_v18 = vmax.f32 %v6112_v38, 0.0  ;;  %v6527_v45 = vld [vmem:[#allocation3 + $0x4e0] sm:$0xff] }
 0x8c6   :  { %v12685_v15 = vpack.c.bf16 %v6258_v36, %v6250_v25  ;;  %v6118_v59 = vadd.f32 %v6117_v37, %v12547_v48  ;;  %6952 = vmatpush1.bf16.msra.mxu0 %v6523_v9  ;;  %7341 = vmatmul.mubr.bf16.gmra.mrb[20].mxu1 %v12571_v19  ;;  %v6174_v21 = vpop.f32.mrb[236].mxu1  ;;  %v6344_v50 = vmax.f32 %v6114_v47, 0.0  ;;  %v6532_v19 = vld [vmem:[#allocation3 + $0x508] sm:$0xff]  ;;  %v6529_v37 = vld [vmem:[#allocation3 + $0x4f0] sm:$0xff] }
 0x8c7   :  { %v6351_v33 = vmax.f32 %v6116_v58, 0.0  ;;  %v6175_v61 = vadd.f32 %v6174_v21, %v12653_v5  ;;  %6898 = vmatprep.mubr.bf16.mxu0 %v12596_v7  ;;  %7350 = vmatprep.mubr.bf16.mxu1 %v12596_v7  ;;  %v6176_v8 = vpop.f32.mrb[237].mxu1 }
 0x8c8   :  { %v6352_v36 = vmax.f32 %v6118_v59, 0.0  ;;  %7404 = vmatpush1.bf16.msra.mxu1 %v6525_v53  ;;  %v6177_v25 = vadd.f32 %v6176_v8, %v12659_v22  ;;  %v6178_v9 = vpop.f32.mrb[238].mxu1  ;;  %6953 = vmatprep.subr.bf16.mxu0 %v6528_v39  ;;  %v6534_v59 = vld [vmem:[#allocation3 + $0x518] sm:$0xff] }
 0x8c9   :  { %v12693_v6 = vpack.c.bf16 %v6351_v33, %v6343_v18  ;;  %v6179_v38 = vadd.f32 %v6178_v9, %v12653_v5  ;;  %v6180_v58 = vpop.f32.mrb[239].mxu1  ;;  %7405 = vmatprep.subr.bf16.mxu1 %v6530_v30  ;;  %v6265_v53 = vmax.f32 %v6175_v61, 0.0  ;;  %v6531_v18 = vld [vmem:[#allocation3 + $0x500] sm:$0xff]  ;;  %v6533_v61 = vld [vmem:[#allocation3 + $0x510] sm:$0xff] }
 0x8ca   :  { %v12696_v21 = vpack.c.bf16 %v6352_v36, %v6344_v50  ;;  %v6181_v7 = vadd.f32 %v6180_v58, %v12659_v22  ;;  %6954 = vmatpush1.bf16.msra.mxu0 %v6527_v45  ;;  %v6121_v47 = vpop.f32.mrb[228].mxu0  ;;  %v6266_v33 = vmax.f32 %v6177_v25, 0.0 }
 0x8cb   :  { %v6273_v0 = vmax.f32 %v6179_v38, 0.0  ;;  %v6122_v8 = vadd.f32 %v6121_v47, %v12541_v14  ;;  %v6123_v39 = vpop.f32.mrb[229].mxu0  ;;  %6955 = vmatprep.subr.bf16.mxu0 %v6532_v19  ;;  %v6536_v38 = vld [vmem:[#allocation3 + $0x528] sm:$0xff] }
 0x8cc   :  { %v6274_v2 = vmax.f32 %v6181_v7, 0.0  ;;  %7406 = vmatpush1.bf16.msra.mxu1 %v6529_v37  ;;  %v6124_v30 = vadd.f32 %v6123_v39, %v12547_v48  ;;  %v6125_v9 = vpop.f32.mrb[230].mxu0  ;;  %v6538_v37 = vld [vmem:[#allocation3 + $0x538] sm:$0xff] }
 0x8cd   :  { %v12701_v50 = vpack.c.bf16 %v6273_v0, %v6265_v53  ;;  %v6126_v36 = vadd.f32 %v6125_v9, %v12541_v14  ;;  %v6127_v45 = vpop.f32.mrb[231].mxu0  ;;  %6899 = vmatmul.mubr.bf16.gmra.mrb[248].mxu0 %v12591_v46  ;;  %7407 = vmatprep.subr.bf16.mxu1 %v6534_v59  ;;  %v6359_v7 = vmax.f32 %v6122_v8, 0.0  ;;  %v6535_v59 = vld [vmem:[#allocation3 + $0x520] sm:$0xff]  ;;  %v6537_v9 = vld [vmem:[#allocation3 + $0x530] sm:$0xff] }
 0x8ce   :  { %v12705_v58 = vpack.c.bf16 %v6274_v2, %v6266_v33  ;;  %v6128_v19 = vadd.f32 %v6127_v45, %v12547_v48  ;;  %6956 = vmatpush1.bf16.msra.mxu0 %v6531_v18  ;;  %7351 = vmatmul.mubr.bf16.gmra.mrb[24].mxu1 %v12591_v46  ;;  %v6184_v25 = vpop.f32.mrb[240].mxu1  ;;  %v6360_v53 = vmax.f32 %v6124_v30, 0.0  ;;  %v6540_v46 = vld [vmem:[#allocation3 + $0x548] sm:$0xff]  ;;  %v6542_v30 = vld [vmem:[#allocation3 + $0x558] sm:$0xff] }
 0x8cf   :  { %v6367_v0 = vmax.f32 %v6126_v36, 0.0  ;;  %v6185_v47 = vadd.f32 %v6184_v25, %v12653_v5  ;;  %6908 = vmatprep.mubr.bf16.mxu0 %v12615_v24  ;;  %7360 = vmatprep.mubr.bf16.mxu1 %v12615_v24  ;;  %v6186_v14 = vpop.f32.mrb[241].mxu1 }
 0x8d0   :  { %v6368_v2 = vmax.f32 %v6128_v19, 0.0  ;;  %7408 = vmatpush1.bf16.msra.mxu1 %v6533_v61  ;;  %v6187_v48 = vadd.f32 %v6186_v14, %v12659_v22  ;;  %v6188_v39 = vpop.f32.mrb[242].mxu1  ;;  %6957 = vmatprep.subr.bf16.mxu0 %v6536_v38  ;;  %v6539_v19 = vld [vmem:[#allocation3 + $0x540] sm:$0xff] }
 0x8d1   :  { %v12713_v18 = vpack.c.bf16 %v6367_v0, %v6359_v7  ;;  %v6189_v8 = vadd.f32 %v6188_v39, %v12653_v5  ;;  %v6190_v33 = vpop.f32.mrb[243].mxu1  ;;  %7409 = vmatprep.subr.bf16.mxu1 %v6538_v37  ;;  %v6281_v45 = vmax.f32 %v6185_v47, 0.0  ;;  %v6541_v37 = vld [vmem:[#allocation3 + $0x550] sm:$0xff]  ;;  %v6544_v0 = vld [vmem:[#allocation3 + $0x568] sm:$0xff]  ;;  %v6546_v47 = vld [vmem:[#allocation3 + $0x578] sm:$0xff] }
 0x8d2   :  { %v12716_v36 = vpack.c.bf16 %v6368_v2, %v6360_v53  ;;  %v6191_v24 = vadd.f32 %v6190_v33, %v12659_v22  ;;  %6958 = vmatpush1.bf16.msra.mxu0 %v6535_v59  ;;  %v6282_v25 = vmax.f32 %v6187_v48, 0.0  ;;  %v6543_v48 = vld [vmem:[#allocation3 + $0x560] sm:$0xff] }
 0x8d3   :  { %v6289_v61 = vmax.f32 %v6189_v8, 0.0  ;;  %6959 = vmatprep.subr.bf16.mxu0 %v6540_v46  ;;  %v6548_v8 = vld [vmem:[#allocation3 + $0x588] sm:$0xff] }
 0x8d4   :  { %v6290_v38 = vmax.f32 %v6191_v24, 0.0  ;;  %7410 = vmatpush1.bf16.msra.mxu1 %v6537_v9 }
 0x8d5   :  { %v12719_v7 = vpack.c.bf16 %v6289_v61, %v6281_v45  ;;  %6909 = vmatmul.mubr.bf16.gmra.mrb[252].mxu0 %v12611_v43  ;;  %7411 = vmatprep.subr.bf16.mxu1 %v6542_v30  ;;  %v6550_v30 = vld [vmem:[#allocation3 + $0x598] sm:$0xff] }
 0x8d6   :  { %v12722_v14 = vpack.c.bf16 %v6290_v38, %v6282_v25  ;;  %6960 = vmatpush1.bf16.msra.mxu0 %v6539_v19  ;;  %7361 = vmatmul.mubr.bf16.gmra.mrb[28].mxu1 %v12611_v43  ;;  %v6194_v59 = vpop.f32.mrb[244].mxu1  ;;  %v6545_v43 = vld [vmem:[#allocation3 + $0x570] sm:$0xff] }
 0x8d7   :  { %v6195_v53 = vadd.f32 %v6194_v59, %v12653_v5  ;;  %6918 = vmatprep.mubr.bf16.mxu0 %v12635_v23  ;;  %7370 = vmatprep.mubr.bf16.mxu1 %v12635_v23  ;;  %v6196_v2 = vpop.f32.mrb[245].mxu1  ;;  %v6547_v23 = vld [vmem:[#allocation3 + $0x580] sm:$0xff] }
 0x8d8   :  { %7412 = vmatpush1.bf16.msra.mxu1 %v6541_v37  ;;  %v6197_v39 = vadd.f32 %v6196_v2, %v12659_v22  ;;  %v6198_v46 = vpop.f32.mrb[246].mxu1  ;;  %6961 = vmatprep.subr.bf16.mxu0 %v6544_v0  ;;  %v6549_v37 = vld [vmem:[#allocation3 + $0x590] sm:$0xff]  ;;  %v6552_v0 = vld [vmem:[#allocation3 + $0x5a8] sm:$0xff] }
 0x8d9   :  { %v6199_v33 = vadd.f32 %v6198_v46, %v12653_v5  ;;  %v6200_v9 = vpop.f32.mrb[247].mxu1  ;;  %7413 = vmatprep.subr.bf16.mxu1 %v6546_v47  ;;  %v6297_v45 = vmax.f32 %v6195_v53, 0.0  ;;  %v6554_v53 = vld [vmem:[#allocation3 + $0x5b8] sm:$0xff] }
 0x8da   :  { %v6201_v24 = vadd.f32 %v6200_v9, %v12659_v22  ;;  %6962 = vmatpush1.bf16.msra.mxu0 %v6543_v48  ;;  %v6298_v19 = vmax.f32 %v6197_v39, 0.0  ;;  %v6551_v39 = vld [vmem:[#allocation3 + $0x5a0] sm:$0xff] }
 0x8db   :  { %v6305_v61 = vmax.f32 %v6199_v33, 0.0  ;;  %6963 = vmatprep.subr.bf16.mxu0 %v6548_v8  ;;  %v6556_v33 = vld [vmem:[#allocation3 + $0x5c8] sm:$0xff] }
 0x8dc   :  { %v6306_v25 = vmax.f32 %v6201_v24, 0.0  ;;  %7414 = vmatpush1.bf16.msra.mxu1 %v6545_v43 }
 0x8dd   :  { %v12731_v38 = vpack.c.bf16 %v6305_v61, %v6297_v45  ;;  %6919 = vmatmul.mubr.bf16.gmra.mrb[0].mxu0 %v12631_v31  ;;  %7415 = vmatprep.subr.bf16.mxu1 %v6550_v30  ;;  %v6558_v30 = vld [vmem:[#allocation3 + $0x5d8] sm:$0xff] }
 0x8de   :  { %v12734_v59 = vpack.c.bf16 %v6306_v25, %v6298_v19  ;;  %6964 = vmatpush1.bf16.msra.mxu0 %v6547_v23  ;;  %7371 = vmatmul.mubr.bf16.gmra.mrb[32].mxu1 %v12631_v31  ;;  %v6204_v47 = vpop.f32.mrb[248].mxu1  ;;  %v6553_v31 = vld [vmem:[#allocation3 + $0x5b0] sm:$0xff] }
 0x8df   :  { %v6205_v2 = vadd.f32 %v6204_v47, %v12653_v5  ;;  %6928 = vmatprep.mubr.bf16.mxu0 %v12665_v29  ;;  %7380 = vmatprep.mubr.bf16.mxu1 %v12665_v29  ;;  %v6206_v48 = vpop.f32.mrb[249].mxu1  ;;  %v6555_v29 = vld [vmem:[#allocation3 + $0x5c0] sm:$0xff] }
 0x8e0   :  { %7416 = vmatpush1.bf16.msra.mxu1 %v6549_v37  ;;  %v6207_v46 = vadd.f32 %v6206_v48, %v12659_v22  ;;  %v6208_v8 = vpop.f32.mrb[250].mxu1  ;;  %6965 = vmatprep.subr.bf16.mxu0 %v6552_v0  ;;  %v6557_v37 = vld [vmem:[#allocation3 + $0x5d0] sm:$0xff]  ;;  %v6560_v0 = vld [vmem:[#allocation3 + $0x5e8] sm:$0xff] }
 0x8e1   :  { %v6209_v9 = vadd.f32 %v6208_v8, %v12653_v5  ;;  %v6210_v43 = vpop.f32.mrb[251].mxu1  ;;  %7417 = vmatprep.subr.bf16.mxu1 %v6554_v53  ;;  %v6313_v45 = vmax.f32 %v6205_v2, 0.0  ;;  %v6562_v2 = vld [vmem:[#allocation3 + $0x5f8] sm:$0xff] }
 0x8e2   :  { %v6211_v24 = vadd.f32 %v6210_v43, %v12659_v22  ;;  %6966 = vmatpush1.bf16.msra.mxu0 %v6551_v39  ;;  %v6314_v23 = vmax.f32 %v6207_v46, 0.0  ;;  %v6559_v46 = vld [vmem:[#allocation3 + $0x5e0] sm:$0xff] }
 0x8e3   :  { %v6321_v61 = vmax.f32 %v6209_v9, 0.0  ;;  %6967 = vmatprep.subr.bf16.mxu0 %v6556_v33  ;;  %v6564_v9 = vld [vmem:[#allocation3 + $0x608] sm:$0xff] }
 0x8e4   :  { %v6322_v19 = vmax.f32 %v6211_v24, 0.0  ;;  %7418 = vmatpush1.bf16.msra.mxu1 %v6553_v31 }
 0x8e5   :  { %v12743_v25 = vpack.c.bf16 %v6321_v61, %v6313_v45  ;;  %6929 = vmatmul.mubr.bf16.gmra.mrb[4].mxu0 %v12661_v13  ;;  %7419 = vmatprep.subr.bf16.mxu1 %v6558_v30  ;;  %v6566_v30 = vld [vmem:[#allocation3 + $0x618] sm:$0xff] }
 0x8e6   :  { %v12746_v47 = vpack.c.bf16 %v6322_v19, %v6314_v23  ;;  %6968 = vmatpush1.bf16.msra.mxu0 %v6555_v29  ;;  %7381 = vmatmul.mubr.bf16.gmra.mrb[36].mxu1 %v12661_v13  ;;  %v6214_v53 = vpop.f32.mrb[252].mxu1  ;;  %v6561_v13 = vld [vmem:[#allocation3 + $0x5f0] sm:$0xff]  ;;  %v6568_v19 = vld [vmem:[#allocation3 + $0x628] sm:$0xff] }
 0x8e7   :  { %v6215_v48 = vadd.f32 %v6214_v53, %v12653_v5  ;;  %6971 = vmatprep.mubr.bf16.mxu0 %v12566_v42  ;;  %7423 = vmatprep.mubr.bf16.mxu1 %v12566_v42  ;;  %v6216_v39 = vpop.f32.mrb[253].mxu1  ;;  %v6563_v42 = vld [vmem:[#allocation3 + $0x600] sm:$0xff] }
 0x8e8   :  { %7420 = vmatpush1.bf16.msra.mxu1 %v6557_v37  ;;  %v6217_v8 = vadd.f32 %v6216_v39, %v12659_v22  ;;  %v6218_v33 = vpop.f32.mrb[254].mxu1  ;;  %6969 = vmatprep.subr.bf16.mxu0 %v6560_v0  ;;  %v6565_v0 = vld [vmem:[#allocation3 + $0x610] sm:$0xff] }
 0x8e9   :  { %v6219_v43 = vadd.f32 %v6218_v33, %v12653_v5  ;;  %v6220_v31 = vpop.f32.mrb[255].mxu1  ;;  %7421 = vmatprep.subr.bf16.mxu1 %v6562_v2  ;;  %v6329_v45 = vmax.f32 %v6215_v48, 0.0  ;;  %v6570_v48 = vld [vmem:[#allocation3 + $0x638] sm:$0xff] }
 0x8ea   :  { %v6221_v24 = vadd.f32 %v6220_v31, %v12659_v22  ;;  %6970 = vmatpush1.bf16.msra.mxu0 %v6559_v46  ;;  %v6330_v29 = vmax.f32 %v6217_v8, 0.0  ;;  %v6567_v8 = vld [vmem:[#allocation3 + $0x620] sm:$0xff] }
 0x8eb   :  { %v6337_v61 = vmax.f32 %v6219_v43, 0.0  ;;  %7052 = vmatprep.subr.bf16.mxu0 %v6564_v9  ;;  %v6572_v43 = vld [vmem:[#allocation3 + $0x648] sm:$0xff] }
 0x8ec   :  { %v6338_v23 = vmax.f32 %v6221_v24, 0.0  ;;  %7422 = vmatpush1.bf16.msra.mxu1 %v6561_v13  ;;  %v6569_v24 = vld [vmem:[#allocation3 + $0x630] sm:$0xff] }
 0x8ed   :  { %v12755_v37 = vpack.c.bf16 %v6337_v61, %v6329_v45  ;;  %6972 = vmatmul.mubr.bf16.vlgmr.msra.gmra.mrb[232].mxu0 %v12563_v3  ;;  %7504 = vmatprep.subr.bf16.mxu1 %v6566_v30 }
 0x8ee   :  { %v12758_v53 = vpack.c.bf16 %v6338_v23, %v6330_v29  ;;  %7053 = vmatpush1.bf16.msra.mxu0 %v6563_v42  ;;  %v6224_v2 = vpop.f32.mrb[0].mxu1  ;;  %6981 = vmatprep.mubr.bf16.mxu0 %v12586_v16  ;;  %v6571_v42 = vld [vmem:[#allocation3 + $0x640] sm:$0xff]  ;;  %v6576_v23 = vld [vmem:[#allocation3 + $0x668] sm:$0xff] }
 0x8ef   :  { %7424 = vmatmul.mubr.bf16.vlgmr.msra.gmra.mrb[8].mxu1 %v12563_v3  ;;  %v6225_v39 = vadd.f32 %v6224_v2, %v12653_v5  ;;  %v6226_v46 = vpop.f32.mrb[1].mxu1  ;;  %7054 = vmatprep.subr.bf16.mxu0 %v6568_v19  ;;  %v6574_v3 = vld [vmem:[#allocation3 + $0x658] sm:$0xff] }
 0x8f0   :  { %7433 = vmatprep.mubr.bf16.mxu1 %v12586_v16  ;;  %7505 = vmatpush1.bf16.msra.mxu1 %v6565_v0  ;;  %v6227_v33 = vadd.f32 %v6226_v46, %v12659_v22  ;;  %v6228_v9 = vpop.f32.mrb[2].mxu1  ;;  %v6573_v0 = vld [vmem:[#allocation3 + $0x650] sm:$0xff] }
 0x8f1   :  { %v6229_v31 = vadd.f32 %v6228_v9, %v12653_v5  ;;  %v6230_v13 = vpop.f32.mrb[3].mxu1  ;;  %7506 = vmatprep.subr.bf16.mxu1 %v6570_v48  ;;  %v6345_v45 = vmax.f32 %v6225_v39, 0.0  ;;  %v6578_v39 = vld [vmem:[#allocation3 + $0x678] sm:$0xff] }
 0x8f2   :  { %v6231_v30 = vadd.f32 %v6230_v13, %v12659_v22  ;;  %7055 = vmatpush1.bf16.msra.mxu0 %v6567_v8  ;;  %v6346_v29 = vmax.f32 %v6227_v33, 0.0  ;;  %v6575_v33 = vld [vmem:[#allocation3 + $0x660] sm:$0xff] }
 0x8f3   :  { %v6353_v61 = vmax.f32 %v6229_v31, 0.0  ;;  %7056 = vmatprep.subr.bf16.mxu0 %v6572_v43  ;;  %v6580_v31 = vld [vmem:[#allocation3 + $0x688] sm:$0xff] }
 0x8f4   :  { %v6354_v16 = vmax.f32 %v6231_v30, 0.0  ;;  %7507 = vmatpush1.bf16.msra.mxu1 %v6569_v24  ;;  %v6577_v30 = vld [vmem:[#allocation3 + $0x670] sm:$0xff] }
 0x8f5   :  { %v12767_v19 = vpack.c.bf16 %v6353_v61, %v6345_v45  ;;  %6982 = vmatmul.mubr.bf16.gmra.mrb[236].mxu0 %v12583_v56  ;;  %7508 = vmatprep.subr.bf16.mxu1 %v6574_v3 }
 0x8f6   :  { %v12770_v2 = vpack.c.bf16 %v6354_v16, %v6346_v29  ;;  %7057 = vmatpush1.bf16.msra.mxu0 %v6571_v42  ;;  %v6234_v48 = vpop.f32.mrb[4].mxu1  ;;  %6991 = vmatprep.mubr.bf16.mxu0 %v12606_v62  ;;  %v6579_v42 = vld [vmem:[#allocation3 + $0x680] sm:$0xff]  ;;  %v6584_v16 = vld [vmem:[#allocation3 + $0x6a8] sm:$0xff] }
 0x8f7   :  { %7434 = vmatmul.mubr.bf16.gmra.mrb[12].mxu1 %v12583_v56  ;;  %v6235_v46 = vadd.f32 %v6234_v48, %v12653_v5  ;;  %v6236_v8 = vpop.f32.mrb[5].mxu1  ;;  %7058 = vmatprep.subr.bf16.mxu0 %v6576_v23  ;;  %v6582_v56 = vld [vmem:[#allocation3 + $0x698] sm:$0xff]  ;;  %v6583_v48 = vld [vmem:[#allocation3 + $0x6a0] sm:$0xff] }
 0x8f8   :  { %7443 = vmatprep.mubr.bf16.mxu1 %v12606_v62  ;;  %7509 = vmatpush1.bf16.msra.mxu1 %v6573_v0  ;;  %v6237_v9 = vadd.f32 %v6236_v8, %v12659_v22  ;;  %v6238_v43 = vpop.f32.mrb[6].mxu1  ;;  %v6590_v8 = vld [vmem:[#allocation3 + $0x6d8] sm:$0xff] }
 0x8f9   :  { %v6239_v13 = vadd.f32 %v6238_v43, %v12653_v5  ;;  %v6240_v24 = vpop.f32.mrb[7].mxu1  ;;  %7510 = vmatprep.subr.bf16.mxu1 %v6578_v39  ;;  %v6361_v45 = vmax.f32 %v6235_v46, 0.0  ;;  %v6581_v5 = vld [vmem:[#allocation3 + $0x690] sm:$0xff]  ;;  %v6588_v39 = vld [vmem:[#allocation3 + $0x6c8] sm:$0xff] }
 0x8fa   :  { %v6241_v3 = vadd.f32 %v6240_v24, %v12659_v22  ;;  %7059 = vmatpush1.bf16.msra.mxu0 %v6575_v33  ;;  %v6362_v29 = vmax.f32 %v6237_v9, 0.0  ;;  %v6586_v22 = vld [vmem:[#allocation3 + $0x6b8] sm:$0xff]  ;;  %v6585_v46 = vld [vmem:[#allocation3 + $0x6b0] sm:$0xff]  ;;  %v6587_v33 = vld [vmem:[#allocation3 + $0x6c0] sm:$0xff] }
 0x8fb   :  { %v6369_v61 = vmax.f32 %v6239_v13, 0.0  ;;  %7060 = vmatprep.subr.bf16.mxu0 %v6580_v31  ;;  %v6592_v9 = vld [vmem:[#allocation3 + $0x6e8] sm:$0xff]  ;;  %v6589_v43 = vld [vmem:[#allocation3 + $0x6d0] sm:$0xff]  ;;  %v6598_v24 = vld [vmem:[#allocation3 + $0x718] sm:$0xff] }
 0x8fc   :  { %v6370_v62 = vmax.f32 %v6241_v3, 0.0  ;;  %7511 = vmatpush1.bf16.msra.mxu1 %v6577_v30  ;;  %v6596_v31 = vld [vmem:[#allocation3 + $0x708] sm:$0xff]  ;;  %v6593_v13 = vld [vmem:[#allocation3 + $0x6f0] sm:$0xff]  ;;  %v6595_v30 = vld [vmem:[#allocation3 + $0x700] sm:$0xff] }
 0x8fd   :  { %v12779_v23 = vpack.c.bf16 %v6369_v61, %v6361_v45  ;;  %6992 = vmatmul.mubr.bf16.gmra.mrb[240].mxu0 %v12603_v4  ;;  %7512 = vmatprep.subr.bf16.mxu1 %v6582_v56  ;;  %v6600_v3 = vld [vmem:[#allocation3 + $0x728] sm:$0xff]  ;;  %v6597_v56 = vld [vmem:[#allocation3 + $0x710] sm:$0xff] }
 0x8fe   :  { %v12782_v0 = vpack.c.bf16 %v6370_v62, %v6362_v29  ;;  %7061 = vmatpush1.bf16.msra.mxu0 %v6579_v42  ;;  %7001 = vmatprep.mubr.bf16.mxu0 %v12626_v28  ;;  %v6604_v45 = vld [vmem:[#allocation3 + $0x748] sm:$0xff]  ;;  %v6601_v61 = vld [vmem:[#allocation3 + $0x730] sm:$0xff]  ;;  %v6606_v42 = vld [vmem:[#allocation3 + $0x758] sm:$0xff] }
 0x8ff   :  { %7444 = vmatmul.mubr.bf16.gmra.mrb[16].mxu1 %v12603_v4  ;;  %7062 = vmatprep.subr.bf16.mxu0 %v6584_v16  ;;  %v6594_v4 = vld [vmem:[#allocation3 + $0x6f8] sm:$0xff]  ;;  %v6603_v29 = vld [vmem:[#allocation3 + $0x740] sm:$0xff]  ;;  %v6608_v62 = vld [vmem:[#allocation3 + $0x768] sm:$0xff] }
 0x900   :  { %7453 = vmatprep.mubr.bf16.mxu1 %v12626_v28  ;;  %7513 = vmatpush1.bf16.msra.mxu1 %v6581_v5  ;;  %v6591_v28 = vld [vmem:[#allocation3 + $0x6e0] sm:$0xff]  ;;  %v6605_v16 = vld [vmem:[#allocation3 + $0x750] sm:$0xff]  ;;  %v6612_v5 = vld [vmem:[#allocation3 + $0x788] sm:$0xff] }
 0x901   :  { %7514 = vmatprep.subr.bf16.mxu1 %v6586_v22  ;;  %v6609_v22 = vld [vmem:[#allocation3 + $0x770] sm:$0xff] }
 0x902   :  { %7063 = vmatpush1.bf16.msra.mxu0 %v6583_v48  ;;  %v6614_v48 = vld [vmem:[#allocation3 + $0x798] sm:$0xff] }
 0x903   :  { %7064 = vmatprep.subr.bf16.mxu0 %v6588_v39  ;;  %v6611_v39 = vld [vmem:[#allocation3 + $0x780] sm:$0xff] }
 0x904   :  { %7515 = vmatpush1.bf16.msra.mxu1 %v6585_v46  ;;  %v6616_v46 = vld [vmem:[#allocation3 + $0x7a8] sm:$0xff] }
 0x905   :  { %7002 = vmatmul.mubr.bf16.gmra.mrb[244].mxu0 %v12623_v44  ;;  %7516 = vmatprep.subr.bf16.mxu1 %v6590_v8  ;;  %v6613_v8 = vld [vmem:[#allocation3 + $0x790] sm:$0xff] }
 0x906   :  { %7065 = vmatpush1.bf16.msra.mxu0 %v6587_v33  ;;  %7011 = vmatprep.mubr.bf16.mxu0 %v12646_v57  ;;  %v6620_v33 = vld [vmem:[#allocation3 + $0x7c8] sm:$0xff] }
 0x907   :  { %7454 = vmatmul.mubr.bf16.gmra.mrb[20].mxu1 %v12623_v44  ;;  %7066 = vmatprep.subr.bf16.mxu0 %v6592_v9  ;;  %v6602_v44 = vld [vmem:[#allocation3 + $0x738] sm:$0xff]  ;;  %v6617_v9 = vld [vmem:[#allocation3 + $0x7b0] sm:$0xff] }
 0x908   :  { %7463 = vmatprep.mubr.bf16.mxu1 %v12646_v57  ;;  %7517 = vmatpush1.bf16.msra.mxu1 %v6589_v43  ;;  %v6599_v57 = vld [vmem:[#allocation3 + $0x720] sm:$0xff]  ;;  %v6622_v43 = vld [vmem:[#allocation3 + $0x7d8] sm:$0xff] }
 0x909   :  { %7518 = vmatprep.subr.bf16.mxu1 %v6594_v4  ;;  %v6619_v4 = vld [vmem:[#allocation3 + $0x7c0] sm:$0xff] }
 0x90a   :  { %7067 = vmatpush1.bf16.msra.mxu0 %v6591_v28  ;;  %v6624_v28 = vld [vmem:[#allocation3 + $0x7e8] sm:$0xff] }
 0x90b   :  { %7068 = vmatprep.subr.bf16.mxu0 %v6596_v31  ;;  %v6621_v31 = vld [vmem:[#allocation3 + $0x7d0] sm:$0xff] }
 0x90c   :  { %7519 = vmatpush1.bf16.msra.mxu1 %v6593_v13  ;;  %v7682_v13 = vld [vmem:[#allocation4 + $0x8] sm:$0xff] }
 0x90d   :  { %7012 = vmatmul.mubr.bf16.gmra.mrb[248].mxu0 %v12643_v52  ;;  %7520 = vmatprep.subr.bf16.mxu1 %v6598_v24  ;;  %v6625_v24 = vld [vmem:[#allocation3 + $0x7f0] sm:$0xff] }
 0x90e   :  { %7069 = vmatpush1.bf16.msra.mxu0 %v6595_v30  ;;  %7021 = vmatprep.mubr.bf16.mxu0 %v12676_v20  ;;  %v7681_v30 = vld [vmem:[#allocation4] sm:$0xff] }
 0x90f   :  { %7464 = vmatmul.mubr.bf16.gmra.mrb[24].mxu1 %v12643_v52  ;;  %7070 = vmatprep.subr.bf16.mxu0 %v6600_v3  ;;  %v6610_v52 = vld [vmem:[#allocation3 + $0x778] sm:$0xff] }
 0x910   :  { %7473 = vmatprep.mubr.bf16.mxu1 %v12676_v20  ;;  %7521 = vmatpush1.bf16.msra.mxu1 %v6597_v56  ;;  %v6607_v20 = vld [vmem:[#allocation3 + $0x760] sm:$0xff]  ;;  %v7684_v3 = vld [vmem:[#allocation4 + $0x18] sm:$0xff] }
 0x911   :  { %7522 = vmatprep.subr.bf16.mxu1 %v6602_v44  ;;  %v7685_v56 = vld [vmem:[#allocation4 + $0x20] sm:$0xff]  ;;  %v7688_v44 = vld [vmem:[#allocation4 + $0x38] sm:$0xff] }
 0x912   :  { %7071 = vmatpush1.bf16.msra.mxu0 %v6599_v57  ;;  %v7687_v57 = vld [vmem:[#allocation4 + $0x30] sm:$0xff] }
 0x913   :  { %7072 = vmatprep.subr.bf16.mxu0 %v6604_v45  ;;  %v7692_v45 = vld [vmem:[#allocation4 + $0x58] sm:$0xff] }
 0x914   :  { %7523 = vmatpush1.bf16.msra.mxu1 %v6601_v61  ;;  %v7691_v61 = vld [vmem:[#allocation4 + $0x50] sm:$0xff] }
 0x915   :  { %7022 = vmatmul.mubr.bf16.gmra.mrb[252].mxu0 %v12673_v63  ;;  %7524 = vmatprep.subr.bf16.mxu1 %v6606_v42  ;;  %v7696_v42 = vld [vmem:[#allocation4 + $0x78] sm:$0xff] }
 0x916   :  { %7073 = vmatpush1.bf16.msra.mxu0 %v6603_v29  ;;  %7031 = vmatprep.mubr.bf16.mxu0 %v12696_v21  ;;  %v7695_v29 = vld [vmem:[#allocation4 + $0x70] sm:$0xff] }
 0x917   :  { %7474 = vmatmul.mubr.bf16.gmra.mrb[28].mxu1 %v12673_v63  ;;  %7074 = vmatprep.subr.bf16.mxu0 %v6608_v62  ;;  %v6618_v63 = vld [vmem:[#allocation3 + $0x7b8] sm:$0xff] }
 0x918   :  { %7483 = vmatprep.mubr.bf16.mxu1 %v12696_v21  ;;  %7525 = vmatpush1.bf16.msra.mxu1 %v6605_v16  ;;  %v6615_v21 = vld [vmem:[#allocation3 + $0x7a0] sm:$0xff]  ;;  %v7700_v62 = vld [vmem:[#allocation4 + $0x98] sm:$0xff]  ;;  %v7699_v16 = vld [vmem:[#allocation4 + $0x90] sm:$0xff] }
 0x919   :  { %7526 = vmatprep.subr.bf16.mxu1 %v6610_v52  ;;  %v7704_v52 = vld [vmem:[#allocation4 + $0xb8] sm:$0xff] }
 0x91a   :  { %7075 = vmatpush1.bf16.msra.mxu0 %v6607_v20  ;;  %v7703_v20 = vld [vmem:[#allocation4 + $0xb0] sm:$0xff] }
 0x91b   :  { %7076 = vmatprep.subr.bf16.mxu0 %v6612_v5  ;;  %v7708_v5 = vld [vmem:[#allocation4 + $0xd8] sm:$0xff] }
 0x91c   :  { %7527 = vmatpush1.bf16.msra.mxu1 %v6609_v22  ;;  %v7707_v22 = vld [vmem:[#allocation4 + $0xd0] sm:$0xff] }
 0x91d   :  { %7032 = vmatmul.mubr.bf16.gmra.mrb[0].mxu0 %v12693_v6  ;;  %7528 = vmatprep.subr.bf16.mxu1 %v6614_v48  ;;  %v7712_v48 = vld [vmem:[#allocation4 + $0xf8] sm:$0xff] }
 0x91e   :  { %7077 = vmatpush1.bf16.msra.mxu0 %v6611_v39  ;;  %7041 = vmatprep.mubr.bf16.mxu0 %v12716_v36  ;;  %v7711_v39 = vld [vmem:[#allocation4 + $0xf0] sm:$0xff] }
 0x91f   :  { %7484 = vmatmul.mubr.bf16.gmra.mrb[32].mxu1 %v12693_v6  ;;  %7078 = vmatprep.subr.bf16.mxu0 %v6616_v46  ;;  %v6626_v6 = vld [vmem:[#allocation3 + $0x7f8] sm:$0xff]  ;;  %v7714_v46 = vld [vmem:[#allocation4 + $0x108] sm:$0xff] }
 0x920   :  { %7493 = vmatprep.mubr.bf16.mxu1 %v12716_v36  ;;  %7529 = vmatpush1.bf16.msra.mxu1 %v6613_v8  ;;  %v6623_v36 = vld [vmem:[#allocation3 + $0x7e0] sm:$0xff] }
 0x921   :  { %7530 = vmatprep.subr.bf16.mxu1 %v6618_v63 }
 0x922   :  { %7079 = vmatpush1.bf16.msra.mxu0 %v6615_v21 }
 0x923   :  { %7080 = vmatprep.subr.bf16.mxu0 %v6620_v33 }
 0x924   :  { %7531 = vmatpush1.bf16.msra.mxu1 %v6617_v9 }
 0x925   :  { %7042 = vmatmul.mubr.bf16.gmra.mrb[4].mxu0 %v12713_v18  ;;  %7532 = vmatprep.subr.bf16.mxu1 %v6622_v43 }
 0x926   :  { %7081 = vmatpush1.bf16.msra.mxu0 %v6619_v4  ;;  %7084 = vmatprep.mubr.bf16.mxu0 %v12685_v15 }
 0x927   :  { %7494 = vmatmul.mubr.bf16.gmra.mrb[36].mxu1 %v12713_v18  ;;  %7082 = vmatprep.subr.bf16.mxu0 %v6624_v28  ;;  %v7683_v18 = vld [vmem:[#allocation4 + $0x10] sm:$0xff] }
 0x928   :  { %7533 = vmatpush1.bf16.msra.mxu1 %v6621_v31  ;;  %7536 = vmatprep.mubr.bf16.mxu1 %v12685_v15  ;;  %v7686_v15 = vld [vmem:[#allocation4 + $0x28] sm:$0xff] }
 0x929   :  { %7534 = vmatprep.subr.bf16.mxu1 %v6626_v6 }
 0x92a   :  { %7083 = vmatpush1.bf16.msra.mxu0 %v6623_v36 }
 0x92b   :  { %7789 = vmatprep.subr.bf16.mxu0 %v7682_v13 }
 0x92c   :  { %7535 = vmatpush1.bf16.msra.mxu1 %v6625_v24  ;;  %v8055_v24 = vld [vmem:[#allocation5 + $0x40] sm:$0xff] }
 0x92d   :  { %7085 = vmatmul.mubr.bf16.vlgmr.msra.gmra.mrb[232].mxu0 %v12681_v12  ;;  %9324 = vmatprep.subr.bf16.mxu1 %v8055_v24 }
 0x92e   :  { %7094 = vmatprep.mubr.bf16.mxu0 %v12705_v58  ;;  %7790 = vmatpush1.bf16.msra.mxu0 %v7681_v30  ;;  %v8056_v30 = vld [vmem:[#allocation5 + $0x48] sm:$0xff] }
 0x92f   :  { %7537 = vmatmul.mubr.bf16.vlgmr.msra.gmra.mrb[8].mxu1 %v12681_v12  ;;  %7791 = vmatprep.subr.bf16.mxu0 %v7684_v3  ;;  %v7690_v12 = vld [vmem:[#allocation4 + $0x48] sm:$0xff] }
 0x930   :  { %7546 = vmatprep.mubr.bf16.mxu1 %v12705_v58  ;;  %v7689_v58 = vld [vmem:[#allocation4 + $0x40] sm:$0xff] }
 0x932   :  { %7792 = vmatpush1.bf16.msra.mxu0 %v7683_v18 }
 0x933   :  { %7793 = vmatprep.subr.bf16.mxu0 %v7686_v15 }
 0x935   :  { %7095 = vmatmul.mubr.bf16.gmra.mrb[236].mxu0 %v12701_v50 }
 0x936   :  { %7104 = vmatprep.mubr.bf16.mxu0 %v12722_v14  ;;  %7794 = vmatpush1.bf16.msra.mxu0 %v7685_v56 }
 0x937   :  { %7547 = vmatmul.mubr.bf16.gmra.mrb[12].mxu1 %v12701_v50  ;;  %7795 = vmatprep.subr.bf16.mxu0 %v7688_v44  ;;  %v7694_v50 = vld [vmem:[#allocation4 + $0x68] sm:$0xff] }
 0x938   :  { %7556 = vmatprep.mubr.bf16.mxu1 %v12722_v14  ;;  %v7693_v14 = vld [vmem:[#allocation4 + $0x60] sm:$0xff] }
 0x93a   :  { %7796 = vmatpush1.bf16.msra.mxu0 %v7687_v57 }
 0x93b   :  { %7797 = vmatprep.subr.bf16.mxu0 %v7690_v12 }
 0x93d   :  { %7105 = vmatmul.mubr.bf16.gmra.mrb[240].mxu0 %v12719_v7 }
 0x93e   :  { %7114 = vmatprep.mubr.bf16.mxu0 %v12734_v59  ;;  %7798 = vmatpush1.bf16.msra.mxu0 %v7689_v58 }
 0x93f   :  { %7557 = vmatmul.mubr.bf16.gmra.mrb[16].mxu1 %v12719_v7  ;;  %7799 = vmatprep.subr.bf16.mxu0 %v7692_v45  ;;  %v7698_v7 = vld [vmem:[#allocation4 + $0x88] sm:$0xff] }
 0x940   :  { %7566 = vmatprep.mubr.bf16.mxu1 %v12734_v59  ;;  %v7697_v59 = vld [vmem:[#allocation4 + $0x80] sm:$0xff] }
 0x942   :  { %7800 = vmatpush1.bf16.msra.mxu0 %v7691_v61  ;;  %v8048_v61 = vld [vmem:[#allocation5 + $0x8] sm:$0xff] }
 0x943   :  { %7801 = vmatprep.subr.bf16.mxu0 %v7694_v50 }
 0x945   :  { %7115 = vmatmul.mubr.bf16.gmra.mrb[244].mxu0 %v12731_v38 }
 0x946   :  { %7124 = vmatprep.mubr.bf16.mxu0 %v12746_v47  ;;  %7802 = vmatpush1.bf16.msra.mxu0 %v7693_v14 }
 0x947   :  { %7567 = vmatmul.mubr.bf16.gmra.mrb[20].mxu1 %v12731_v38  ;;  %7803 = vmatprep.subr.bf16.mxu0 %v7696_v42  ;;  %v7702_v38 = vld [vmem:[#allocation4 + $0xa8] sm:$0xff] }
 0x948   :  { %7576 = vmatprep.mubr.bf16.mxu1 %v12746_v47  ;;  %v7701_v47 = vld [vmem:[#allocation4 + $0xa0] sm:$0xff] }
 0x94a   :  { %7804 = vmatpush1.bf16.msra.mxu0 %v7695_v29  ;;  %v8057_v29 = vld [vmem:[#allocation5 + $0x50] sm:$0xff] }
 0x94b   :  { %7805 = vmatprep.subr.bf16.mxu0 %v7698_v7 }
 0x94d   :  { %7125 = vmatmul.mubr.bf16.gmra.mrb[248].mxu0 %v12743_v25 }
 0x94e   :  { %7134 = vmatprep.mubr.bf16.mxu0 %v12758_v53  ;;  %7806 = vmatpush1.bf16.msra.mxu0 %v7697_v59 }
 0x94f   :  { %7577 = vmatmul.mubr.bf16.gmra.mrb[24].mxu1 %v12743_v25  ;;  %7807 = vmatprep.subr.bf16.mxu0 %v7700_v62  ;;  %v7706_v25 = vld [vmem:[#allocation4 + $0xc8] sm:$0xff] }
 0x950   :  { %7586 = vmatprep.mubr.bf16.mxu1 %v12758_v53  ;;  %v7705_v53 = vld [vmem:[#allocation4 + $0xc0] sm:$0xff] }
 0x952   :  { %7808 = vmatpush1.bf16.msra.mxu0 %v7699_v16 }
 0x953   :  { %7809 = vmatprep.subr.bf16.mxu0 %v7702_v38 }
 0x955   :  { %7135 = vmatmul.mubr.bf16.gmra.mrb[252].mxu0 %v12755_v37 }
 0x956   :  { %7144 = vmatprep.mubr.bf16.mxu0 %v12770_v2  ;;  %7810 = vmatpush1.bf16.msra.mxu0 %v7701_v47 }
 0x957   :  { %7587 = vmatmul.mubr.bf16.gmra.mrb[28].mxu1 %v12755_v37  ;;  %7811 = vmatprep.subr.bf16.mxu0 %v7704_v52  ;;  %v7710_v37 = vld [vmem:[#allocation4 + $0xe8] sm:$0xff] }
 0x958   :  { %7596 = vmatprep.mubr.bf16.mxu1 %v12770_v2  ;;  %v7709_v2 = vld [vmem:[#allocation4 + $0xe0] sm:$0xff] }
 0x95a   :  { %7812 = vmatpush1.bf16.msra.mxu0 %v7703_v20  ;;  %v7713_v20 = vld [vmem:[#allocation4 + $0x100] sm:$0xff] }
 0x95b   :  { %7813 = vmatprep.subr.bf16.mxu0 %v7706_v25 }
 0x95d   :  { %7145 = vmatmul.mubr.bf16.gmra.mrb[0].mxu0 %v12767_v19 }
 0x95e   :  { %7154 = vmatprep.mubr.bf16.mxu0 %v12782_v0  ;;  %7814 = vmatpush1.bf16.msra.mxu0 %v7705_v53 }
 0x95f   :  { %7597 = vmatmul.mubr.bf16.gmra.mrb[32].mxu1 %v12767_v19  ;;  %7815 = vmatprep.subr.bf16.mxu0 %v7708_v5  ;;  %v6691_v19 = vld [vmem:[#allocation13 + $0x18] sm:$0xf] }
 0x960   :  { %7606 = vmatprep.mubr.bf16.mxu1 %v12782_v0  ;;  %v12838_v8 = vrot.slane %v6691_v19, %v11098_v49  ;;  %v12841_v0 = vrot.slane %v6691_v19, %v13278_v10  ;;  %v12844_v63 = vrot.slane %v6691_v19, %v13277_v40  ;;  %v12847_v21 = vrot.slane %v6691_v19, %v13279_v27  ;;  %v8047_v40 = vld [vmem:[#allocation5] sm:$0xff] }
 0x961   :  { %9325 = vmatpush3.bf16.msra.mxu1 %v8047_v40 }
 0x962   :  { %7816 = vmatpush1.bf16.msra.mxu0 %v7707_v22  ;;  %9326 = vmatprep.subr.bf16.mxu1 %v8056_v30  ;;  %v7718_v30 = vld [vmem:[#allocation4 + $0x128] sm:$0xff] }
 0x963   :  { %7817 = vmatprep.subr.bf16.mxu0 %v7710_v37  ;;  %v7716_v37 = vld [vmem:[#allocation4 + $0x118] sm:$0xff] }
 0x965   :  { %7155 = vmatmul.mubr.bf16.gmra.mrb[4].mxu0 %v12779_v23  ;;  %9327 = vmatpush3.bf16.msra.mxu1 %v8048_v61 }
 0x966   :  { %7818 = vmatpush1.bf16.msra.mxu0 %v7709_v2  ;;  %9328 = vmatprep.subr.bf16.mxu1 %v8057_v29  ;;  %v8049_v2 = vld [vmem:[#allocation5 + $0x10] sm:$0xff] }
 0x967   :  { %7607 = vmatmul.mubr.bf16.gmra.mrb[36].mxu1 %v12779_v23  ;;  %7819 = vmatprep.subr.bf16.mxu0 %v7712_v48 }
 0x969   :  { %9329 = vmatpush3.bf16.msra.mxu1 %v8049_v2 }
 0x96a   :  { %7820 = vmatpush1.bf16.msra.mxu0 %v7711_v39 }
 0x96b   :  { %7902 = vmatprep.subr.bf16.mxu0 %v7714_v46 }
 0xa00   :  { %v7086_v23 = vpop.f32.mrb[232].mxu0 }
 0xa01   :  { %v9598_v33 = vadd.f32 %v7086_v23, %v12838_v8  ;;  %v7088_v9 = vpop.f32.mrb[233].mxu0  ;;  %v8058_v23 = vld [vmem:[#allocation5 + $0x58] sm:$0xff] }
 0xa02   :  { %v7538_v43 = vpop.f32.mrb[8].mxu1  ;;  %v9599_v4 = vadd.f32 %v7088_v9, %v12841_v0  ;;  %v7090_v28 = vpop.f32.mrb[234].mxu0  ;;  %9330 = vmatprep.subr.bf16.mxu1 %v8058_v23  ;;  %v7719_v23 = vld [vmem:[#allocation4 + $0x130] sm:$0xff] }
 0xa03   :  { %v9630_v31 = vadd.f32 %v7538_v43, %v12844_v63  ;;  %v7540_v6 = vpop.f32.mrb[9].mxu1  ;;  %v9600_v36 = vadd.f32 %v7090_v28, %v12838_v8  ;;  %v7092_v13 = vpop.f32.mrb[235].mxu0  ;;  %v7617_v15 = vmax.f32 %v9598_v33, 0.0 }
 0xa04   :  { %v9631_v3 = vadd.f32 %v7540_v6, %v12847_v21  ;;  %v7542_v27 = vpop.f32.mrb[10].mxu1  ;;  %v9601_v18 = vadd.f32 %v7092_v13, %v12841_v0  ;;  %v7618_v12 = vmax.f32 %v9599_v4, 0.0 }
 0xa05   :  { %v7621_v56 = vmax.f32 %v9600_v36, 0.0  ;;  %v9632_v44 = vadd.f32 %v7542_v27, %v12844_v63  ;;  %v7544_v57 = vpop.f32.mrb[11].mxu1  ;;  %v7619_v50 = vmax.f32 %v9630_v31, 0.0  ;;  %v7715_v36 = vld [vmem:[#allocation4 + $0x110] sm:$0xff] }
 0xa06   :  { %v7622_v58 = vmax.f32 %v9601_v18, 0.0  ;;  %v9633_v45 = vadd.f32 %v7544_v57, %v12847_v21  ;;  %v7620_v7 = vmax.f32 %v9631_v3, 0.0  ;;  %v8050_v3 = vld [vmem:[#allocation5 + $0x18] sm:$0xff] }
 0xa07   :  { %v7745_v14 = vpack.c.bf16 %v7621_v56, %v7617_v15  ;;  %v7623_v42 = vmax.f32 %v9632_v44, 0.0  ;;  %v8059_v56 = vld [vmem:[#allocation5 + $0x60] sm:$0xff]  ;;  %9331 = vmatpush3.bf16.msra.mxu1 %v8050_v3 }
 0xa08   :  { %v7746_v59 = vpack.c.bf16 %v7622_v58, %v7618_v12  ;;  %v7624_v62 = vmax.f32 %v9633_v45, 0.0  ;;  %v7096_v16 = vpop.f32.mrb[236].mxu0  ;;  %9332 = vmatprep.subr.bf16.mxu1 %v8059_v56  ;;  %v7721_v56 = vld [vmem:[#allocation4 + $0x140] sm:$0xff] }
 0xa09   :  { %v12857_v38 = vpack.c.bf16 %v7623_v42, %v7619_v50  ;;  %v9602_v47 = vadd.f32 %v7096_v16, %v12838_v8  ;;  %v7098_v52 = vpop.f32.mrb[237].mxu0  ;;  %v8051_v16 = vld [vmem:[#allocation5 + $0x20] sm:$0xff] }
 0xa0a   :  { %v12860_v25 = vpack.c.bf16 %v7624_v62, %v7620_v7  ;;  %v7548_v53 = vpop.f32.mrb[12].mxu1  ;;  %v9603_v5 = vadd.f32 %v7098_v52, %v12841_v0  ;;  %v7100_v22 = vpop.f32.mrb[238].mxu0  ;;  %7821 = vmatprep.mubr.bf16.mxu0 %v7746_v59  ;;  %v7720_v62 = vld [vmem:[#allocation4 + $0x138] sm:$0xff] }
 0xa0b   :  { %v9634_v48 = vadd.f32 %v7548_v53, %v12844_v63  ;;  %v7550_v39 = vpop.f32.mrb[13].mxu1  ;;  %v9604_v46 = vadd.f32 %v7100_v22, %v12838_v8  ;;  %v7102_v19 = vpop.f32.mrb[239].mxu0  ;;  %7822 = vmatmul.mubr.bf16.vlgmr.msra.gmra.mrb[8].mxu0 %v7745_v14  ;;  %v7625_v4 = vmax.f32 %v9602_v47, 0.0  ;;  %v7717_v14 = vld [vmem:[#allocation4 + $0x120] sm:$0xff]  ;;  %9333 = vmatpush3.bf16.msra.mxu1 %v8051_v16 }
 0xa0c   :  { %v9635_v33 = vadd.f32 %v7550_v39, %v12847_v21  ;;  %v7552_v9 = vpop.f32.mrb[14].mxu1  ;;  %v9605_v43 = vadd.f32 %v7102_v19, %v12841_v0  ;;  %7903 = vmatpush1.bf16.msra.mxu0 %v7713_v20  ;;  %v7626_v13 = vmax.f32 %v9603_v5, 0.0  ;;  %v8060_v5 = vld [vmem:[#allocation5 + $0x68] sm:$0xff] }
 0xa0d   :  { %v7629_v28 = vmax.f32 %v9604_v46, 0.0  ;;  %v9636_v31 = vadd.f32 %v7552_v9, %v12844_v63  ;;  %v7554_v6 = vpop.f32.mrb[15].mxu1  ;;  %7904 = vmatprep.subr.bf16.mxu0 %v7716_v37  ;;  %v7627_v27 = vmax.f32 %v9634_v48, 0.0  ;;  %9334 = vmatprep.subr.bf16.mxu1 %v8060_v5 }
 0xa0e   :  { %v7630_v24 = vmax.f32 %v9605_v43, 0.0  ;;  %v9637_v40 = vadd.f32 %v7554_v6, %v12847_v21  ;;  %v7628_v44 = vmax.f32 %v9635_v33, 0.0 }
 0xa0f   :  { %v7749_v18 = vpack.c.bf16 %v7629_v28, %v7625_v4  ;;  %v7631_v15 = vmax.f32 %v9636_v31, 0.0  ;;  %v7722_v4 = vld [vmem:[#allocation4 + $0x148] sm:$0xff] }
 0xa10   :  { %v7750_v57 = vpack.c.bf16 %v7630_v24, %v7626_v13  ;;  %v7632_v12 = vmax.f32 %v9637_v40, 0.0  ;;  %7905 = vmatpush1.bf16.msra.mxu0 %v7715_v36  ;;  %v7106_v58 = vpop.f32.mrb[240].mxu0  ;;  %v8052_v28 = vld [vmem:[#allocation5 + $0x28] sm:$0xff]  ;;  %v8061_v13 = vld [vmem:[#allocation5 + $0x70] sm:$0xff] }
 0xa11   :  { %v12869_v45 = vpack.c.bf16 %v7631_v15, %v7627_v27  ;;  %v9606_v61 = vadd.f32 %v7106_v58, %v12838_v8  ;;  %v7108_v50 = vpop.f32.mrb[241].mxu0  ;;  %7906 = vmatprep.subr.bf16.mxu0 %v7718_v30  ;;  %9335 = vmatpush3.bf16.msra.mxu1 %v8052_v28 }
 0xa12   :  { %v12872_v42 = vpack.c.bf16 %v7632_v12, %v7628_v44  ;;  %v7558_v29 = vpop.f32.mrb[16].mxu1  ;;  %v9607_v7 = vadd.f32 %v7108_v50, %v12841_v0  ;;  %v7110_v59 = vpop.f32.mrb[242].mxu0  ;;  %7831 = vmatprep.mubr.bf16.mxu0 %v7750_v57  ;;  %9336 = vmatprep.subr.bf16.mxu1 %v8061_v13  ;;  %v8053_v50 = vld [vmem:[#allocation5 + $0x30] sm:$0xff] }
 0xa13   :  { %v9638_v47 = vadd.f32 %v7558_v29, %v12844_v63  ;;  %v7560_v52 = vpop.f32.mrb[17].mxu1  ;;  %v9608_v20 = vadd.f32 %v7110_v59, %v12838_v8  ;;  %v7112_v53 = vpop.f32.mrb[243].mxu0  ;;  %7832 = vmatmul.mubr.bf16.gmra.mrb[12].mxu0 %v7749_v18  ;;  %v7633_v48 = vmax.f32 %v9606_v61, 0.0  ;;  %v7724_v61 = vld [vmem:[#allocation4 + $0x158] sm:$0xff] }
 0xa14   :  { %v9639_v22 = vadd.f32 %v7560_v52, %v12847_v21  ;;  %v7562_v37 = vpop.f32.mrb[18].mxu1  ;;  %v9609_v2 = vadd.f32 %v7112_v53, %v12841_v0  ;;  %7907 = vmatpush1.bf16.msra.mxu0 %v7717_v14  ;;  %v7634_v33 = vmax.f32 %v9607_v7, 0.0 }
 0xa15   :  { %v7637_v39 = vmax.f32 %v9608_v20, 0.0  ;;  %v9640_v46 = vadd.f32 %v7562_v37, %v12844_v63  ;;  %v7564_v19 = vpop.f32.mrb[19].mxu1  ;;  %7908 = vmatprep.subr.bf16.mxu0 %v7720_v62  ;;  %v7635_v31 = vmax.f32 %v9638_v47, 0.0  ;;  %9337 = vmatpush3.bf16.msra.mxu1 %v8053_v50 }
 0xa16   :  { %v7638_v9 = vmax.f32 %v9609_v2, 0.0  ;;  %v9641_v43 = vadd.f32 %v7564_v19, %v12847_v21  ;;  %v7636_v24 = vmax.f32 %v9639_v22, 0.0  ;;  %v7723_v22 = vld [vmem:[#allocation4 + $0x150] sm:$0xff] }
 0xa17   :  { %v7753_v6 = vpack.c.bf16 %v7637_v39, %v7633_v48  ;;  %v7639_v36 = vmax.f32 %v9640_v46, 0.0  ;;  %v7726_v39 = vld [vmem:[#allocation4 + $0x168] sm:$0xff] }
 0xa18   :  { %v7754_v40 = vpack.c.bf16 %v7638_v9, %v7634_v33  ;;  %v7640_v30 = vmax.f32 %v9641_v43, 0.0  ;;  %7909 = vmatpush1.bf16.msra.mxu0 %v7719_v23  ;;  %v7116_v3 = vpop.f32.mrb[244].mxu0 }
 0xa19   :  { %v12881_v27 = vpack.c.bf16 %v7639_v36, %v7635_v31  ;;  %v9610_v18 = vadd.f32 %v7116_v3, %v12838_v8  ;;  %v7118_v15 = vpop.f32.mrb[245].mxu0  ;;  %7910 = vmatprep.subr.bf16.mxu0 %v7722_v4  ;;  %v7725_v36 = vld [vmem:[#allocation4 + $0x160] sm:$0xff]  ;;  %v7728_v3 = vld [vmem:[#allocation4 + $0x178] sm:$0xff] }
 0xa1a   :  { %v12884_v44 = vpack.c.bf16 %v7640_v30, %v7636_v24  ;;  %v7568_v57 = vpop.f32.mrb[20].mxu1  ;;  %v9611_v12 = vadd.f32 %v7118_v15, %v12841_v0  ;;  %v7120_v58 = vpop.f32.mrb[246].mxu0  ;;  %7841 = vmatprep.mubr.bf16.mxu0 %v7754_v40 }
 0xa1b   :  { %v9642_v14 = vadd.f32 %v7568_v57, %v12844_v63  ;;  %v7570_v29 = vpop.f32.mrb[21].mxu1  ;;  %v9612_v7 = vadd.f32 %v7120_v58, %v12838_v8  ;;  %v7122_v59 = vpop.f32.mrb[247].mxu0  ;;  %7842 = vmatmul.mubr.bf16.gmra.mrb[16].mxu0 %v7753_v6  ;;  %v7641_v52 = vmax.f32 %v9610_v18, 0.0 }
 0xa1c   :  { %v9643_v62 = vadd.f32 %v7570_v29, %v12847_v21  ;;  %v7572_v16 = vpop.f32.mrb[22].mxu1  ;;  %v9613_v47 = vadd.f32 %v7122_v59, %v12841_v0  ;;  %7911 = vmatpush1.bf16.msra.mxu0 %v7721_v56  ;;  %v7642_v37 = vmax.f32 %v9611_v12, 0.0  ;;  %v7727_v59 = vld [vmem:[#allocation4 + $0x170] sm:$0xff] }
 0xa1d   :  { %v7645_v20 = vmax.f32 %v9612_v7, 0.0  ;;  %v9644_v53 = vadd.f32 %v7572_v16, %v12844_v63  ;;  %v7574_v5 = vpop.f32.mrb[23].mxu1  ;;  %7912 = vmatprep.subr.bf16.mxu0 %v7724_v61  ;;  %v7643_v46 = vmax.f32 %v9642_v14, 0.0 }
 0xa1e   :  { %v7646_v2 = vmax.f32 %v9613_v47, 0.0  ;;  %v9645_v48 = vadd.f32 %v7574_v5, %v12847_v21  ;;  %v7644_v33 = vmax.f32 %v9643_v62, 0.0 }
 0xa1f   :  { %v7757_v19 = vpack.c.bf16 %v7645_v20, %v7641_v52  ;;  %v7647_v23 = vmax.f32 %v9644_v53, 0.0  ;;  %v7730_v52 = vld [vmem:[#allocation4 + $0x188] sm:$0xff] }
 0xa20   :  { %v7758_v9 = vpack.c.bf16 %v7646_v2, %v7642_v37  ;;  %v7648_v43 = vmax.f32 %v9645_v48, 0.0  ;;  %7913 = vmatpush1.bf16.msra.mxu0 %v7723_v22  ;;  %v7126_v4 = vpop.f32.mrb[248].mxu0 }
 0xa21   :  { %v12893_v28 = vpack.c.bf16 %v7647_v23, %v7643_v46  ;;  %v9614_v31 = vadd.f32 %v7126_v4, %v12838_v8  ;;  %v7128_v6 = vpop.f32.mrb[249].mxu0  ;;  %7914 = vmatprep.subr.bf16.mxu0 %v7726_v39  ;;  %v7729_v23 = vld [vmem:[#allocation4 + $0x180] sm:$0xff] }
 0xa22   :  { %v12896_v13 = vpack.c.bf16 %v7648_v43, %v7644_v33  ;;  %v7578_v24 = vpop.f32.mrb[24].mxu1  ;;  %v9615_v40 = vadd.f32 %v7128_v6, %v12841_v0  ;;  %v7130_v30 = vpop.f32.mrb[250].mxu0  ;;  %7851 = vmatprep.mubr.bf16.mxu0 %v7758_v9 }
 0xa23   :  { %v9646_v18 = vadd.f32 %v7578_v24, %v12844_v63  ;;  %v7580_v15 = vpop.f32.mrb[25].mxu1  ;;  %v9616_v56 = vadd.f32 %v7130_v30, %v12838_v8  ;;  %v7132_v57 = vpop.f32.mrb[251].mxu0  ;;  %7852 = vmatmul.mubr.bf16.gmra.mrb[20].mxu0 %v7757_v19  ;;  %v7649_v50 = vmax.f32 %v9614_v31, 0.0  ;;  %v7732_v31 = vld [vmem:[#allocation4 + $0x198] sm:$0xff] }
 0xa24   :  { %v9647_v12 = vadd.f32 %v7580_v15, %v12847_v21  ;;  %v7582_v58 = vpop.f32.mrb[26].mxu1  ;;  %v9617_v61 = vadd.f32 %v7132_v57, %v12841_v0  ;;  %7915 = vmatpush1.bf16.msra.mxu0 %v7725_v36  ;;  %v7650_v62 = vmax.f32 %v9615_v40, 0.0 }
 0xa25   :  { %v7653_v14 = vmax.f32 %v9616_v56, 0.0  ;;  %v9648_v29 = vadd.f32 %v7582_v58, %v12844_v63  ;;  %v7584_v7 = vpop.f32.mrb[27].mxu1  ;;  %7916 = vmatprep.subr.bf16.mxu0 %v7728_v3  ;;  %v7651_v20 = vmax.f32 %v9646_v18, 0.0  ;;  %v7731_v58 = vld [vmem:[#allocation4 + $0x190] sm:$0xff] }
 0xa26   :  { %v7654_v16 = vmax.f32 %v9617_v61, 0.0  ;;  %v9649_v47 = vadd.f32 %v7584_v7, %v12847_v21  ;;  %v7652_v22 = vmax.f32 %v9647_v12, 0.0 }
 0xa27   :  { %v7761_v53 = vpack.c.bf16 %v7653_v14, %v7649_v50  ;;  %v7655_v5 = vmax.f32 %v9648_v29, 0.0  ;;  %v7734_v29 = vld [vmem:[#allocation4 + $0x1a8] sm:$0xff] }
 0xa28   :  { %v7762_v37 = vpack.c.bf16 %v7654_v16, %v7650_v62  ;;  %v7656_v2 = vmax.f32 %v9649_v47, 0.0  ;;  %7917 = vmatpush1.bf16.msra.mxu0 %v7727_v59  ;;  %v7136_v48 = vpop.f32.mrb[252].mxu0 }
 0xa29   :  { %v12905_v39 = vpack.c.bf16 %v7655_v5, %v7651_v20  ;;  %v9618_v46 = vadd.f32 %v7136_v48, %v12838_v8  ;;  %v7138_v19 = vpop.f32.mrb[253].mxu0  ;;  %7918 = vmatprep.subr.bf16.mxu0 %v7730_v52 }
 0xa2a   :  { %v12908_v33 = vpack.c.bf16 %v7656_v2, %v7652_v22  ;;  %v7588_v9 = vpop.f32.mrb[28].mxu1  ;;  %v9619_v43 = vadd.f32 %v7138_v19, %v12841_v0  ;;  %v7140_v4 = vpop.f32.mrb[254].mxu0  ;;  %7861 = vmatprep.mubr.bf16.mxu0 %v7762_v37  ;;  %v7733_v37 = vld [vmem:[#allocation4 + $0x1a0] sm:$0xff] }
 0xa2b   :  { %v9650_v6 = vadd.f32 %v7588_v9, %v12844_v63  ;;  %v7590_v36 = vpop.f32.mrb[29].mxu1  ;;  %v9620_v24 = vadd.f32 %v7140_v4, %v12838_v8  ;;  %v7142_v40 = vpop.f32.mrb[255].mxu0  ;;  %7862 = vmatmul.mubr.bf16.gmra.mrb[24].mxu0 %v7761_v53  ;;  %v7657_v15 = vmax.f32 %v9618_v46, 0.0 }
 0xa2c   :  { %v9651_v30 = vadd.f32 %v7590_v36, %v12847_v21  ;;  %v7592_v3 = vpop.f32.mrb[30].mxu1  ;;  %v9621_v18 = vadd.f32 %v7142_v40, %v12841_v0  ;;  %7919 = vmatpush1.bf16.msra.mxu0 %v7729_v23  ;;  %v7658_v61 = vmax.f32 %v9619_v43, 0.0  ;;  %v7736_v23 = vld [vmem:[#allocation4 + $0x1b8] sm:$0xff] }
 0xa2d   :  { %v7661_v56 = vmax.f32 %v9620_v24, 0.0  ;;  %v9652_v57 = vadd.f32 %v7592_v3, %v12844_v63  ;;  %v7594_v12 = vpop.f32.mrb[31].mxu1  ;;  %7920 = vmatprep.subr.bf16.mxu0 %v7732_v31  ;;  %v7659_v7 = vmax.f32 %v9650_v6, 0.0 }
 0xa2e   :  { %v7662_v50 = vmax.f32 %v9621_v18, 0.0  ;;  %v9653_v14 = vadd.f32 %v7594_v12, %v12847_v21  ;;  %v7660_v16 = vmax.f32 %v9651_v30, 0.0 }
 0xa2f   :  { %v7765_v59 = vpack.c.bf16 %v7661_v56, %v7657_v15  ;;  %v7663_v62 = vmax.f32 %v9652_v57, 0.0  ;;  %v7735_v15 = vld [vmem:[#allocation4 + $0x1b0] sm:$0xff] }
 0xa30   :  { %v7766_v47 = vpack.c.bf16 %v7662_v50, %v7658_v61  ;;  %v7664_v52 = vmax.f32 %v9653_v14, 0.0  ;;  %7921 = vmatpush1.bf16.msra.mxu0 %v7731_v58  ;;  %v7146_v20 = vpop.f32.mrb[0].mxu0  ;;  %v7738_v58 = vld [vmem:[#allocation4 + $0x1c8] sm:$0xff] }
 0xa31   :  { %v12917_v53 = vpack.c.bf16 %v7663_v62, %v7659_v7  ;;  %v9622_v5 = vadd.f32 %v7146_v20, %v12838_v8  ;;  %v7148_v22 = vpop.f32.mrb[1].mxu0  ;;  %7922 = vmatprep.subr.bf16.mxu0 %v7734_v29  ;;  %v7737_v20 = vld [vmem:[#allocation4 + $0x1c0] sm:$0xff] }
 0xa32   :  { %v12920_v2 = vpack.c.bf16 %v7664_v52, %v7660_v16  ;;  %v7598_v48 = vpop.f32.mrb[32].mxu1  ;;  %v9623_v46 = vadd.f32 %v7148_v22, %v12841_v0  ;;  %v7150_v19 = vpop.f32.mrb[2].mxu0  ;;  %7871 = vmatprep.mubr.bf16.mxu0 %v7766_v47 }
 0xa33   :  { %v9654_v9 = vadd.f32 %v7598_v48, %v12844_v63  ;;  %v7600_v43 = vpop.f32.mrb[33].mxu1  ;;  %v9624_v4 = vadd.f32 %v7150_v19, %v12838_v8  ;;  %v7152_v31 = vpop.f32.mrb[3].mxu0  ;;  %7872 = vmatmul.mubr.bf16.gmra.mrb[28].mxu0 %v7765_v59  ;;  %v7665_v40 = vmax.f32 %v9622_v5, 0.0 }
 0xa34   :  { %v9655_v6 = vadd.f32 %v7600_v43, %v12847_v21  ;;  %v7602_v36 = vpop.f32.mrb[34].mxu1  ;;  %v9625_v24 = vadd.f32 %v7152_v31, %v12841_v0  ;;  %7923 = vmatpush1.bf16.msra.mxu0 %v7733_v37  ;;  %v7666_v56 = vmax.f32 %v9623_v46, 0.0  ;;  %v7740_v46 = vld [vmem:[#allocation4 + $0x1d8] sm:$0xff] }
 0xa35   :  { %v7669_v30 = vmax.f32 %v9624_v4, 0.0  ;;  %v9656_v3 = vadd.f32 %v7602_v36, %v12844_v63  ;;  %v7604_v18 = vpop.f32.mrb[35].mxu1  ;;  %7924 = vmatprep.subr.bf16.mxu0 %v7736_v23  ;;  %v7667_v61 = vmax.f32 %v9654_v9, 0.0 }
 0xa36   :  { %v7670_v57 = vmax.f32 %v9625_v24, 0.0  ;;  %v9657_v12 = vadd.f32 %v7604_v18, %v12847_v21  ;;  %v7668_v29 = vmax.f32 %v9655_v6, 0.0 }
 0xa37   :  { %v7769_v50 = vpack.c.bf16 %v7669_v30, %v7665_v40  ;;  %v7671_v14 = vmax.f32 %v9656_v3, 0.0  ;;  %v7739_v3 = vld [vmem:[#allocation4 + $0x1d0] sm:$0xff] }
 0xa38   :  { %v7770_v7 = vpack.c.bf16 %v7670_v57, %v7666_v56  ;;  %v7672_v59 = vmax.f32 %v9657_v12, 0.0  ;;  %7925 = vmatpush1.bf16.msra.mxu0 %v7735_v15  ;;  %v7156_v62 = vpop.f32.mrb[4].mxu0 }
 0xa39   :  { %v7771_v16 = vpack.c.bf16 %v7671_v14, %v7667_v61  ;;  %v9626_v47 = vadd.f32 %v7156_v62, %v12838_v8  ;;  %v7158_v52 = vpop.f32.mrb[5].mxu0  ;;  %7926 = vmatprep.subr.bf16.mxu0 %v7738_v58 }
 0xa3a   :  { %v7772_v5 = vpack.c.bf16 %v7672_v59, %v7668_v29  ;;  %v7608_v22 = vpop.f32.mrb[36].mxu1  ;;  %v9627_v37 = vadd.f32 %v7158_v52, %v12841_v0  ;;  %v7160_v48 = vpop.f32.mrb[6].mxu0  ;;  %7881 = vmatprep.mubr.bf16.mxu0 %v7770_v7  ;;  %v7741_v29 = vld [vmem:[#allocation4 + $0x1e0] sm:$0xff] }
 0xa3b   :  { %v9658_v19 = vadd.f32 %v7608_v22, %v12844_v63  ;;  %v7610_v23 = vpop.f32.mrb[37].mxu1  ;;  %v9628_v9 = vadd.f32 %v7160_v48, %v12838_v8  ;;  %v7162_v43 = vpop.f32.mrb[7].mxu0  ;;  %7882 = vmatmul.mubr.bf16.gmra.mrb[32].mxu0 %v7769_v50  ;;  %v7673_v36 = vmax.f32 %v9626_v47, 0.0  ;;  %v7742_v8 = vld [vmem:[#allocation4 + $0x1e8] sm:$0xff] }
 0xa3c   :  { %v9659_v4 = vadd.f32 %v7610_v23, %v12847_v21  ;;  %v7612_v31 = vpop.f32.mrb[38].mxu1  ;;  %v9629_v6 = vadd.f32 %v7162_v43, %v12841_v0  ;;  %7927 = vmatpush1.bf16.msra.mxu0 %v7737_v20  ;;  %v7674_v18 = vmax.f32 %v9627_v37, 0.0 }
 0xa3d   :  { %v7677_v24 = vmax.f32 %v9628_v9, 0.0  ;;  %v9660_v40 = vadd.f32 %v7612_v31, %v12844_v63  ;;  %v7614_v30 = vpop.f32.mrb[39].mxu1  ;;  %7928 = vmatprep.subr.bf16.mxu0 %v7740_v46  ;;  %v7675_v57 = vmax.f32 %v9658_v19, 0.0  ;;  %v7744_v63 = vld [vmem:[#allocation4 + $0x1f8] sm:$0xff]  ;;  %v8200_v19 = vld [vmem:[#allocation6 + $0x8] sm:$0xff] }
 0xa3e   :  { %v7678_v15 = vmax.f32 %v9629_v6, 0.0  ;;  %v9661_v56 = vadd.f32 %v7614_v30, %v12847_v21  ;;  %v7676_v61 = vmax.f32 %v9659_v4, 0.0  ;;  %v7743_v21 = vld [vmem:[#allocation4 + $0x1f0] sm:$0xff] }
 0xa3f   :  { %v7773_v12 = vpack.c.bf16 %v7677_v24, %v7673_v36  ;;  %v7679_v58 = vmax.f32 %v9660_v40, 0.0  ;;  %v8201_v24 = vld [vmem:[#allocation6 + $0x10] sm:$0xff] }
 0xa40   :  { %v7774_v50 = vpack.c.bf16 %v7678_v15, %v7674_v18  ;;  %v7680_v14 = vmax.f32 %v9661_v56, 0.0  ;;  %7929 = vmatpush1.bf16.msra.mxu0 %v7739_v3 }
 0xa41   :  { %v7775_v0 = vpack.c.bf16 %v7679_v58, %v7675_v57  ;;  %7930 = vmatprep.subr.bf16.mxu0 %v7742_v8 }
 0xa42   :  { %v7776_v7 = vpack.c.bf16 %v7680_v14, %v7676_v61  ;;  %7891 = vmatprep.mubr.bf16.mxu0 %v7774_v50 }
 0xa43   :  { %7892 = vmatmul.mubr.bf16.gmra.mrb[36].mxu0 %v7773_v12 }
 0xa44   :  { %7931 = vmatpush1.bf16.msra.mxu0 %v7741_v29  ;;  %7934 = vmatprep.mubr.bf16.mxu0 %v12860_v25  ;;  %v8054_v25 = vld [vmem:[#allocation5 + $0x38] sm:$0xff] }
 0xa45   :  { %7932 = vmatprep.subr.bf16.mxu0 %v7744_v63 }
 0xa48   :  { %7933 = vmatpush1.bf16.msra.mxu0 %v7743_v21 }
 0xa4b   :  { %7935 = vmatmul.mubr.bf16.vlgmr.msra.gmra.mrb[8].mxu0 %v12857_v38  ;;  %v8062_v38 = vld [vmem:[#allocation5 + $0x78] sm:$0xff] }
 0xa4c   :  { %7944 = vmatprep.mubr.bf16.mxu0 %v12872_v42  ;;  %9338 = vmatprep.subr.bf16.mxu1 %v8062_v38  ;;  %v7777_v42 = vld [vmem:[#allocation13 + $0x1c] sm:$0x3] }
 0xa4d   :  { %9339 = vmatpush3.bf16.msra.mxu1 %v8054_v25 }
 0xa53   :  { %7945 = vmatmul.mubr.bf16.gmra.mrb[12].mxu0 %v12869_v45  ;;  %v8199_v45 = vld [vmem:[#allocation6] sm:$0xff] }
 0xa54   :  { %7954 = vmatprep.mubr.bf16.mxu0 %v12884_v44  ;;  %9436 = vmatprep.subr.bf16.mxu1 %v8199_v45  ;;  %v12953_v44 = vrot.slane %v7777_v42, %v13278_v10 }
 0xa5b   :  { %7955 = vmatmul.mubr.bf16.gmra.mrb[16].mxu0 %v12881_v27  ;;  %v12950_v27 = vrot.slane %v7777_v42, %v11098_v49 }
 0xa5c   :  { %7964 = vmatprep.mubr.bf16.mxu0 %v12896_v13 }
 0xa63   :  { %7965 = vmatmul.mubr.bf16.gmra.mrb[20].mxu0 %v12893_v28 }
 0xa64   :  { %7974 = vmatprep.mubr.bf16.mxu0 %v12908_v33 }
 0xa6b   :  { %7975 = vmatmul.mubr.bf16.gmra.mrb[24].mxu0 %v12905_v39 }
 0xa6c   :  { %7984 = vmatprep.mubr.bf16.mxu0 %v12920_v2 }
 0xa73   :  { %7985 = vmatmul.mubr.bf16.gmra.mrb[28].mxu0 %v12917_v53 }
 0xa74   :  { %7994 = vmatprep.mubr.bf16.mxu0 %v7772_v5 }
 0xa7b   :  { %7995 = vmatmul.mubr.bf16.gmra.mrb[32].mxu0 %v7771_v16 }
 0xa7c   :  { %8004 = vmatprep.mubr.bf16.mxu0 %v7776_v7 }
 0xa83   :  { %8005 = vmatmul.mubr.bf16.gmra.mrb[36].mxu0 %v7775_v0 }
 0xb1e   :  { %v7936_v28 = vpop.f32.mrb[8].mxu0 }
 0xb1f   :  { %v9662_v13 = vadd.f32 %v7936_v28, %v12950_v27  ;;  %v7938_v39 = vpop.f32.mrb[9].mxu0 }
 0xb20   :  { %v9663_v33 = vadd.f32 %v7938_v39, %v12953_v44  ;;  %v7940_v53 = vpop.f32.mrb[10].mxu0 }
 0xb21   :  { %v9664_v2 = vadd.f32 %v7940_v53, %v12950_v27  ;;  %v7942_v59 = vpop.f32.mrb[11].mxu0  ;;  %v8015_v16 = vmax.f32 %v9662_v13, 0.0 }
 0xb22   :  { %v9665_v62 = vadd.f32 %v7942_v59, %v12953_v44  ;;  %v8016_v52 = vmax.f32 %v9663_v33, 0.0 }
 0xb23   :  { %v8017_v47 = vmax.f32 %v9664_v2, 0.0 }
 0xb24   :  { %v8018_v49 = vmax.f32 %v9665_v62, 0.0 }
 0xb25   :  { %v8063_v20 = vpack.c.bf16 %v8017_v47, %v8015_v16 }
 0xb26   :  { %v8064_v5 = vpack.c.bf16 %v8018_v49, %v8016_v52  ;;  %v7946_v10 = vpop.f32.mrb[12].mxu0 }
 0xb27   :  { %v9666_v22 = vadd.f32 %v7946_v10, %v12950_v27  ;;  %v7948_v37 = vpop.f32.mrb[13].mxu0 }
 0xb28   :  { %v9667_v48 = vadd.f32 %v7948_v37, %v12953_v44  ;;  %v7950_v46 = vpop.f32.mrb[14].mxu0  ;;  %8118 = vmatprep.mubr.bf16.mxu1 %v8064_v5 }
 0xb29   :  { %v9668_v23 = vadd.f32 %v7950_v46, %v12950_v27  ;;  %v7952_v9 = vpop.f32.mrb[15].mxu0  ;;  %8119 = vmatmul.mubr.bf16.vlgmr.msra.gmra.mrb[40].mxu1 %v8063_v20  ;;  %v8019_v4 = vmax.f32 %v9666_v22, 0.0 }
 0xb2a   :  { %v9669_v43 = vadd.f32 %v7952_v9, %v12953_v44  ;;  %9437 = vmatpush3.bf16.msra.mxu1 %v8199_v45  ;;  %v8020_v6 = vmax.f32 %v9667_v48, 0.0 }
 0xb2b   :  { %v8021_v31 = vmax.f32 %v9668_v23, 0.0  ;;  %9438 = vmatprep.subr.bf16.mxu1 %v8200_v19 }
 0xb2c   :  { %v8022_v36 = vmax.f32 %v9669_v43, 0.0 }
 0xb2d   :  { %v8065_v40 = vpack.c.bf16 %v8021_v31, %v8019_v4 }
 0xb2e   :  { %v8066_v30 = vpack.c.bf16 %v8022_v36, %v8020_v6  ;;  %v7956_v3 = vpop.f32.mrb[16].mxu0  ;;  %9439 = vmatpush3.bf16.msra.mxu1 %v8200_v19 }
 0xb2f   :  { %v9670_v18 = vadd.f32 %v7956_v3, %v12950_v27  ;;  %v7958_v15 = vpop.f32.mrb[17].mxu0  ;;  %9440 = vmatprep.subr.bf16.mxu1 %v8201_v24 }
 0xb30   :  { %v9671_v56 = vadd.f32 %v7958_v15, %v12953_v44  ;;  %v7960_v8 = vpop.f32.mrb[18].mxu0  ;;  %8126 = vmatprep.mubr.bf16.mxu1 %v8066_v30 }
 0xb31   :  { %v9672_v57 = vadd.f32 %v7960_v8, %v12950_v27  ;;  %v7962_v12 = vpop.f32.mrb[19].mxu0  ;;  %8127 = vmatmul.mubr.bf16.gmra.mrb[44].mxu1 %v8065_v40  ;;  %v8023_v61 = vmax.f32 %v9670_v18, 0.0 }
 0xb32   :  { %v9673_v58 = vadd.f32 %v7962_v12, %v12953_v44  ;;  %9441 = vmatpush3.bf16.msra.mxu1 %v8201_v24  ;;  %v8024_v14 = vmax.f32 %v9671_v56, 0.0 }
 0xb33   :  { %v8025_v50 = vmax.f32 %v9672_v57, 0.0 }
 0xb34   :  { %v8026_v0 = vmax.f32 %v9673_v58, 0.0 }
 0xb35   :  { %v8067_v29 = vpack.c.bf16 %v8025_v50, %v8023_v61 }
 0xb36   :  { %v8068_v7 = vpack.c.bf16 %v8026_v0, %v8024_v14  ;;  %v7966_v63 = vpop.f32.mrb[20].mxu0 }
 0xb37   :  { %v9674_v21 = vadd.f32 %v7966_v63, %v12950_v27  ;;  %v7968_v38 = vpop.f32.mrb[21].mxu0 }
 0xb38   :  { %v9675_v25 = vadd.f32 %v7968_v38, %v12953_v44  ;;  %v7970_v45 = vpop.f32.mrb[22].mxu0  ;;  %8134 = vmatprep.mubr.bf16.mxu1 %v8068_v7 }
 0xb39   :  { %v9676_v42 = vadd.f32 %v7970_v45, %v12950_v27  ;;  %v7972_v28 = vpop.f32.mrb[23].mxu0  ;;  %8135 = vmatmul.mubr.bf16.gmra.mrb[48].mxu1 %v8067_v29  ;;  %v8027_v39 = vmax.f32 %v9674_v21, 0.0 }
 0xb3a   :  { %v9677_v13 = vadd.f32 %v7972_v28, %v12953_v44  ;;  %v8028_v53 = vmax.f32 %v9675_v25, 0.0 }
 0xb3b   :  { %v8029_v33 = vmax.f32 %v9676_v42, 0.0 }
 0xb3c   :  { %v8030_v2 = vmax.f32 %v9677_v13, 0.0 }
 0xb3d   :  { %v8069_v59 = vpack.c.bf16 %v8029_v33, %v8027_v39 }
 0xb3e   :  { %v8070_v62 = vpack.c.bf16 %v8030_v2, %v8028_v53  ;;  %v7976_v16 = vpop.f32.mrb[24].mxu0 }
 0xb3f   :  { %v9678_v47 = vadd.f32 %v7976_v16, %v12950_v27  ;;  %v7978_v52 = vpop.f32.mrb[25].mxu0 }
 0xb40   :  { %v9679_v49 = vadd.f32 %v7978_v52, %v12953_v44  ;;  %v7980_v20 = vpop.f32.mrb[26].mxu0  ;;  %8142 = vmatprep.mubr.bf16.mxu1 %v8070_v62 }
 0xb41   :  { %v9680_v5 = vadd.f32 %v7980_v20, %v12950_v27  ;;  %v7982_v10 = vpop.f32.mrb[27].mxu0  ;;  %8143 = vmatmul.mubr.bf16.gmra.mrb[52].mxu1 %v8069_v59  ;;  %v8031_v37 = vmax.f32 %v9678_v47, 0.0 }
 0xb42   :  { %v9681_v22 = vadd.f32 %v7982_v10, %v12953_v44  ;;  %v8032_v46 = vmax.f32 %v9679_v49, 0.0  ;;  %v8202_v10 = vld [vmem:[#allocation6 + $0x18] sm:$0xff] }
 0xb43   :  { %v8033_v48 = vmax.f32 %v9680_v5, 0.0  ;;  %9442 = vmatprep.subr.bf16.mxu1 %v8202_v10 }
 0xb44   :  { %v8034_v19 = vmax.f32 %v9681_v22, 0.0  ;;  %9443 = vmatpush3.bf16.msra.mxu1 %v8202_v10  ;;  %v8203_v22 = vld [vmem:[#allocation6 + $0x20] sm:$0xff] }
 0xb45   :  { %v8071_v23 = vpack.c.bf16 %v8033_v48, %v8031_v37  ;;  %9444 = vmatprep.subr.bf16.mxu1 %v8203_v22  ;;  %v8204_v37 = vld [vmem:[#allocation6 + $0x28] sm:$0xff]  ;;  %v8432_v48 = vsel %vm5674_vm0, %v12240_v26, %v12149_v41  ;;  %v8436_v41 = vsel %vm5674_vm0, %v12252_v1, %v12172_v35  ;;  %v13323_v26 = vld [vmem:[#allocation61_spill] sm:$0xff] }
 0xb46   :  { %v8072_v9 = vpack.c.bf16 %v8034_v19, %v8032_v46  ;;  %v7986_v43 = vpop.f32.mrb[28].mxu0  ;;  %v8431_v46 = vsel %vm5674_vm0, %v12236_v17, %v12128_v54  ;;  %8465 = vrot.lane.b32.xlu1 %v8432_v48, %s10707_s30  ;;  %v8434_v19 = vsel %vm5674_vm0, %v12246_v11, %v12157_v32  ;;  %v8435_v54 = vsel %vm5674_vm0, %v12248_v34, %v12164_v51  ;;  %v13322_v17 = vld [vmem:[#allocation51_spill] sm:$0xff]  ;;  %v13324_v11 = vld [vmem:[#allocation52_spill] sm:$0xff]  ;;  %v13328_v1 = vld [vmem:[#allocation53_spill] sm:$0xff] }
 0xb47   :  { %v9682_v4 = vadd.f32 %v7986_v43, %v12950_v27  ;;  %v7988_v31 = vpop.f32.mrb[29].mxu0  ;;  %8463 = vrot.lane.b32.xlu0 %v8431_v46, %s10707_s30  ;;  %v8438_v32 = vsel %vm5674_vm0, %v13323_v26, %v13322_v17  ;;  %v13327_v43 = vld [vmem:[#allocation63_spill] sm:$0xff] }
 0xb48   :  { %v9683_v6 = vadd.f32 %v7988_v31, %v12953_v44  ;;  %v7990_v36 = vpop.f32.mrb[30].mxu0  ;;  %8150 = vmatprep.mubr.bf16.mxu1 %v8072_v9  ;;  %9445 = vmatpush3.bf16.msra.mxu1 %v8203_v22  ;;  %v13325_v9 = vld [vmem:[#allocation60_spill] sm:$0xff]  ;;  %v13330_v34 = vld [vmem:[#allocation55_spill] sm:$0xff]  ;;  %v13331_v31 = vld [vmem:[#allocation65_spill] sm:$0xff] }
 0xb49   :  { %v9684_v24 = vadd.f32 %v7990_v36, %v12950_v27  ;;  %v7992_v40 = vpop.f32.mrb[31].mxu0  ;;  %8151 = vmatmul.mubr.bf16.gmra.mrb[56].mxu1 %v8071_v23  ;;  %v8035_v3 = vmax.f32 %v9682_v4, 0.0  ;;  %9446 = vmatprep.subr.bf16.mxu1 %v8204_v37  ;;  %v8433_v23 = vsel %vm5674_vm0, %v12242_v55, %v12144_v60  ;;  %v8437_v60 = vsel %vm5674_vm0, %v13325_v9, %v13324_v11  ;;  %v13326_v55 = vld [vmem:[#allocation50_spill] sm:$0xff] }
 0xb4a   :  { %v9685_v30 = vadd.f32 %v7992_v40, %v12953_v44  ;;  %v8036_v15 = vmax.f32 %v9683_v6, 0.0  ;;  %8469 = vrot.lane.b32.xlu1 %v8434_v19, %s10707_s30  ;;  %v8440_v35 = vsel %vm5674_vm0, %v13327_v43, %v13326_v55  ;;  %v13329_v4 = vld [vmem:[#allocation62_spill] sm:$0xff]  ;;  %v8442_v6 = vsel %vm5674_vm0, %v13331_v31, %v13330_v34 }
 0xb4b   :  { %v8037_v18 = vmax.f32 %v9684_v24, 0.0  ;;  %8467 = vrot.lane.b32.xlu0 %v8433_v23, %s10707_s30  ;;  %v8439_v51 = vsel %vm5674_vm0, %v13329_v4, %v13328_v1  ;;  %v13332_v36 = vld [vmem:[#allocation54_spill] sm:$0xff]  ;;  %v13333_v24 = vld [vmem:[#allocation64_spill] sm:$0xff] }
 0xb4c   :  { %v8038_v56 = vmax.f32 %v9685_v30, 0.0  ;;  %9447 = vmatpush3.bf16.msra.mxu1 %v8204_v37  ;;  %v8441_v40 = vsel %vm5674_vm0, %v13333_v24, %v13332_v36  ;;  %v13334_v30 = vld [vmem:[#allocation57_spill] sm:$0xff] }
 0xb4d   :  { %v8073_v8 = vpack.c.bf16 %v8037_v18, %v8035_v3  ;;  %v13335_v3 = vld [vmem:[#allocation67_spill] sm:$0xff] }
 0xb4e   :  { %v8074_v57 = vpack.c.bf16 %v8038_v56, %v8036_v15  ;;  %v7996_v12 = vpop.f32.mrb[32].mxu0  ;;  %8473 = vrot.lane.b32.xlu1 %v8436_v41, %s10707_s30  ;;  %v8444_v18 = vsel %vm5674_vm0, %v13335_v3, %v13334_v30  ;;  %v13336_v15 = vld [vmem:[#allocation56_spill] sm:$0xff]  ;;  %v13337_v56 = vld [vmem:[#allocation66_spill] sm:$0xff] }
 0xb4f   :  { %v9686_v58 = vadd.f32 %v7996_v12, %v12950_v27  ;;  %v7998_v61 = vpop.f32.mrb[33].mxu0  ;;  %8471 = vrot.lane.b32.xlu0 %v8435_v54, %s10707_s30  ;;  %v13339_v12 = vld [vmem:[#allocation69_spill] sm:$0xff] }
 0xb50   :  { %v9687_v50 = vadd.f32 %v7998_v61, %v12953_v44  ;;  %v8000_v14 = vpop.f32.mrb[34].mxu0  ;;  %8158 = vmatprep.mubr.bf16.mxu1 %v8074_v57  ;;  %v13338_v57 = vld [vmem:[#allocation59_spill] sm:$0xff]  ;;  %v13340_v61 = vld [vmem:[#allocation58_spill] sm:$0xff] }
 0xb51   :  { %v9688_v0 = vadd.f32 %v8000_v14, %v12950_v27  ;;  %v8002_v29 = vpop.f32.mrb[35].mxu0  ;;  %8159 = vmatmul.mubr.bf16.gmra.mrb[60].mxu1 %v8073_v8  ;;  %v8039_v63 = vmax.f32 %v9686_v58, 0.0  ;;  %v8443_v8 = vsel %vm5674_vm0, %v13337_v56, %v13336_v15  ;;  %v8446_v58 = vsel %vm5674_vm0, %v13339_v12, %v13338_v57 }
 0xb52   :  { %v9689_v7 = vadd.f32 %v8002_v29, %v12953_v44  ;;  %v8040_v38 = vmax.f32 %v9687_v50, 0.0  ;;  %8477 = vrot.lane.b32.xlu1 %v8438_v32, %s10707_s30  ;;  %v13341_v50 = vld [vmem:[#allocation68_spill] sm:$0xff]  ;;  %v13035_v29 = vld [vmem:[#allocation13 + $0x1e] ss:$0 sm:$0xff] }
 0xb53   :  { %v8041_v21 = vmax.f32 %v9688_v0, 0.0  ;;  %8475 = vrot.lane.b32.xlu0 %v8437_v60, %s10707_s30  ;;  %v8445_v14 = vsel %vm5674_vm0, %v13341_v50, %v13340_v61 }
 0xb54   :  { %v8042_v25 = vmax.f32 %v9689_v7, 0.0 }
 0xb55   :  { %v8075_v45 = vpack.c.bf16 %v8041_v21, %v8039_v63 }
 0xb56   :  { %v8076_v42 = vpack.c.bf16 %v8042_v25, %v8040_v38  ;;  %v8006_v28 = vpop.f32.mrb[36].mxu0  ;;  %8481 = vrot.lane.b32.xlu1 %v8440_v35, %s10707_s30 }
 0xb57   :  { %v9690_v13 = vadd.f32 %v8006_v28, %v12950_v27  ;;  %v8008_v39 = vpop.f32.mrb[37].mxu0  ;;  %8479 = vrot.lane.b32.xlu0 %v8439_v51, %s10707_s30 }
 0xb58   :  { %v9691_v33 = vadd.f32 %v8008_v39, %v12953_v44  ;;  %v8010_v53 = vpop.f32.mrb[38].mxu0  ;;  %8166 = vmatprep.mubr.bf16.mxu1 %v8076_v42 }
 0xb59   :  { %v9692_v2 = vadd.f32 %v8010_v53, %v12950_v27  ;;  %v8012_v59 = vpop.f32.mrb[39].mxu0  ;;  %8167 = vmatmul.mubr.bf16.gmra.mrb[64].mxu1 %v8075_v45  ;;  %v8043_v16 = vmax.f32 %v9690_v13, 0.0  ;;  %v8205_v27 = vld [vmem:[#allocation6 + $0x30] sm:$0xff] }
 0xb5a   :  { %v9693_v62 = vadd.f32 %v8012_v59, %v12953_v44  ;;  %v8044_v52 = vmax.f32 %v9691_v33, 0.0  ;;  %9448 = vmatprep.subr.bf16.mxu1 %v8205_v27  ;;  %v8206_v44 = vld [vmem:[#allocation6 + $0x38] sm:$0xff]  ;;  %8485 = vrot.lane.b32.xlu1 %v8442_v6, %s10707_s30 }
 0xb5b   :  { %v8045_v47 = vmax.f32 %v9692_v2, 0.0  ;;  %9449 = vmatpush3.bf16.msra.mxu1 %v8205_v27  ;;  %8483 = vrot.lane.b32.xlu0 %v8441_v40, %s10707_s30 }
 0xb5c   :  { %v8046_v49 = vmax.f32 %v9693_v62, 0.0  ;;  %9450 = vmatprep.subr.bf16.mxu1 %v8206_v44 }
 0xb5d   :  { %v8077_v20 = vpack.c.bf16 %v8045_v47, %v8043_v16 }
 0xb5e   :  { %v8078_v5 = vpack.c.bf16 %v8046_v49, %v8044_v52  ;;  %8489 = vrot.lane.b32.xlu1 %v8444_v18, %s10707_s30 }
 0xb5f   :  { %9451 = vmatpush3.bf16.msra.mxu1 %v8206_v44  ;;  %8487 = vrot.lane.b32.xlu0 %v8443_v8, %s10707_s30 }
 0xb60   :  { %8174 = vmatprep.mubr.bf16.mxu1 %v8078_v5 }
 0xb61   :  { %8175 = vmatmul.mubr.bf16.gmra.mrb[68].mxu1 %v8077_v20 }
 0xb62   :  { %8493 = vrot.lane.b32.xlu1 %v8446_v58, %s10707_s30 }
 0xb63   :  { %8491 = vrot.lane.b32.xlu0 %v8445_v14, %s10707_s30 }
 0xbfc   :  { %v9340_v0 = vpop.f32.mrb[40].mxu1 }
 0xbfd   :  { %v9341_v7 = vpop.f32.mrb[41].mxu1 }
 0xbfe   :  { %v9342_v63 = vadd.f32 %v9341_v7, %v9340_v0  ;;  %v9343_v21 = vpop.f32.mrb[42].mxu1 }
 0xbff   :  { %v9344_v38 = vpop.f32.mrb[43].mxu1 }
 0xc00   :  { %v8121_v25 = vadd.f32 %v9342_v63, %v13035_v29  ;;  %v9345_v45 = vadd.f32 %v9344_v38, %v9343_v21 }
 0xc02   :  { %v8124_v42 = vadd.f32 %v9345_v45, %v13035_v29  ;;  %v8183_v28 = vmax.f32 %v8121_v25, 0.0 }
 0xc04   :  { %v8184_v13 = vmax.f32 %v8124_v42, 0.0  ;;  %v9346_v39 = vpop.f32.mrb[44].mxu1 }
 0xc05   :  { %v9347_v33 = vpop.f32.mrb[45].mxu1 }
 0xc06   :  { %v9348_v53 = vadd.f32 %v9347_v33, %v9346_v39  ;;  %v9349_v2 = vpop.f32.mrb[46].mxu1  ;;  %v8207_v59 = vpack.c.bf16 %v8184_v13, %v8183_v28 }
 0xc07   :  { %v9350_v62 = vpop.f32.mrb[47].mxu1 }
 0xc08   :  { %v8129_v16 = vadd.f32 %v9348_v53, %v13035_v29  ;;  %v9351_v47 = vadd.f32 %v9350_v62, %v9349_v2  ;;  %9452 = vmatprep.mubr.bf16.mxu1 %v8207_v59 }
 0xc0a   :  { %v8132_v52 = vadd.f32 %v9351_v47, %v13035_v29  ;;  %v8185_v49 = vmax.f32 %v8129_v16, 0.0 }
 0xc0c   :  { %v8186_v20 = vmax.f32 %v8132_v52, 0.0  ;;  %v9352_v5 = vpop.f32.mrb[48].mxu1 }
 0xc0d   :  { %v9353_v10 = vpop.f32.mrb[49].mxu1 }
 0xc0e   :  { %v8208_v22 = vpack.c.bf16 %v8186_v20, %v8185_v49  ;;  %v9354_v37 = vadd.f32 %v9353_v10, %v9352_v5  ;;  %v9355_v27 = vpop.f32.mrb[50].mxu1 }
 0xc0f   :  { %v9356_v44 = vpop.f32.mrb[51].mxu1 }
 0xc10   :  { %v8137_v48 = vadd.f32 %v9354_v37, %v13035_v29  ;;  %v9357_v46 = vadd.f32 %v9356_v44, %v9355_v27  ;;  %9453 = vmatmul.mubr.bf16.vlgmr.msra.gmra.mrb[72].mxu1 %v8208_v22  ;;  %v13053_v27 = vld [vmem:[#allocation13 + $0x1f] ss:$0 sm:$0xff] }
 0xc12   :  { %v8140_v19 = vadd.f32 %v9357_v46, %v13035_v29  ;;  %v8187_v23 = vmax.f32 %v8137_v48, 0.0 }
 0xc14   :  { %v8188_v41 = vmax.f32 %v8140_v19, 0.0  ;;  %v9358_v54 = vpop.f32.mrb[52].mxu1 }
 0xc15   :  { %v9359_v17 = vpop.f32.mrb[53].mxu1 }
 0xc16   :  { %v9360_v26 = vadd.f32 %v9359_v17, %v9358_v54  ;;  %v9361_v32 = vpop.f32.mrb[54].mxu1  ;;  %v8209_v11 = vpack.c.bf16 %v8188_v41, %v8187_v23 }
 0xc17   :  { %v9362_v9 = vpop.f32.mrb[55].mxu1 }
 0xc18   :  { %v8145_v60 = vadd.f32 %v9360_v26, %v13035_v29  ;;  %v9363_v55 = vadd.f32 %v9362_v9, %v9361_v32  ;;  %9456 = vmatprep.mubr.bf16.mxu1 %v8209_v11 }
 0xc1a   :  { %v8148_v43 = vadd.f32 %v9363_v55, %v13035_v29  ;;  %v8189_v35 = vmax.f32 %v8145_v60, 0.0 }
 0xc1c   :  { %v8190_v1 = vmax.f32 %v8148_v43, 0.0  ;;  %v9364_v4 = vpop.f32.mrb[56].mxu1 }
 0xc1d   :  { %v9365_v51 = vpop.f32.mrb[57].mxu1 }
 0xc1e   :  { %v9366_v34 = vadd.f32 %v9365_v51, %v9364_v4  ;;  %v9367_v31 = vpop.f32.mrb[58].mxu1  ;;  %v8210_v6 = vpack.c.bf16 %v8190_v1, %v8189_v35 }
 0xc1f   :  { %v9368_v36 = vpop.f32.mrb[59].mxu1 }
 0xc20   :  { %v8153_v24 = vadd.f32 %v9366_v34, %v13035_v29  ;;  %v9369_v40 = vadd.f32 %v9368_v36, %v9367_v31  ;;  %9457 = vmatmul.mubr.bf16.gmra.mrb[76].mxu1 %v8210_v6 }
 0xc22   :  { %v8156_v30 = vadd.f32 %v9369_v40, %v13035_v29  ;;  %v8191_v3 = vmax.f32 %v8153_v24, 0.0 }
 0xc24   :  { %v8192_v18 = vmax.f32 %v8156_v30, 0.0  ;;  %v9370_v15 = vpop.f32.mrb[60].mxu1 }
 0xc25   :  { %v9371_v56 = vpop.f32.mrb[61].mxu1 }
 0xc26   :  { %v9372_v8 = vadd.f32 %v9371_v56, %v9370_v15  ;;  %v9373_v57 = vpop.f32.mrb[62].mxu1  ;;  %v8211_v12 = vpack.c.bf16 %v8192_v18, %v8191_v3 }
 0xc27   :  { %v9374_v58 = vpop.f32.mrb[63].mxu1 }
 0xc28   :  { %v8161_v61 = vadd.f32 %v9372_v8, %v13035_v29  ;;  %v9375_v50 = vadd.f32 %v9374_v58, %v9373_v57  ;;  %9460 = vmatprep.mubr.bf16.mxu1 %v8211_v12  ;;  %v8464_v8 = vpop.permute.xlu0 %8463  ;;  %v8466_v12 = vpop.permute.xlu1 %8465 }
 0xc2a   :  { %v8164_v14 = vadd.f32 %v9375_v50, %v13035_v29  ;;  %v8193_v0 = vmax.f32 %v8161_v61, 0.0 }
 0xc2c   :  { %v8194_v7 = vmax.f32 %v8164_v14, 0.0  ;;  %v9376_v63 = vpop.f32.mrb[64].mxu1  ;;  %v8468_v58 = vpop.permute.xlu0 %8467 }
 0xc2d   :  { %v9377_v21 = vpop.f32.mrb[65].mxu1  ;;  %v8470_v14 = vpop.permute.xlu1 %8469 }
 0xc2e   :  { %v9378_v38 = vadd.f32 %v9377_v21, %v9376_v63  ;;  %v9379_v25 = vpop.f32.mrb[66].mxu1  ;;  %v8212_v45 = vpack.c.bf16 %v8194_v7, %v8193_v0 }
 0xc2f   :  { %v9380_v42 = vpop.f32.mrb[67].mxu1 }
 0xc30   :  { %v8169_v28 = vadd.f32 %v9378_v38, %v13035_v29  ;;  %v9381_v13 = vadd.f32 %v9380_v42, %v9379_v25  ;;  %9461 = vmatmul.mubr.bf16.gmra.mrb[80].mxu1 %v8212_v45 }
 0xc32   :  { %v8172_v39 = vadd.f32 %v9381_v13, %v13035_v29  ;;  %v8195_v33 = vmax.f32 %v8169_v28, 0.0 }
 0xc34   :  { %v8196_v53 = vmax.f32 %v8172_v39, 0.0  ;;  %v9382_v2 = vpop.f32.mrb[68].mxu1 }
 0xc35   :  { %v9383_v59 = vpop.f32.mrb[69].mxu1 }
 0xc36   :  { %v9384_v62 = vadd.f32 %v9383_v59, %v9382_v2  ;;  %v9385_v16 = vpop.f32.mrb[70].mxu1  ;;  %v8213_v47 = vpack.c.bf16 %v8196_v53, %v8195_v33 }
 0xc37   :  { %v9386_v52 = vpop.f32.mrb[71].mxu1 }
 0xc38   :  { %v8177_v49 = vadd.f32 %v9384_v62, %v13035_v29  ;;  %v9387_v20 = vadd.f32 %v9386_v52, %v9385_v16  ;;  %9464 = vmatprep.mubr.bf16.mxu1 %v8213_v47 }
 0xc3a   :  { %v8180_v5 = vadd.f32 %v9387_v20, %v13035_v29  ;;  %v8197_v10 = vmax.f32 %v8177_v49, 0.0 }
 0xc3c   :  { %v8198_v22 = vmax.f32 %v8180_v5, 0.0 }
 0xc3e   :  { %v8214_v37 = vpack.c.bf16 %v8198_v22, %v8197_v10  ;;  %v8472_v10 = vpop.permute.xlu0 %8471  ;;  %v8474_v22 = vpop.permute.xlu1 %8473 }
 0xc40   :  { %9465 = vmatmul.mubr.bf16.gmra.mrb[84].mxu1 %v8214_v37 }
 0xc42   :  { %v8476_v37 = vpop.permute.xlu0 %8475 }
 0xce3   :  { %v9454_v44 = vpop.f32.mrb[72].mxu1 }
 0xce4   :  { %v8265_v48 = vadd.f32 %v9454_v44, %v13053_v27  ;;  %v8256_v46 = vpop.f32.mrb[73].mxu1 }
 0xce5   :  { %v8257_v19 = vadd.f32 %v13053_v27, %v8256_v46  ;;  %v9455_v23 = vpop.f32.mrb[74].mxu1  ;;  %v8478_v46 = vpop.permute.xlu1 %8477 }
 0xce6   :  { %v9033_v41 = vmul.f32 -1.442695, %v8265_v48  ;;  %v8268_v54 = vadd.f32 %v9455_v23, %v13053_v27  ;;  %v8259_v17 = vpop.f32.mrb[75].mxu1 }
 0xce7   :  { %v9031_v26 = vmul.f32 -1.442695, %v8257_v19  ;;  %v8260_v29 = vadd.f32 %v13053_v27, %v8259_v17 }
 0xce8   :  { %10467 = vpow2.f32 %v9033_v41  ;;  %v9034_v32 = vmul.f32 -1.442695, %v8268_v54 }
 0xce9   :  { %10469 = vpow2.f32 %v9031_v26  ;;  %v9032_v11 = vmul.f32 -1.442695, %v8260_v29 }
 0xcea   :  { %10471 = vpow2.f32 %v9034_v32 }
 0xceb   :  { %10473 = vpow2.f32 %v9032_v11 }
 0xcf2   :  { %v10468_v9 = vpop.eup %10467 }
 0xcf3   :  { %v10470_v60 = vpop.eup %10469  ;;  %v8369_v55 = vadd.f32 1.0, %v10468_v9  ;;  %v9458_v43 = vpop.f32.mrb[76].mxu1 }
 0xcf4   :  { %v10472_v35 = vpop.eup %10471  ;;  %v8367_v1 = vadd.f32 1.0, %v10470_v60  ;;  %v8281_v4 = vadd.f32 %v9458_v43, %v13053_v27  ;;  %v8272_v51 = vpop.f32.mrb[77].mxu1 }
 0xcf5   :  { %v10474_v34 = vpop.eup %10473  ;;  %10475 = vrcp.f32 %v8369_v55  ;;  %v8370_v31 = vadd.f32 1.0, %v10472_v35  ;;  %v8273_v6 = vadd.f32 %v13053_v27, %v8272_v51  ;;  %v9459_v36 = vpop.f32.mrb[78].mxu1 }
 0xcf6   :  { %10477 = vrcp.f32 %v8367_v1  ;;  %v8368_v24 = vadd.f32 1.0, %v10474_v34  ;;  %v9037_v40 = vmul.f32 -1.442695, %v8281_v4  ;;  %v8284_v30 = vadd.f32 %v9459_v36, %v13053_v27  ;;  %v8275_v3 = vpop.f32.mrb[79].mxu1 }
 0xcf7   :  { %10479 = vrcp.f32 %v8370_v31  ;;  %v9035_v18 = vmul.f32 -1.442695, %v8273_v6  ;;  %v8276_v15 = vadd.f32 %v13053_v27, %v8275_v3 }
 0xcf8   :  { %10481 = vrcp.f32 %v8368_v24  ;;  %v9038_v56 = vmul.f32 -1.442695, %v8284_v30  ;;  %v8482_v30 = vpop.permute.xlu1 %8481 }
 0xcf9   :  { %10483 = vpow2.f32 %v9037_v40  ;;  %v9036_v57 = vmul.f32 -1.442695, %v8276_v15  ;;  %v8480_v40 = vpop.permute.xlu0 %8479 }
 0xcfa   :  { %10485 = vpow2.f32 %v9035_v18 }
 0xcfb   :  { %10487 = vpow2.f32 %v9038_v56 }
 0xcfc   :  { %10489 = vpow2.f32 %v9036_v57 }
 0xcfd   :  { %v8484_v3 = vpop.permute.xlu0 %8483 }
 0xcff   :  { %v10476_v61 = vpop.eup %10475 }
 0xd00   :  { %v10478_v50 = vpop.eup %10477  ;;  %8417 = vst [vmem:[%s13194_s11 + $0x10] sm:$0xff] %v10476_v61 }
 0xd01   :  { %v10480_v0 = vpop.eup %10479  ;;  %8415 = vst [vmem:[%s13194_s11] sm:$0xff] %v10478_v50  ;;  %8514 = vst.msk [vmem:[%s13194_s11 + $0x10] sm:$0xff] %vm8511_vm3, %v8468_v58 }
 0xd02   :  { %v10482_v7 = vpop.eup %10481  ;;  %8418 = vst [vmem:[%s13194_s11 + $0x18] sm:$0xff] %v10480_v0  ;;  %8512 = vst.msk [vmem:[%s13194_s11] sm:$0xff] %vm8511_vm3, %v8464_v8 }
 0xd03   :  { %v10484_v63 = vpop.eup %10483  ;;  %8416 = vst [vmem:[%s13194_s11 + $0x8] sm:$0xff] %v10482_v7  ;;  %v9462_v21 = vpop.f32.mrb[80].mxu1  ;;  %8515 = vst.msk [vmem:[%s13194_s11 + $0x18] sm:$0xff] %vm8511_vm3, %v8470_v14 }
 0xd04   :  { %v10486_v38 = vpop.eup %10485  ;;  %v8373_v25 = vadd.f32 1.0, %v10484_v63  ;;  %v8297_v45 = vadd.f32 %v9462_v21, %v13053_v27  ;;  %v8288_v42 = vpop.f32.mrb[81].mxu1  ;;  %8513 = vst.msk [vmem:[%s13194_s11 + $0x8] sm:$0xff] %vm8511_vm3, %v8466_v12 }
 0xd05   :  { %v10488_v28 = vpop.eup %10487  ;;  %v8371_v13 = vadd.f32 1.0, %v10486_v38  ;;  %v8289_v39 = vadd.f32 %v13053_v27, %v8288_v42  ;;  %v9463_v33 = vpop.f32.mrb[82].mxu1 }
 0xd06   :  { %v10490_v53 = vpop.eup %10489  ;;  %10491 = vrcp.f32 %v8373_v25  ;;  %v8374_v2 = vadd.f32 1.0, %v10488_v28  ;;  %v9041_v59 = vmul.f32 -1.442695, %v8297_v45  ;;  %v8300_v62 = vadd.f32 %v9463_v33, %v13053_v27  ;;  %v8291_v16 = vpop.f32.mrb[83].mxu1 }
 0xd07   :  { %10493 = vrcp.f32 %v8371_v13  ;;  %v8372_v47 = vadd.f32 1.0, %v10490_v53  ;;  %v9039_v52 = vmul.f32 -1.442695, %v8289_v39  ;;  %v8292_v49 = vadd.f32 %v13053_v27, %v8291_v16  ;;  %v8488_v63 = vpop.permute.xlu0 %8487 }
 0xd08   :  { %10495 = vrcp.f32 %v8374_v2  ;;  %v9042_v20 = vmul.f32 -1.442695, %v8300_v62 }
 0xd09   :  { %10497 = vrcp.f32 %v8372_v47  ;;  %v9040_v5 = vmul.f32 -1.442695, %v8292_v49 }
 0xd0a   :  { %10499 = vpow2.f32 %v9041_v59 }
 0xd0b   :  { %10501 = vpow2.f32 %v9039_v52  ;;  %v8492_v38 = vpop.permute.xlu0 %8491 }
 0xd0c   :  { %10503 = vpow2.f32 %v9042_v20 }
 0xd0d   :  { %10505 = vpow2.f32 %v9040_v5 }
 0xd10   :  { %v10492_v44 = vpop.eup %10491 }
 0xd11   :  { %v10494_v48 = vpop.eup %10493  ;;  %8421 = vst [vmem:[%s13194_s11 + $0x30] sm:$0xff] %v10492_v44 }
 0xd12   :  { %v10496_v19 = vpop.eup %10495  ;;  %8419 = vst [vmem:[%s13194_s11 + $0x20] sm:$0xff] %v10494_v48  ;;  %8518 = vst.msk [vmem:[%s13194_s11 + $0x30] sm:$0xff] %vm8511_vm3, %v8476_v37 }
 0xd13   :  { %v10498_v23 = vpop.eup %10497  ;;  %8422 = vst [vmem:[%s13194_s11 + $0x38] sm:$0xff] %v10496_v19  ;;  %v9466_v41 = vpop.f32.mrb[84].mxu1  ;;  %8516 = vst.msk [vmem:[%s13194_s11 + $0x20] sm:$0xff] %vm8511_vm3, %v8472_v10 }
 0xd14   :  { %v10500_v54 = vpop.eup %10499  ;;  %8420 = vst [vmem:[%s13194_s11 + $0x28] sm:$0xff] %v10498_v23  ;;  %v8313_v17 = vadd.f32 %v9466_v41, %v13053_v27  ;;  %v8304_v26 = vpop.f32.mrb[85].mxu1  ;;  %8519 = vst.msk [vmem:[%s13194_s11 + $0x38] sm:$0xff] %vm8511_vm3, %v8478_v46 }
 0xd15   :  { %v10502_v29 = vpop.eup %10501  ;;  %v8377_v32 = vadd.f32 1.0, %v10500_v54  ;;  %v8305_v11 = vadd.f32 %v13053_v27, %v8304_v26  ;;  %v9467_v9 = vpop.f32.mrb[86].mxu1  ;;  %8517 = vst.msk [vmem:[%s13194_s11 + $0x28] sm:$0xff] %vm8511_vm3, %v8474_v22 }
 0xd16   :  { %v10504_v60 = vpop.eup %10503  ;;  %v8375_v55 = vadd.f32 1.0, %v10502_v29  ;;  %v8316_v43 = vadd.f32 %v9467_v9, %v13053_v27  ;;  %v8307_v35 = vpop.f32.mrb[87].mxu1  ;;  %v9045_v51 = vmul.f32 -1.442695, %v8313_v17 }
 0xd17   :  { %v10506_v1 = vpop.eup %10505  ;;  %10507 = vrcp.f32 %v8377_v32  ;;  %v8378_v4 = vadd.f32 1.0, %v10504_v60  ;;  %v8308_v34 = vadd.f32 %v13053_v27, %v8307_v35  ;;  %v9043_v6 = vmul.f32 -1.442695, %v8305_v11  ;;  %v8486_v27 = vpop.permute.xlu1 %8485 }
 0xd18   :  { %10509 = vrcp.f32 %v8375_v55  ;;  %v8376_v31 = vadd.f32 1.0, %v10506_v1  ;;  %v9046_v36 = vmul.f32 -1.442695, %v8316_v43 }
 0xd19   :  { %10511 = vrcp.f32 %v8378_v4  ;;  %v9044_v24 = vmul.f32 -1.442695, %v8308_v34 }
 0xd1a   :  { %10513 = vrcp.f32 %v8376_v31 }
 0xd1b   :  { %10515 = vpow2.f32 %v9045_v51  ;;  %v8490_v21 = vpop.permute.xlu1 %8489 }
 0xd1c   :  { %10517 = vpow2.f32 %v9043_v6 }
 0xd1d   :  { %10519 = vpow2.f32 %v9046_v36 }
 0xd1e   :  { %10521 = vpow2.f32 %v9044_v24 }
 0xd1f   :  { %v8494_v42 = vpop.permute.xlu1 %8493 }
 0xd21   :  { %v10508_v18 = vpop.eup %10507 }
 0xd22   :  { %v10510_v15 = vpop.eup %10509  ;;  %8425 = vst [vmem:[%s13194_s11 + $0x50] sm:$0xff] %v10508_v18 }
 0xd23   :  { %v10512_v56 = vpop.eup %10511  ;;  %8423 = vst [vmem:[%s13194_s11 + $0x40] sm:$0xff] %v10510_v15  ;;  %8522 = vst.msk [vmem:[%s13194_s11 + $0x50] sm:$0xff] %vm8511_vm3, %v8484_v3 }
 0xd24   :  { %v10514_v8 = vpop.eup %10513  ;;  %8426 = vst [vmem:[%s13194_s11 + $0x58] sm:$0xff] %v10512_v56  ;;  %8520 = vst.msk [vmem:[%s13194_s11 + $0x40] sm:$0xff] %vm8511_vm3, %v8480_v40 }
 0xd25   :  { %v10516_v57 = vpop.eup %10515  ;;  %8424 = vst [vmem:[%s13194_s11 + $0x48] sm:$0xff] %v10514_v8  ;;  %8523 = vst.msk [vmem:[%s13194_s11 + $0x58] sm:$0xff] %vm8511_vm3, %v8486_v27 }
 0xd26   :  { %v10518_v12 = vpop.eup %10517  ;;  %v8381_v58 = vadd.f32 1.0, %v10516_v57  ;;  %8521 = vst.msk [vmem:[%s13194_s11 + $0x48] sm:$0xff] %vm8511_vm3, %v8482_v30 }
 0xd27   :  { %v10520_v61 = vpop.eup %10519  ;;  %v8379_v50 = vadd.f32 1.0, %v10518_v12 }
 0xd28   :  { %v10522_v14 = vpop.eup %10521  ;;  %10523 = vrcp.f32 %v8381_v58  ;;  %v8382_v0 = vadd.f32 1.0, %v10520_v61 }
 0xd29   :  { %10525 = vrcp.f32 %v8379_v50  ;;  %v8380_v7 = vadd.f32 1.0, %v10522_v14 }
 0xd2a   :  { %10527 = vrcp.f32 %v8382_v0 }
 0xd2b   :  { %10529 = vrcp.f32 %v8380_v7 }
 0xd32   :  { %v10524_v25 = vpop.eup %10523 }
 0xd33   :  { %v10526_v45 = vpop.eup %10525  ;;  %8429 = vst [vmem:[%s13194_s11 + $0x70] sm:$0xff] %v10524_v25 }
 0xd34   :  { %v10528_v28 = vpop.eup %10527  ;;  %8427 = vst [vmem:[%s13194_s11 + $0x60] sm:$0xff] %v10526_v45  ;;  %8526 = vst.msk [vmem:[%s13194_s11 + $0x70] sm:$0xff] %vm8511_vm3, %v8492_v38 }
 0xd35   :  { %v10530_v13 = vpop.eup %10529  ;;  %8430 = vst [vmem:[%s13194_s11 + $0x78] sm:$0xff] %v10528_v28  ;;  %8524 = vst.msk [vmem:[%s13194_s11 + $0x60] sm:$0xff] %vm8511_vm3, %v8488_v63 }
 0xd36   :  { %8428 = vst [vmem:[%s13194_s11 + $0x68] sm:$0xff] %v10530_v13  ;;  %8527 = vst.msk [vmem:[%s13194_s11 + $0x78] sm:$0xff] %vm8511_vm3, %v8494_v42 }
 0xd37   :  { %8525 = vst.msk [vmem:[%s13194_s11 + $0x68] sm:$0xff] %vm8511_vm3, %v8490_v21 }
 0xd38   :  { %8532 = vsyncpa [#allocation9], 1 }
 0xd39   :  { %8533 = vsyncpa [#allocation11], 1 }
 0xd3a   :  { %8534 = vsyncpa [#allocation14], 1 }
 0xd3b   :  { %8535 = vsyncmov [#allocation7] }
 0xd3e   :  { %s8536_s7 = vpop.sfrf %8535 }
 0xd3f   :  { %p9047_p6 = scmp.ne.s32.totalorder %s8536_s7, 0 }
 0xd41   :  { %8540 = shalt.err (%p9047_p6)  }
 0xd42   :  { %8542 = vsyncmov [#allocation7 + $0x1] }
 0xd45   :  { %s8543_s5 = vpop.sfrf %8542 }
 0xd46   :  { %p9048_p7 = scmp.ne.s32.totalorder %s8543_s5, 0 }
 0xd48   :  { %8547 = shalt.err (%p9048_p7)  }
 0xd49   :  { %8549 = vsyncmov [#allocation7 + $0x2] }
 0xd4c   :  { %s8550_s2 = vpop.sfrf %8549 }
 0xd4d   :  { %p9049_p8 = scmp.ne.s32.totalorder %s8550_s2, 0 }
 0xd4f   :  { %8554 = shalt.err (%p9049_p8)  }
 0xd50   :  { %8556 = vsyncmov [#allocation7 + $0x3] }
 0xd53   :  { %s8557_s13 = vpop.sfrf %8556 }
 0xd54   :  { %p9050_p9 = scmp.ne.s32.totalorder %s8557_s13, 0 }
 0xd56   :  { %8561 = shalt.err (%p9050_p9)  }
 0xd57   :  { %8563 = vsyncmov [#allocation7 + $0x4] }
 0xd5a   :  { %s8564_s11 = vpop.sfrf %8563 }
 0xd5b   :  { %p9051_p10 = scmp.ne.s32.totalorder %s8564_s11, 0 }
 0xd5d   :  { %8568 = shalt.err (%p9051_p10)  }

</bundles_post_ra>
